<compile_context>
chip_gen: v7x
topology: tpu7x:2x2x1
jax: 0.10.0
libtpu: 0.0.40
codegen_flags: <defaults>
</compile_context>

<pallas_src>
import jax
import jax.numpy as jnp
from jax import lax
from jax.experimental import pallas as pl
from jax.experimental.pallas import tpu as pltpu


def _round_up(x, m):
    return (x + m - 1) // m * m


def rnn_kernel(xi_ref, eprojT_ref, whh_ref, wlin_ref, blin_ref, out_ref, h_ref):
    """One batch tile of the RNN recurrence + classifier (batch-in-lanes layout).

    xi_ref     : (T, TN)  int32   token ids for this batch tile (time-major)
    eprojT_ref : (Hp, Dp) float32 fused  W_ih @ E.T + b_ih + b_hh
    whh_ref    : (Hp, Hp) float32 W_hh (PyTorch layout, zero-padded)
    wlin_ref   : (Cp, Hp) float32 classifier weight (PyTorch layout, zero-padded)
    blin_ref   : (Cp, 1)  float32 classifier bias
    out_ref    : (Cp, TN) float32 sigmoid(W_lin h_T + b_lin), transposed
    h_ref      : (Hp, TN) float32 VMEM scratch hidden state (never a full SSA
                                  value -> no vreg-file spill churn)
    """
    T, TN = xi_ref.shape
    Hp, Dp = eprojT_ref.shape

    # Fresh zero hidden state for this batch tile (matches self.init()).
    h_ref[...] = jnp.zeros_like(h_ref)

    # Two independent sub-batch chains (128-aligned lane halves) when wide enough:
    # lets the scheduler overlap one chain's tanh (EUP) with the other's matmul
    # (MXU) on the otherwise strictly serial MXU -> EUP -> MXU recurrence.
    if TN % 256 == 0:
        bounds = (0, TN // 2, TN)
    else:
        bounds = (0, TN)

    def step(t):
        for lo, hi in zip(bounds[:-1], bounds[1:]):
            sz = hi - lo
            idx = xi_ref[pl.ds(t, 1), pl.ds(lo, sz)]                       # (1, sz)
            onehot = (lax.broadcasted_iota(jnp.int32, (Dp, sz), 0)
                      == idx).astype(jnp.float32)                          # (Dp, sz)
            # In-kernel embedding gather + input projection as a small MXU matmul;
            # it does not depend on h, so it overlaps the recurrent dot.
            x_t = jnp.dot(eprojT_ref[...], onehot,
                          preferred_element_type=jnp.float32)              # (Hp, sz)
            g = jnp.dot(whh_ref[...], h_ref[:, pl.ds(lo, sz)],
                        preferred_element_type=jnp.float32)                # (Hp, sz)
            h_ref[:, pl.ds(lo, sz)] = jnp.tanh(x_t + g)

    if T <= 32:
        # Short, static trip count: full unroll gives the LLO scheduler visibility.
        for t in range(T):
            step(t)
    else:
        # Long sequences: rolled loop (dynamic sublane index into xi_ref).
        @pl.loop(0, T)
        def _(t):
            step(t)

    # Classifier head on the final hidden state; lane-dense (Cp, TN) store.
    logits = (jnp.dot(wlin_ref[...], h_ref[...],
                      preferred_element_type=jnp.float32) + blin_ref[...])
    out_ref[...] = jax.nn.sigmoid(logits)


def rnn_class_forward(x_idx, embed_w, w_ih, w_hh, b_ih, b_hh, w_lin, b_lin):
    """Forward pass matching rnn_class.forward (style='RNN', num_layers=1).

    x_idx   : (N, T) int32 token indices
    embed_w : (D, W) embedding table
    w_ih    : (H, W) RNN weight_ih_l0      w_hh : (H, H) weight_hh_l0
    b_ih    : (H,)   bias_ih_l0            b_hh : (H,)   bias_hh_l0
    w_lin   : (C, H) Linear weight         b_lin: (C,)   Linear bias
    returns : (N, C) float32
    """
    N, T = x_idx.shape
    D = embed_w.shape[0]
    H = w_hh.shape[0]
    C = w_lin.shape[0]

    Hp = _round_up(H, 128)     # lane/MXU granularity (200 -> 256)
    Dp = _round_up(D, 128)     # one-hot contraction dim
    Cp = _round_up(C, 8)       # sublane granularity for the tiny class dim

    # Batch tiling: single tile for small N; >=2 tiles for N>128 (v7x megacore),
    # fattened up to 512 rows to amortize grid overhead on single-TC v5e/v6e.
    if N <= 128:
        TN = _round_up(N, 8)
        Np = TN
    else:
        TN = min(512, _round_up(-(-N // 2), 128))
        Np = _round_up(N, TN)

    f32 = jnp.float32
    # Host-side algebraic fusion: embedding + input projection + both biases
    # collapse into one (Hp, Dp) table; the recurrence only sees x_t + W_hh h.
    e_projT = (w_ih.astype(f32) @ embed_w.astype(f32).T
               + (b_ih.astype(f32) + b_hh.astype(f32))[:, None])           # (H, D)
    e_projT = jnp.pad(e_projT, ((0, Hp - H), (0, Dp - D)))                  # (Hp, Dp)

    whh = jnp.pad(w_hh.astype(f32), ((0, Hp - H), (0, Hp - H)))             # (Hp, Hp)
    wlin = jnp.pad(w_lin.astype(f32), ((0, Cp - C), (0, Hp - H)))           # (Cp, Hp)
    blin = jnp.pad(b_lin.astype(f32).reshape(C, 1), ((0, Cp - C), (0, 0)))  # (Cp, 1)

    # Only the token ids go through HBM (time-major, batch padded).
    xi = jnp.pad(x_idx.T.astype(jnp.int32), ((0, 0), (0, Np - N)))          # (T, Np)

    out = pl.pallas_call(
        rnn_kernel,
        out_shape=jax.ShapeDtypeStruct((Cp, Np), f32),
        grid_spec=pltpu.PrefetchScalarGridSpec(
            num_scalar_prefetch=0,
            grid=(Np // TN,),
            in_specs=[
                pl.BlockSpec((T, TN), lambda i: (0, i)),    # token ids (tiny)
                pl.BlockSpec((Hp, Dp), lambda i: (0, 0)),   # fused embed+proj table
                pl.BlockSpec((Hp, Hp), lambda i: (0, 0)),   # W_hh
                pl.BlockSpec((Cp, Hp), lambda i: (0, 0)),   # W_lin
                pl.BlockSpec((Cp, 1), lambda i: (0, 0)),    # b_lin
            ],
            out_specs=pl.BlockSpec((Cp, TN), lambda i: (0, i)),
            scratch_shapes=[pltpu.VMEM((Hp, TN), f32)],     # hidden state
        ),
        compiler_params=pltpu.CompilerParams(
            dimension_semantics=("parallel",)),
    )(xi, e_projT, whh, wlin, blin)

    return out[:C, :N].T


def _reference_forward(x_idx, embed_w, w_ih, w_hh, b_ih, b_hh, w_lin, b_lin):
    """Plain-JAX reference mirroring torch semantics, for a sanity check."""
    N, T = x_idx.shape
    H = w_hh.shape[0]
    emb = embed_w[x_idx]                       # (N, T, W)
    h = jnp.zeros((N, H), jnp.float32)
    for t in range(T):
        h = jnp.tanh(emb[:, t, :] @ w_ih.T + b_ih + h @ w_hh.T + b_hh)
    return jax.nn.sigmoid(h @ w_lin.T + b_lin)


if __name__ == "__main__":
    # Module hyperparameters (hidden_dim is hard-coded to 200 in the module).
    D = 100      # input_dim (vocab size)
    W = 50       # word_vec_dim
    H = 200      # hidden_dim
    C = 2        # class_num
    N = 4        # batch
    T = 8        # sentence_len

    key = jax.random.PRNGKey(0)
    k_emb, k_ih, k_hh, k_bih, k_bhh, k_lw, k_lb, k_x = jax.random.split(key, 8)

    # Deterministic synthetic parameters (shapes match nn.Embedding / nn.RNN / nn.Linear).
    embed_w = jax.random.normal(k_emb, (D, W), jnp.float32) * 0.1
    embed_w = embed_w.at[0].set(0.0)           # padding_idx=0 row
    w_ih = jax.random.normal(k_ih, (H, W), jnp.float32) * 0.1
    w_hh = jax.random.normal(k_hh, (H, H), jnp.float32) * 0.1
    b_ih = jax.random.normal(k_bih, (H,), jnp.float32) * 0.1
    b_hh = jax.random.normal(k_bhh, (H,), jnp.float32) * 0.1
    w_lin = jax.random.normal(k_lw, (C, H), jnp.float32) * 0.1
    b_lin = jax.random.normal(k_lb, (C,), jnp.float32) * 0.1

    x_idx = jax.random.randint(k_x, (N, T), 0, D, dtype=jnp.int32)

    out = rnn_class_forward(x_idx, embed_w, w_ih, w_hh, b_ih, b_hh, w_lin, b_lin)
    out = jax.block_until_ready(out)

    ref = _reference_forward(x_idx, embed_w, w_ih, w_hh, b_ih, b_hh, w_lin, b_lin)
    assert out.shape == (N, C)
    assert jnp.max(jnp.abs(out - ref)) < 1e-4

    print("KERNEL_OK")
</pallas_src>

<mosaic_0001>
module attributes {stable_mosaic.version = 11 : i64} {
  func.func @rnn_kernel(%arg0: i32, %arg1: memref<8x8xi32, #tpu.memory_space<vmem>>, %arg2: memref<256x128xf32, #tpu.memory_space<vmem>>, %arg3: memref<256x256xf32, #tpu.memory_space<vmem>>, %arg4: memref<8x256xf32, #tpu.memory_space<vmem>>, %arg5: memref<8x1xf32, #tpu.memory_space<vmem>>, %arg6: memref<8x8xf32, #tpu.memory_space<vmem>>, %arg7: memref<256x8xf32, #tpu.memory_space<vmem>>) attributes {dimension_semantics = [#tpu.dimension_semantics<parallel>], iteration_bounds = array<i64: 1>, scalar_prefetch = 0 : i64, scratch_operands = 1 : i64, tpu.core_type = #tpu.core_type<tc>, window_params = [{transform_indices = @transform_0, window_bounds = array<i64: 8, 8>}, {pipeline_mode = #tpu.pipeline_mode<synchronous>, transform_indices = @transform_1, window_bounds = array<i64: 256, 128>}, {pipeline_mode = #tpu.pipeline_mode<synchronous>, transform_indices = @transform_2, window_bounds = array<i64: 256, 256>}, {pipeline_mode = #tpu.pipeline_mode<synchronous>, transform_indices = @transform_3, window_bounds = array<i64: 8, 256>}, {pipeline_mode = #tpu.pipeline_mode<synchronous>, transform_indices = @transform_4, window_bounds = array<i64: 8, 1>}, {transform_indices = @transform_5, window_bounds = array<i64: 8, 8>}]} {
    %cst = arith.constant 0.000000e+00 : f32
    %0 = vector.broadcast %cst : f32 to vector<256x8xf32>
    %c0 = arith.constant 0 : index
    %c0_0 = arith.constant 0 : index
    %1 = vector.load %arg7[%c0, %c0_0] : memref<256x8xf32, #tpu.memory_space<vmem>>, vector<256x8xf32>
    tpu.vector_store %arg7[%c0, %c0_0], %0 {strides = array<i32>} : memref<256x8xf32, #tpu.memory_space<vmem>>, vector<256x8xf32>,
    %c0_1 = arith.constant 0 : index
    %c0_2 = arith.constant 0 : index
    %2 = vector.load %arg1[%c0_1, %c0_2] : memref<8x8xi32, #tpu.memory_space<vmem>>, vector<1x8xi32>
    %3 = tpu.iota {dimensions = array<i32: 0>} : vector<128x8xi32>
    %4 = vector.broadcast %2 : vector<1x8xi32> to vector<128x8xi32>
    %5 = arith.cmpi eq, %3, %4 : vector<128x8xi32>
    %6 = arith.extui %5 : vector<128x8xi1> to vector<128x8xi32>
    %7 = arith.sitofp %6 : vector<128x8xi32> to vector<128x8xf32>
    %c0_3 = arith.constant 0 : index
    %c0_4 = arith.constant 0 : index
    %8 = vector.load %arg2[%c0_3, %c0_4] : memref<256x128xf32, #tpu.memory_space<vmem>>, vector<256x128xf32>
    %cst_5 = arith.constant dense<0.000000e+00> : vector<256x8xf32>
    %9 = tpu.matmul %8, %7, %cst_5 {dimension_numbers = #tpu.dot_dimension_numbers<[1], [0], [0], [1], [0, 0, 1, 1], [], []>} : vector<256x128xf32>, vector<128x8xf32>, vector<256x8xf32> -> vector<256x8xf32>
    %c0_6 = arith.constant 0 : index
    %c0_7 = arith.constant 0 : index
    %10 = vector.load %arg3[%c0_6, %c0_7] : memref<256x256xf32, #tpu.memory_space<vmem>>, vector<256x256xf32>
    %c0_8 = arith.constant 0 : index
    %c0_9 = arith.constant 0 : index
    %11 = vector.load %arg7[%c0_8, %c0_9] : memref<256x8xf32, #tpu.memory_space<vmem>>, vector<256x8xf32>
    %cst_10 = arith.constant dense<0.000000e+00> : vector<256x8xf32>
    %12 = tpu.matmul %10, %11, %cst_10 {dimension_numbers = #tpu.dot_dimension_numbers<[1], [0], [0], [1], [0, 0, 1, 1], [], []>} : vector<256x256xf32>, vector<256x8xf32>, vector<256x8xf32> -> vector<256x8xf32>
    %13 = arith.addf %9, %12 : vector<256x8xf32>
    %14 = math.tanh %13 : vector<256x8xf32>
    %c0_11 = arith.constant 0 : index
    %c0_12 = arith.constant 0 : index
    %15 = vector.load %arg7[%c0_11, %c0_12] : memref<256x8xf32, #tpu.memory_space<vmem>>, vector<256x8xf32>
    tpu.vector_store %arg7[%c0_11, %c0_12], %14 {strides = array<i32>} : memref<256x8xf32, #tpu.memory_space<vmem>>, vector<256x8xf32>,
    %c1 = arith.constant 1 : index
    %c0_13 = arith.constant 0 : index
    %16 = vector.load %arg1[%c1, %c0_13] : memref<8x8xi32, #tpu.memory_space<vmem>>, vector<1x8xi32>
    %17 = tpu.iota {dimensions = array<i32: 0>} : vector<128x8xi32>
    %18 = vector.broadcast %16 : vector<1x8xi32> to vector<128x8xi32>
    %19 = arith.cmpi eq, %17, %18 : vector<128x8xi32>
    %20 = arith.extui %19 : vector<128x8xi1> to vector<128x8xi32>
    %21 = arith.sitofp %20 : vector<128x8xi32> to vector<128x8xf32>
    %c0_14 = arith.constant 0 : index
    %c0_15 = arith.constant 0 : index
    %22 = vector.load %arg2[%c0_14, %c0_15] : memref<256x128xf32, #tpu.memory_space<vmem>>, vector<256x128xf32>
    %cst_16 = arith.constant dense<0.000000e+00> : vector<256x8xf32>
    %23 = tpu.matmul %22, %21, %cst_16 {dimension_numbers = #tpu.dot_dimension_numbers<[1], [0], [0], [1], [0, 0, 1, 1], [], []>} : vector<256x128xf32>, vector<128x8xf32>, vector<256x8xf32> -> vector<256x8xf32>
    %c0_17 = arith.constant 0 : index
    %c0_18 = arith.constant 0 : index
    %24 = vector.load %arg3[%c0_17, %c0_18] : memref<256x256xf32, #tpu.memory_space<vmem>>, vector<256x256xf32>
    %c0_19 = arith.constant 0 : index
    %c0_20 = arith.constant 0 : index
    %25 = vector.load %arg7[%c0_19, %c0_20] : memref<256x8xf32, #tpu.memory_space<vmem>>, vector<256x8xf32>
    %cst_21 = arith.constant dense<0.000000e+00> : vector<256x8xf32>
    %26 = tpu.matmul %24, %25, %cst_21 {dimension_numbers = #tpu.dot_dimension_numbers<[1], [0], [0], [1], [0, 0, 1, 1], [], []>} : vector<256x256xf32>, vector<256x8xf32>, vector<256x8xf32> -> vector<256x8xf32>
    %27 = arith.addf %23, %26 : vector<256x8xf32>
    %28 = math.tanh %27 : vector<256x8xf32>
    %c0_22 = arith.constant 0 : index
    %c0_23 = arith.constant 0 : index
    %29 = vector.load %arg7[%c0_22, %c0_23] : memref<256x8xf32, #tpu.memory_space<vmem>>, vector<256x8xf32>
    tpu.vector_store %arg7[%c0_22, %c0_23], %28 {strides = array<i32>} : memref<256x8xf32, #tpu.memory_space<vmem>>, vector<256x8xf32>,
    %c2 = arith.constant 2 : index
    %c0_24 = arith.constant 0 : index
    %30 = vector.load %arg1[%c2, %c0_24] : memref<8x8xi32, #tpu.memory_space<vmem>>, vector<1x8xi32>
    %31 = tpu.iota {dimensions = array<i32: 0>} : vector<128x8xi32>
    %32 = vector.broadcast %30 : vector<1x8xi32> to vector<128x8xi32>
    %33 = arith.cmpi eq, %31, %32 : vector<128x8xi32>
    %34 = arith.extui %33 : vector<128x8xi1> to vector<128x8xi32>
    %35 = arith.sitofp %34 : vector<128x8xi32> to vector<128x8xf32>
    %c0_25 = arith.constant 0 : index
    %c0_26 = arith.constant 0 : index
    %36 = vector.load %arg2[%c0_25, %c0_26] : memref<256x128xf32, #tpu.memory_space<vmem>>, vector<256x128xf32>
    %cst_27 = arith.constant dense<0.000000e+00> : vector<256x8xf32>
    %37 = tpu.matmul %36, %35, %cst_27 {dimension_numbers = #tpu.dot_dimension_numbers<[1], [0], [0], [1], [0, 0, 1, 1], [], []>} : vector<256x128xf32>, vector<128x8xf32>, vector<256x8xf32> -> vector<256x8xf32>
    %c0_28 = arith.constant 0 : index
    %c0_29 = arith.constant 0 : index
    %38 = vector.load %arg3[%c0_28, %c0_29] : memref<256x256xf32, #tpu.memory_space<vmem>>, vector<256x256xf32>
    %c0_30 = arith.constant 0 : index
    %c0_31 = arith.constant 0 : index
    %39 = vector.load %arg7[%c0_30, %c0_31] : memref<256x8xf32, #tpu.memory_space<vmem>>, vector<256x8xf32>
    %cst_32 = arith.constant dense<0.000000e+00> : vector<256x8xf32>
    %40 = tpu.matmul %38, %39, %cst_32 {dimension_numbers = #tpu.dot_dimension_numbers<[1], [0], [0], [1], [0, 0, 1, 1], [], []>} : vector<256x256xf32>, vector<256x8xf32>, vector<256x8xf32> -> vector<256x8xf32>
    %41 = arith.addf %37, %40 : vector<256x8xf32>
    %42 = math.tanh %41 : vector<256x8xf32>
    %c0_33 = arith.constant 0 : index
    %c0_34 = arith.constant 0 : index
    %43 = vector.load %arg7[%c0_33, %c0_34] : memref<256x8xf32, #tpu.memory_space<vmem>>, vector<256x8xf32>
    tpu.vector_store %arg7[%c0_33, %c0_34], %42 {strides = array<i32>} : memref<256x8xf32, #tpu.memory_space<vmem>>, vector<256x8xf32>,
    %c3 = arith.constant 3 : index
    %c0_35 = arith.constant 0 : index
    %44 = vector.load %arg1[%c3, %c0_35] : memref<8x8xi32, #tpu.memory_space<vmem>>, vector<1x8xi32>
    %45 = tpu.iota {dimensions = array<i32: 0>} : vector<128x8xi32>
    %46 = vector.broadcast %44 : vector<1x8xi32> to vector<128x8xi32>
    %47 = arith.cmpi eq, %45, %46 : vector<128x8xi32>
    %48 = arith.extui %47 : vector<128x8xi1> to vector<128x8xi32>
    %49 = arith.sitofp %48 : vector<128x8xi32> to vector<128x8xf32>
    %c0_36 = arith.constant 0 : index
    %c0_37 = arith.constant 0 : index
    %50 = vector.load %arg2[%c0_36, %c0_37] : memref<256x128xf32, #tpu.memory_space<vmem>>, vector<256x128xf32>
    %cst_38 = arith.constant dense<0.000000e+00> : vector<256x8xf32>
    %51 = tpu.matmul %50, %49, %cst_38 {dimension_numbers = #tpu.dot_dimension_numbers<[1], [0], [0], [1], [0, 0, 1, 1], [], []>} : vector<256x128xf32>, vector<128x8xf32>, vector<256x8xf32> -> vector<256x8xf32>
    %c0_39 = arith.constant 0 : index
    %c0_40 = arith.constant 0 : index
    %52 = vector.load %arg3[%c0_39, %c0_40] : memref<256x256xf32, #tpu.memory_space<vmem>>, vector<256x256xf32>
    %c0_41 = arith.constant 0 : index
    %c0_42 = arith.constant 0 : index
    %53 = vector.load %arg7[%c0_41, %c0_42] : memref<256x8xf32, #tpu.memory_space<vmem>>, vector<256x8xf32>
    %cst_43 = arith.constant dense<0.000000e+00> : vector<256x8xf32>
    %54 = tpu.matmul %52, %53, %cst_43 {dimension_numbers = #tpu.dot_dimension_numbers<[1], [0], [0], [1], [0, 0, 1, 1], [], []>} : vector<256x256xf32>, vector<256x8xf32>, vector<256x8xf32> -> vector<256x8xf32>
    %55 = arith.addf %51, %54 : vector<256x8xf32>
    %56 = math.tanh %55 : vector<256x8xf32>
    %c0_44 = arith.constant 0 : index
    %c0_45 = arith.constant 0 : index
    %57 = vector.load %arg7[%c0_44, %c0_45] : memref<256x8xf32, #tpu.memory_space<vmem>>, vector<256x8xf32>
    tpu.vector_store %arg7[%c0_44, %c0_45], %56 {strides = array<i32>} : memref<256x8xf32, #tpu.memory_space<vmem>>, vector<256x8xf32>,
    %c4 = arith.constant 4 : index
    %c0_46 = arith.constant 0 : index
    %58 = vector.load %arg1[%c4, %c0_46] : memref<8x8xi32, #tpu.memory_space<vmem>>, vector<1x8xi32>
    %59 = tpu.iota {dimensions = array<i32: 0>} : vector<128x8xi32>
    %60 = vector.broadcast %58 : vector<1x8xi32> to vector<128x8xi32>
    %61 = arith.cmpi eq, %59, %60 : vector<128x8xi32>
    %62 = arith.extui %61 : vector<128x8xi1> to vector<128x8xi32>
    %63 = arith.sitofp %62 : vector<128x8xi32> to vector<128x8xf32>
    %c0_47 = arith.constant 0 : index
    %c0_48 = arith.constant 0 : index
    %64 = vector.load %arg2[%c0_47, %c0_48] : memref<256x128xf32, #tpu.memory_space<vmem>>, vector<256x128xf32>
    %cst_49 = arith.constant dense<0.000000e+00> : vector<256x8xf32>
    %65 = tpu.matmul %64, %63, %cst_49 {dimension_numbers = #tpu.dot_dimension_numbers<[1], [0], [0], [1], [0, 0, 1, 1], [], []>} : vector<256x128xf32>, vector<128x8xf32>, vector<256x8xf32> -> vector<256x8xf32>
    %c0_50 = arith.constant 0 : index
    %c0_51 = arith.constant 0 : index
    %66 = vector.load %arg3[%c0_50, %c0_51] : memref<256x256xf32, #tpu.memory_space<vmem>>, vector<256x256xf32>
    %c0_52 = arith.constant 0 : index
    %c0_53 = arith.constant 0 : index
    %67 = vector.load %arg7[%c0_52, %c0_53] : memref<256x8xf32, #tpu.memory_space<vmem>>, vector<256x8xf32>
    %cst_54 = arith.constant dense<0.000000e+00> : vector<256x8xf32>
    %68 = tpu.matmul %66, %67, %cst_54 {dimension_numbers = #tpu.dot_dimension_numbers<[1], [0], [0], [1], [0, 0, 1, 1], [], []>} : vector<256x256xf32>, vector<256x8xf32>, vector<256x8xf32> -> vector<256x8xf32>
    %69 = arith.addf %65, %68 : vector<256x8xf32>
    %70 = math.tanh %69 : vector<256x8xf32>
    %c0_55 = arith.constant 0 : index
    %c0_56 = arith.constant 0 : index
    %71 = vector.load %arg7[%c0_55, %c0_56] : memref<256x8xf32, #tpu.memory_space<vmem>>, vector<256x8xf32>
    tpu.vector_store %arg7[%c0_55, %c0_56], %70 {strides = array<i32>} : memref<256x8xf32, #tpu.memory_space<vmem>>, vector<256x8xf32>,
    %c5 = arith.constant 5 : index
    %c0_57 = arith.constant 0 : index
    %72 = vector.load %arg1[%c5, %c0_57] : memref<8x8xi32, #tpu.memory_space<vmem>>, vector<1x8xi32>
    %73 = tpu.iota {dimensions = array<i32: 0>} : vector<128x8xi32>
    %74 = vector.broadcast %72 : vector<1x8xi32> to vector<128x8xi32>
    %75 = arith.cmpi eq, %73, %74 : vector<128x8xi32>
    %76 = arith.extui %75 : vector<128x8xi1> to vector<128x8xi32>
    %77 = arith.sitofp %76 : vector<128x8xi32> to vector<128x8xf32>
    %c0_58 = arith.constant 0 : index
    %c0_59 = arith.constant 0 : index
    %78 = vector.load %arg2[%c0_58, %c0_59] : memref<256x128xf32, #tpu.memory_space<vmem>>, vector<256x128xf32>
    %cst_60 = arith.constant dense<0.000000e+00> : vector<256x8xf32>
    %79 = tpu.matmul %78, %77, %cst_60 {dimension_numbers = #tpu.dot_dimension_numbers<[1], [0], [0], [1], [0, 0, 1, 1], [], []>} : vector<256x128xf32>, vector<128x8xf32>, vector<256x8xf32> -> vector<256x8xf32>
    %c0_61 = arith.constant 0 : index
    %c0_62 = arith.constant 0 : index
    %80 = vector.load %arg3[%c0_61, %c0_62] : memref<256x256xf32, #tpu.memory_space<vmem>>, vector<256x256xf32>
    %c0_63 = arith.constant 0 : index
    %c0_64 = arith.constant 0 : index
    %81 = vector.load %arg7[%c0_63, %c0_64] : memref<256x8xf32, #tpu.memory_space<vmem>>, vector<256x8xf32>
    %cst_65 = arith.constant dense<0.000000e+00> : vector<256x8xf32>
    %82 = tpu.matmul %80, %81, %cst_65 {dimension_numbers = #tpu.dot_dimension_numbers<[1], [0], [0], [1], [0, 0, 1, 1], [], []>} : vector<256x256xf32>, vector<256x8xf32>, vector<256x8xf32> -> vector<256x8xf32>
    %83 = arith.addf %79, %82 : vector<256x8xf32>
    %84 = math.tanh %83 : vector<256x8xf32>
    %c0_66 = arith.constant 0 : index
    %c0_67 = arith.constant 0 : index
    %85 = vector.load %arg7[%c0_66, %c0_67] : memref<256x8xf32, #tpu.memory_space<vmem>>, vector<256x8xf32>
    tpu.vector_store %arg7[%c0_66, %c0_67], %84 {strides = array<i32>} : memref<256x8xf32, #tpu.memory_space<vmem>>, vector<256x8xf32>,
    %c6 = arith.constant 6 : index
    %c0_68 = arith.constant 0 : index
    %86 = vector.load %arg1[%c6, %c0_68] : memref<8x8xi32, #tpu.memory_space<vmem>>, vector<1x8xi32>
    %87 = tpu.iota {dimensions = array<i32: 0>} : vector<128x8xi32>
    %88 = vector.broadcast %86 : vector<1x8xi32> to vector<128x8xi32>
    %89 = arith.cmpi eq, %87, %88 : vector<128x8xi32>
    %90 = arith.extui %89 : vector<128x8xi1> to vector<128x8xi32>
    %91 = arith.sitofp %90 : vector<128x8xi32> to vector<128x8xf32>
    %c0_69 = arith.constant 0 : index
    %c0_70 = arith.constant 0 : index
    %92 = vector.load %arg2[%c0_69, %c0_70] : memref<256x128xf32, #tpu.memory_space<vmem>>, vector<256x128xf32>
    %cst_71 = arith.constant dense<0.000000e+00> : vector<256x8xf32>
    %93 = tpu.matmul %92, %91, %cst_71 {dimension_numbers = #tpu.dot_dimension_numbers<[1], [0], [0], [1], [0, 0, 1, 1], [], []>} : vector<256x128xf32>, vector<128x8xf32>, vector<256x8xf32> -> vector<256x8xf32>
    %c0_72 = arith.constant 0 : index
    %c0_73 = arith.constant 0 : index
    %94 = vector.load %arg3[%c0_72, %c0_73] : memref<256x256xf32, #tpu.memory_space<vmem>>, vector<256x256xf32>
    %c0_74 = arith.constant 0 : index
    %c0_75 = arith.constant 0 : index
    %95 = vector.load %arg7[%c0_74, %c0_75] : memref<256x8xf32, #tpu.memory_space<vmem>>, vector<256x8xf32>
    %cst_76 = arith.constant dense<0.000000e+00> : vector<256x8xf32>
    %96 = tpu.matmul %94, %95, %cst_76 {dimension_numbers = #tpu.dot_dimension_numbers<[1], [0], [0], [1], [0, 0, 1, 1], [], []>} : vector<256x256xf32>, vector<256x8xf32>, vector<256x8xf32> -> vector<256x8xf32>
    %97 = arith.addf %93, %96 : vector<256x8xf32>
    %98 = math.tanh %97 : vector<256x8xf32>
    %c0_77 = arith.constant 0 : index
    %c0_78 = arith.constant 0 : index
    %99 = vector.load %arg7[%c0_77, %c0_78] : memref<256x8xf32, #tpu.memory_space<vmem>>, vector<256x8xf32>
    tpu.vector_store %arg7[%c0_77, %c0_78], %98 {strides = array<i32>} : memref<256x8xf32, #tpu.memory_space<vmem>>, vector<256x8xf32>,
    %c7 = arith.constant 7 : index
    %c0_79 = arith.constant 0 : index
    %100 = vector.load %arg1[%c7, %c0_79] : memref<8x8xi32, #tpu.memory_space<vmem>>, vector<1x8xi32>
    %101 = tpu.iota {dimensions = array<i32: 0>} : vector<128x8xi32>
    %102 = vector.broadcast %100 : vector<1x8xi32> to vector<128x8xi32>
    %103 = arith.cmpi eq, %101, %102 : vector<128x8xi32>
    %104 = arith.extui %103 : vector<128x8xi1> to vector<128x8xi32>
    %105 = arith.sitofp %104 : vector<128x8xi32> to vector<128x8xf32>
    %c0_80 = arith.constant 0 : index
    %c0_81 = arith.constant 0 : index
    %106 = vector.load %arg2[%c0_80, %c0_81] : memref<256x128xf32, #tpu.memory_space<vmem>>, vector<256x128xf32>
    %cst_82 = arith.constant dense<0.000000e+00> : vector<256x8xf32>
    %107 = tpu.matmul %106, %105, %cst_82 {dimension_numbers = #tpu.dot_dimension_numbers<[1], [0], [0], [1], [0, 0, 1, 1], [], []>} : vector<256x128xf32>, vector<128x8xf32>, vector<256x8xf32> -> vector<256x8xf32>
    %c0_83 = arith.constant 0 : index
    %c0_84 = arith.constant 0 : index
    %108 = vector.load %arg3[%c0_83, %c0_84] : memref<256x256xf32, #tpu.memory_space<vmem>>, vector<256x256xf32>
    %c0_85 = arith.constant 0 : index
    %c0_86 = arith.constant 0 : index
    %109 = vector.load %arg7[%c0_85, %c0_86] : memref<256x8xf32, #tpu.memory_space<vmem>>, vector<256x8xf32>
    %cst_87 = arith.constant dense<0.000000e+00> : vector<256x8xf32>
    %110 = tpu.matmul %108, %109, %cst_87 {dimension_numbers = #tpu.dot_dimension_numbers<[1], [0], [0], [1], [0, 0, 1, 1], [], []>} : vector<256x256xf32>, vector<256x8xf32>, vector<256x8xf32> -> vector<256x8xf32>
    %111 = arith.addf %107, %110 : vector<256x8xf32>
    %112 = math.tanh %111 : vector<256x8xf32>
    %c0_88 = arith.constant 0 : index
    %c0_89 = arith.constant 0 : index
    %113 = vector.load %arg7[%c0_88, %c0_89] : memref<256x8xf32, #tpu.memory_space<vmem>>, vector<256x8xf32>
    tpu.vector_store %arg7[%c0_88, %c0_89], %112 {strides = array<i32>} : memref<256x8xf32, #tpu.memory_space<vmem>>, vector<256x8xf32>,
    %c0_90 = arith.constant 0 : index
    %c0_91 = arith.constant 0 : index
    %114 = vector.load %arg4[%c0_90, %c0_91] : memref<8x256xf32, #tpu.memory_space<vmem>>, vector<8x256xf32>
    %c0_92 = arith.constant 0 : index
    %c0_93 = arith.constant 0 : index
    %115 = vector.load %arg7[%c0_92, %c0_93] : memref<256x8xf32, #tpu.memory_space<vmem>>, vector<256x8xf32>
    %cst_94 = arith.constant dense<0.000000e+00> : vector<8x8xf32>
    %116 = tpu.matmul %114, %115, %cst_94 {dimension_numbers = #tpu.dot_dimension_numbers<[1], [0], [0], [1], [0, 0, 1, 1], [], []>} : vector<8x256xf32>, vector<256x8xf32>, vector<8x8xf32> -> vector<8x8xf32>
    %c0_95 = arith.constant 0 : index
    %c0_96 = arith.constant 0 : index
    %117 = vector.load %arg5[%c0_95, %c0_96] : memref<8x1xf32, #tpu.memory_space<vmem>>, vector<8x1xf32>
    %118 = vector.broadcast %117 : vector<8x1xf32> to vector<8x8xf32>
    %119 = arith.addf %116, %118 : vector<8x8xf32>
    %120 = arith.negf %119 : vector<8x8xf32>
    %121 = math.exp %120 : vector<8x8xf32>
    %cst_97 = arith.constant 1.000000e+00 : f32
    %122 = vector.broadcast %cst_97 : f32 to vector<8x8xf32>
    %123 = arith.addf %122, %121 : vector<8x8xf32>
    %124 = arith.divf %122, %123 : vector<8x8xf32>
    %c0_98 = arith.constant 0 : index
    %c0_99 = arith.constant 0 : index
    %125 = vector.load %arg6[%c0_98, %c0_99] : memref<8x8xf32, #tpu.memory_space<vmem>>, vector<8x8xf32>
    tpu.vector_store %arg6[%c0_98, %c0_99], %124 {strides = array<i32>} : memref<8x8xf32, #tpu.memory_space<vmem>>, vector<8x8xf32>,
    return
  }
  func.func @transform_0(%arg0: i32) -> (i32, i32) {
    %c0_i32 = arith.constant 0 : i32
    %c0_i32_0 = arith.constant 0 : i32
    return %c0_i32, %arg0 : i32, i32
  }
  func.func @transform_1(%arg0: i32) -> (i32, i32) {
    %c0_i32 = arith.constant 0 : i32
    %c0_i32_0 = arith.constant 0 : i32
    %c0_i32_1 = arith.constant 0 : i32
    return %c0_i32, %c0_i32_0 : i32, i32
  }
  func.func @transform_2(%arg0: i32) -> (i32, i32) {
    %c0_i32 = arith.constant 0 : i32
    %c0_i32_0 = arith.constant 0 : i32
    %c0_i32_1 = arith.constant 0 : i32
    return %c0_i32, %c0_i32_0 : i32, i32
  }
  func.func @transform_3(%arg0: i32) -> (i32, i32) {
    %c0_i32 = arith.constant 0 : i32
    %c0_i32_0 = arith.constant 0 : i32
    %c0_i32_1 = arith.constant 0 : i32
    return %c0_i32, %c0_i32_0 : i32, i32
  }
  func.func @transform_4(%arg0: i32) -> (i32, i32) {
    %c0_i32 = arith.constant 0 : i32
    %c0_i32_0 = arith.constant 0 : i32
    %c0_i32_1 = arith.constant 0 : i32
    return %c0_i32, %c0_i32_0 : i32, i32
  }
  func.func @transform_5(%arg0: i32) -> (i32, i32) {
    %c0_i32 = arith.constant 0 : i32
    %c0_i32_0 = arith.constant 0 : i32
    return %c0_i32, %arg0 : i32, i32
  }
}

</mosaic_0001>

<bundles_post_ra>
// kernel: tpu_custom_call.1
= control target key start
LH: loop header
LB: loop body
LE: loop exit
PB: predicated region body
PF: predicated region fallthrough
CT: control target
= control target key end

     0   :  { %10 = vsyncpa [#allocation4], 0  ;;  %s11522_s0 = inlined_call_operand.hbm [shape: s32[8,8], index: 0, kind: input, shape index: {}]   ;;  %s11523_s1 = inlined_call_operand.hbm [shape: f32[256,128], index: 1, kind: input, shape index: {}]   ;;  %s11524_s2 = inlined_call_operand.hbm [shape: f32[256,256], index: 2, kind: input, shape index: {}]   ;;  %s11525_s3 = inlined_call_operand.vmem [shape: f32[8,256], index: 3, kind: input, shape index: {}]   ;;  %s11526_s4 = inlined_call_operand.vmem [shape: f32[8,1], index: 4, kind: input, shape index: {}]   ;;  %s11527_s5 = inlined_call_operand.hbm [shape: f32[8,8], index: 5, kind: output, shape index: {}]  }
   0x1   :  { %11 = vsyncpa [#allocation7], 0 }
   0x2   :  { %12 = vsyncpa [#allocation5], 0  ;;  %s8447_s18 = smov [#allocation6]   ;;  %s8353_s22 = scalar_lea.hbm %s11523_s1, 4096 }
   0x3   :  { %s28_s19 = sshll.u32 %s8447_s18, 4  ;;  %p8354_p0 = scmp.ne.s32.totalorder %s11523_s1, %s8353_s22  ;;  %s29_s19 = int_to_ptr.vmem [resolvable:$true] %s28_s19 }
   0x4   :  { %p8357_p1 = scmp.lt.u32.totalorder %s8353_s22, %s11523_s1 }
   0x6   :  { %p8359_p2 = pnand %p8357_p1, %p8354_p0 }
   0x8   :  { %8362 = shalt.err (!%p8359_p2)
}
   0x9   :  { %s8363_s27 = scalar_lea.vmem %s29_s19, 4096  ;;  %p8368_p4 = scmp.lt.s32.totalorder %s29_s19, %s29_s19 }
   0xa   :  { %p8364_p3 = scmp.ne.s32.totalorder %s29_s19, %s8363_s27  ;;  %p8369_p5 = scmp.lt.s32.totalorder %s8363_s27, %s8363_s27 }
   0xc   :  { %p8370_p6 = por %p8369_p5, %p8368_p4 }
   0xe   :  { %p8371_p7 = pnand %p8370_p6, %p8364_p3 }
  0x10   :  { %8374 = shalt.err (!%p8371_p7)
}
  0x11   :  { %s8448_s28 = smov 128   ;;  %s8449_s29 = smov 8  }
  0x12   :  { %34 = dma.hbm_to_vmem [thread:$0]  %s11523_s1, 4096, %s29_s19, [#allocation7], %s8448_s28, %s8448_s28, %s8449_s29  }
  0x13   :  { %s8450_s7 = smov [#allocation3]   ;;  %s8451_s9 = smov [#allocation8]  }
  0x14   :  { %s19_s8 = sshll.u32 %s8450_s7, 4  ;;  %s40_s10 = sshll.u32 %s8451_s9, 4  ;;  %s20_s8 = int_to_ptr.vmem [resolvable:$true] %s19_s8  ;;  %s41_s10 = int_to_ptr.vmem [resolvable:$true] %s40_s10 }
  0x15   :  { %s8375_s13 = scalar_lea.hbm %s11522_s0, 128 }
  0x16   :  { %p8376_p8 = scmp.ne.s32.totalorder %s11522_s0, %s8375_s13  ;;  %p8379_p9 = scmp.lt.u32.totalorder %s8375_s13, %s11522_s0 }
  0x18   :  { %p8381_p10 = pnand %p8379_p9, %p8376_p8 }
  0x1a   :  { %8384 = shalt.err (!%p8381_p10)
}
  0x1b   :  { %s8385_s1 = scalar_lea.vmem %s20_s8, 128  ;;  %p8390_p12 = scmp.lt.s32.totalorder %s20_s8, %s20_s8 }
  0x1c   :  { %p8386_p11 = scmp.ne.s32.totalorder %s20_s8, %s8385_s1  ;;  %p8391_p13 = scmp.lt.s32.totalorder %s8385_s1, %s8385_s1 }
  0x1e   :  { %p8392_p0 = por %p8391_p13, %p8390_p12 }
  0x20   :  { %p8393_p1 = pnand %p8392_p0, %p8386_p11 }
  0x22   :  { %8396 = shalt.err (!%p8393_p1)
}
  0x23   :  { %22 = dma.hbm_to_vmem [thread:$0]  %s11522_s0, 128, %s20_s8, [#allocation4]  }
  0x24   :  { %s8397_s22 = scalar_lea.hbm %s11524_s2, 8192 }
  0x25   :  { %p8398_p2 = scmp.ne.s32.totalorder %s11524_s2, %s8397_s22  ;;  %p8401_p3 = scmp.lt.u32.totalorder %s8397_s22, %s11524_s2 }
  0x27   :  { %p8403_p4 = pnand %p8401_p3, %p8398_p2 }
  0x29   :  { %8406 = shalt.err (!%p8403_p4)
}
  0x2a   :  { %s8407_s27 = scalar_lea.vmem %s41_s10, 8192  ;;  %p8412_p6 = scmp.lt.s32.totalorder %s41_s10, %s41_s10 }
  0x2b   :  { %p8408_p5 = scmp.ne.s32.totalorder %s41_s10, %s8407_s27  ;;  %p8413_p7 = scmp.lt.s32.totalorder %s8407_s27, %s8407_s27 }
  0x2d   :  { %p8414_p8 = por %p8413_p7, %p8412_p6 }
  0x2f   :  { %p8415_p9 = pnand %p8414_p8, %p8408_p5 }
  0x31   :  { %8418 = shalt.err (!%p8415_p9)
}
  0x32   :  { %s8452_s0 = smov 256   ;;  %s8453_s28 = smov 16  }
  0x33   :  { %46 = dma.hbm_to_vmem [thread:$0]  %s11524_s2, 8192, %s41_s10, [#allocation7], %s8452_s0, %s8452_s0, %s8453_s28  }
  0x34   :  { %8441 = dma.done.wait [#allocation4], 128  }
  0x35   :  { %8442 = vsyncadd [#allocation4], 4294967168 }
  0x36   :  { %8443 = dma.done.wait [#allocation7], 12288  }
  0x37   :  { %8444 = vsyncadd [#allocation7], 4294955008  ;;  %vm60_vm0 = vcmask 64512   ;;  %v94_v0 = vlaneseq  ;;  %v11528_v1 = vmov 0.0|0.0   ;;  %v8455_v2 = vmov 0.0   ;;  %v8571_v8 = vld [vmem:[#allocation6] sm:$0xff] }
  0x38   :  { %7127 = vmatprep.subr.bf16.mxu0 %v11528_v1  ;;  %61 = vst.msk [vmem:[#allocation2] sm:$0xff] %vm60_vm0, %v8455_v2  ;;  %62 = vst.msk [vmem:[#allocation2 + $0x8] sm:$0xff] %vm60_vm0, %v8455_v2  ;;  %v8563_v5 = vld [vmem:[#allocation3] ss:$0 sm:$0xff]  ;;  %6519 = vmatprep.mubr.f32.mxu1 %v8571_v8  ;;  %v11530_v19 = vmov 1.0|1.0  }
  0x39   :  { %63 = vst.msk [vmem:[#allocation2 + $0x10] sm:$0xff] %vm60_vm0, %v8455_v2  ;;  %64 = vst.msk [vmem:[#allocation2 + $0x18] sm:$0xff] %vm60_vm0, %v8455_v2  ;;  %v8558_v3 = vshrl.u32 %v94_v0, 7  ;;  %v8634_v33 = vld [vmem:[#allocation8 + $0x8] sm:$0xff]  ;;  %v8712_v61 = vld [vmem:[#allocation6 + $0x10] sm:$0xff]  ;;  %s8458_s10 = smov [#allocation9]  }
  0x3a   :  { %65 = vst.msk [vmem:[#allocation2 + $0x20] sm:$0xff] %vm60_vm0, %v8455_v2  ;;  %66 = vst.msk [vmem:[#allocation2 + $0x28] sm:$0xff] %vm60_vm0, %v8455_v2  ;;  %355 = vmatprep.mubr.f32.mxu0 %v8634_v33  ;;  %v8709_v58 = vld [vmem:[#allocation6 + $0x8] sm:$0xff]  ;;  %v8717_v63 = vld [vmem:[#allocation6 + $0x18] sm:$0xff]  ;;  %s5793_s11 = sshll.u32 %s8458_s10, 4  ;;  %s5794_s11 = int_to_ptr.vmem [resolvable:$true] %s5793_s11 }
  0x3b   :  { %67 = vst.msk [vmem:[#allocation2 + $0x30] sm:$0xff] %vm60_vm0, %v8455_v2  ;;  %68 = vst.msk [vmem:[#allocation2 + $0x38] sm:$0xff] %vm60_vm0, %v8455_v2  ;;  %v8561_v4 = vadd.s32 8, %v8558_v3  ;;  %v8566_v6 = vadd.s32 16, %v8558_v3  ;;  %v8569_v7 = vadd.s32 24, %v8558_v3  ;;  %vm115_vm1 = vcmp.eq.s32.totalorder %v8558_v3, %v8563_v5  ;;  %v8745_v32 = vld [vmem:[#allocation6 + $0x58] sm:$0xff]  ;;  %p8424_p11 = scmp.lt.s32.totalorder %s5794_s11, %s5794_s11 }
  0x3c   :  { %69 = vst.msk [vmem:[#allocation2 + $0x40] sm:$0xff] %vm60_vm0, %v8455_v2  ;;  %70 = vst.msk [vmem:[#allocation2 + $0x48] sm:$0xff] %vm60_vm0, %v8455_v2  ;;  %v8579_v14 = vadd.s32 32, %v8558_v3  ;;  %v8582_v15 = vadd.s32 40, %v8558_v3  ;;  %v8599_v21 = vadd.s32 48, %v8558_v3  ;;  %v8602_v22 = vadd.s32 56, %v8558_v3 }
  0x3d   :  { %71 = vst.msk [vmem:[#allocation2 + $0x50] sm:$0xff] %vm60_vm0, %v8455_v2  ;;  %72 = vst.msk [vmem:[#allocation2 + $0x58] sm:$0xff] %vm60_vm0, %v8455_v2  ;;  %vm116_vm2 = vcmp.eq.s32.totalorder %v8561_v4, %v8563_v5  ;;  %vm117_vm3 = vcmp.eq.s32.totalorder %v8566_v6, %v8563_v5  ;;  %vm118_vm4 = vcmp.eq.s32.totalorder %v8569_v7, %v8563_v5  ;;  %v8618_v27 = vadd.s32 64, %v8558_v3  ;;  %v8759_v45 = vld [vmem:[#allocation6 + $0x78] sm:$0xff]  ;;  %s8419_s12 = scalar_lea.vmem %s5794_s11, 128 }
  0x3e   :  { %73 = vst.msk [vmem:[#allocation2 + $0x60] sm:$0xff] %vm60_vm0, %v8455_v2  ;;  %74 = vst.msk [vmem:[#allocation2 + $0x68] sm:$0xff] %vm60_vm0, %v8455_v2  ;;  %vm119_vm7 = vcmp.eq.s32.totalorder %v8579_v14, %v8563_v5  ;;  %vm120_vm8 = vcmp.eq.s32.totalorder %v8582_v15, %v8563_v5  ;;  %vm121_vm10 = vcmp.eq.s32.totalorder %v8599_v21, %v8563_v5  ;;  %v8621_v28 = vadd.s32 72, %v8558_v3  ;;  %p8420_p10 = scmp.ne.s32.totalorder %s5794_s11, %s8419_s12  ;;  %p8425_p12 = scmp.lt.s32.totalorder %s8419_s12, %s8419_s12 }
  0x3f   :  { %75 = vst.msk [vmem:[#allocation2 + $0x70] sm:$0xff] %vm60_vm0, %v8455_v2  ;;  %76 = vst.msk [vmem:[#allocation2 + $0x78] sm:$0xff] %vm60_vm0, %v8455_v2  ;;  %v259_v9 = vld [vmem:[#allocation2] sm:$0xff]  ;;  %v260_v10 = vld [vmem:[#allocation2 + $0x8] sm:$0xff]  ;;  %vm122_vm11 = vcmp.eq.s32.totalorder %v8602_v22, %v8563_v5  ;;  %vm123_vm13 = vcmp.eq.s32.totalorder %v8618_v27, %v8563_v5  ;;  %v8641_v34 = vadd.s32 80, %v8558_v3  ;;  %v8644_v35 = vadd.s32 88, %v8558_v3 }
  0x40   :  { %77 = vst.msk [vmem:[#allocation2 + $0x80] sm:$0xff] %vm60_vm0, %v8455_v2  ;;  %78 = vst.msk [vmem:[#allocation2 + $0x88] sm:$0xff] %vm60_vm0, %v8455_v2  ;;  %v261_v11 = vld [vmem:[#allocation2 + $0x10] sm:$0xff]  ;;  %v7128_v12 = vpack.c.bf16 %v260_v10, %v259_v9  ;;  %v262_v13 = vld [vmem:[#allocation2 + $0x18] sm:$0xff]  ;;  %vm124_vm14 = vcmp.eq.s32.totalorder %v8621_v28, %v8563_v5  ;;  %v8663_v40 = vadd.s32 96, %v8558_v3  ;;  %v8666_v41 = vadd.s32 104, %v8558_v3  ;;  %p8426_p13 = por %p8425_p12, %p8424_p11 }
  0x41   :  { %79 = vst.msk [vmem:[#allocation2 + $0x90] sm:$0xff] %vm60_vm0, %v8455_v2  ;;  %80 = vst.msk [vmem:[#allocation2 + $0x98] sm:$0xff] %vm60_vm0, %v8455_v2  ;;  %v7131_v16 = vpack.c.bf16 %v262_v13, %v261_v11  ;;  %v263_v17 = vld [vmem:[#allocation2 + $0x20] sm:$0xff]  ;;  %v264_v18 = vld [vmem:[#allocation2 + $0x28] sm:$0xff]  ;;  %v8684_v46 = vadd.s32 112, %v8558_v3  ;;  %v8687_v47 = vadd.s32 120, %v8558_v3 }
  0x42   :  { %81 = vst.msk [vmem:[#allocation2 + $0xa0] sm:$0xff] %vm60_vm0, %v8455_v2  ;;  %82 = vst.msk [vmem:[#allocation2 + $0xa8] sm:$0xff] %vm60_vm0, %v8455_v2  ;;  %7129 = vmatpush1.bf16.msra.mxu0 %v7128_v12  ;;  %v7134_v23 = vpack.c.bf16 %v264_v18, %v263_v17  ;;  %v265_v24 = vld [vmem:[#allocation2 + $0x30] sm:$0xff]  ;;  %v266_v25 = vld [vmem:[#allocation2 + $0x38] sm:$0xff]  ;;  %p8427_p0 = pnand %p8426_p13, %p8420_p10 }
  0x43   :  { %83 = vst.msk [vmem:[#allocation2 + $0xb0] sm:$0xff] %vm60_vm0, %v8455_v2  ;;  %84 = vst.msk [vmem:[#allocation2 + $0xb8] sm:$0xff] %vm60_vm0, %v8455_v2  ;;  %7130 = vmatprep.subr.bf16.mxu0 %v11528_v1  ;;  %v7137_v29 = vpack.c.bf16 %v266_v25, %v265_v24  ;;  %v267_v30 = vld [vmem:[#allocation2 + $0x40] sm:$0xff]  ;;  %v268_v31 = vld [vmem:[#allocation2 + $0x48] sm:$0xff] }
  0x44   :  { %85 = vst.msk [vmem:[#allocation2 + $0xc0] sm:$0xff] %vm60_vm0, %v8455_v2  ;;  %86 = vst.msk [vmem:[#allocation2 + $0xc8] sm:$0xff] %vm60_vm0, %v8455_v2  ;;  %v7140_v36 = vpack.c.bf16 %v268_v31, %v267_v30  ;;  %v269_v37 = vld [vmem:[#allocation2 + $0x50] sm:$0xff]  ;;  %v270_v38 = vld [vmem:[#allocation2 + $0x58] sm:$0xff] }
  0x45   :  { %87 = vst.msk [vmem:[#allocation2 + $0xd0] sm:$0xff] %vm60_vm0, %v8455_v2  ;;  %88 = vst.msk [vmem:[#allocation2 + $0xd8] sm:$0xff] %vm60_vm0, %v8455_v2  ;;  %v7143_v42 = vpack.c.bf16 %v270_v38, %v269_v37  ;;  %v271_v43 = vld [vmem:[#allocation2 + $0x60] sm:$0xff]  ;;  %v272_v44 = vld [vmem:[#allocation2 + $0x68] sm:$0xff] }
  0x46   :  { %89 = vst.msk [vmem:[#allocation2 + $0xe0] sm:$0xff] %vm60_vm0, %v8455_v2  ;;  %90 = vst.msk [vmem:[#allocation2 + $0xe8] sm:$0xff] %vm60_vm0, %v8455_v2  ;;  %7132 = vmatpush1.bf16.msra.mxu0 %v7131_v16  ;;  %v7146_v48 = vpack.c.bf16 %v272_v44, %v271_v43  ;;  %v273_v49 = vld [vmem:[#allocation2 + $0x70] sm:$0xff]  ;;  %v274_v50 = vld [vmem:[#allocation2 + $0x78] sm:$0xff] }
  0x47   :  { %91 = vst.msk [vmem:[#allocation2 + $0xf0] sm:$0xff] %vm60_vm0, %v8455_v2  ;;  %92 = vst.msk [vmem:[#allocation2 + $0xf8] sm:$0xff] %vm60_vm0, %v8455_v2  ;;  %7133 = vmatprep.subr.bf16.mxu0 %v11528_v1  ;;  %v7149_v51 = vpack.c.bf16 %v274_v50, %v273_v49  ;;  %v275_v52 = vld [vmem:[#allocation2 + $0x80] sm:$0xff]  ;;  %v276_v53 = vld [vmem:[#allocation2 + $0x88] sm:$0xff] }
  0x48   :  { %11843 = vst [vmem:[#allocation13_spill] sm:$0xff] %v8558_v3  ;;  %11844 = vst [vmem:[#allocation14_spill] sm:$0xff] %v8561_v4  ;;  %v7152_v54 = vpack.c.bf16 %v276_v53, %v275_v52  ;;  %v277_v55 = vld [vmem:[#allocation2 + $0x90] sm:$0xff]  ;;  %v278_v56 = vld [vmem:[#allocation2 + $0x98] sm:$0xff] }
  0x49   :  { %11845 = vst [vmem:[#allocation15_spill] sm:$0xff] %v8566_v6  ;;  %11846 = vst [vmem:[#allocation16_spill] sm:$0xff] %v8569_v7  ;;  %v7155_v57 = vpack.c.bf16 %v278_v56, %v277_v55  ;;  %v279_v59 = vld [vmem:[#allocation2 + $0xa0] sm:$0xff]  ;;  %v280_v60 = vld [vmem:[#allocation2 + $0xa8] sm:$0xff] }
  0x4a   :  { %11847 = vst [vmem:[#allocation17_spill] sm:$0xff] %v8579_v14  ;;  %11848 = vst [vmem:[#allocation18_spill] sm:$0xff] %v8582_v15  ;;  %7135 = vmatpush1.bf16.msra.mxu0 %v7134_v23  ;;  %v7158_v62 = vpack.c.bf16 %v280_v60, %v279_v59  ;;  %v281_v0 = vld [vmem:[#allocation2 + $0xb0] sm:$0xff]  ;;  %v282_v2 = vld [vmem:[#allocation2 + $0xb8] sm:$0xff] }
  0x4b   :  { %vm7175_vm5 = vmpackc.low %vm116_vm2, %vm115_vm1  ;;  %11851 = vst [vmem:[#allocation19_spill] sm:$0xff] %v8599_v21  ;;  %7136 = vmatprep.subr.bf16.mxu0 %v11528_v1  ;;  %vm125_vm1 = vcmp.eq.s32.totalorder %v8641_v34, %v8563_v5  ;;  %vm126_vm2 = vcmp.eq.s32.totalorder %v8644_v35, %v8563_v5  ;;  %v7161_v9 = vpack.c.bf16 %v282_v2, %v281_v0  ;;  %v8724_v10 = vld [vmem:[#allocation6 + $0x28] sm:$0xff]  ;;  %v283_v11 = vld [vmem:[#allocation2 + $0xc0] sm:$0xff] }
  0x4c   :  { %7176 = vmatprep.subr.msk.bf16.mxu1 %vm7175_vm5, %v11530_v19  ;;  %vm8590_vm6 = vmpackc.low %vm118_vm4, %vm117_vm3  ;;  %11852 = vst [vmem:[#allocation20_spill] sm:$0xff] %v8602_v22  ;;  %vm127_vm4 = vcmp.eq.s32.totalorder %v8663_v40, %v8563_v5  ;;  %v284_v12 = vld [vmem:[#allocation2 + $0xc8] sm:$0xff]  ;;  %v8727_v13 = vld [vmem:[#allocation6 + $0x30] sm:$0xff] }
  0x4d   :  { %7178 = vmatpush3.bf16.msk.msra.mxu1 %vm7175_vm5, %v11530_v19  ;;  %vm8609_vm9 = vmpackc.low %vm120_vm8, %vm119_vm7  ;;  %11855 = vst [vmem:[#allocation21_spill] sm:$0xff] %v8618_v27  ;;  %vm128_vm5 = vcmp.eq.s32.totalorder %v8666_v41, %v8563_v5  ;;  %vm129_vm7 = vcmp.eq.s32.totalorder %v8684_v46, %v8563_v5  ;;  %vm130_vm8 = vcmp.eq.s32.totalorder %v8687_v47, %v8563_v5  ;;  %v8720_v5 = vld [vmem:[#allocation6 + $0x20] sm:$0xff]  ;;  %v8731_v17 = vld [vmem:[#allocation6 + $0x38] sm:$0xff] }
  0x4e   :  { %7180 = vmatprep.subr.msk.bf16.mxu1 %vm8590_vm6, %v11530_v19  ;;  %11856 = vst [vmem:[#allocation22_spill] sm:$0xff] %v8621_v28  ;;  %vm8630_vm12 = vmpackc.low %vm122_vm11, %vm121_vm10  ;;  %7138 = vmatpush1.bf16.msra.mxu0 %v7137_v29  ;;  %v7164_v16 = vpack.c.bf16 %v284_v12, %v283_v11  ;;  %v285_v18 = vld [vmem:[#allocation2 + $0xd0] sm:$0xff]  ;;  %v286_v20 = vld [vmem:[#allocation2 + $0xd8] sm:$0xff] }
  0x4f   :  { %11859 = vst [vmem:[#allocation23_spill] sm:$0xff] %v8641_v34  ;;  %11860 = vst [vmem:[#allocation24_spill] sm:$0xff] %v8644_v35  ;;  %7139 = vmatprep.subr.bf16.mxu0 %v11528_v1  ;;  %v8734_v23 = vld [vmem:[#allocation6 + $0x40] sm:$0xff]  ;;  %v7167_v24 = vpack.c.bf16 %v286_v20, %v285_v18  ;;  %v8738_v25 = vld [vmem:[#allocation6 + $0x48] sm:$0xff] }
  0x50   :  { %vm8654_vm15 = vmpackc.low %vm124_vm14, %vm123_vm13  ;;  %11863 = vst [vmem:[#allocation25_spill] sm:$0xff] %v8663_v40  ;;  %v287_v26 = vld [vmem:[#allocation2 + $0xe0] sm:$0xff]  ;;  %v288_v29 = vld [vmem:[#allocation2 + $0xe8] sm:$0xff] }
  0x51   :  { %7182 = vmatpush3.bf16.msk.msra.mxu1 %vm8590_vm6, %v11530_v19  ;;  %11864 = vst [vmem:[#allocation26_spill] sm:$0xff] %v8666_v41  ;;  %vm8675_vm3 = vmpackc.low %vm126_vm2, %vm125_vm1  ;;  %v8741_v30 = vld [vmem:[#allocation6 + $0x50] sm:$0xff]  ;;  %v7170_v31 = vpack.c.bf16 %v288_v29, %v287_v26  ;;  %v8748_v38 = vld [vmem:[#allocation6 + $0x60] sm:$0xff] }
  0x52   :  { %7184 = vmatprep.subr.msk.bf16.mxu1 %vm8609_vm9, %v11530_v19  ;;  %7141 = vmatpush1.bf16.msra.mxu0 %v7140_v36  ;;  %11867 = vst [vmem:[#allocation27_spill] sm:$0xff] %v8684_v46  ;;  %11868 = vst [vmem:[#allocation28_spill] sm:$0xff] %v8687_v47  ;;  %v289_v36 = vld [vmem:[#allocation2 + $0xf0] sm:$0xff]  ;;  %v290_v37 = vld [vmem:[#allocation2 + $0xf8] sm:$0xff] }
  0x53   :  { %7142 = vmatprep.subr.bf16.mxu0 %v11528_v1  ;;  %vm7199_vm6 = vmpackc.low %vm128_vm5, %vm127_vm4  ;;  %v7173_v39 = vpack.c.bf16 %v290_v37, %v289_v36  ;;  %v8755_v43 = vld [vmem:[#allocation6 + $0x70] sm:$0xff]  ;;  %v195_v44 = vld [vmem:[#allocation8] sm:$0xff] }
  0x54   :  { %v8761_v49 = vld [vmem:[#allocation6 + $0x80] sm:$0xff]  ;;  %v197_v50 = vld [vmem:[#allocation8 + $0x10] sm:$0xff]  ;;  %v200_v52 = vld [vmem:[#allocation8 + $0x28] sm:$0xff] }
  0x55   :  { %7186 = vmatpush3.bf16.msk.msra.mxu1 %vm8609_vm9, %v11530_v19  ;;  %vm7203_vm9 = vmpackc.low %vm130_vm8, %vm129_vm7  ;;  %v8767_v53 = vld [vmem:[#allocation6 + $0x90] sm:$0xff]  ;;  %v8771_v55 = vld [vmem:[#allocation6 + $0x98] sm:$0xff] }
  0x56   :  { %7188 = vmatprep.subr.msk.bf16.mxu1 %vm8630_vm12, %v11530_v19  ;;  %7144 = vmatpush1.bf16.msra.mxu0 %v7143_v42  ;;  %v8752_v42 = vld [vmem:[#allocation6 + $0x68] sm:$0xff]  ;;  %v202_v56 = vld [vmem:[#allocation8 + $0x38] sm:$0xff]  ;;  %v201_v59 = vld [vmem:[#allocation8 + $0x30] sm:$0xff] }
  0x57   :  { %7145 = vmatprep.subr.bf16.mxu0 %v11528_v1  ;;  %v8777_v60 = vld [vmem:[#allocation6 + $0xa8] sm:$0xff]  ;;  %v8779_v0 = vld [vmem:[#allocation6 + $0xb0] sm:$0xff]  ;;  %v203_v2 = vld [vmem:[#allocation8 + $0x40] sm:$0xff] }
  0x58   :  { %v206_v11 = vld [vmem:[#allocation8 + $0x58] sm:$0xff]  ;;  %v8785_v12 = vld [vmem:[#allocation6 + $0xc0] sm:$0xff]  ;;  %v8791_v18 = vld [vmem:[#allocation6 + $0xc8] sm:$0xff] }
  0x59   :  { %7190 = vmatpush3.bf16.msk.msra.mxu1 %vm8630_vm12, %v11530_v19  ;;  %v8793_v20 = vld [vmem:[#allocation8 + $0x68] sm:$0xff]  ;;  %v8800_v26 = vld [vmem:[#allocation8 + $0x60] sm:$0xff]  ;;  %v8803_v29 = vld [vmem:[#allocation6 + $0xd8] sm:$0xff] }
  0x5a   :  { %7192 = vmatprep.subr.msk.bf16.mxu1 %vm8654_vm15, %v11530_v19  ;;  %7147 = vmatpush1.bf16.msra.mxu0 %v7146_v48  ;;  %v198_v48 = vld [vmem:[#allocation8 + $0x18] sm:$0xff]  ;;  %11870 = vst [vmem:[#allocation30_spill] sm:$0xff] %v8793_v20  ;;  %11871 = vst [vmem:[#allocation31_spill] sm:$0xff] %v8800_v26  ;;  %v8807_v36 = vld [vmem:[#allocation6 + $0xe0] sm:$0xff] }
  0x5b   :  { %7148 = vmatprep.subr.bf16.mxu0 %v11528_v1  ;;  %v8812_v37 = vld [vmem:[#allocation8 + $0x70] sm:$0xff] }
  0x5c   :  { %11873 = vst [vmem:[#allocation33_spill] sm:$0xff] %v8812_v37 }
  0x5d   :  { %7194 = vmatpush3.bf16.msk.msra.mxu1 %vm8654_vm15, %v11530_v19 }
  0x5e   :  { %7196 = vmatprep.subr.msk.bf16.mxu1 %vm8675_vm3, %v11530_v19  ;;  %7150 = vmatpush1.bf16.msra.mxu0 %v7149_v51  ;;  %v8765_v51 = vld [vmem:[#allocation6 + $0x88] sm:$0xff] }
  0x5f   :  { %7151 = vmatprep.subr.bf16.mxu0 %v11528_v1 }
  0x61   :  { %7198 = vmatpush3.bf16.msk.msra.mxu1 %vm8675_vm3, %v11530_v19 }
  0x62   :  { %7200 = vmatprep.subr.msk.bf16.mxu1 %vm7199_vm6, %v11530_v19  ;;  %7153 = vmatpush1.bf16.msra.mxu0 %v7152_v54  ;;  %v199_v54 = vld [vmem:[#allocation8 + $0x20] sm:$0xff] }
  0x63   :  { %7154 = vmatprep.subr.bf16.mxu0 %v11528_v1 }
  0x65   :  { %7202 = vmatpush3.bf16.msk.msra.mxu1 %vm7199_vm6, %v11530_v19 }
  0x66   :  { %7204 = vmatprep.subr.msk.bf16.mxu1 %vm7203_vm9, %v11530_v19  ;;  %7156 = vmatpush1.bf16.msra.mxu0 %v7155_v57  ;;  %v8773_v57 = vld [vmem:[#allocation6 + $0xa0] sm:$0xff] }
  0x67   :  { %7157 = vmatprep.subr.bf16.mxu0 %v11528_v1 }
  0x69   :  { %7206 = vmatpush3.bf16.msk.msra.mxu1 %vm7203_vm9, %v11530_v19  ;;  %v8855_v19 = vld [vmem:[#allocation8 + $0xd8] sm:$0xff] }
  0x6a   :  { %7207 = vmatprep.subr.bf16.mxu1 %v11528_v1  ;;  %7159 = vmatpush1.bf16.msra.mxu0 %v7158_v62  ;;  %v204_v62 = vld [vmem:[#allocation8 + $0x48] sm:$0xff]  ;;  %11884 = vst [vmem:[#allocation44_spill] sm:$0xff] %v8855_v19 }
  0x6b   :  { %7160 = vmatprep.subr.bf16.mxu0 %v11528_v1 }
  0x6c   :  { %6520 = vmatmul.mubr.f32.vlgmr.msra.gmra.mrb[0].mxu1 %v8709_v58 }
  0x6d   :  { %6522 = vmatprep.mubr.f32.mxu1 %v8712_v61 }
  0x6e   :  { %7162 = vmatpush1.bf16.msra.mxu0 %v7161_v9  ;;  %v8783_v9 = vld [vmem:[#allocation6 + $0xb8] sm:$0xff] }
  0x6f   :  { %7163 = vmatprep.subr.bf16.mxu0 %v11528_v1 }
  0x70   :  { %6523 = vmatmul.mubr.f32.gmra.mrb[2].mxu1 %v8717_v63 }
  0x71   :  { %6525 = vmatprep.mubr.f32.mxu1 %v8720_v5 }
  0x72   :  { %7165 = vmatpush1.bf16.msra.mxu0 %v7164_v16  ;;  %v8788_v16 = vld [vmem:[#allocation8 + $0x50] sm:$0xff] }
  0x73   :  { %7166 = vmatprep.subr.bf16.mxu0 %v11528_v1  ;;  %11869 = vst [vmem:[#allocation29_spill] sm:$0xff] %v8788_v16 }
  0x74   :  { %6526 = vmatmul.mubr.f32.gmra.mrb[4].mxu1 %v8724_v10 }
  0x75   :  { %6528 = vmatprep.mubr.f32.mxu1 %v8727_v13 }
  0x76   :  { %7168 = vmatpush1.bf16.msra.mxu0 %v7167_v24  ;;  %v8795_v24 = vld [vmem:[#allocation6 + $0xd0] sm:$0xff] }
  0x77   :  { %7169 = vmatprep.subr.bf16.mxu0 %v11528_v1 }
  0x78   :  { %6529 = vmatmul.mubr.f32.gmra.mrb[6].mxu1 %v8731_v17 }
  0x79   :  { %6531 = vmatprep.mubr.f32.mxu1 %v8734_v23 }
  0x7a   :  { %7171 = vmatpush1.bf16.msra.mxu0 %v7170_v31  ;;  %v8805_v31 = vld [vmem:[#allocation8 + $0x78] sm:$0xff] }
  0x7b   :  { %7172 = vmatprep.subr.bf16.mxu0 %v11528_v1  ;;  %11872 = vst [vmem:[#allocation32_spill] sm:$0xff] %v8805_v31  ;;  %v8849_v1 = vld [vmem:[#allocation8 + $0xc8] sm:$0xff] }
  0x7c   :  { %6532 = vmatmul.mubr.f32.gmra.mrb[8].mxu1 %v8738_v25  ;;  %11882 = vst [vmem:[#allocation42_spill] sm:$0xff] %v8849_v1 }
  0x7d   :  { %6534 = vmatprep.mubr.f32.mxu1 %v8741_v30 }
  0x7e   :  { %7174 = vmatpush1.bf16.msra.mxu0 %v7173_v39  ;;  %v8815_v39 = vld [vmem:[#allocation6 + $0xe8] sm:$0xff] }
  0x80   :  { %6535 = vmatmul.mubr.f32.gmra.mrb[10].mxu1 %v8745_v32 }
  0x81   :  { %6537 = vmatprep.mubr.f32.mxu1 %v8748_v38  ;;  %356 = vmatmul.mubr.f32.vlgmr.msra.gmra.mrb[0].mxu0 %v195_v44  ;;  %v8817_v44 = vld [vmem:[#allocation8 + $0x88] sm:$0xff] }
  0x82   :  { %360 = vmatprep.mubr.f32.mxu0 %v198_v48  ;;  %11874 = vst [vmem:[#allocation34_spill] sm:$0xff] %v8817_v44  ;;  %v8819_v48 = vld [vmem:[#allocation6 + $0xf0] sm:$0xff] }
  0x84   :  { %6538 = vmatmul.mubr.f32.gmra.mrb[12].mxu1 %v8752_v42 }
  0x85   :  { %6540 = vmatprep.mubr.f32.mxu1 %v8755_v43  ;;  %361 = vmatmul.mubr.f32.gmra.mrb[2].mxu0 %v197_v50  ;;  %v8824_v50 = vld [vmem:[#allocation8 + $0x80] sm:$0xff] }
  0x86   :  { %365 = vmatprep.mubr.f32.mxu0 %v200_v52  ;;  %11875 = vst [vmem:[#allocation35_spill] sm:$0xff] %v8824_v50  ;;  %v8827_v52 = vld [vmem:[#allocation6 + $0xf8] sm:$0xff] }
  0x88   :  { %6541 = vmatmul.mubr.f32.gmra.mrb[14].mxu1 %v8759_v45 }
  0x89   :  { %6543 = vmatprep.mubr.f32.mxu1 %v8761_v49  ;;  %366 = vmatmul.mubr.f32.gmra.mrb[4].mxu0 %v199_v54  ;;  %v8829_v54 = vld [vmem:[#allocation8 + $0x98] sm:$0xff] }
  0x8a   :  { %370 = vmatprep.mubr.f32.mxu0 %v202_v56  ;;  %11876 = vst [vmem:[#allocation36_spill] sm:$0xff] %v8829_v54  ;;  %v8834_v56 = vld [vmem:[#allocation8 + $0x90] sm:$0xff] }
  0x8b   :  { %11877 = vst [vmem:[#allocation37_spill] sm:$0xff] %v8834_v56 }
  0x8c   :  { %6544 = vmatmul.mubr.f32.gmra.mrb[16].mxu1 %v8765_v51 }
  0x8d   :  { %6546 = vmatprep.mubr.f32.mxu1 %v8767_v53  ;;  %371 = vmatmul.mubr.f32.gmra.mrb[6].mxu0 %v201_v59  ;;  %v8837_v59 = vld [vmem:[#allocation8 + $0xa8] sm:$0xff] }
  0x8e   :  { %375 = vmatprep.mubr.f32.mxu0 %v204_v62  ;;  %11878 = vst [vmem:[#allocation38_spill] sm:$0xff] %v8837_v59  ;;  %v8841_v62 = vld [vmem:[#allocation8 + $0xa0] sm:$0xff] }
  0x8f   :  { %11879 = vst [vmem:[#allocation39_spill] sm:$0xff] %v8841_v62 }
  0x90   :  { %6547 = vmatmul.mubr.f32.gmra.mrb[18].mxu1 %v8771_v55 }
  0x91   :  { %6549 = vmatprep.mubr.f32.mxu1 %v8773_v57  ;;  %376 = vmatmul.mubr.f32.gmra.mrb[8].mxu0 %v203_v2  ;;  %v8843_v2 = vld [vmem:[#allocation8 + $0xb8] sm:$0xff] }
  0x92   :  { %380 = vmatprep.mubr.f32.mxu0 %v206_v11  ;;  %11880 = vst [vmem:[#allocation40_spill] sm:$0xff] %v8843_v2  ;;  %v8847_v11 = vld [vmem:[#allocation8 + $0xb0] sm:$0xff] }
  0x93   :  { %11881 = vst [vmem:[#allocation41_spill] sm:$0xff] %v8847_v11 }
  0x94   :  { %6550 = vmatmul.mubr.f32.gmra.mrb[20].mxu1 %v8777_v60 }
  0x95   :  { %6552 = vmatprep.mubr.f32.mxu1 %v8779_v0  ;;  %381 = vmatmul.mubr.f32.gmra.mrb[10].mxu0 %v8788_v16 }
  0x96   :  { %385 = vmatprep.mubr.f32.mxu0 %v8793_v20 }
  0x98   :  { %6553 = vmatmul.mubr.f32.gmra.mrb[22].mxu1 %v8783_v9 }
  0x99   :  { %6555 = vmatprep.mubr.f32.mxu1 %v8785_v12  ;;  %386 = vmatmul.mubr.f32.gmra.mrb[12].mxu0 %v8800_v26 }
  0x9a   :  { %390 = vmatprep.mubr.f32.mxu0 %v8805_v31 }
  0x9c   :  { %6556 = vmatmul.mubr.f32.gmra.mrb[24].mxu1 %v8791_v18 }
  0x9d   :  { %6558 = vmatprep.mubr.f32.mxu1 %v8795_v24  ;;  %391 = vmatmul.mubr.f32.gmra.mrb[14].mxu0 %v8812_v37 }
  0x9e   :  { %395 = vmatprep.mubr.f32.mxu0 %v8817_v44 }
  0xa0   :  { %6559 = vmatmul.mubr.f32.gmra.mrb[26].mxu1 %v8803_v29 }
  0xa1   :  { %6561 = vmatprep.mubr.f32.mxu1 %v8807_v36  ;;  %396 = vmatmul.mubr.f32.gmra.mrb[16].mxu0 %v8824_v50 }
  0xa2   :  { %400 = vmatprep.mubr.f32.mxu0 %v8829_v54 }
  0xa4   :  { %6562 = vmatmul.mubr.f32.gmra.mrb[28].mxu1 %v8815_v39 }
  0xa5   :  { %6564 = vmatprep.mubr.f32.mxu1 %v8819_v48  ;;  %401 = vmatmul.mubr.f32.gmra.mrb[18].mxu0 %v8834_v56  ;;  %v8971_v56 = vld [vmem:[#allocation3 + $0x1] ss:$0 sm:$0xff] }
  0xa6   :  { %405 = vmatprep.mubr.f32.mxu0 %v8837_v59  ;;  %v8859_v59 = vld [vmem:[#allocation8 + $0xd0] sm:$0xff]  ;;  %vm810_vm10 = vcmp.eq.s32.totalorder %v8558_v3, %v8971_v56  ;;  %vm811_vm11 = vcmp.eq.s32.totalorder %v8561_v4, %v8971_v56  ;;  %vm812_vm13 = vcmp.eq.s32.totalorder %v8566_v6, %v8971_v56  ;;  %vm813_vm14 = vcmp.eq.s32.totalorder %v8569_v7, %v8971_v56 }
  0xa7   :  { %11885 = vst [vmem:[#allocation45_spill] sm:$0xff] %v8859_v59  ;;  %vm7255_vm12 = vmpackc.low %vm811_vm11, %vm810_vm10  ;;  %vm814_vm1 = vcmp.eq.s32.totalorder %v8579_v14, %v8971_v56  ;;  %vm815_vm2 = vcmp.eq.s32.totalorder %v8582_v15, %v8971_v56  ;;  %vm816_vm4 = vcmp.eq.s32.totalorder %v8599_v21, %v8971_v56  ;;  %vm817_vm5 = vcmp.eq.s32.totalorder %v8602_v22, %v8971_v56 }
  0xa8   :  { %6565 = vmatmul.mubr.f32.gmra.mrb[30].mxu1 %v8827_v52  ;;  %vm7259_vm15 = vmpackc.low %vm813_vm14, %vm812_vm13  ;;  %vm818_vm7 = vcmp.eq.s32.totalorder %v8618_v27, %v8971_v56  ;;  %vm819_vm8 = vcmp.eq.s32.totalorder %v8621_v28, %v8971_v56  ;;  %vm820_vm10 = vcmp.eq.s32.totalorder %v8641_v34, %v8971_v56  ;;  %vm821_vm11 = vcmp.eq.s32.totalorder %v8644_v35, %v8971_v56 }
  0xa9   :  { %1050 = vmatprep.mubr.f32.mxu1 %v8634_v33  ;;  %406 = vmatmul.mubr.f32.gmra.mrb[20].mxu0 %v8841_v62  ;;  %v8853_v33 = vld [vmem:[#allocation8 + $0xc0] sm:$0xff]  ;;  %v8861_v62 = vld [vmem:[#allocation8 + $0xe8] sm:$0xff]  ;;  %vm7263_vm3 = vmpackc.low %vm815_vm2, %vm814_vm1  ;;  %vm822_vm13 = vcmp.eq.s32.totalorder %v8663_v40, %v8971_v56  ;;  %vm823_vm14 = vcmp.eq.s32.totalorder %v8666_v41, %v8971_v56  ;;  %vm825_vm1 = vcmp.eq.s32.totalorder %v8687_v47, %v8971_v56 }
  0xaa   :  { %410 = vmatprep.mubr.f32.mxu0 %v8843_v2  ;;  %11883 = vst [vmem:[#allocation43_spill] sm:$0xff] %v8853_v33  ;;  %11886 = vst [vmem:[#allocation46_spill] sm:$0xff] %v8861_v62  ;;  %v8865_v2 = vld [vmem:[#allocation8 + $0xe0] sm:$0xff] }
  0xab   :  { %11887 = vst [vmem:[#allocation47_spill] sm:$0xff] %v8865_v2  ;;  %vm7267_vm6 = vmpackc.low %vm817_vm5, %vm816_vm4 }
  0xac   :  { %vm7271_vm9 = vmpackc.low %vm819_vm8, %vm818_vm7 }
  0xad   :  { %411 = vmatmul.mubr.f32.gmra.mrb[22].mxu0 %v8847_v11  ;;  %v8867_v11 = vld [vmem:[#allocation8 + $0xf8] sm:$0xff]  ;;  %vm7279_vm2 = vmpackc.low %vm823_vm14, %vm822_vm13 }
  0xae   :  { %415 = vmatprep.mubr.f32.mxu0 %v8849_v1  ;;  %11888 = vst [vmem:[#allocation48_spill] sm:$0xff] %v8867_v11  ;;  %v8871_v1 = vld [vmem:[#allocation8 + $0xf0] sm:$0xff] }
  0xaf   :  { %11889 = vst [vmem:[#allocation49_spill] sm:$0xff] %v8871_v1 }
  0xb1   :  { %416 = vmatmul.mubr.f32.gmra.mrb[24].mxu0 %v8853_v33  ;;  %v8873_v33 = vld [vmem:[#allocation8 + $0x108] sm:$0xff] }
  0xb2   :  { %420 = vmatprep.mubr.f32.mxu0 %v8855_v19  ;;  %11890 = vst [vmem:[#allocation50_spill] sm:$0xff] %v8873_v33  ;;  %v8877_v19 = vld [vmem:[#allocation8 + $0x100] sm:$0xff] }
  0xb3   :  { %11891 = vst [vmem:[#allocation51_spill] sm:$0xff] %v8877_v19 }
  0xb5   :  { %421 = vmatmul.mubr.f32.gmra.mrb[26].mxu0 %v8859_v59  ;;  %v8879_v59 = vld [vmem:[#allocation8 + $0x118] sm:$0xff] }
  0xb6   :  { %425 = vmatprep.mubr.f32.mxu0 %v8861_v62  ;;  %11892 = vst [vmem:[#allocation52_spill] sm:$0xff] %v8879_v59  ;;  %v8883_v62 = vld [vmem:[#allocation8 + $0x110] sm:$0xff] }
  0xb7   :  { %11893 = vst [vmem:[#allocation53_spill] sm:$0xff] %v8883_v62 }
  0xb9   :  { %426 = vmatmul.mubr.f32.gmra.mrb[28].mxu0 %v8865_v2  ;;  %v8885_v2 = vld [vmem:[#allocation8 + $0x128] sm:$0xff] }
  0xba   :  { %430 = vmatprep.mubr.f32.mxu0 %v8867_v11  ;;  %11894 = vst [vmem:[#allocation54_spill] sm:$0xff] %v8885_v2  ;;  %v8889_v11 = vld [vmem:[#allocation8 + $0x120] sm:$0xff] }
  0xbb   :  { %11895 = vst [vmem:[#allocation55_spill] sm:$0xff] %v8889_v11 }
  0xbd   :  { %431 = vmatmul.mubr.f32.gmra.mrb[30].mxu0 %v8871_v1  ;;  %v8891_v1 = vld [vmem:[#allocation8 + $0x138] sm:$0xff] }
  0xbe   :  { %435 = vmatprep.mubr.f32.mxu0 %v8873_v33  ;;  %11896 = vst [vmem:[#allocation56_spill] sm:$0xff] %v8891_v1  ;;  %v8895_v33 = vld [vmem:[#allocation8 + $0x130] sm:$0xff] }
  0xbf   :  { %11897 = vst [vmem:[#allocation57_spill] sm:$0xff] %v8895_v33 }
  0xc1   :  { %436 = vmatmul.mubr.f32.gmra.mrb[32].mxu0 %v8877_v19  ;;  %v8897_v19 = vld [vmem:[#allocation8 + $0x148] sm:$0xff] }
  0xc2   :  { %440 = vmatprep.mubr.f32.mxu0 %v8879_v59  ;;  %11898 = vst [vmem:[#allocation58_spill] sm:$0xff] %v8897_v19  ;;  %v8901_v59 = vld [vmem:[#allocation8 + $0x140] sm:$0xff] }
  0xc3   :  { %11899 = vst [vmem:[#allocation59_spill] sm:$0xff] %v8901_v59 }
  0xc5   :  { %441 = vmatmul.mubr.f32.gmra.mrb[34].mxu0 %v8883_v62  ;;  %v8903_v62 = vld [vmem:[#allocation8 + $0x158] sm:$0xff] }
  0xc6   :  { %445 = vmatprep.mubr.f32.mxu0 %v8885_v2  ;;  %11900 = vst [vmem:[#allocation60_spill] sm:$0xff] %v8903_v62  ;;  %v8907_v2 = vld [vmem:[#allocation8 + $0x150] sm:$0xff] }
  0xc7   :  { %11901 = vst [vmem:[#allocation61_spill] sm:$0xff] %v8907_v2 }
  0xc9   :  { %446 = vmatmul.mubr.f32.gmra.mrb[36].mxu0 %v8889_v11  ;;  %v8909_v11 = vld [vmem:[#allocation8 + $0x168] sm:$0xff] }
  0xca   :  { %450 = vmatprep.mubr.f32.mxu0 %v8891_v1  ;;  %11902 = vst [vmem:[#allocation62_spill] sm:$0xff] %v8909_v11  ;;  %v8913_v1 = vld [vmem:[#allocation8 + $0x160] sm:$0xff] }
  0xcb   :  { %11903 = vst [vmem:[#allocation63_spill] sm:$0xff] %v8913_v1 }
  0xcd   :  { %451 = vmatmul.mubr.f32.gmra.mrb[38].mxu0 %v8895_v33  ;;  %v8915_v33 = vld [vmem:[#allocation8 + $0x178] sm:$0xff] }
  0xce   :  { %455 = vmatprep.mubr.f32.mxu0 %v8897_v19  ;;  %11904 = vst [vmem:[#allocation64_spill] sm:$0xff] %v8915_v33  ;;  %v8919_v19 = vld [vmem:[#allocation8 + $0x170] sm:$0xff] }
  0xcf   :  { %11905 = vst [vmem:[#allocation65_spill] sm:$0xff] %v8919_v19 }
  0xd1   :  { %456 = vmatmul.mubr.f32.gmra.mrb[40].mxu0 %v8901_v59  ;;  %v8921_v59 = vld [vmem:[#allocation8 + $0x188] sm:$0xff] }
  0xd2   :  { %460 = vmatprep.mubr.f32.mxu0 %v8903_v62  ;;  %11906 = vst [vmem:[#allocation66_spill] sm:$0xff] %v8921_v59  ;;  %v8925_v62 = vld [vmem:[#allocation8 + $0x180] sm:$0xff] }
  0xd3   :  { %11907 = vst [vmem:[#allocation67_spill] sm:$0xff] %v8925_v62 }
  0xd5   :  { %461 = vmatmul.mubr.f32.gmra.mrb[42].mxu0 %v8907_v2  ;;  %v8927_v2 = vld [vmem:[#allocation8 + $0x198] sm:$0xff] }
  0xd6   :  { %465 = vmatprep.mubr.f32.mxu0 %v8909_v11  ;;  %11908 = vst [vmem:[#allocation68_spill] sm:$0xff] %v8927_v2  ;;  %v8931_v11 = vld [vmem:[#allocation8 + $0x190] sm:$0xff] }
  0xd7   :  { %11909 = vst [vmem:[#allocation69_spill] sm:$0xff] %v8931_v11 }
  0xd9   :  { %466 = vmatmul.mubr.f32.gmra.mrb[44].mxu0 %v8913_v1  ;;  %v8933_v1 = vld [vmem:[#allocation8 + $0x1a8] sm:$0xff] }
  0xda   :  { %470 = vmatprep.mubr.f32.mxu0 %v8915_v33  ;;  %11910 = vst [vmem:[#allocation70_spill] sm:$0xff] %v8933_v1  ;;  %v8937_v33 = vld [vmem:[#allocation8 + $0x1a0] sm:$0xff] }
  0xdb   :  { %11911 = vst [vmem:[#allocation71_spill] sm:$0xff] %v8937_v33 }
  0xdd   :  { %471 = vmatmul.mubr.f32.gmra.mrb[46].mxu0 %v8919_v19  ;;  %v8939_v19 = vld [vmem:[#allocation8 + $0x1b8] sm:$0xff] }
  0xde   :  { %475 = vmatprep.mubr.f32.mxu0 %v8921_v59  ;;  %11912 = vst [vmem:[#allocation72_spill] sm:$0xff] %v8939_v19  ;;  %v8943_v59 = vld [vmem:[#allocation8 + $0x1b0] sm:$0xff] }
  0xdf   :  { %11913 = vst [vmem:[#allocation73_spill] sm:$0xff] %v8943_v59 }
  0xe1   :  { %476 = vmatmul.mubr.f32.gmra.mrb[48].mxu0 %v8925_v62  ;;  %v8945_v62 = vld [vmem:[#allocation8 + $0x1c8] sm:$0xff] }
  0xe2   :  { %480 = vmatprep.mubr.f32.mxu0 %v8927_v2  ;;  %11914 = vst [vmem:[#allocation74_spill] sm:$0xff] %v8945_v62  ;;  %v8949_v2 = vld [vmem:[#allocation8 + $0x1c0] sm:$0xff] }
  0xe3   :  { %11915 = vst [vmem:[#allocation75_spill] sm:$0xff] %v8949_v2 }
  0xe5   :  { %481 = vmatmul.mubr.f32.gmra.mrb[50].mxu0 %v8931_v11  ;;  %v8951_v11 = vld [vmem:[#allocation8 + $0x1d8] sm:$0xff] }
  0xe6   :  { %485 = vmatprep.mubr.f32.mxu0 %v8933_v1  ;;  %11916 = vst [vmem:[#allocation76_spill] sm:$0xff] %v8951_v11  ;;  %v8955_v1 = vld [vmem:[#allocation8 + $0x1d0] sm:$0xff] }
  0xe7   :  { %11917 = vst [vmem:[#allocation77_spill] sm:$0xff] %v8955_v1 }
  0xe9   :  { %486 = vmatmul.mubr.f32.gmra.mrb[52].mxu0 %v8937_v33  ;;  %v8957_v33 = vld [vmem:[#allocation8 + $0x1e8] sm:$0xff] }
  0xea   :  { %490 = vmatprep.mubr.f32.mxu0 %v8939_v19  ;;  %11918 = vst [vmem:[#allocation78_spill] sm:$0xff] %v8957_v33  ;;  %v8961_v19 = vld [vmem:[#allocation8 + $0x1e0] sm:$0xff] }
  0xeb   :  { %11919 = vst [vmem:[#allocation79_spill] sm:$0xff] %v8961_v19 }
  0xed   :  { %491 = vmatmul.mubr.f32.gmra.mrb[54].mxu0 %v8943_v59  ;;  %v8963_v59 = vld [vmem:[#allocation8 + $0x1f8] sm:$0xff] }
  0xee   :  { %495 = vmatprep.mubr.f32.mxu0 %v8945_v62  ;;  %11920 = vst [vmem:[#allocation80_spill] sm:$0xff] %v8963_v59  ;;  %v8967_v62 = vld [vmem:[#allocation8 + $0x1f0] sm:$0xff] }
  0xef   :  { %11921 = vst [vmem:[#allocation81_spill] sm:$0xff] %v8967_v62 }
  0xf1   :  { %496 = vmatmul.mubr.f32.gmra.mrb[56].mxu0 %v8949_v2 }
  0xf2   :  { %500 = vmatprep.mubr.f32.mxu0 %v8951_v11 }
  0xf5   :  { %501 = vmatmul.mubr.f32.gmra.mrb[58].mxu0 %v8955_v1 }
  0xf6   :  { %505 = vmatprep.mubr.f32.mxu0 %v8957_v33 }
  0xf9   :  { %506 = vmatmul.mubr.f32.gmra.mrb[60].mxu0 %v8961_v19  ;;  %v11922_v19 = vmov 1.0|1.0  }
  0xfa   :  { %510 = vmatprep.mubr.f32.mxu0 %v8963_v59  ;;  %7256 = vmatprep.subr.msk.bf16.mxu0 %vm7255_vm12, %v11922_v19 }
  0xfb   :  { %7258 = vmatpush3.bf16.msk.msra.mxu0 %vm7255_vm12, %v11922_v19  ;;  %vm7275_vm12 = vmpackc.low %vm821_vm11, %vm820_vm10 }
  0xfc   :  { %7260 = vmatprep.subr.msk.bf16.mxu0 %vm7259_vm15, %v11922_v19 }
  0xfd   :  { %511 = vmatmul.mubr.f32.gmra.mrb[62].mxu0 %v8967_v62 }
  0xfe   :  { %6599 = vmatprep.mubr.f32.mxu0 %v8571_v8 }
  0xff   :  { %7262 = vmatpush3.bf16.msk.msra.mxu0 %vm7259_vm15, %v11922_v19  ;;  %vm824_vm15 = vcmp.eq.s32.totalorder %v8684_v46, %v8971_v56 }
 0x100   :  { %7264 = vmatprep.subr.msk.bf16.mxu0 %vm7263_vm3, %v11922_v19 }
 0x103   :  { %7266 = vmatpush3.bf16.msk.msra.mxu0 %vm7263_vm3, %v11922_v19  ;;  %vm7283_vm3 = vmpackc.low %vm825_vm1, %vm824_vm15 }
 0x104   :  { %7268 = vmatprep.subr.msk.bf16.mxu0 %vm7267_vm6, %v11922_v19 }
 0x107   :  { %7270 = vmatpush3.bf16.msk.msra.mxu0 %vm7267_vm6, %v11922_v19 }
 0x108   :  { %7272 = vmatprep.subr.msk.bf16.mxu0 %vm7271_vm9, %v11922_v19 }
 0x10b   :  { %7274 = vmatpush3.bf16.msk.msra.mxu0 %vm7271_vm9, %v11922_v19 }
 0x10c   :  { %7276 = vmatprep.subr.msk.bf16.mxu0 %vm7275_vm12, %v11922_v19 }
 0x10f   :  { %7278 = vmatpush3.bf16.msk.msra.mxu0 %vm7275_vm12, %v11922_v19 }
 0x110   :  { %7280 = vmatprep.subr.msk.bf16.mxu0 %vm7279_vm2, %v11922_v19 }
 0x113   :  { %7282 = vmatpush3.bf16.msk.msra.mxu0 %vm7279_vm2, %v11922_v19 }
 0x114   :  { %7284 = vmatprep.subr.msk.bf16.mxu0 %vm7283_vm3, %v11922_v19 }
 0x117   :  { %7286 = vmatpush3.bf16.msk.msra.mxu0 %vm7283_vm3, %v11922_v19 }
 0x11a   :  { %6600 = vmatmul.mubr.f32.vlgmr.msra.gmra.mrb[64].mxu0 %v8709_v58 }
 0x11b   :  { %6602 = vmatprep.mubr.f32.mxu0 %v8712_v61 }
 0x11e   :  { %6603 = vmatmul.mubr.f32.gmra.mrb[66].mxu0 %v8717_v63 }
 0x11f   :  { %6605 = vmatprep.mubr.f32.mxu0 %v8720_v5 }
 0x122   :  { %6606 = vmatmul.mubr.f32.gmra.mrb[68].mxu0 %v8724_v10 }
 0x123   :  { %6608 = vmatprep.mubr.f32.mxu0 %v8727_v13 }
 0x126   :  { %6609 = vmatmul.mubr.f32.gmra.mrb[70].mxu0 %v8731_v17 }
 0x127   :  { %6611 = vmatprep.mubr.f32.mxu0 %v8734_v23 }
 0x12a   :  { %6612 = vmatmul.mubr.f32.gmra.mrb[72].mxu0 %v8738_v25 }
 0x12b   :  { %6614 = vmatprep.mubr.f32.mxu0 %v8741_v30 }
 0x12e   :  { %6615 = vmatmul.mubr.f32.gmra.mrb[74].mxu0 %v8745_v32 }
 0x12f   :  { %6617 = vmatprep.mubr.f32.mxu0 %v8748_v38 }
 0x132   :  { %6618 = vmatmul.mubr.f32.gmra.mrb[76].mxu0 %v8752_v42 }
 0x133   :  { %6620 = vmatprep.mubr.f32.mxu0 %v8755_v43 }
 0x136   :  { %6621 = vmatmul.mubr.f32.gmra.mrb[78].mxu0 %v8759_v45 }
 0x137   :  { %6623 = vmatprep.mubr.f32.mxu0 %v8761_v49 }
 0x13a   :  { %6624 = vmatmul.mubr.f32.gmra.mrb[80].mxu0 %v8765_v51 }
 0x13b   :  { %6626 = vmatprep.mubr.f32.mxu0 %v8767_v53 }
 0x13e   :  { %6627 = vmatmul.mubr.f32.gmra.mrb[82].mxu0 %v8771_v55 }
 0x13f   :  { %v6521_v11 = vpop.f32.mrb[0].mxu1  ;;  %6629 = vmatprep.mubr.f32.mxu0 %v8773_v57 }
 0x140   :  { %v582_v2 = vpop.f32.mrb[1].mxu1 }
 0x142   :  { %6630 = vmatmul.mubr.f32.gmra.mrb[84].mxu0 %v8777_v60 }
 0x143   :  { %v8977_v33 = vpop.f32.mrb[2].mxu1  ;;  %6632 = vmatprep.mubr.f32.mxu0 %v8779_v0 }
 0x144   :  { %v592_v59 = vpop.f32.mrb[3].mxu1 }
 0x146   :  { %6633 = vmatmul.mubr.f32.gmra.mrb[86].mxu0 %v8783_v9 }
 0x147   :  { %v8981_v62 = vpop.f32.mrb[4].mxu1  ;;  %6635 = vmatprep.mubr.f32.mxu0 %v8785_v12 }
 0x148   :  { %v8983_v8 = vpop.f32.mrb[5].mxu1 }
 0x14a   :  { %6636 = vmatmul.mubr.f32.gmra.mrb[88].mxu0 %v8791_v18 }
 0x14b   :  { %v8985_v1 = vpop.f32.mrb[6].mxu1  ;;  %6638 = vmatprep.mubr.f32.mxu0 %v8795_v24 }
 0x14c   :  { %v8987_v54 = vpop.f32.mrb[7].mxu1 }
 0x14e   :  { %6639 = vmatmul.mubr.f32.gmra.mrb[90].mxu0 %v8803_v29 }
 0x14f   :  { %v8989_v3 = vpop.f32.mrb[8].mxu1  ;;  %6641 = vmatprep.mubr.f32.mxu0 %v8807_v36 }
 0x150   :  { %v8991_v50 = vpop.f32.mrb[9].mxu1 }
 0x152   :  { %6642 = vmatmul.mubr.f32.gmra.mrb[92].mxu0 %v8815_v39 }
 0x153   :  { %v8997_v4 = vpop.f32.mrb[10].mxu1  ;;  %6644 = vmatprep.mubr.f32.mxu0 %v8819_v48 }
 0x154   :  { %v9000_v44 = vpop.f32.mrb[11].mxu1  ;;  %v357_v7 = vpop.f32.mrb[0].mxu0 }
 0x155   :  { %v583_v14 = vadd.f32 %v582_v2, %v357_v7  ;;  %v359_v26 = vpop.f32.mrb[1].mxu0 }
 0x156   :  { %6645 = vmatmul.mubr.f32.gmra.mrb[94].mxu0 %v8827_v52 }
 0x157   :  { %v9003_v37 = vpop.f32.mrb[12].mxu1  ;;  %7812 = vtanh.f32 %v583_v14 }
 0x158   :  { %v9009_v6 = vpop.f32.mrb[13].mxu1  ;;  %v362_v15 = vpop.f32.mrb[2].mxu0 }
 0x159   :  { %v588_v22 = vadd.f32 %v6521_v11, %v362_v15  ;;  %v364_v7 = vpop.f32.mrb[3].mxu0 }
 0x15b   :  { %v9013_v31 = vpop.f32.mrb[14].mxu1  ;;  %7814 = vtanh.f32 %v588_v22 }
 0x15c   :  { %v9019_v20 = vpop.f32.mrb[15].mxu1  ;;  %v367_v14 = vpop.f32.mrb[4].mxu0 }
 0x15d   :  { %v593_v28 = vadd.f32 %v592_v59, %v367_v14  ;;  %v369_v15 = vpop.f32.mrb[5].mxu0 }
 0x15f   :  { %v9023_v16 = vpop.f32.mrb[16].mxu1  ;;  %7816 = vtanh.f32 %v593_v28 }
 0x160   :  { %v9029_v26 = vpop.f32.mrb[17].mxu1  ;;  %v372_v22 = vpop.f32.mrb[6].mxu0 }
 0x161   :  { %v7813_v59 = vpop.eup %7812  ;;  %v598_v28 = vadd.f32 %v8977_v33, %v372_v22  ;;  %v374_v14 = vpop.f32.mrb[7].mxu0 }
 0x162   :  { %773 = vst.msk [vmem:[#allocation2] sm:$0xff] %vm60_vm0, %v7813_v59 }
 0x163   :  { %v9033_v2 = vpop.f32.mrb[18].mxu1  ;;  %7818 = vtanh.f32 %v598_v28 }
 0x164   :  { %v9039_v11 = vpop.f32.mrb[19].mxu1  ;;  %v377_v41 = vpop.f32.mrb[8].mxu0 }
 0x165   :  { %v7815_v56 = vpop.eup %7814  ;;  %v603_v33 = vadd.f32 %v8983_v8, %v377_v41  ;;  %v379_v22 = vpop.f32.mrb[9].mxu0 }
 0x166   :  { %774 = vst.msk [vmem:[#allocation2 + $0x8] sm:$0xff] %vm60_vm0, %v7815_v56 }
 0x167   :  { %v9043_v7 = vpop.f32.mrb[20].mxu1  ;;  %7820 = vtanh.f32 %v603_v33 }
 0x168   :  { %v9054_v15 = vpop.f32.mrb[21].mxu1  ;;  %v382_v59 = vpop.f32.mrb[10].mxu0 }
 0x169   :  { %v7817_v47 = vpop.eup %7816  ;;  %v608_v40 = vadd.f32 %v8981_v62, %v382_v59  ;;  %v384_v35 = vpop.f32.mrb[11].mxu0  ;;  %v954_v27 = vld [vmem:[#allocation2] sm:$0xff]  ;;  %v11923_v59 = vmov 0.0|0.0  }
 0x16a   :  { %775 = vst.msk [vmem:[#allocation2 + $0x10] sm:$0xff] %vm60_vm0, %v7817_v47 }
 0x16b   :  { %v9059_v46 = vpop.f32.mrb[22].mxu1  ;;  %7822 = vtanh.f32 %v608_v40 }
 0x16c   :  { %v9063_v14 = vpop.f32.mrb[23].mxu1  ;;  %v387_v41 = vpop.f32.mrb[12].mxu0 }
 0x16d   :  { %v7819_v56 = vpop.eup %7818  ;;  %v613_v33 = vadd.f32 %v8987_v54, %v387_v41  ;;  %v389_v22 = vpop.f32.mrb[13].mxu0  ;;  %v955_v21 = vld [vmem:[#allocation2 + $0x8] sm:$0xff] }
 0x16e   :  { %776 = vst.msk [vmem:[#allocation2 + $0x18] sm:$0xff] %vm60_vm0, %v7819_v56  ;;  %v7208_v35 = vpack.c.bf16 %v955_v21, %v954_v27 }
 0x16f   :  { %v9067_v28 = vpop.f32.mrb[24].mxu1  ;;  %7824 = vtanh.f32 %v613_v33 }
 0x170   :  { %v9070_v34 = vpop.f32.mrb[25].mxu1  ;;  %v392_v40 = vpop.f32.mrb[14].mxu0  ;;  %7209 = vmatpush1.bf16.msra.mxu1 %v7208_v35 }
 0x171   :  { %v7821_v58 = vpop.eup %7820  ;;  %v618_v61 = vadd.f32 %v8985_v1, %v392_v40  ;;  %v394_v54 = vpop.f32.mrb[15].mxu0  ;;  %7210 = vmatprep.subr.bf16.mxu1 %v11923_v59  ;;  %v956_v1 = vld [vmem:[#allocation2 + $0x10] sm:$0xff] }
 0x172   :  { %777 = vst.msk [vmem:[#allocation2 + $0x20] sm:$0xff] %vm60_vm0, %v7821_v58 }
 0x173   :  { %v9075_v8 = vpop.f32.mrb[26].mxu1  ;;  %7826 = vtanh.f32 %v618_v61 }
 0x174   :  { %v9078_v62 = vpop.f32.mrb[27].mxu1  ;;  %v397_v21 = vpop.f32.mrb[16].mxu0 }
 0x175   :  { %v7823_v63 = vpop.eup %7822  ;;  %v623_v5 = vadd.f32 %v8991_v50, %v397_v21  ;;  %v399_v56 = vpop.f32.mrb[17].mxu0  ;;  %v957_v33 = vld [vmem:[#allocation2 + $0x18] sm:$0xff] }
 0x176   :  { %778 = vst.msk [vmem:[#allocation2 + $0x28] sm:$0xff] %vm60_vm0, %v7823_v63  ;;  %v7211_v35 = vpack.c.bf16 %v957_v33, %v956_v1 }
 0x177   :  { %v9083_v47 = vpop.f32.mrb[28].mxu1  ;;  %7828 = vtanh.f32 %v623_v5 }
 0x178   :  { %v9087_v41 = vpop.f32.mrb[29].mxu1  ;;  %v402_v10 = vpop.f32.mrb[18].mxu0  ;;  %7212 = vmatpush1.bf16.msra.mxu1 %v7211_v35 }
 0x179   :  { %v7825_v13 = vpop.eup %7824  ;;  %v628_v40 = vadd.f32 %v8989_v3, %v402_v10  ;;  %v404_v58 = vpop.f32.mrb[19].mxu0  ;;  %7213 = vmatprep.subr.bf16.mxu1 %v11923_v59  ;;  %v958_v54 = vld [vmem:[#allocation2 + $0x20] sm:$0xff] }
 0x17a   :  { %779 = vst.msk [vmem:[#allocation2 + $0x30] sm:$0xff] %vm60_vm0, %v7825_v13 }
 0x17b   :  { %v9092_v27 = vpop.f32.mrb[30].mxu1  ;;  %7830 = vtanh.f32 %v628_v40 }
 0x17c   :  { %v9095_v22 = vpop.f32.mrb[31].mxu1  ;;  %v407_v50 = vpop.f32.mrb[20].mxu0 }
 0x17d   :  { %v7827_v17 = vpop.eup %7826  ;;  %v633_v61 = vadd.f32 %v9000_v44, %v407_v50  ;;  %v409_v23 = vpop.f32.mrb[21].mxu0  ;;  %v959_v21 = vld [vmem:[#allocation2 + $0x28] sm:$0xff] }
 0x17e   :  { %780 = vst.msk [vmem:[#allocation2 + $0x38] sm:$0xff] %vm60_vm0, %v7827_v17  ;;  %v7214_v3 = vpack.c.bf16 %v959_v21, %v958_v54 }
 0x17f   :  { %7832 = vtanh.f32 %v633_v61 }
 0x180   :  { %v412_v63 = vpop.f32.mrb[22].mxu0  ;;  %7215 = vmatpush1.bf16.msra.mxu1 %v7214_v3 }
 0x181   :  { %v7829_v25 = vpop.eup %7828  ;;  %v638_v30 = vadd.f32 %v8997_v4, %v412_v63  ;;  %v414_v5 = vpop.f32.mrb[23].mxu0  ;;  %7216 = vmatprep.subr.bf16.mxu1 %v11923_v59  ;;  %v960_v1 = vld [vmem:[#allocation2 + $0x30] sm:$0xff] }
 0x182   :  { %781 = vst.msk [vmem:[#allocation2 + $0x40] sm:$0xff] %vm60_vm0, %v7829_v25 }
 0x183   :  { %7834 = vtanh.f32 %v638_v30 }
 0x184   :  { %v417_v44 = vpop.f32.mrb[24].mxu0 }
 0x185   :  { %v7831_v32 = vpop.eup %7830  ;;  %v643_v56 = vadd.f32 %v9009_v6, %v417_v44  ;;  %v419_v38 = vpop.f32.mrb[25].mxu0  ;;  %v961_v33 = vld [vmem:[#allocation2 + $0x38] sm:$0xff] }
 0x186   :  { %782 = vst.msk [vmem:[#allocation2 + $0x48] sm:$0xff] %vm60_vm0, %v7831_v32  ;;  %v7217_v4 = vpack.c.bf16 %v961_v33, %v960_v1 }
 0x187   :  { %7836 = vtanh.f32 %v643_v56 }
 0x188   :  { %v422_v35 = vpop.f32.mrb[26].mxu0  ;;  %7218 = vmatpush1.bf16.msra.mxu1 %v7217_v4 }
 0x189   :  { %v7833_v42 = vpop.eup %7832  ;;  %v648_v43 = vadd.f32 %v9003_v37, %v422_v35  ;;  %v424_v10 = vpop.f32.mrb[27].mxu0  ;;  %7219 = vmatprep.subr.bf16.mxu1 %v11923_v59  ;;  %v962_v40 = vld [vmem:[#allocation2 + $0x40] sm:$0xff] }
 0x18a   :  { %783 = vst.msk [vmem:[#allocation2 + $0x50] sm:$0xff] %vm60_vm0, %v7833_v42 }
 0x18b   :  { %7838 = vtanh.f32 %v648_v43 }
 0x18c   :  { %v427_v6 = vpop.f32.mrb[28].mxu0 }
 0x18d   :  { %v7835_v45 = vpop.eup %7834  ;;  %v653_v13 = vadd.f32 %v9019_v20, %v427_v6  ;;  %v429_v49 = vpop.f32.mrb[29].mxu0  ;;  %v963_v58 = vld [vmem:[#allocation2 + $0x48] sm:$0xff] }
 0x18e   :  { %784 = vst.msk [vmem:[#allocation2 + $0x58] sm:$0xff] %vm60_vm0, %v7835_v45  ;;  %v7220_v37 = vpack.c.bf16 %v963_v58, %v962_v40 }
 0x18f   :  { %7840 = vtanh.f32 %v653_v13 }
 0x190   :  { %v432_v50 = vpop.f32.mrb[30].mxu0  ;;  %7221 = vmatpush1.bf16.msra.mxu1 %v7220_v37 }
 0x191   :  { %v7837_v51 = vpop.eup %7836  ;;  %v658_v53 = vadd.f32 %v9013_v31, %v432_v50  ;;  %v434_v17 = vpop.f32.mrb[31].mxu0  ;;  %7222 = vmatprep.subr.bf16.mxu1 %v11923_v59  ;;  %v964_v23 = vld [vmem:[#allocation2 + $0x50] sm:$0xff] }
 0x192   :  { %785 = vst.msk [vmem:[#allocation2 + $0x60] sm:$0xff] %vm60_vm0, %v7837_v51 }
 0x193   :  { %7842 = vtanh.f32 %v658_v53 }
 0x194   :  { %v437_v20 = vpop.f32.mrb[32].mxu0 }
 0x195   :  { %v7839_v55 = vpop.eup %7838  ;;  %v663_v61 = vadd.f32 %v9029_v26, %v437_v20  ;;  %v439_v57 = vpop.f32.mrb[33].mxu0  ;;  %v965_v54 = vld [vmem:[#allocation2 + $0x58] sm:$0xff] }
 0x196   :  { %786 = vst.msk [vmem:[#allocation2 + $0x68] sm:$0xff] %vm60_vm0, %v7839_v55  ;;  %v7223_v31 = vpack.c.bf16 %v965_v54, %v964_v23 }
 0x197   :  { %7844 = vtanh.f32 %v663_v61 }
 0x198   :  { %v442_v21 = vpop.f32.mrb[34].mxu0  ;;  %7224 = vmatpush1.bf16.msra.mxu1 %v7223_v31 }
 0x199   :  { %v7841_v60 = vpop.eup %7840  ;;  %v668_v0 = vadd.f32 %v9023_v16, %v442_v21  ;;  %v444_v3 = vpop.f32.mrb[35].mxu0  ;;  %7225 = vmatprep.subr.bf16.mxu1 %v11923_v59  ;;  %v966_v25 = vld [vmem:[#allocation2 + $0x60] sm:$0xff] }
 0x19a   :  { %787 = vst.msk [vmem:[#allocation2 + $0x70] sm:$0xff] %vm60_vm0, %v7841_v60 }
 0x19b   :  { %7846 = vtanh.f32 %v668_v0 }
 0x19c   :  { %v447_v26 = vpop.f32.mrb[36].mxu0 }
 0x19d   :  { %v7843_v9 = vpop.eup %7842  ;;  %v673_v63 = vadd.f32 %v9039_v11, %v447_v26  ;;  %v449_v12 = vpop.f32.mrb[37].mxu0  ;;  %v967_v30 = vld [vmem:[#allocation2 + $0x68] sm:$0xff] }
 0x19e   :  { %788 = vst.msk [vmem:[#allocation2 + $0x78] sm:$0xff] %vm60_vm0, %v7843_v9  ;;  %v7226_v16 = vpack.c.bf16 %v967_v30, %v966_v25 }
 0x19f   :  { %7848 = vtanh.f32 %v673_v63 }
 0x1a0   :  { %v452_v5 = vpop.f32.mrb[38].mxu0  ;;  %7227 = vmatpush1.bf16.msra.mxu1 %v7226_v16 }
 0x1a1   :  { %v7845_v18 = vpop.eup %7844  ;;  %v678_v24 = vadd.f32 %v9033_v2, %v452_v5  ;;  %v454_v44 = vpop.f32.mrb[39].mxu0  ;;  %7228 = vmatprep.subr.bf16.mxu1 %v11923_v59  ;;  %v968_v56 = vld [vmem:[#allocation2 + $0x70] sm:$0xff] }
 0x1a2   :  { %789 = vst.msk [vmem:[#allocation2 + $0x80] sm:$0xff] %vm60_vm0, %v7845_v18 }
 0x1a3   :  { %7850 = vtanh.f32 %v678_v24 }
 0x1a4   :  { %v457_v11 = vpop.f32.mrb[40].mxu0 }
 0x1a5   :  { %v7847_v29 = vpop.eup %7846  ;;  %v683_v32 = vadd.f32 %v9054_v15, %v457_v11  ;;  %v459_v36 = vpop.f32.mrb[41].mxu0  ;;  %v969_v38 = vld [vmem:[#allocation2 + $0x78] sm:$0xff] }
 0x1a6   :  { %790 = vst.msk [vmem:[#allocation2 + $0x88] sm:$0xff] %vm60_vm0, %v7847_v29  ;;  %v7229_v2 = vpack.c.bf16 %v969_v38, %v968_v56 }
 0x1a7   :  { %7852 = vtanh.f32 %v683_v32 }
 0x1a8   :  { %v462_v1 = vpop.f32.mrb[42].mxu0  ;;  %7230 = vmatpush1.bf16.msra.mxu1 %v7229_v2 }
 0x1a9   :  { %v7849_v33 = vpop.eup %7848  ;;  %v688_v39 = vadd.f32 %v9043_v7, %v462_v1  ;;  %v464_v4 = vpop.f32.mrb[43].mxu0  ;;  %7231 = vmatprep.subr.bf16.mxu1 %v11923_v59  ;;  %v970_v43 = vld [vmem:[#allocation2 + $0x80] sm:$0xff] }
 0x1aa   :  { %791 = vst.msk [vmem:[#allocation2 + $0x90] sm:$0xff] %vm60_vm0, %v7849_v33 }
 0x1ab   :  { %7854 = vtanh.f32 %v688_v39 }
 0x1ac   :  { %v467_v48 = vpop.f32.mrb[44].mxu0 }
 0x1ad   :  { %v7851_v15 = vpop.eup %7850  ;;  %v693_v35 = vadd.f32 %v9063_v14, %v467_v48  ;;  %v469_v42 = vpop.f32.mrb[45].mxu0  ;;  %v971_v10 = vld [vmem:[#allocation2 + $0x88] sm:$0xff] }
 0x1ae   :  { %792 = vst.msk [vmem:[#allocation2 + $0x98] sm:$0xff] %vm60_vm0, %v7851_v15  ;;  %v7232_v52 = vpack.c.bf16 %v971_v10, %v970_v43  ;;  %v8328_v10 = vld [vmem:[#allocation8] sm:$0xff] }
 0x1af   :  { %7856 = vtanh.f32 %v693_v35 }
 0x1b0   :  { %v472_v6 = vpop.f32.mrb[46].mxu0  ;;  %7233 = vmatpush1.bf16.msra.mxu1 %v7232_v52  ;;  %v8329_v52 = vld [vmem:[#allocation8 + $0x18] sm:$0xff] }
 0x1b1   :  { %v7853_v7 = vpop.eup %7852  ;;  %v698_v45 = vadd.f32 %v9059_v46, %v472_v6  ;;  %v474_v13 = vpop.f32.mrb[47].mxu0  ;;  %7234 = vmatprep.subr.bf16.mxu1 %v11923_v59  ;;  %v972_v37 = vld [vmem:[#allocation2 + $0x90] sm:$0xff]  ;;  %v8330_v6 = vld [vmem:[#allocation8 + $0x10] sm:$0xff] }
 0x1b2   :  { %793 = vst.msk [vmem:[#allocation2 + $0xa0] sm:$0xff] %vm60_vm0, %v7853_v7  ;;  %v8331_v7 = vld [vmem:[#allocation8 + $0x28] sm:$0xff]  ;;  %v8333_v13 = vld [vmem:[#allocation8 + $0x38] sm:$0xff] }
 0x1b3   :  { %7858 = vtanh.f32 %v698_v45  ;;  %v8332_v45 = vld [vmem:[#allocation8 + $0x20] sm:$0xff] }
 0x1b4   :  { %v477_v49 = vpop.f32.mrb[48].mxu0 }
 0x1b5   :  { %v7855_v14 = vpop.eup %7854  ;;  %v703_v40 = vadd.f32 %v9070_v34, %v477_v49  ;;  %v479_v58 = vpop.f32.mrb[49].mxu0  ;;  %v973_v50 = vld [vmem:[#allocation2 + $0x98] sm:$0xff] }
 0x1b6   :  { %794 = vst.msk [vmem:[#allocation2 + $0xa8] sm:$0xff] %vm60_vm0, %v7855_v14  ;;  %v7235_v51 = vpack.c.bf16 %v973_v50, %v972_v37  ;;  %v8334_v49 = vld [vmem:[#allocation8 + $0x30] sm:$0xff]  ;;  %v8335_v14 = vld [vmem:[#allocation8 + $0x48] sm:$0xff]  ;;  %v8337_v58 = vld [vmem:[#allocation8 + $0x58] sm:$0xff] }
 0x1b7   :  { %7860 = vtanh.f32 %v703_v40  ;;  %v8336_v40 = vld [vmem:[#allocation8 + $0x40] sm:$0xff]  ;;  %v11924_v37 = vld [vmem:[#allocation29_spill] sm:$0xff]  ;;  %v11925_v50 = vld [vmem:[#allocation30_spill] sm:$0xff] }
 0x1b8   :  { %v482_v53 = vpop.f32.mrb[50].mxu0  ;;  %7236 = vmatpush1.bf16.msra.mxu1 %v7235_v51  ;;  %v11926_v51 = vld [vmem:[#allocation31_spill] sm:$0xff] }
 0x1b9   :  { %v7857_v46 = vpop.eup %7856  ;;  %v708_v17 = vadd.f32 %v9067_v28, %v482_v53  ;;  %v484_v20 = vpop.f32.mrb[51].mxu0  ;;  %7237 = vmatprep.subr.bf16.mxu1 %v11923_v59  ;;  %v974_v23 = vld [vmem:[#allocation2 + $0xa0] sm:$0xff]  ;;  %v11927_v53 = vld [vmem:[#allocation32_spill] sm:$0xff] }
 0x1ba   :  { %795 = vst.msk [vmem:[#allocation2 + $0xb0] sm:$0xff] %vm60_vm0, %v7857_v46  ;;  %v11928_v46 = vld [vmem:[#allocation33_spill] sm:$0xff]  ;;  %v11930_v20 = vld [vmem:[#allocation35_spill] sm:$0xff] }
 0x1bb   :  { %7862 = vtanh.f32 %v708_v17  ;;  %v11929_v17 = vld [vmem:[#allocation34_spill] sm:$0xff] }
 0x1bc   :  { %v487_v55 = vpop.f32.mrb[52].mxu0 }
 0x1bd   :  { %v7859_v34 = vpop.eup %7858  ;;  %v713_v61 = vadd.f32 %v9078_v62, %v487_v55  ;;  %v489_v57 = vpop.f32.mrb[53].mxu0  ;;  %v975_v54 = vld [vmem:[#allocation2 + $0xa8] sm:$0xff] }
 0x1be   :  { %796 = vst.msk [vmem:[#allocation2 + $0xb8] sm:$0xff] %vm60_vm0, %v7859_v34  ;;  %v7238_v31 = vpack.c.bf16 %v975_v54, %v974_v23  ;;  %v11931_v55 = vld [vmem:[#allocation36_spill] sm:$0xff]  ;;  %v11932_v34 = vld [vmem:[#allocation37_spill] sm:$0xff]  ;;  %v11934_v57 = vld [vmem:[#allocation39_spill] sm:$0xff] }
 0x1bf   :  { %7864 = vtanh.f32 %v713_v61  ;;  %v11933_v61 = vld [vmem:[#allocation38_spill] sm:$0xff]  ;;  %v11935_v23 = vld [vmem:[#allocation40_spill] sm:$0xff]  ;;  %v11936_v54 = vld [vmem:[#allocation41_spill] sm:$0xff] }
 0x1c0   :  { %v492_v21 = vpop.f32.mrb[54].mxu0  ;;  %7239 = vmatpush1.bf16.msra.mxu1 %v7238_v31  ;;  %v11937_v31 = vld [vmem:[#allocation42_spill] sm:$0xff] }
 0x1c1   :  { %v7861_v28 = vpop.eup %7860  ;;  %v718_v60 = vadd.f32 %v9075_v8, %v492_v21  ;;  %v494_v0 = vpop.f32.mrb[55].mxu0  ;;  %7240 = vmatprep.subr.bf16.mxu1 %v11923_v59  ;;  %v976_v63 = vld [vmem:[#allocation2 + $0xb0] sm:$0xff]  ;;  %v11938_v21 = vld [vmem:[#allocation43_spill] sm:$0xff] }
 0x1c2   :  { %797 = vst.msk [vmem:[#allocation2 + $0xc0] sm:$0xff] %vm60_vm0, %v7861_v28  ;;  %v11939_v28 = vld [vmem:[#allocation44_spill] sm:$0xff]  ;;  %v11941_v0 = vld [vmem:[#allocation46_spill] sm:$0xff] }
 0x1c3   :  { %7866 = vtanh.f32 %v718_v60  ;;  %v11940_v60 = vld [vmem:[#allocation45_spill] sm:$0xff] }
 0x1c4   :  { %v497_v3 = vpop.f32.mrb[56].mxu0 }
 0x1c5   :  { %v7863_v62 = vpop.eup %7862  ;;  %v723_v26 = vadd.f32 %v9087_v41, %v497_v3  ;;  %v499_v9 = vpop.f32.mrb[57].mxu0  ;;  %v977_v12 = vld [vmem:[#allocation2 + $0xb8] sm:$0xff]  ;;  %v11942_v3 = vld [vmem:[#allocation47_spill] sm:$0xff] }
 0x1c6   :  { %798 = vst.msk [vmem:[#allocation2 + $0xc8] sm:$0xff] %vm60_vm0, %v7863_v62  ;;  %v7241_v25 = vpack.c.bf16 %v977_v12, %v976_v63  ;;  %v11943_v62 = vld [vmem:[#allocation48_spill] sm:$0xff]  ;;  %v11945_v9 = vld [vmem:[#allocation50_spill] sm:$0xff]  ;;  %v11946_v63 = vld [vmem:[#allocation51_spill] sm:$0xff] }
 0x1c7   :  { %7868 = vtanh.f32 %v723_v26  ;;  %v11944_v26 = vld [vmem:[#allocation49_spill] sm:$0xff]  ;;  %v11947_v12 = vld [vmem:[#allocation52_spill] sm:$0xff] }
 0x1c8   :  { %v502_v30 = vpop.f32.mrb[58].mxu0  ;;  %7242 = vmatpush1.bf16.msra.mxu1 %v7241_v25  ;;  %v11948_v25 = vld [vmem:[#allocation53_spill] sm:$0xff] }
 0x1c9   :  { %v7865_v8 = vpop.eup %7864  ;;  %v728_v16 = vadd.f32 %v9083_v47, %v502_v30  ;;  %v504_v5 = vpop.f32.mrb[59].mxu0  ;;  %7243 = vmatprep.subr.bf16.mxu1 %v11923_v59  ;;  %v978_v11 = vld [vmem:[#allocation2 + $0xc0] sm:$0xff]  ;;  %v11949_v30 = vld [vmem:[#allocation54_spill] sm:$0xff] }
 0x1ca   :  { %799 = vst.msk [vmem:[#allocation2 + $0xd0] sm:$0xff] %vm60_vm0, %v7865_v8  ;;  %v11950_v8 = vld [vmem:[#allocation55_spill] sm:$0xff]  ;;  %v11952_v5 = vld [vmem:[#allocation57_spill] sm:$0xff] }
 0x1cb   :  { %7870 = vtanh.f32 %v728_v16  ;;  %v11951_v16 = vld [vmem:[#allocation56_spill] sm:$0xff] }
 0x1cc   :  { %v507_v18 = vpop.f32.mrb[60].mxu0 }
 0x1cd   :  { %v7867_v41 = vpop.eup %7866  ;;  %v733_v24 = vadd.f32 %v9095_v22, %v507_v18  ;;  %v509_v44 = vpop.f32.mrb[61].mxu0  ;;  %v979_v29 = vld [vmem:[#allocation2 + $0xc8] sm:$0xff]  ;;  %v11953_v18 = vld [vmem:[#allocation58_spill] sm:$0xff] }
 0x1ce   :  { %800 = vst.msk [vmem:[#allocation2 + $0xd8] sm:$0xff] %vm60_vm0, %v7867_v41  ;;  %v7244_v32 = vpack.c.bf16 %v979_v29, %v978_v11  ;;  %v11954_v41 = vld [vmem:[#allocation59_spill] sm:$0xff]  ;;  %v11956_v29 = vld [vmem:[#allocation61_spill] sm:$0xff] }
 0x1cf   :  { %7872 = vtanh.f32 %v733_v24  ;;  %v11955_v24 = vld [vmem:[#allocation60_spill] sm:$0xff] }
 0x1d0   :  { %v512_v36 = vpop.f32.mrb[62].mxu0  ;;  %7245 = vmatpush1.bf16.msra.mxu1 %v7244_v32  ;;  %v11957_v32 = vld [vmem:[#allocation62_spill] sm:$0xff] }
 0x1d1   :  { %v7869_v47 = vpop.eup %7868  ;;  %v738_v56 = vadd.f32 %v9092_v27, %v512_v36  ;;  %v514_v38 = vpop.f32.mrb[63].mxu0  ;;  %7246 = vmatprep.subr.bf16.mxu1 %v11923_v59  ;;  %v980_v22 = vld [vmem:[#allocation2 + $0xd0] sm:$0xff]  ;;  %v11958_v36 = vld [vmem:[#allocation63_spill] sm:$0xff] }
 0x1d2   :  { %801 = vst.msk [vmem:[#allocation2 + $0xe0] sm:$0xff] %vm60_vm0, %v7869_v47  ;;  %v11959_v47 = vld [vmem:[#allocation64_spill] sm:$0xff] }
 0x1d3   :  { %7874 = vtanh.f32 %v738_v56 }
 0x1d5   :  { %v7871_v2 = vpop.eup %7870  ;;  %v981_v1 = vld [vmem:[#allocation2 + $0xd8] sm:$0xff] }
 0x1d6   :  { %802 = vst.msk [vmem:[#allocation2 + $0xe8] sm:$0xff] %vm60_vm0, %v7871_v2  ;;  %v7247_v33 = vpack.c.bf16 %v981_v1, %v980_v22  ;;  %v11960_v2 = vld [vmem:[#allocation65_spill] sm:$0xff]  ;;  %v11961_v22 = vld [vmem:[#allocation66_spill] sm:$0xff]  ;;  %v11962_v1 = vld [vmem:[#allocation67_spill] sm:$0xff] }
 0x1d8   :  { %7248 = vmatpush1.bf16.msra.mxu1 %v7247_v33  ;;  %v11963_v33 = vld [vmem:[#allocation68_spill] sm:$0xff] }
 0x1d9   :  { %v7873_v39 = vpop.eup %7872  ;;  %7249 = vmatprep.subr.bf16.mxu1 %v11923_v59  ;;  %v982_v27 = vld [vmem:[#allocation2 + $0xe0] sm:$0xff] }
 0x1da   :  { %803 = vst.msk [vmem:[#allocation2 + $0xf0] sm:$0xff] %vm60_vm0, %v7873_v39 }
 0x1dd   :  { %v7875_v4 = vpop.eup %7874  ;;  %v983_v48 = vld [vmem:[#allocation2 + $0xe8] sm:$0xff] }
 0x1de   :  { %804 = vst.msk [vmem:[#allocation2 + $0xf8] sm:$0xff] %vm60_vm0, %v7875_v4  ;;  %v7250_v15 = vpack.c.bf16 %v983_v48, %v982_v27  ;;  %v11964_v27 = vld [vmem:[#allocation69_spill] sm:$0xff]  ;;  %v11965_v48 = vld [vmem:[#allocation70_spill] sm:$0xff] }
 0x1e0   :  { %7251 = vmatpush1.bf16.msra.mxu1 %v7250_v15  ;;  %v11966_v15 = vld [vmem:[#allocation71_spill] sm:$0xff] }
 0x1e1   :  { %7252 = vmatprep.subr.bf16.mxu1 %v11923_v59  ;;  %v984_v35 = vld [vmem:[#allocation2 + $0xf0] sm:$0xff] }
 0x1e5   :  { %v985_v42 = vld [vmem:[#allocation2 + $0xf8] sm:$0xff] }
 0x1e6   :  { %v7253_v43 = vpack.c.bf16 %v985_v42, %v984_v35  ;;  %v11967_v35 = vld [vmem:[#allocation72_spill] sm:$0xff] }
 0x1e8   :  { %7254 = vmatpush1.bf16.msra.mxu1 %v7253_v43 }
 0x1e9   :  { %7287 = vmatprep.subr.bf16.mxu1 %v11923_v59 }
 0x1eb   :  { %1051 = vmatmul.mubr.f32.vlgmr.msra.gmra.mrb[32].mxu1 %v8328_v10  ;;  %v11968_v10 = vld [vmem:[#allocation73_spill] sm:$0xff] }
 0x1ec   :  { %1055 = vmatprep.mubr.f32.mxu1 %v8329_v52  ;;  %v11969_v52 = vld [vmem:[#allocation74_spill] sm:$0xff] }
 0x1ed   :  { %v9219_v44 = vpop.f32.mrb[64].mxu0 }
 0x1ee   :  { %v9221_v11 = vpop.f32.mrb[65].mxu0 }
 0x1ef   :  { %1056 = vmatmul.mubr.f32.gmra.mrb[34].mxu1 %v8330_v6  ;;  %v11970_v6 = vld [vmem:[#allocation75_spill] sm:$0xff] }
 0x1f0   :  { %1060 = vmatprep.mubr.f32.mxu1 %v8331_v7  ;;  %v11971_v7 = vld [vmem:[#allocation76_spill] sm:$0xff] }
 0x1f1   :  { %v9227_v56 = vpop.f32.mrb[66].mxu0 }
 0x1f2   :  { %v9229_v38 = vpop.f32.mrb[67].mxu0 }
 0x1f3   :  { %1061 = vmatmul.mubr.f32.gmra.mrb[36].mxu1 %v8332_v45 }
 0x1f4   :  { %1065 = vmatprep.mubr.f32.mxu1 %v8333_v13 }
 0x1f5   :  { %v9235_v39 = vpop.f32.mrb[68].mxu0 }
 0x1f6   :  { %v9237_v4 = vpop.f32.mrb[69].mxu0 }
 0x1f7   :  { %1066 = vmatmul.mubr.f32.gmra.mrb[38].mxu1 %v8334_v49  ;;  %v11972_v49 = vld [vmem:[#allocation77_spill] sm:$0xff] }
 0x1f8   :  { %1070 = vmatprep.mubr.f32.mxu1 %v8335_v14  ;;  %v11973_v14 = vld [vmem:[#allocation78_spill] sm:$0xff] }
 0x1f9   :  { %v9243_v42 = vpop.f32.mrb[70].mxu0 }
 0x1fa   :  { %v9245_v43 = vpop.f32.mrb[71].mxu0 }
 0x1fb   :  { %1071 = vmatmul.mubr.f32.gmra.mrb[40].mxu1 %v8336_v40  ;;  %v11974_v40 = vld [vmem:[#allocation79_spill] sm:$0xff] }
 0x1fc   :  { %1075 = vmatprep.mubr.f32.mxu1 %v8337_v58  ;;  %v11975_v58 = vld [vmem:[#allocation80_spill] sm:$0xff] }
 0x1fd   :  { %v9251_v45 = vpop.f32.mrb[72].mxu0 }
 0x1fe   :  { %v9253_v13 = vpop.f32.mrb[73].mxu0 }
 0x1ff   :  { %1076 = vmatmul.mubr.f32.gmra.mrb[42].mxu1 %v11924_v37 }
 0x200   :  { %1080 = vmatprep.mubr.f32.mxu1 %v11925_v50 }
 0x201   :  { %v9259_v37 = vpop.f32.mrb[74].mxu0 }
 0x202   :  { %v9261_v50 = vpop.f32.mrb[75].mxu0 }
 0x203   :  { %1081 = vmatmul.mubr.f32.gmra.mrb[44].mxu1 %v11926_v51  ;;  %v11976_v51 = vld [vmem:[#allocation81_spill] sm:$0xff] }
 0x204   :  { %1085 = vmatprep.mubr.f32.mxu1 %v11927_v53 }
 0x205   :  { %v9264_v53 = vpop.f32.mrb[76].mxu0 }
 0x207   :  { %1086 = vmatmul.mubr.f32.gmra.mrb[46].mxu1 %v11928_v46  ;;  %v9266_v46 = vpop.f32.mrb[77].mxu0 }
 0x208   :  { %1090 = vmatprep.mubr.f32.mxu1 %v11929_v17 }
 0x209   :  { %v9268_v17 = vpop.f32.mrb[78].mxu0 }
 0x20b   :  { %1091 = vmatmul.mubr.f32.gmra.mrb[48].mxu1 %v11930_v20  ;;  %v9270_v20 = vpop.f32.mrb[79].mxu0 }
 0x20c   :  { %1095 = vmatprep.mubr.f32.mxu1 %v11931_v55 }
 0x20d   :  { %v9272_v55 = vpop.f32.mrb[80].mxu0 }
 0x20f   :  { %1096 = vmatmul.mubr.f32.gmra.mrb[50].mxu1 %v11932_v34  ;;  %v9274_v34 = vpop.f32.mrb[81].mxu0 }
 0x210   :  { %1100 = vmatprep.mubr.f32.mxu1 %v11933_v61 }
 0x211   :  { %v9276_v61 = vpop.f32.mrb[82].mxu0 }
 0x213   :  { %1101 = vmatmul.mubr.f32.gmra.mrb[52].mxu1 %v11934_v57  ;;  %v9278_v57 = vpop.f32.mrb[83].mxu0 }
 0x214   :  { %1105 = vmatprep.mubr.f32.mxu1 %v11935_v23 }
 0x215   :  { %v9280_v23 = vpop.f32.mrb[84].mxu0 }
 0x217   :  { %1106 = vmatmul.mubr.f32.gmra.mrb[54].mxu1 %v11936_v54  ;;  %v9282_v54 = vpop.f32.mrb[85].mxu0 }
 0x218   :  { %1110 = vmatprep.mubr.f32.mxu1 %v11937_v31 }
 0x219   :  { %v9284_v31 = vpop.f32.mrb[86].mxu0 }
 0x21b   :  { %1111 = vmatmul.mubr.f32.gmra.mrb[56].mxu1 %v11938_v21  ;;  %v9286_v21 = vpop.f32.mrb[87].mxu0 }
 0x21c   :  { %1115 = vmatprep.mubr.f32.mxu1 %v11939_v28 }
 0x21d   :  { %v9288_v28 = vpop.f32.mrb[88].mxu0 }
 0x21f   :  { %1116 = vmatmul.mubr.f32.gmra.mrb[58].mxu1 %v11940_v60  ;;  %v9290_v60 = vpop.f32.mrb[89].mxu0 }
 0x220   :  { %1120 = vmatprep.mubr.f32.mxu1 %v11941_v0 }
 0x221   :  { %v9292_v0 = vpop.f32.mrb[90].mxu0 }
 0x223   :  { %1121 = vmatmul.mubr.f32.gmra.mrb[60].mxu1 %v11942_v3  ;;  %v9294_v3 = vpop.f32.mrb[91].mxu0 }
 0x224   :  { %1125 = vmatprep.mubr.f32.mxu1 %v11943_v62 }
 0x225   :  { %v9296_v62 = vpop.f32.mrb[92].mxu0 }
 0x227   :  { %1126 = vmatmul.mubr.f32.gmra.mrb[62].mxu1 %v11944_v26  ;;  %v9298_v26 = vpop.f32.mrb[93].mxu0 }
 0x228   :  { %1130 = vmatprep.mubr.f32.mxu1 %v11945_v9  ;;  %v5869_v9 = vld [vmem:[#allocation3 + $0x2] ss:$0 sm:$0xff] }
 0x22b   :  { %1131 = vmatmul.mubr.f32.gmra.mrb[64].mxu1 %v11946_v63  ;;  %v11977_v63 = vld [vmem:[#allocation13_spill] sm:$0xff] }
 0x22c   :  { %1135 = vmatprep.mubr.f32.mxu1 %v11947_v12  ;;  %vm1505_vm4 = vcmp.eq.s32.totalorder %v11977_v63, %v5869_v9  ;;  %v11978_v12 = vld [vmem:[#allocation14_spill] sm:$0xff] }
 0x22d   :  { %vm1506_vm5 = vcmp.eq.s32.totalorder %v11978_v12, %v5869_v9 }
 0x22e   :  { %vm7335_vm6 = vmpackc.low %vm1506_vm5, %vm1505_vm4 }
 0x22f   :  { %1136 = vmatmul.mubr.f32.gmra.mrb[66].mxu1 %v11948_v25  ;;  %7336 = vmatprep.subr.msk.bf16.mxu0 %vm7335_vm6, %v11922_v19  ;;  %v9303_v25 = vpop.f32.mrb[94].mxu0 }
 0x230   :  { %1140 = vmatprep.mubr.f32.mxu1 %v11949_v30  ;;  %7338 = vmatpush3.bf16.msk.msra.mxu0 %vm7335_vm6, %v11922_v19  ;;  %v9306_v30 = vpop.f32.mrb[95].mxu0 }
 0x233   :  { %1141 = vmatmul.mubr.f32.gmra.mrb[68].mxu1 %v11950_v8  ;;  %v11979_v8 = vld [vmem:[#allocation15_spill] sm:$0xff] }
 0x234   :  { %1145 = vmatprep.mubr.f32.mxu1 %v11951_v16  ;;  %vm1507_vm7 = vcmp.eq.s32.totalorder %v11979_v8, %v5869_v9  ;;  %v11980_v16 = vld [vmem:[#allocation16_spill] sm:$0xff] }
 0x235   :  { %vm1508_vm8 = vcmp.eq.s32.totalorder %v11980_v16, %v5869_v9 }
 0x236   :  { %vm7339_vm9 = vmpackc.low %vm1508_vm8, %vm1507_vm7 }
 0x237   :  { %1146 = vmatmul.mubr.f32.gmra.mrb[70].mxu1 %v11952_v5  ;;  %7340 = vmatprep.subr.msk.bf16.mxu0 %vm7339_vm9, %v11922_v19  ;;  %v11981_v5 = vld [vmem:[#allocation17_spill] sm:$0xff] }
 0x238   :  { %1150 = vmatprep.mubr.f32.mxu1 %v11953_v18  ;;  %7342 = vmatpush3.bf16.msk.msra.mxu0 %vm7339_vm9, %v11922_v19  ;;  %vm1509_vm10 = vcmp.eq.s32.totalorder %v11981_v5, %v5869_v9  ;;  %v11982_v18 = vld [vmem:[#allocation18_spill] sm:$0xff] }
 0x239   :  { %vm1510_vm11 = vcmp.eq.s32.totalorder %v11982_v18, %v5869_v9 }
 0x23a   :  { %vm7343_vm12 = vmpackc.low %vm1510_vm11, %vm1509_vm10 }
 0x23b   :  { %1151 = vmatmul.mubr.f32.gmra.mrb[72].mxu1 %v11954_v41  ;;  %7344 = vmatprep.subr.msk.bf16.mxu0 %vm7343_vm12, %v11922_v19 }
 0x23c   :  { %1155 = vmatprep.mubr.f32.mxu1 %v11955_v24  ;;  %7346 = vmatpush3.bf16.msk.msra.mxu0 %vm7343_vm12, %v11922_v19  ;;  %v11983_v24 = vld [vmem:[#allocation19_spill] sm:$0xff] }
 0x23d   :  { %vm1511_vm13 = vcmp.eq.s32.totalorder %v11983_v24, %v5869_v9 }
 0x23f   :  { %1156 = vmatmul.mubr.f32.gmra.mrb[74].mxu1 %v11956_v29  ;;  %v11984_v29 = vld [vmem:[#allocation20_spill] sm:$0xff] }
 0x240   :  { %1160 = vmatprep.mubr.f32.mxu1 %v11957_v32  ;;  %vm1512_vm14 = vcmp.eq.s32.totalorder %v11984_v29, %v5869_v9 }
 0x241   :  { %vm7347_vm15 = vmpackc.low %vm1512_vm14, %vm1511_vm13 }
 0x242   :  { %7348 = vmatprep.subr.msk.bf16.mxu0 %vm7347_vm15, %v11922_v19 }
 0x243   :  { %1161 = vmatmul.mubr.f32.gmra.mrb[76].mxu1 %v11958_v36  ;;  %7350 = vmatpush3.bf16.msk.msra.mxu0 %vm7347_vm15, %v11922_v19 }
 0x244   :  { %1165 = vmatprep.mubr.f32.mxu1 %v11959_v47 }
 0x247   :  { %1166 = vmatmul.mubr.f32.gmra.mrb[78].mxu1 %v11960_v2  ;;  %v11985_v2 = vld [vmem:[#allocation21_spill] sm:$0xff] }
 0x248   :  { %1170 = vmatprep.mubr.f32.mxu1 %v11961_v22  ;;  %vm1513_vm1 = vcmp.eq.s32.totalorder %v11985_v2, %v5869_v9  ;;  %v11986_v22 = vld [vmem:[#allocation22_spill] sm:$0xff] }
 0x249   :  { %vm1514_vm2 = vcmp.eq.s32.totalorder %v11986_v22, %v5869_v9 }
 0x24a   :  { %vm7351_vm3 = vmpackc.low %vm1514_vm2, %vm1513_vm1 }
 0x24b   :  { %1171 = vmatmul.mubr.f32.gmra.mrb[80].mxu1 %v11962_v1  ;;  %7352 = vmatprep.subr.msk.bf16.mxu0 %vm7351_vm3, %v11922_v19 }
 0x24c   :  { %1175 = vmatprep.mubr.f32.mxu1 %v11963_v33  ;;  %7354 = vmatpush3.bf16.msk.msra.mxu0 %vm7351_vm3, %v11922_v19 }
 0x24f   :  { %1176 = vmatmul.mubr.f32.gmra.mrb[82].mxu1 %v11964_v27  ;;  %v11987_v27 = vld [vmem:[#allocation23_spill] sm:$0xff] }
 0x250   :  { %1180 = vmatprep.mubr.f32.mxu1 %v11965_v48  ;;  %vm1515_vm4 = vcmp.eq.s32.totalorder %v11987_v27, %v5869_v9  ;;  %v11988_v48 = vld [vmem:[#allocation24_spill] sm:$0xff] }
 0x251   :  { %vm1516_vm5 = vcmp.eq.s32.totalorder %v11988_v48, %v5869_v9 }
 0x252   :  { %vm7355_vm6 = vmpackc.low %vm1516_vm5, %vm1515_vm4 }
 0x253   :  { %1181 = vmatmul.mubr.f32.gmra.mrb[84].mxu1 %v11966_v15  ;;  %7356 = vmatprep.subr.msk.bf16.mxu0 %vm7355_vm6, %v11922_v19 }
 0x254   :  { %1185 = vmatprep.mubr.f32.mxu1 %v11967_v35  ;;  %7358 = vmatpush3.bf16.msk.msra.mxu0 %vm7355_vm6, %v11922_v19 }
 0x257   :  { %1186 = vmatmul.mubr.f32.gmra.mrb[86].mxu1 %v11968_v10  ;;  %v11989_v10 = vld [vmem:[#allocation25_spill] sm:$0xff] }
 0x258   :  { %1190 = vmatprep.mubr.f32.mxu1 %v11969_v52  ;;  %vm1517_vm7 = vcmp.eq.s32.totalorder %v11989_v10, %v5869_v9  ;;  %v11990_v52 = vld [vmem:[#allocation26_spill] sm:$0xff] }
 0x259   :  { %vm1518_vm8 = vcmp.eq.s32.totalorder %v11990_v52, %v5869_v9 }
 0x25a   :  { %vm7359_vm11 = vmpackc.low %vm1518_vm8, %vm1517_vm7 }
 0x25b   :  { %1191 = vmatmul.mubr.f32.gmra.mrb[88].mxu1 %v11970_v6  ;;  %v11991_v6 = vld [vmem:[#allocation27_spill] sm:$0xff]  ;;  %7360 = vmatprep.subr.msk.bf16.mxu0 %vm7359_vm11, %v11922_v19 }
 0x25c   :  { %1195 = vmatprep.mubr.f32.mxu1 %v11971_v7  ;;  %vm1519_vm9 = vcmp.eq.s32.totalorder %v11991_v6, %v5869_v9  ;;  %v11992_v7 = vld [vmem:[#allocation28_spill] sm:$0xff]  ;;  %7362 = vmatpush3.bf16.msk.msra.mxu0 %vm7359_vm11, %v11922_v19 }
 0x25d   :  { %vm1520_vm10 = vcmp.eq.s32.totalorder %v11992_v7, %v5869_v9 }
 0x25e   :  { %vm7363_vm12 = vmpackc.low %vm1520_vm10, %vm1519_vm9 }
 0x25f   :  { %1196 = vmatmul.mubr.f32.gmra.mrb[90].mxu1 %v11972_v49  ;;  %7364 = vmatprep.subr.msk.bf16.mxu0 %vm7363_vm12, %v11922_v19 }
 0x260   :  { %1200 = vmatprep.mubr.f32.mxu1 %v11973_v14  ;;  %7366 = vmatpush3.bf16.msk.msra.mxu0 %vm7363_vm12, %v11922_v19 }
 0x261   :  { %7367 = vmatprep.subr.bf16.mxu0 %v11923_v59 }
 0x263   :  { %1201 = vmatmul.mubr.f32.gmra.mrb[92].mxu1 %v11974_v40 }
 0x264   :  { %1205 = vmatprep.mubr.f32.mxu1 %v11975_v58 }
 0x267   :  { %1206 = vmatmul.mubr.f32.gmra.mrb[94].mxu1 %v11976_v51 }
 0x2be   :  { %v1052_v41 = vpop.f32.mrb[32].mxu1 }
 0x2bf   :  { %v1278_v32 = vadd.f32 %v9221_v11, %v1052_v41  ;;  %v1054_v36 = vpop.f32.mrb[33].mxu1  ;;  %v9343_v41 = vld [vmem:[#allocation6] sm:$0xff] }
 0x2c0   :  { %v1554_v36 = vld [vmem:[#allocation6 + $0x8] sm:$0xff]  ;;  %6679 = vmatprep.mubr.f32.mxu0 %v9343_v41 }
 0x2c1   :  { %7876 = vtanh.f32 %v1278_v32  ;;  %v9345_v32 = vld [vmem:[#allocation8 + $0x8] sm:$0xff]  ;;  %6680 = vmatmul.mubr.f32.vlgmr.msra.gmra.mrb[96].mxu0 %v1554_v36 }
 0x2c2   :  { %v1057_v47 = vpop.f32.mrb[34].mxu1  ;;  %1745 = vmatprep.mubr.f32.mxu1 %v9345_v32 }
 0x2c3   :  { %v1283_v1 = vadd.f32 %v9219_v44, %v1057_v47  ;;  %v1059_v33 = vpop.f32.mrb[35].mxu1 }
 0x2c5   :  { %7878 = vtanh.f32 %v1283_v1 }
 0x2c6   :  { %v1062_v11 = vpop.f32.mrb[36].mxu1 }
 0x2c7   :  { %v1288_v15 = vadd.f32 %v9229_v38, %v1062_v11  ;;  %v1064_v35 = vpop.f32.mrb[37].mxu1 }
 0x2c9   :  { %7880 = vtanh.f32 %v1288_v15 }
 0x2ca   :  { %v1067_v44 = vpop.f32.mrb[38].mxu1 }
 0x2cb   :  { %v7877_v49 = vpop.eup %7876  ;;  %v1293_v14 = vadd.f32 %v9227_v56, %v1067_v44  ;;  %v1069_v38 = vpop.f32.mrb[39].mxu1 }
 0x2cc   :  { %1468 = vst.msk [vmem:[#allocation2] sm:$0xff] %vm60_vm0, %v7877_v49 }
 0x2cd   :  { %7882 = vtanh.f32 %v1293_v14 }
 0x2ce   :  { %v1072_v40 = vpop.f32.mrb[40].mxu1 }
 0x2cf   :  { %v7879_v58 = vpop.eup %7878  ;;  %v1298_v51 = vadd.f32 %v9237_v4, %v1072_v40  ;;  %v1074_v9 = vpop.f32.mrb[41].mxu1  ;;  %v1556_v40 = vld [vmem:[#allocation6 + $0x18] sm:$0xff] }
 0x2d0   :  { %1469 = vst.msk [vmem:[#allocation2 + $0x8] sm:$0xff] %vm60_vm0, %v7879_v58 }
 0x2d1   :  { %7884 = vtanh.f32 %v1298_v51 }
 0x2d2   :  { %v1077_v56 = vpop.f32.mrb[42].mxu1 }
 0x2d3   :  { %v7881_v47 = vpop.eup %7880  ;;  %v1303_v1 = vadd.f32 %v9235_v39, %v1077_v56  ;;  %v1079_v33 = vpop.f32.mrb[43].mxu1  ;;  %v1649_v44 = vld [vmem:[#allocation2] sm:$0xff]  ;;  %v1555_v39 = vld [vmem:[#allocation6 + $0x10] sm:$0xff] }
 0x2d4   :  { %1470 = vst.msk [vmem:[#allocation2 + $0x10] sm:$0xff] %vm60_vm0, %v7881_v47  ;;  %6682 = vmatprep.mubr.f32.mxu0 %v1555_v39 }
 0x2d5   :  { %7886 = vtanh.f32 %v1303_v1  ;;  %6683 = vmatmul.mubr.f32.gmra.mrb[98].mxu0 %v1556_v40 }
 0x2d6   :  { %v1082_v4 = vpop.f32.mrb[44].mxu1 }
 0x2d7   :  { %v7883_v11 = vpop.eup %7882  ;;  %v1308_v15 = vadd.f32 %v9245_v43, %v1082_v4  ;;  %v1084_v35 = vpop.f32.mrb[45].mxu1  ;;  %v1650_v49 = vld [vmem:[#allocation2 + $0x8] sm:$0xff] }
 0x2d8   :  { %1471 = vst.msk [vmem:[#allocation2 + $0x18] sm:$0xff] %vm60_vm0, %v7883_v11  ;;  %v7288_v14 = vpack.c.bf16 %v1650_v49, %v1649_v44  ;;  %v1557_v11 = vld [vmem:[#allocation6 + $0x20] sm:$0xff] }
 0x2d9   :  { %7888 = vtanh.f32 %v1308_v15  ;;  %6685 = vmatprep.mubr.f32.mxu0 %v1557_v11  ;;  %v1558_v15 = vld [vmem:[#allocation6 + $0x28] sm:$0xff] }
 0x2da   :  { %v1087_v38 = vpop.f32.mrb[46].mxu1  ;;  %7289 = vmatpush1.bf16.msra.mxu1 %v7288_v14  ;;  %6686 = vmatmul.mubr.f32.gmra.mrb[100].mxu0 %v1558_v15 }
 0x2db   :  { %v7885_v58 = vpop.eup %7884  ;;  %v1313_v51 = vadd.f32 %v9243_v42, %v1087_v38  ;;  %v1089_v9 = vpop.f32.mrb[47].mxu1  ;;  %7290 = vmatprep.subr.bf16.mxu1 %v11923_v59  ;;  %v1651_v1 = vld [vmem:[#allocation2 + $0x10] sm:$0xff] }
 0x2dc   :  { %1472 = vst.msk [vmem:[#allocation2 + $0x20] sm:$0xff] %vm60_vm0, %v7885_v58  ;;  %v9364_v9 = vld [vmem:[#allocation6 + $0x30] sm:$0xff] }
 0x2dd   :  { %7890 = vtanh.f32 %v1313_v51  ;;  %6688 = vmatprep.mubr.f32.mxu0 %v9364_v9 }
 0x2de   :  { %v1092_v43 = vpop.f32.mrb[48].mxu1 }
 0x2df   :  { %v7887_v56 = vpop.eup %7886  ;;  %v1318_v36 = vadd.f32 %v9253_v13, %v1092_v43  ;;  %v1094_v47 = vpop.f32.mrb[49].mxu1  ;;  %v1652_v33 = vld [vmem:[#allocation2 + $0x18] sm:$0xff]  ;;  %v9367_v43 = vld [vmem:[#allocation6 + $0x38] sm:$0xff] }
 0x2e0   :  { %1473 = vst.msk [vmem:[#allocation2 + $0x28] sm:$0xff] %vm60_vm0, %v7887_v56  ;;  %v7291_v4 = vpack.c.bf16 %v1652_v33, %v1651_v1  ;;  %6689 = vmatmul.mubr.f32.gmra.mrb[102].mxu0 %v9367_v43 }
 0x2e1   :  { %7892 = vtanh.f32 %v1318_v36 }
 0x2e2   :  { %v1097_v42 = vpop.f32.mrb[50].mxu1  ;;  %7292 = vmatpush1.bf16.msra.mxu1 %v7291_v4 }
 0x2e3   :  { %v7889_v35 = vpop.eup %7888  ;;  %v1323_v44 = vadd.f32 %v9251_v45, %v1097_v42  ;;  %v1099_v49 = vpop.f32.mrb[51].mxu1  ;;  %7293 = vmatprep.subr.bf16.mxu1 %v11923_v59  ;;  %v1653_v40 = vld [vmem:[#allocation2 + $0x20] sm:$0xff] }
 0x2e4   :  { %1474 = vst.msk [vmem:[#allocation2 + $0x30] sm:$0xff] %vm60_vm0, %v7889_v35 }
 0x2e5   :  { %7894 = vtanh.f32 %v1323_v44  ;;  %v9378_v44 = vld [vmem:[#allocation6 + $0x48] sm:$0xff] }
 0x2e6   :  { %v1102_v13 = vpop.f32.mrb[52].mxu1 }
 0x2e7   :  { %v7891_v14 = vpop.eup %7890  ;;  %v1328_v39 = vadd.f32 %v9261_v50, %v1102_v13  ;;  %v1104_v38 = vpop.f32.mrb[53].mxu1  ;;  %v1654_v58 = vld [vmem:[#allocation2 + $0x28] sm:$0xff] }
 0x2e8   :  { %1475 = vst.msk [vmem:[#allocation2 + $0x38] sm:$0xff] %vm60_vm0, %v7891_v14  ;;  %v7294_v51 = vpack.c.bf16 %v1654_v58, %v1653_v40 }
 0x2e9   :  { %7896 = vtanh.f32 %v1328_v39 }
 0x2ea   :  { %v1107_v45 = vpop.f32.mrb[54].mxu1  ;;  %7295 = vmatpush1.bf16.msra.mxu1 %v7294_v51 }
 0x2eb   :  { %v7893_v56 = vpop.eup %7892  ;;  %v1333_v36 = vadd.f32 %v9259_v37, %v1107_v45  ;;  %v1109_v47 = vpop.f32.mrb[55].mxu1  ;;  %7296 = vmatprep.subr.bf16.mxu1 %v11923_v59  ;;  %v1655_v11 = vld [vmem:[#allocation2 + $0x30] sm:$0xff]  ;;  %v9375_v37 = vld [vmem:[#allocation6 + $0x40] sm:$0xff] }
 0x2ec   :  { %1476 = vst.msk [vmem:[#allocation2 + $0x40] sm:$0xff] %vm60_vm0, %v7893_v56  ;;  %6691 = vmatprep.mubr.f32.mxu0 %v9375_v37 }
 0x2ed   :  { %7898 = vtanh.f32 %v1333_v36  ;;  %6692 = vmatmul.mubr.f32.gmra.mrb[104].mxu0 %v9378_v44  ;;  %v9389_v36 = vld [vmem:[#allocation6 + $0x58] sm:$0xff] }
 0x2ee   :  { %v1112_v50 = vpop.f32.mrb[56].mxu1 }
 0x2ef   :  { %v7895_v1 = vpop.eup %7894  ;;  %v1338_v33 = vadd.f32 %v9266_v46, %v1112_v50  ;;  %v1114_v4 = vpop.f32.mrb[57].mxu1  ;;  %v1656_v42 = vld [vmem:[#allocation2 + $0x38] sm:$0xff] }
 0x2f0   :  { %1477 = vst.msk [vmem:[#allocation2 + $0x48] sm:$0xff] %vm60_vm0, %v7895_v1  ;;  %v7297_v15 = vpack.c.bf16 %v1656_v42, %v1655_v11 }
 0x2f1   :  { %7900 = vtanh.f32 %v1338_v33 }
 0x2f2   :  { %v1117_v35 = vpop.f32.mrb[58].mxu1  ;;  %7298 = vmatpush1.bf16.msra.mxu1 %v7297_v15 }
 0x2f3   :  { %v7897_v49 = vpop.eup %7896  ;;  %v1343_v13 = vadd.f32 %v9264_v53, %v1117_v35  ;;  %v1119_v14 = vpop.f32.mrb[59].mxu1  ;;  %7299 = vmatprep.subr.bf16.mxu1 %v11923_v59  ;;  %v1657_v58 = vld [vmem:[#allocation2 + $0x40] sm:$0xff]  ;;  %v9386_v53 = vld [vmem:[#allocation6 + $0x50] sm:$0xff] }
 0x2f4   :  { %1478 = vst.msk [vmem:[#allocation2 + $0x50] sm:$0xff] %vm60_vm0, %v7897_v49  ;;  %6694 = vmatprep.mubr.f32.mxu0 %v9386_v53 }
 0x2f5   :  { %7902 = vtanh.f32 %v1343_v13  ;;  %6695 = vmatmul.mubr.f32.gmra.mrb[106].mxu0 %v9389_v36  ;;  %v9400_v13 = vld [vmem:[#allocation6 + $0x68] sm:$0xff] }
 0x2f6   :  { %v1122_v46 = vpop.f32.mrb[60].mxu1 }
 0x2f7   :  { %v7899_v39 = vpop.eup %7898  ;;  %v1348_v38 = vadd.f32 %v9270_v20, %v1122_v46  ;;  %v1124_v40 = vpop.f32.mrb[61].mxu1  ;;  %v1658_v51 = vld [vmem:[#allocation2 + $0x48] sm:$0xff] }
 0x2f8   :  { %1479 = vst.msk [vmem:[#allocation2 + $0x58] sm:$0xff] %vm60_vm0, %v7899_v39  ;;  %v7300_v45 = vpack.c.bf16 %v1658_v51, %v1657_v58 }
 0x2f9   :  { %7904 = vtanh.f32 %v1348_v38 }
 0x2fa   :  { %v1127_v56 = vpop.f32.mrb[62].mxu1  ;;  %7301 = vmatpush1.bf16.msra.mxu1 %v7300_v45 }
 0x2fb   :  { %v7901_v47 = vpop.eup %7900  ;;  %v1353_v50 = vadd.f32 %v9268_v17, %v1127_v56  ;;  %v1129_v1 = vpop.f32.mrb[63].mxu1  ;;  %7302 = vmatprep.subr.bf16.mxu1 %v11923_v59  ;;  %v1659_v42 = vld [vmem:[#allocation2 + $0x50] sm:$0xff]  ;;  %v9397_v17 = vld [vmem:[#allocation6 + $0x60] sm:$0xff] }
 0x2fc   :  { %1480 = vst.msk [vmem:[#allocation2 + $0x60] sm:$0xff] %vm60_vm0, %v7901_v47  ;;  %6697 = vmatprep.mubr.f32.mxu0 %v9397_v17 }
 0x2fd   :  { %7906 = vtanh.f32 %v1353_v50  ;;  %6698 = vmatmul.mubr.f32.gmra.mrb[108].mxu0 %v9400_v13  ;;  %v9411_v50 = vld [vmem:[#allocation6 + $0x78] sm:$0xff] }
 0x2fe   :  { %v1132_v20 = vpop.f32.mrb[64].mxu1 }
 0x2ff   :  { %v7903_v33 = vpop.eup %7902  ;;  %v1358_v4 = vadd.f32 %v9274_v34, %v1132_v20  ;;  %v1134_v11 = vpop.f32.mrb[65].mxu1  ;;  %v1660_v15 = vld [vmem:[#allocation2 + $0x58] sm:$0xff] }
 0x300   :  { %1481 = vst.msk [vmem:[#allocation2 + $0x68] sm:$0xff] %vm60_vm0, %v7903_v33  ;;  %v7303_v35 = vpack.c.bf16 %v1660_v15, %v1659_v42 }
 0x301   :  { %7908 = vtanh.f32 %v1358_v4 }
 0x302   :  { %v1137_v49 = vpop.f32.mrb[66].mxu1  ;;  %7304 = vmatpush1.bf16.msra.mxu1 %v7303_v35 }
 0x303   :  { %v7905_v14 = vpop.eup %7904  ;;  %v1363_v46 = vadd.f32 %v9272_v55, %v1137_v49  ;;  %v1139_v39 = vpop.f32.mrb[67].mxu1  ;;  %7305 = vmatprep.subr.bf16.mxu1 %v11923_v59  ;;  %v1661_v51 = vld [vmem:[#allocation2 + $0x60] sm:$0xff]  ;;  %v9408_v55 = vld [vmem:[#allocation6 + $0x70] sm:$0xff] }
 0x304   :  { %1482 = vst.msk [vmem:[#allocation2 + $0x70] sm:$0xff] %vm60_vm0, %v7905_v14  ;;  %6700 = vmatprep.mubr.f32.mxu0 %v9408_v55 }
 0x305   :  { %7910 = vtanh.f32 %v1363_v46  ;;  %6701 = vmatmul.mubr.f32.gmra.mrb[110].mxu0 %v9411_v50  ;;  %v9422_v46 = vld [vmem:[#allocation6 + $0x88] sm:$0xff] }
 0x306   :  { %v1142_v34 = vpop.f32.mrb[68].mxu1 }
 0x307   :  { %v7907_v38 = vpop.eup %7906  ;;  %v1368_v40 = vadd.f32 %v9278_v57, %v1142_v34  ;;  %v1144_v58 = vpop.f32.mrb[69].mxu1  ;;  %v1662_v45 = vld [vmem:[#allocation2 + $0x68] sm:$0xff] }
 0x308   :  { %1483 = vst.msk [vmem:[#allocation2 + $0x78] sm:$0xff] %vm60_vm0, %v7907_v38  ;;  %v7306_v56 = vpack.c.bf16 %v1662_v45, %v1661_v51 }
 0x309   :  { %7912 = vtanh.f32 %v1368_v40 }
 0x30a   :  { %v1147_v47 = vpop.f32.mrb[70].mxu1  ;;  %7307 = vmatpush1.bf16.msra.mxu1 %v7306_v56 }
 0x30b   :  { %v7909_v1 = vpop.eup %7908  ;;  %v1373_v20 = vadd.f32 %v9276_v61, %v1147_v47  ;;  %v1149_v33 = vpop.f32.mrb[71].mxu1  ;;  %7308 = vmatprep.subr.bf16.mxu1 %v11923_v59  ;;  %v1663_v15 = vld [vmem:[#allocation2 + $0x70] sm:$0xff]  ;;  %v9419_v61 = vld [vmem:[#allocation6 + $0x80] sm:$0xff] }
 0x30c   :  { %1484 = vst.msk [vmem:[#allocation2 + $0x80] sm:$0xff] %vm60_vm0, %v7909_v1  ;;  %6703 = vmatprep.mubr.f32.mxu0 %v9419_v61 }
 0x30d   :  { %7914 = vtanh.f32 %v1373_v20  ;;  %6704 = vmatmul.mubr.f32.gmra.mrb[112].mxu0 %v9422_v46  ;;  %v9433_v20 = vld [vmem:[#allocation6 + $0x98] sm:$0xff] }
 0x30e   :  { %v1152_v57 = vpop.f32.mrb[72].mxu1 }
 0x30f   :  { %v7911_v4 = vpop.eup %7910  ;;  %v1378_v11 = vadd.f32 %v9282_v54, %v1152_v57  ;;  %v1154_v42 = vpop.f32.mrb[73].mxu1  ;;  %v1664_v35 = vld [vmem:[#allocation2 + $0x78] sm:$0xff] }
 0x310   :  { %1485 = vst.msk [vmem:[#allocation2 + $0x88] sm:$0xff] %vm60_vm0, %v7911_v4  ;;  %v7309_v49 = vpack.c.bf16 %v1664_v35, %v1663_v15 }
 0x311   :  { %7916 = vtanh.f32 %v1378_v11 }
 0x312   :  { %v1157_v14 = vpop.f32.mrb[74].mxu1  ;;  %7310 = vmatpush1.bf16.msra.mxu1 %v7309_v49 }
 0x313   :  { %v7913_v39 = vpop.eup %7912  ;;  %v1383_v34 = vadd.f32 %v9280_v23, %v1157_v14  ;;  %v1159_v38 = vpop.f32.mrb[75].mxu1  ;;  %7311 = vmatprep.subr.bf16.mxu1 %v11923_v59  ;;  %v1665_v45 = vld [vmem:[#allocation2 + $0x80] sm:$0xff]  ;;  %v9430_v23 = vld [vmem:[#allocation6 + $0x90] sm:$0xff] }
 0x314   :  { %1486 = vst.msk [vmem:[#allocation2 + $0x90] sm:$0xff] %vm60_vm0, %v7913_v39  ;;  %6706 = vmatprep.mubr.f32.mxu0 %v9430_v23 }
 0x315   :  { %7918 = vtanh.f32 %v1383_v34  ;;  %6707 = vmatmul.mubr.f32.gmra.mrb[114].mxu0 %v9433_v20  ;;  %v9444_v34 = vld [vmem:[#allocation6 + $0xa8] sm:$0xff] }
 0x316   :  { %v1162_v54 = vpop.f32.mrb[76].mxu1 }
 0x317   :  { %v7915_v40 = vpop.eup %7914  ;;  %v1388_v58 = vadd.f32 %v9286_v21, %v1162_v54  ;;  %v1164_v51 = vpop.f32.mrb[77].mxu1  ;;  %v1666_v56 = vld [vmem:[#allocation2 + $0x88] sm:$0xff] }
 0x318   :  { %1487 = vst.msk [vmem:[#allocation2 + $0x98] sm:$0xff] %vm60_vm0, %v7915_v40  ;;  %v7312_v47 = vpack.c.bf16 %v1666_v56, %v1665_v45 }
 0x319   :  { %7920 = vtanh.f32 %v1388_v58 }
 0x31a   :  { %v1167_v1 = vpop.f32.mrb[78].mxu1  ;;  %7313 = vmatpush1.bf16.msra.mxu1 %v7312_v47 }
 0x31b   :  { %v7917_v33 = vpop.eup %7916  ;;  %v1393_v57 = vadd.f32 %v9284_v31, %v1167_v1  ;;  %v1169_v4 = vpop.f32.mrb[79].mxu1  ;;  %7314 = vmatprep.subr.bf16.mxu1 %v11923_v59  ;;  %v1667_v35 = vld [vmem:[#allocation2 + $0x90] sm:$0xff]  ;;  %v9441_v31 = vld [vmem:[#allocation6 + $0xa0] sm:$0xff] }
 0x31c   :  { %1488 = vst.msk [vmem:[#allocation2 + $0xa0] sm:$0xff] %vm60_vm0, %v7917_v33  ;;  %6709 = vmatprep.mubr.f32.mxu0 %v9441_v31 }
 0x31d   :  { %7922 = vtanh.f32 %v1393_v57  ;;  %6710 = vmatmul.mubr.f32.gmra.mrb[116].mxu0 %v9444_v34  ;;  %v9455_v57 = vld [vmem:[#allocation6 + $0xb8] sm:$0xff] }
 0x31e   :  { %v1172_v21 = vpop.f32.mrb[80].mxu1 }
 0x31f   :  { %v7919_v11 = vpop.eup %7918  ;;  %v1398_v42 = vadd.f32 %v9290_v60, %v1172_v21  ;;  %v1174_v15 = vpop.f32.mrb[81].mxu1  ;;  %v1668_v49 = vld [vmem:[#allocation2 + $0x98] sm:$0xff] }
 0x320   :  { %1489 = vst.msk [vmem:[#allocation2 + $0xa8] sm:$0xff] %vm60_vm0, %v7919_v11  ;;  %v7315_v14 = vpack.c.bf16 %v1668_v49, %v1667_v35 }
 0x321   :  { %7924 = vtanh.f32 %v1398_v42 }
 0x322   :  { %v1177_v39 = vpop.f32.mrb[82].mxu1  ;;  %7316 = vmatpush1.bf16.msra.mxu1 %v7315_v14 }
 0x323   :  { %v7921_v38 = vpop.eup %7920  ;;  %v1403_v54 = vadd.f32 %v9288_v28, %v1177_v39  ;;  %v1179_v40 = vpop.f32.mrb[83].mxu1  ;;  %7317 = vmatprep.subr.bf16.mxu1 %v11923_v59  ;;  %v1669_v56 = vld [vmem:[#allocation2 + $0xa0] sm:$0xff]  ;;  %v9452_v28 = vld [vmem:[#allocation6 + $0xb0] sm:$0xff] }
 0x324   :  { %1490 = vst.msk [vmem:[#allocation2 + $0xb0] sm:$0xff] %vm60_vm0, %v7921_v38  ;;  %6712 = vmatprep.mubr.f32.mxu0 %v9452_v28 }
 0x325   :  { %7926 = vtanh.f32 %v1403_v54  ;;  %6713 = vmatmul.mubr.f32.gmra.mrb[118].mxu0 %v9455_v57  ;;  %v9466_v54 = vld [vmem:[#allocation6 + $0xc8] sm:$0xff] }
 0x326   :  { %v1182_v60 = vpop.f32.mrb[84].mxu1  ;;  %11993 = vst [vmem:[#allocation29_spill] sm:$0xff] %v9466_v54 }
 0x327   :  { %v7923_v58 = vpop.eup %7922  ;;  %v1408_v51 = vadd.f32 %v9294_v3, %v1182_v60  ;;  %v1184_v45 = vpop.f32.mrb[85].mxu1  ;;  %v1670_v47 = vld [vmem:[#allocation2 + $0xa8] sm:$0xff] }
 0x328   :  { %1491 = vst.msk [vmem:[#allocation2 + $0xb8] sm:$0xff] %vm60_vm0, %v7923_v58  ;;  %v7318_v1 = vpack.c.bf16 %v1670_v47, %v1669_v56 }
 0x329   :  { %7928 = vtanh.f32 %v1408_v51 }
 0x32a   :  { %v1187_v33 = vpop.f32.mrb[86].mxu1  ;;  %7319 = vmatpush1.bf16.msra.mxu1 %v7318_v1 }
 0x32b   :  { %v7925_v4 = vpop.eup %7924  ;;  %v1413_v21 = vadd.f32 %v9292_v0, %v1187_v33  ;;  %v1189_v11 = vpop.f32.mrb[87].mxu1  ;;  %7320 = vmatprep.subr.bf16.mxu1 %v11923_v59  ;;  %v1671_v49 = vld [vmem:[#allocation2 + $0xb0] sm:$0xff]  ;;  %v9463_v0 = vld [vmem:[#allocation6 + $0xc0] sm:$0xff] }
 0x32c   :  { %1492 = vst.msk [vmem:[#allocation2 + $0xc0] sm:$0xff] %vm60_vm0, %v7925_v4  ;;  %6715 = vmatprep.mubr.f32.mxu0 %v9463_v0 }
 0x32d   :  { %7930 = vtanh.f32 %v1413_v21  ;;  %6716 = vmatmul.mubr.f32.gmra.mrb[120].mxu0 %v9466_v54  ;;  %v9477_v21 = vld [vmem:[#allocation6 + $0xd8] sm:$0xff] }
 0x32e   :  { %v1192_v3 = vpop.f32.mrb[88].mxu1  ;;  %11995 = vst [vmem:[#allocation31_spill] sm:$0xff] %v9477_v21  ;;  %v5902_v54 = vld [vmem:[#allocation3 + $0x3] ss:$0 sm:$0xff] }
 0x32f   :  { %v7927_v42 = vpop.eup %7926  ;;  %v1418_v15 = vadd.f32 %v9298_v26, %v1192_v3  ;;  %v1194_v35 = vpop.f32.mrb[89].mxu1  ;;  %v1672_v14 = vld [vmem:[#allocation2 + $0xb8] sm:$0xff]  ;;  %vm2200_vm13 = vcmp.eq.s32.totalorder %v11977_v63, %v5902_v54  ;;  %vm2201_vm14 = vcmp.eq.s32.totalorder %v11978_v12, %v5902_v54  ;;  %vm2202_vm1 = vcmp.eq.s32.totalorder %v11979_v8, %v5902_v54 }
 0x330   :  { %1493 = vst.msk [vmem:[#allocation2 + $0xc8] sm:$0xff] %vm60_vm0, %v7927_v42  ;;  %v7321_v39 = vpack.c.bf16 %v1672_v14, %v1671_v49  ;;  %v9484_v14 = vld [vmem:[#allocation6 + $0xe0] sm:$0xff]  ;;  %vm7415_vm15 = vmpackc.low %vm2201_vm14, %vm2200_vm13  ;;  %vm2203_vm2 = vcmp.eq.s32.totalorder %v11980_v16, %v5902_v54  ;;  %vm2204_vm4 = vcmp.eq.s32.totalorder %v11981_v5, %v5902_v54  ;;  %vm2205_vm5 = vcmp.eq.s32.totalorder %v11982_v18, %v5902_v54 }
 0x331   :  { %7932 = vtanh.f32 %v1418_v15  ;;  %11996 = vst [vmem:[#allocation32_spill] sm:$0xff] %v9484_v14  ;;  %vm7419_vm3 = vmpackc.low %vm2203_vm2, %vm2202_vm1  ;;  %vm2206_vm7 = vcmp.eq.s32.totalorder %v11983_v24, %v5902_v54  ;;  %vm2207_vm8 = vcmp.eq.s32.totalorder %v11984_v29, %v5902_v54  ;;  %vm2208_vm10 = vcmp.eq.s32.totalorder %v11985_v2, %v5902_v54 }
 0x332   :  { %v1197_v38 = vpop.f32.mrb[90].mxu1  ;;  %7322 = vmatpush1.bf16.msra.mxu1 %v7321_v39  ;;  %vm7423_vm6 = vmpackc.low %vm2205_vm5, %vm2204_vm4  ;;  %vm2209_vm11 = vcmp.eq.s32.totalorder %v11986_v22, %v5902_v54  ;;  %vm2210_vm13 = vcmp.eq.s32.totalorder %v11987_v27, %v5902_v54  ;;  %vm2211_vm14 = vcmp.eq.s32.totalorder %v11988_v48, %v5902_v54  ;;  %vm2212_vm1 = vcmp.eq.s32.totalorder %v11989_v10, %v5902_v54 }
 0x333   :  { %v7929_v40 = vpop.eup %7928  ;;  %v1423_v60 = vadd.f32 %v9296_v62, %v1197_v38  ;;  %v1199_v58 = vpop.f32.mrb[91].mxu1  ;;  %7323 = vmatprep.subr.bf16.mxu1 %v11923_v59  ;;  %v1673_v47 = vld [vmem:[#allocation2 + $0xc0] sm:$0xff]  ;;  %v9474_v62 = vld [vmem:[#allocation6 + $0xd0] sm:$0xff]  ;;  %vm7427_vm9 = vmpackc.low %vm2207_vm8, %vm2206_vm7  ;;  %vm2213_vm2 = vcmp.eq.s32.totalorder %v11990_v52, %v5902_v54  ;;  %vm2215_vm4 = vcmp.eq.s32.totalorder %v11992_v7, %v5902_v54 }
 0x334   :  { %1494 = vst.msk [vmem:[#allocation2 + $0xd0] sm:$0xff] %vm60_vm0, %v7929_v40  ;;  %11994 = vst [vmem:[#allocation30_spill] sm:$0xff] %v9474_v62  ;;  %6718 = vmatprep.mubr.f32.mxu0 %v9474_v62 }
 0x335   :  { %7934 = vtanh.f32 %v1423_v60  ;;  %6719 = vmatmul.mubr.f32.gmra.mrb[122].mxu0 %v9477_v21  ;;  %vm7431_vm12 = vmpackc.low %vm2209_vm11, %vm2208_vm10 }
 0x336   :  { %v1202_v26 = vpop.f32.mrb[92].mxu1  ;;  %6721 = vmatprep.mubr.f32.mxu0 %v9484_v14  ;;  %vm7439_vm5 = vmpackc.low %vm2213_vm2, %vm2212_vm1 }
 0x337   :  { %v7931_v51 = vpop.eup %7930  ;;  %v1428_v45 = vadd.f32 %v9306_v30, %v1202_v26  ;;  %v1204_v56 = vpop.f32.mrb[93].mxu1  ;;  %v1674_v1 = vld [vmem:[#allocation2 + $0xc8] sm:$0xff]  ;;  %v9493_v26 = vld [vmem:[#allocation6 + $0xf0] sm:$0xff] }
 0x338   :  { %1495 = vst.msk [vmem:[#allocation2 + $0xd8] sm:$0xff] %vm60_vm0, %v7931_v51  ;;  %v7324_v33 = vpack.c.bf16 %v1674_v1, %v1673_v47  ;;  %11998 = vst [vmem:[#allocation34_spill] sm:$0xff] %v9493_v26  ;;  %v9496_v51 = vld [vmem:[#allocation6 + $0xf8] sm:$0xff]  ;;  %v9501_v1 = vld [vmem:[#allocation8] sm:$0xff] }
 0x339   :  { %7936 = vtanh.f32 %v1428_v45  ;;  %11999 = vst [vmem:[#allocation35_spill] sm:$0xff] %v9496_v51  ;;  %12000 = vst [vmem:[#allocation36_spill] sm:$0xff] %v9501_v1 }
 0x33a   :  { %v1207_v4 = vpop.f32.mrb[94].mxu1  ;;  %7325 = vmatpush1.bf16.msra.mxu1 %v7324_v33  ;;  %v9503_v33 = vld [vmem:[#allocation8 + $0x18] sm:$0xff] }
 0x33b   :  { %v7933_v11 = vpop.eup %7932  ;;  %v1433_v3 = vadd.f32 %v9303_v25, %v1207_v4  ;;  %v1209_v42 = vpop.f32.mrb[95].mxu1  ;;  %7326 = vmatprep.subr.bf16.mxu1 %v11923_v59  ;;  %v1675_v15 = vld [vmem:[#allocation2 + $0xd0] sm:$0xff]  ;;  %12001 = vst [vmem:[#allocation37_spill] sm:$0xff] %v9503_v33  ;;  %v9507_v4 = vld [vmem:[#allocation8 + $0x10] sm:$0xff] }
 0x33c   :  { %1496 = vst.msk [vmem:[#allocation2 + $0xe0] sm:$0xff] %vm60_vm0, %v7933_v11  ;;  %v9487_v25 = vld [vmem:[#allocation6 + $0xe8] sm:$0xff]  ;;  %12002 = vst [vmem:[#allocation38_spill] sm:$0xff] %v9507_v4  ;;  %v9519_v42 = vld [vmem:[#allocation8 + $0x30] sm:$0xff] }
 0x33d   :  { %7938 = vtanh.f32 %v1433_v3  ;;  %11997 = vst [vmem:[#allocation33_spill] sm:$0xff] %v9487_v25  ;;  %6722 = vmatmul.mubr.f32.gmra.mrb[124].mxu0 %v9487_v25  ;;  %v9509_v11 = vld [vmem:[#allocation8 + $0x28] sm:$0xff]  ;;  %v9515_v3 = vld [vmem:[#allocation8 + $0x38] sm:$0xff]  ;;  %12006 = vst [vmem:[#allocation42_spill] sm:$0xff] %v9519_v42 }
 0x33e   :  { %6724 = vmatprep.mubr.f32.mxu0 %v9493_v26  ;;  %12003 = vst [vmem:[#allocation39_spill] sm:$0xff] %v9509_v11  ;;  %12005 = vst [vmem:[#allocation41_spill] sm:$0xff] %v9515_v3 }
 0x33f   :  { %v7935_v30 = vpop.eup %7934  ;;  %v1676_v35 = vld [vmem:[#allocation2 + $0xd8] sm:$0xff] }
 0x340   :  { %1497 = vst.msk [vmem:[#allocation2 + $0xe8] sm:$0xff] %vm60_vm0, %v7935_v30  ;;  %v7327_v49 = vpack.c.bf16 %v1676_v35, %v1675_v15  ;;  %v9521_v30 = vld [vmem:[#allocation8 + $0x48] sm:$0xff]  ;;  %v9525_v15 = vld [vmem:[#allocation8 + $0x40] sm:$0xff]  ;;  %v9527_v35 = vld [vmem:[#allocation8 + $0x58] sm:$0xff] }
 0x341   :  { %6725 = vmatmul.mubr.f32.gmra.mrb[126].mxu0 %v9496_v51  ;;  %12007 = vst [vmem:[#allocation43_spill] sm:$0xff] %v9521_v30  ;;  %12008 = vst [vmem:[#allocation44_spill] sm:$0xff] %v9525_v15 }
 0x342   :  { %7328 = vmatpush1.bf16.msra.mxu1 %v7327_v49  ;;  %2440 = vmatprep.mubr.f32.mxu0 %v9345_v32  ;;  %v9513_v32 = vld [vmem:[#allocation8 + $0x20] sm:$0xff]  ;;  %12009 = vst [vmem:[#allocation45_spill] sm:$0xff] %v9527_v35  ;;  %v9531_v49 = vld [vmem:[#allocation8 + $0x50] sm:$0xff] }
 0x343   :  { %v7937_v39 = vpop.eup %7936  ;;  %7329 = vmatprep.subr.bf16.mxu1 %v11923_v59  ;;  %v1677_v40 = vld [vmem:[#allocation2 + $0xe0] sm:$0xff]  ;;  %12004 = vst [vmem:[#allocation40_spill] sm:$0xff] %v9513_v32  ;;  %12010 = vst [vmem:[#allocation46_spill] sm:$0xff] %v9531_v49 }
 0x344   :  { %1498 = vst.msk [vmem:[#allocation2 + $0xf0] sm:$0xff] %vm60_vm0, %v7937_v39  ;;  %v9533_v39 = vld [vmem:[#allocation8 + $0x68] sm:$0xff] }
 0x345   :  { %12011 = vst [vmem:[#allocation47_spill] sm:$0xff] %v9533_v39 }
 0x347   :  { %v7939_v38 = vpop.eup %7938  ;;  %v1678_v60 = vld [vmem:[#allocation2 + $0xe8] sm:$0xff] }
 0x348   :  { %1499 = vst.msk [vmem:[#allocation2 + $0xf8] sm:$0xff] %vm60_vm0, %v7939_v38  ;;  %v7330_v58 = vpack.c.bf16 %v1678_v60, %v1677_v40  ;;  %v9537_v38 = vld [vmem:[#allocation8 + $0x60] sm:$0xff]  ;;  %v9539_v40 = vld [vmem:[#allocation8 + $0x78] sm:$0xff]  ;;  %v9543_v60 = vld [vmem:[#allocation8 + $0x70] sm:$0xff] }
 0x349   :  { %12012 = vst [vmem:[#allocation48_spill] sm:$0xff] %v9537_v38  ;;  %12013 = vst [vmem:[#allocation49_spill] sm:$0xff] %v9539_v40 }
 0x34a   :  { %7331 = vmatpush1.bf16.msra.mxu1 %v7330_v58  ;;  %12014 = vst [vmem:[#allocation50_spill] sm:$0xff] %v9543_v60  ;;  %v9545_v58 = vld [vmem:[#allocation8 + $0x88] sm:$0xff] }
 0x34b   :  { %7332 = vmatprep.subr.bf16.mxu1 %v11923_v59  ;;  %v1679_v45 = vld [vmem:[#allocation2 + $0xf0] sm:$0xff]  ;;  %12015 = vst [vmem:[#allocation51_spill] sm:$0xff] %v9545_v58 }
 0x34f   :  { %v1680_v56 = vld [vmem:[#allocation2 + $0xf8] sm:$0xff] }
 0x350   :  { %v7333_v47 = vpack.c.bf16 %v1680_v56, %v1679_v45  ;;  %v9549_v45 = vld [vmem:[#allocation8 + $0x80] sm:$0xff]  ;;  %v9551_v56 = vld [vmem:[#allocation8 + $0x98] sm:$0xff] }
 0x351   :  { %12016 = vst [vmem:[#allocation52_spill] sm:$0xff] %v9549_v45  ;;  %12017 = vst [vmem:[#allocation53_spill] sm:$0xff] %v9551_v56 }
 0x352   :  { %7334 = vmatpush1.bf16.msra.mxu1 %v7333_v47  ;;  %v9555_v47 = vld [vmem:[#allocation8 + $0x90] sm:$0xff] }
 0x353   :  { %12018 = vst [vmem:[#allocation54_spill] sm:$0xff] %v9555_v47  ;;  %7416 = vmatprep.subr.msk.bf16.mxu1 %vm7415_vm15, %v11922_v19 }
 0x355   :  { %1746 = vmatmul.mubr.f32.vlgmr.msra.gmra.mrb[96].mxu1 %v9501_v1 }
 0x356   :  { %1750 = vmatprep.mubr.f32.mxu1 %v9503_v33  ;;  %7418 = vmatpush3.bf16.msk.msra.mxu1 %vm7415_vm15, %v11922_v19  ;;  %vm7435_vm15 = vmpackc.low %vm2211_vm14, %vm2210_vm13 }
 0x357   :  { %7420 = vmatprep.subr.msk.bf16.mxu1 %vm7419_vm3, %v11922_v19 }
 0x359   :  { %1751 = vmatmul.mubr.f32.gmra.mrb[98].mxu1 %v9507_v4 }
 0x35a   :  { %1755 = vmatprep.mubr.f32.mxu1 %v9509_v11  ;;  %7422 = vmatpush3.bf16.msk.msra.mxu1 %vm7419_vm3, %v11922_v19  ;;  %vm2214_vm3 = vcmp.eq.s32.totalorder %v11991_v6, %v5902_v54  ;;  %v8340_v6 = vld [vmem:[#allocation6 + $0x18] sm:$0xff] }
 0x35b   :  { %7424 = vmatprep.subr.msk.bf16.mxu1 %vm7423_vm6, %v11922_v19 }
 0x35d   :  { %1756 = vmatmul.mubr.f32.gmra.mrb[100].mxu1 %v9513_v32 }
 0x35e   :  { %1760 = vmatprep.mubr.f32.mxu1 %v9515_v3  ;;  %7426 = vmatpush3.bf16.msk.msra.mxu1 %vm7423_vm6, %v11922_v19  ;;  %vm7443_vm6 = vmpackc.low %vm2215_vm4, %vm2214_vm3 }
 0x35f   :  { %7428 = vmatprep.subr.msk.bf16.mxu1 %vm7427_vm9, %v11922_v19 }
 0x361   :  { %1761 = vmatmul.mubr.f32.gmra.mrb[102].mxu1 %v9519_v42 }
 0x362   :  { %1765 = vmatprep.mubr.f32.mxu1 %v9521_v30  ;;  %7430 = vmatpush3.bf16.msk.msra.mxu1 %vm7427_vm9, %v11922_v19 }
 0x363   :  { %7432 = vmatprep.subr.msk.bf16.mxu1 %vm7431_vm12, %v11922_v19 }
 0x365   :  { %1766 = vmatmul.mubr.f32.gmra.mrb[104].mxu1 %v9525_v15 }
 0x366   :  { %1770 = vmatprep.mubr.f32.mxu1 %v9527_v35  ;;  %7434 = vmatpush3.bf16.msk.msra.mxu1 %vm7431_vm12, %v11922_v19 }
 0x367   :  { %7436 = vmatprep.subr.msk.bf16.mxu1 %vm7435_vm15, %v11922_v19 }
 0x369   :  { %1771 = vmatmul.mubr.f32.gmra.mrb[106].mxu1 %v9531_v49 }
 0x36a   :  { %1775 = vmatprep.mubr.f32.mxu1 %v9533_v39  ;;  %7438 = vmatpush3.bf16.msk.msra.mxu1 %vm7435_vm15, %v11922_v19 }
 0x36b   :  { %7440 = vmatprep.subr.msk.bf16.mxu1 %vm7439_vm5, %v11922_v19 }
 0x36d   :  { %1776 = vmatmul.mubr.f32.gmra.mrb[108].mxu1 %v9537_v38  ;;  %v9557_v38 = vld [vmem:[#allocation8 + $0xa8] sm:$0xff] }
 0x36e   :  { %1780 = vmatprep.mubr.f32.mxu1 %v9539_v40  ;;  %12019 = vst [vmem:[#allocation55_spill] sm:$0xff] %v9557_v38  ;;  %v9561_v40 = vld [vmem:[#allocation8 + $0xa0] sm:$0xff]  ;;  %7442 = vmatpush3.bf16.msk.msra.mxu1 %vm7439_vm5, %v11922_v19 }
 0x36f   :  { %12020 = vst [vmem:[#allocation56_spill] sm:$0xff] %v9561_v40  ;;  %7444 = vmatprep.subr.msk.bf16.mxu1 %vm7443_vm6, %v11922_v19 }
 0x371   :  { %1781 = vmatmul.mubr.f32.gmra.mrb[110].mxu1 %v9543_v60  ;;  %v9563_v60 = vld [vmem:[#allocation8 + $0xb8] sm:$0xff] }
 0x372   :  { %1785 = vmatprep.mubr.f32.mxu1 %v9545_v58  ;;  %12021 = vst [vmem:[#allocation57_spill] sm:$0xff] %v9563_v60  ;;  %v9567_v58 = vld [vmem:[#allocation8 + $0xb0] sm:$0xff]  ;;  %7446 = vmatpush3.bf16.msk.msra.mxu1 %vm7443_vm6, %v11922_v19 }
 0x373   :  { %12022 = vst [vmem:[#allocation58_spill] sm:$0xff] %v9567_v58  ;;  %7447 = vmatprep.subr.bf16.mxu1 %v11923_v59 }
 0x375   :  { %1786 = vmatmul.mubr.f32.gmra.mrb[112].mxu1 %v9549_v45  ;;  %v9569_v45 = vld [vmem:[#allocation8 + $0xc8] sm:$0xff] }
 0x376   :  { %1790 = vmatprep.mubr.f32.mxu1 %v9551_v56  ;;  %12023 = vst [vmem:[#allocation59_spill] sm:$0xff] %v9569_v45  ;;  %v9573_v56 = vld [vmem:[#allocation8 + $0xc0] sm:$0xff] }
 0x377   :  { %12024 = vst [vmem:[#allocation60_spill] sm:$0xff] %v9573_v56 }
 0x379   :  { %1791 = vmatmul.mubr.f32.gmra.mrb[114].mxu1 %v9555_v47  ;;  %v9575_v47 = vld [vmem:[#allocation8 + $0xd8] sm:$0xff] }
 0x37a   :  { %1795 = vmatprep.mubr.f32.mxu1 %v9557_v38  ;;  %12025 = vst [vmem:[#allocation61_spill] sm:$0xff] %v9575_v47  ;;  %v9579_v38 = vld [vmem:[#allocation8 + $0xd0] sm:$0xff] }
 0x37b   :  { %12026 = vst [vmem:[#allocation62_spill] sm:$0xff] %v9579_v38 }
 0x37d   :  { %1796 = vmatmul.mubr.f32.gmra.mrb[116].mxu1 %v9561_v40  ;;  %v9581_v40 = vld [vmem:[#allocation8 + $0xe8] sm:$0xff] }
 0x37e   :  { %1800 = vmatprep.mubr.f32.mxu1 %v9563_v60  ;;  %12027 = vst [vmem:[#allocation63_spill] sm:$0xff] %v9581_v40  ;;  %v9585_v60 = vld [vmem:[#allocation8 + $0xe0] sm:$0xff] }
 0x37f   :  { %12028 = vst [vmem:[#allocation64_spill] sm:$0xff] %v9585_v60 }
 0x381   :  { %1801 = vmatmul.mubr.f32.gmra.mrb[118].mxu1 %v9567_v58  ;;  %v9587_v58 = vld [vmem:[#allocation8 + $0xf8] sm:$0xff] }
 0x382   :  { %1805 = vmatprep.mubr.f32.mxu1 %v9569_v45  ;;  %12029 = vst [vmem:[#allocation65_spill] sm:$0xff] %v9587_v58  ;;  %v9591_v45 = vld [vmem:[#allocation8 + $0xf0] sm:$0xff] }
 0x383   :  { %12030 = vst [vmem:[#allocation66_spill] sm:$0xff] %v9591_v45 }
 0x385   :  { %1806 = vmatmul.mubr.f32.gmra.mrb[120].mxu1 %v9573_v56  ;;  %v9593_v56 = vld [vmem:[#allocation8 + $0x108] sm:$0xff] }
 0x386   :  { %1810 = vmatprep.mubr.f32.mxu1 %v9575_v47  ;;  %12031 = vst [vmem:[#allocation67_spill] sm:$0xff] %v9593_v56  ;;  %v9597_v47 = vld [vmem:[#allocation8 + $0x100] sm:$0xff] }
 0x387   :  { %12032 = vst [vmem:[#allocation68_spill] sm:$0xff] %v9597_v47 }
 0x389   :  { %1811 = vmatmul.mubr.f32.gmra.mrb[122].mxu1 %v9579_v38  ;;  %v9599_v38 = vld [vmem:[#allocation8 + $0x118] sm:$0xff] }
 0x38a   :  { %1815 = vmatprep.mubr.f32.mxu1 %v9581_v40  ;;  %12033 = vst [vmem:[#allocation69_spill] sm:$0xff] %v9599_v38  ;;  %v9603_v40 = vld [vmem:[#allocation8 + $0x110] sm:$0xff] }
 0x38b   :  { %12034 = vst [vmem:[#allocation70_spill] sm:$0xff] %v9603_v40 }
 0x38d   :  { %1816 = vmatmul.mubr.f32.gmra.mrb[124].mxu1 %v9585_v60  ;;  %v9605_v60 = vld [vmem:[#allocation8 + $0x128] sm:$0xff] }
 0x38e   :  { %1820 = vmatprep.mubr.f32.mxu1 %v9587_v58  ;;  %12035 = vst [vmem:[#allocation71_spill] sm:$0xff] %v9605_v60  ;;  %v9609_v58 = vld [vmem:[#allocation8 + $0x120] sm:$0xff] }
 0x38f   :  { %12036 = vst [vmem:[#allocation72_spill] sm:$0xff] %v9609_v58 }
 0x391   :  { %1821 = vmatmul.mubr.f32.gmra.mrb[126].mxu1 %v9591_v45  ;;  %v9611_v45 = vld [vmem:[#allocation8 + $0x138] sm:$0xff] }
 0x392   :  { %1825 = vmatprep.mubr.f32.mxu1 %v9593_v56  ;;  %12037 = vst [vmem:[#allocation73_spill] sm:$0xff] %v9611_v45  ;;  %v9615_v56 = vld [vmem:[#allocation8 + $0x130] sm:$0xff] }
 0x393   :  { %12038 = vst [vmem:[#allocation74_spill] sm:$0xff] %v9615_v56 }
 0x395   :  { %1826 = vmatmul.mubr.f32.gmra.mrb[128].mxu1 %v9597_v47  ;;  %v9617_v47 = vld [vmem:[#allocation8 + $0x148] sm:$0xff] }
 0x396   :  { %1830 = vmatprep.mubr.f32.mxu1 %v9599_v38  ;;  %12039 = vst [vmem:[#allocation75_spill] sm:$0xff] %v9617_v47  ;;  %v9621_v38 = vld [vmem:[#allocation8 + $0x140] sm:$0xff] }
 0x397   :  { %12040 = vst [vmem:[#allocation76_spill] sm:$0xff] %v9621_v38 }
 0x399   :  { %1831 = vmatmul.mubr.f32.gmra.mrb[130].mxu1 %v9603_v40  ;;  %v9623_v40 = vld [vmem:[#allocation8 + $0x158] sm:$0xff] }
 0x39a   :  { %1835 = vmatprep.mubr.f32.mxu1 %v9605_v60  ;;  %12041 = vst [vmem:[#allocation77_spill] sm:$0xff] %v9623_v40  ;;  %v9627_v60 = vld [vmem:[#allocation8 + $0x150] sm:$0xff] }
 0x39b   :  { %12042 = vst [vmem:[#allocation78_spill] sm:$0xff] %v9627_v60 }
 0x39d   :  { %1836 = vmatmul.mubr.f32.gmra.mrb[132].mxu1 %v9609_v58  ;;  %v9629_v58 = vld [vmem:[#allocation8 + $0x168] sm:$0xff] }
 0x39e   :  { %1840 = vmatprep.mubr.f32.mxu1 %v9611_v45  ;;  %12043 = vst [vmem:[#allocation79_spill] sm:$0xff] %v9629_v58  ;;  %v9631_v45 = vpop.f32.mrb[96].mxu0 }
 0x39f   :  { %v9633_v39 = vpop.f32.mrb[97].mxu0 }
 0x3a1   :  { %1841 = vmatmul.mubr.f32.gmra.mrb[134].mxu1 %v9615_v56  ;;  %v9639_v56 = vld [vmem:[#allocation8 + $0x178] sm:$0xff] }
 0x3a2   :  { %1845 = vmatprep.mubr.f32.mxu1 %v9617_v47  ;;  %v9637_v47 = vld [vmem:[#allocation8 + $0x160] sm:$0xff]  ;;  %12045 = vst [vmem:[#allocation81_spill] sm:$0xff] %v9639_v56 }
 0x3a3   :  { %12044 = vst [vmem:[#allocation80_spill] sm:$0xff] %v9637_v47 }
 0x3a5   :  { %1846 = vmatmul.mubr.f32.gmra.mrb[136].mxu1 %v9621_v38  ;;  %v9645_v38 = vld [vmem:[#allocation8 + $0x188] sm:$0xff] }
 0x3a6   :  { %1850 = vmatprep.mubr.f32.mxu1 %v9623_v40  ;;  %v9643_v40 = vld [vmem:[#allocation8 + $0x170] sm:$0xff]  ;;  %12047 = vst [vmem:[#allocation20_spill] sm:$0xff] %v9645_v38 }
 0x3a7   :  { %12046 = vst [vmem:[#allocation19_spill] sm:$0xff] %v9643_v40 }
 0x3a8   :  { %v9647_v49 = vpop.f32.mrb[98].mxu0 }
 0x3a9   :  { %1851 = vmatmul.mubr.f32.gmra.mrb[138].mxu1 %v9627_v60  ;;  %v9649_v35 = vpop.f32.mrb[99].mxu0  ;;  %v9655_v60 = vld [vmem:[#allocation8 + $0x198] sm:$0xff] }
 0x3aa   :  { %1855 = vmatprep.mubr.f32.mxu1 %v9629_v58  ;;  %v9653_v58 = vld [vmem:[#allocation8 + $0x180] sm:$0xff]  ;;  %12049 = vst [vmem:[#allocation22_spill] sm:$0xff] %v9655_v60 }
 0x3ab   :  { %12048 = vst [vmem:[#allocation21_spill] sm:$0xff] %v9653_v58 }
 0x3ad   :  { %1856 = vmatmul.mubr.f32.gmra.mrb[140].mxu1 %v9637_v47  ;;  %v9661_v47 = vld [vmem:[#allocation8 + $0x1a8] sm:$0xff]  ;;  %v9663_v15 = vpop.f32.mrb[100].mxu0 }
 0x3ae   :  { %1860 = vmatprep.mubr.f32.mxu1 %v9639_v56  ;;  %v9659_v56 = vld [vmem:[#allocation8 + $0x190] sm:$0xff]  ;;  %12051 = vst [vmem:[#allocation24_spill] sm:$0xff] %v9661_v47  ;;  %v9665_v30 = vpop.f32.mrb[101].mxu0 }
 0x3af   :  { %12050 = vst [vmem:[#allocation23_spill] sm:$0xff] %v9659_v56 }
 0x3b1   :  { %1861 = vmatmul.mubr.f32.gmra.mrb[142].mxu1 %v9643_v40  ;;  %v9671_v40 = vld [vmem:[#allocation8 + $0x1b8] sm:$0xff] }
 0x3b2   :  { %1865 = vmatprep.mubr.f32.mxu1 %v9645_v38  ;;  %v9669_v38 = vld [vmem:[#allocation8 + $0x1a0] sm:$0xff]  ;;  %12053 = vst [vmem:[#allocation26_spill] sm:$0xff] %v9671_v40 }
 0x3b3   :  { %12052 = vst [vmem:[#allocation25_spill] sm:$0xff] %v9669_v38  ;;  %v9679_v42 = vpop.f32.mrb[102].mxu0 }
 0x3b4   :  { %v9681_v3 = vpop.f32.mrb[103].mxu0 }
 0x3b5   :  { %1866 = vmatmul.mubr.f32.gmra.mrb[144].mxu1 %v9653_v58  ;;  %v9677_v58 = vld [vmem:[#allocation8 + $0x1c8] sm:$0xff] }
 0x3b6   :  { %1870 = vmatprep.mubr.f32.mxu1 %v9655_v60  ;;  %v9675_v60 = vld [vmem:[#allocation8 + $0x1b0] sm:$0xff]  ;;  %12055 = vst [vmem:[#allocation83_spill] sm:$0xff] %v9677_v58 }
 0x3b7   :  { %12054 = vst [vmem:[#allocation82_spill] sm:$0xff] %v9675_v60 }
 0x3b9   :  { %1871 = vmatmul.mubr.f32.gmra.mrb[146].mxu1 %v9659_v56  ;;  %v9687_v56 = vld [vmem:[#allocation8 + $0x1d8] sm:$0xff] }
 0x3ba   :  { %1875 = vmatprep.mubr.f32.mxu1 %v9661_v47  ;;  %v9685_v47 = vld [vmem:[#allocation8 + $0x1c0] sm:$0xff]  ;;  %12057 = vst [vmem:[#allocation85_spill] sm:$0xff] %v9687_v56 }
 0x3bb   :  { %12056 = vst [vmem:[#allocation84_spill] sm:$0xff] %v9685_v47 }
 0x3bd   :  { %1876 = vmatmul.mubr.f32.gmra.mrb[148].mxu1 %v9669_v38  ;;  %v9693_v38 = vld [vmem:[#allocation8 + $0x1e8] sm:$0xff] }
 0x3be   :  { %1880 = vmatprep.mubr.f32.mxu1 %v9671_v40  ;;  %v9691_v40 = vld [vmem:[#allocation8 + $0x1d0] sm:$0xff]  ;;  %12059 = vst [vmem:[#allocation87_spill] sm:$0xff] %v9693_v38 }
 0x3bf   :  { %12058 = vst [vmem:[#allocation86_spill] sm:$0xff] %v9691_v40 }
 0x3c0   :  { %v9695_v32 = vpop.f32.mrb[104].mxu0 }
 0x3c1   :  { %1881 = vmatmul.mubr.f32.gmra.mrb[150].mxu1 %v9675_v60  ;;  %v9697_v11 = vpop.f32.mrb[105].mxu0  ;;  %v9703_v60 = vld [vmem:[#allocation8 + $0x1f8] sm:$0xff] }
 0x3c2   :  { %1885 = vmatprep.mubr.f32.mxu1 %v9677_v58  ;;  %v9701_v58 = vld [vmem:[#allocation8 + $0x1e0] sm:$0xff]  ;;  %12061 = vst [vmem:[#allocation89_spill] sm:$0xff] %v9703_v60 }
 0x3c3   :  { %12060 = vst [vmem:[#allocation88_spill] sm:$0xff] %v9701_v58 }
 0x3c5   :  { %1886 = vmatmul.mubr.f32.gmra.mrb[152].mxu1 %v9685_v47 }
 0x3c6   :  { %1890 = vmatprep.mubr.f32.mxu1 %v9687_v56  ;;  %v9707_v56 = vld [vmem:[#allocation8 + $0x1f0] sm:$0xff] }
 0x3c7   :  { %12062 = vst [vmem:[#allocation90_spill] sm:$0xff] %v9707_v56 }
 0x3c8   :  { %v9709_v47 = vpop.f32.mrb[106].mxu0 }
 0x3c9   :  { %1891 = vmatmul.mubr.f32.gmra.mrb[154].mxu1 %v9691_v40  ;;  %v9711_v4 = vpop.f32.mrb[107].mxu0 }
 0x3ca   :  { %1895 = vmatprep.mubr.f32.mxu1 %v9693_v38 }
 0x3cd   :  { %1896 = vmatmul.mubr.f32.gmra.mrb[156].mxu1 %v9701_v58 }
 0x3ce   :  { %1900 = vmatprep.mubr.f32.mxu1 %v9703_v60 }
 0x3d0   :  { %v9715_v40 = vpop.f32.mrb[108].mxu0 }
 0x3d1   :  { %1901 = vmatmul.mubr.f32.gmra.mrb[158].mxu1 %v9707_v56  ;;  %v9717_v38 = vpop.f32.mrb[109].mxu0 }
 0x3d2   :  { %6759 = vmatprep.mubr.f32.mxu1 %v9343_v41 }
 0x3d8   :  { %v9719_v33 = vpop.f32.mrb[110].mxu0 }
 0x3d9   :  { %v9721_v1 = vpop.f32.mrb[111].mxu0 }
 0x3e0   :  { %v9723_v58 = vpop.f32.mrb[112].mxu0 }
 0x3e1   :  { %v9725_v60 = vpop.f32.mrb[113].mxu0 }
 0x3e8   :  { %v9727_v51 = vpop.f32.mrb[114].mxu0 }
 0x3e9   :  { %12063 = vst [vmem:[#allocation91_spill] sm:$0xff] %v9727_v51  ;;  %v9729_v26 = vpop.f32.mrb[115].mxu0 }
 0x3ea   :  { %12064 = vst [vmem:[#allocation92_spill] sm:$0xff] %v9729_v26 }
 0x3f0   :  { %v9731_v25 = vpop.f32.mrb[116].mxu0 }
 0x3f1   :  { %v9733_v56 = vpop.f32.mrb[117].mxu0 }
 0x3f8   :  { %v9735_v41 = vpop.f32.mrb[118].mxu0 }
 0x3f9   :  { %12065 = vst [vmem:[#allocation93_spill] sm:$0xff] %v9735_v41  ;;  %v9737_v14 = vpop.f32.mrb[119].mxu0 }
 0x3fa   :  { %12066 = vst [vmem:[#allocation94_spill] sm:$0xff] %v9737_v14 }
 0x400   :  { %v9739_v21 = vpop.f32.mrb[120].mxu0 }
 0x401   :  { %v9741_v62 = vpop.f32.mrb[121].mxu0 }
 0x408   :  { %v9745_v51 = vpop.f32.mrb[122].mxu0 }
 0x409   :  { %v9747_v26 = vpop.f32.mrb[123].mxu0 }
 0x410   :  { %v9751_v41 = vpop.f32.mrb[124].mxu0 }
 0x411   :  { %v9753_v14 = vpop.f32.mrb[125].mxu0 }
 0x414   :  { %v9757_v63 = vpop.f32.mrb[126].mxu0 }
 0x415   :  { %12067 = vst [vmem:[#allocation95_spill] sm:$0xff] %v9757_v63  ;;  %v9760_v12 = vpop.f32.mrb[127].mxu0 }
 0x416   :  { %12068 = vst [vmem:[#allocation96_spill] sm:$0xff] %v9760_v12 }
 0x428   :  { %v1747_v8 = vpop.f32.mrb[96].mxu1 }
 0x429   :  { %v1973_v16 = vadd.f32 %v9633_v39, %v1747_v8  ;;  %v1749_v63 = vpop.f32.mrb[97].mxu1 }
 0x42b   :  { %7940 = vtanh.f32 %v1973_v16 }
 0x42c   :  { %v1752_v18 = vpop.f32.mrb[98].mxu1 }
 0x42d   :  { %v1978_v5 = vadd.f32 %v9631_v45, %v1752_v18  ;;  %v1754_v12 = vpop.f32.mrb[99].mxu1 }
 0x42f   :  { %7942 = vtanh.f32 %v1978_v5 }
 0x430   :  { %v1757_v63 = vpop.f32.mrb[100].mxu1 }
 0x431   :  { %v1983_v8 = vadd.f32 %v9649_v35, %v1757_v63  ;;  %v1759_v16 = vpop.f32.mrb[101].mxu1 }
 0x433   :  { %7944 = vtanh.f32 %v1983_v8 }
 0x434   :  { %v1762_v12 = vpop.f32.mrb[102].mxu1 }
 0x435   :  { %v7941_v5 = vpop.eup %7940  ;;  %v1988_v18 = vadd.f32 %v9647_v49, %v1762_v12  ;;  %v1764_v35 = vpop.f32.mrb[103].mxu1 }
 0x436   :  { %2163 = vst.msk [vmem:[#allocation2] sm:$0xff] %vm60_vm0, %v7941_v5  ;;  %v8338_v5 = vld [vmem:[#allocation6 + $0x8] sm:$0xff] }
 0x437   :  { %7946 = vtanh.f32 %v1988_v18  ;;  %6760 = vmatmul.mubr.f32.vlgmr.msra.gmra.mrb[160].mxu1 %v8338_v5  ;;  %v8339_v18 = vld [vmem:[#allocation6 + $0x10] sm:$0xff] }
 0x438   :  { %v1767_v39 = vpop.f32.mrb[104].mxu1  ;;  %6762 = vmatprep.mubr.f32.mxu1 %v8339_v18 }
 0x439   :  { %v7943_v45 = vpop.eup %7942  ;;  %v1993_v63 = vadd.f32 %v9665_v30, %v1767_v39  ;;  %v1769_v54 = vpop.f32.mrb[105].mxu1 }
 0x43a   :  { %2164 = vst.msk [vmem:[#allocation2 + $0x8] sm:$0xff] %vm60_vm0, %v7943_v45 }
 0x43b   :  { %7948 = vtanh.f32 %v1993_v63  ;;  %6763 = vmatmul.mubr.f32.gmra.mrb[162].mxu1 %v8340_v6 }
 0x43c   :  { %v1772_v49 = vpop.f32.mrb[106].mxu1 }
 0x43d   :  { %v7945_v8 = vpop.eup %7944  ;;  %v1998_v16 = vadd.f32 %v9663_v15, %v1772_v49  ;;  %v1774_v12 = vpop.f32.mrb[107].mxu1  ;;  %v2344_v63 = vld [vmem:[#allocation2] sm:$0xff]  ;;  %v8341_v15 = vld [vmem:[#allocation6 + $0x20] sm:$0xff] }
 0x43e   :  { %2165 = vst.msk [vmem:[#allocation2 + $0x10] sm:$0xff] %vm60_vm0, %v7945_v8  ;;  %6765 = vmatprep.mubr.f32.mxu1 %v8341_v15 }
 0x43f   :  { %7950 = vtanh.f32 %v1998_v16 }
 0x440   :  { %v1777_v30 = vpop.f32.mrb[108].mxu1 }
 0x441   :  { %v7947_v35 = vpop.eup %7946  ;;  %v2003_v39 = vadd.f32 %v9681_v3, %v1777_v30  ;;  %v1779_v45 = vpop.f32.mrb[109].mxu1  ;;  %v2345_v54 = vld [vmem:[#allocation2 + $0x8] sm:$0xff]  ;;  %v8342_v3 = vld [vmem:[#allocation6 + $0x28] sm:$0xff] }
 0x442   :  { %2166 = vst.msk [vmem:[#allocation2 + $0x18] sm:$0xff] %vm60_vm0, %v7947_v35  ;;  %v7368_v7 = vpack.c.bf16 %v2345_v54, %v2344_v63  ;;  %6766 = vmatmul.mubr.f32.gmra.mrb[164].mxu1 %v8342_v3 }
 0x443   :  { %7952 = vtanh.f32 %v2003_v39  ;;  %6768 = vmatprep.mubr.f32.mxu1 %v9364_v9 }
 0x444   :  { %v1782_v49 = vpop.f32.mrb[110].mxu1  ;;  %7369 = vmatpush1.bf16.msra.mxu0 %v7368_v7 }
 0x445   :  { %v7949_v8 = vpop.eup %7948  ;;  %v2008_v16 = vadd.f32 %v9679_v42, %v1782_v49  ;;  %v1784_v12 = vpop.f32.mrb[111].mxu1  ;;  %7370 = vmatprep.subr.bf16.mxu0 %v11923_v59  ;;  %v2346_v35 = vld [vmem:[#allocation2 + $0x10] sm:$0xff] }
 0x446   :  { %2167 = vst.msk [vmem:[#allocation2 + $0x20] sm:$0xff] %vm60_vm0, %v7949_v8  ;;  %6769 = vmatmul.mubr.f32.gmra.mrb[166].mxu1 %v9367_v43 }
 0x447   :  { %7954 = vtanh.f32 %v2008_v16  ;;  %6771 = vmatprep.mubr.f32.mxu1 %v9375_v37 }
 0x448   :  { %v1787_v5 = vpop.f32.mrb[112].mxu1 }
 0x449   :  { %v7951_v6 = vpop.eup %7950  ;;  %v2013_v18 = vadd.f32 %v9697_v11, %v1787_v5  ;;  %v1789_v30 = vpop.f32.mrb[113].mxu1  ;;  %v2347_v7 = vld [vmem:[#allocation2 + $0x18] sm:$0xff] }
 0x44a   :  { %2168 = vst.msk [vmem:[#allocation2 + $0x28] sm:$0xff] %vm60_vm0, %v7951_v6  ;;  %v7371_v42 = vpack.c.bf16 %v2347_v7, %v2346_v35  ;;  %6772 = vmatmul.mubr.f32.gmra.mrb[168].mxu1 %v9378_v44 }
 0x44b   :  { %7956 = vtanh.f32 %v2013_v18  ;;  %6774 = vmatprep.mubr.f32.mxu1 %v9386_v53 }
 0x44c   :  { %v1792_v39 = vpop.f32.mrb[114].mxu1  ;;  %7372 = vmatpush1.bf16.msra.mxu0 %v7371_v42 }
 0x44d   :  { %v7953_v45 = vpop.eup %7952  ;;  %v2018_v9 = vadd.f32 %v9695_v32, %v1792_v39  ;;  %v1794_v63 = vpop.f32.mrb[115].mxu1  ;;  %7373 = vmatprep.subr.bf16.mxu0 %v11923_v59  ;;  %v2348_v15 = vld [vmem:[#allocation2 + $0x20] sm:$0xff] }
 0x44e   :  { %2169 = vst.msk [vmem:[#allocation2 + $0x30] sm:$0xff] %vm60_vm0, %v7953_v45  ;;  %6775 = vmatmul.mubr.f32.gmra.mrb[170].mxu1 %v9389_v36 }
 0x44f   :  { %7958 = vtanh.f32 %v2018_v9  ;;  %6777 = vmatprep.mubr.f32.mxu1 %v9397_v17 }
 0x450   :  { %v1797_v11 = vpop.f32.mrb[116].mxu1 }
 0x451   :  { %v7955_v43 = vpop.eup %7954  ;;  %v2023_v54 = vadd.f32 %v9711_v4, %v1797_v11  ;;  %v1799_v37 = vpop.f32.mrb[117].mxu1  ;;  %v2349_v49 = vld [vmem:[#allocation2 + $0x28] sm:$0xff] }
 0x452   :  { %2170 = vst.msk [vmem:[#allocation2 + $0x38] sm:$0xff] %vm60_vm0, %v7955_v43  ;;  %v7374_v32 = vpack.c.bf16 %v2349_v49, %v2348_v15  ;;  %6778 = vmatmul.mubr.f32.gmra.mrb[172].mxu1 %v9400_v13  ;;  %v12071_v15 = vld [vmem:[#allocation92_spill] sm:$0xff] }
 0x453   :  { %7960 = vtanh.f32 %v2023_v54  ;;  %6780 = vmatprep.mubr.f32.mxu1 %v9408_v55  ;;  %v12070_v54 = vld [vmem:[#allocation30_spill] sm:$0xff] }
 0x454   :  { %v1802_v8 = vpop.f32.mrb[118].mxu1  ;;  %7375 = vmatpush1.bf16.msra.mxu0 %v7374_v32 }
 0x455   :  { %v7957_v44 = vpop.eup %7956  ;;  %v2028_v53 = vadd.f32 %v9709_v47, %v1802_v8  ;;  %v1804_v16 = vpop.f32.mrb[119].mxu1  ;;  %7376 = vmatprep.subr.bf16.mxu0 %v11923_v59  ;;  %v2350_v3 = vld [vmem:[#allocation2 + $0x30] sm:$0xff] }
 0x456   :  { %2171 = vst.msk [vmem:[#allocation2 + $0x40] sm:$0xff] %vm60_vm0, %v7957_v44  ;;  %6781 = vmatmul.mubr.f32.gmra.mrb[174].mxu1 %v9411_v50  ;;  %v12072_v44 = vld [vmem:[#allocation31_spill] sm:$0xff] }
 0x457   :  { %7962 = vtanh.f32 %v2028_v53  ;;  %6783 = vmatprep.mubr.f32.mxu1 %v9419_v61  ;;  %v12073_v53 = vld [vmem:[#allocation32_spill] sm:$0xff] }
 0x458   :  { %v1807_v4 = vpop.f32.mrb[120].mxu1 }
 0x459   :  { %v7959_v36 = vpop.eup %7958  ;;  %v2033_v12 = vadd.f32 %v9717_v38, %v1807_v4  ;;  %v1809_v17 = vpop.f32.mrb[121].mxu1  ;;  %v2351_v5 = vld [vmem:[#allocation2 + $0x38] sm:$0xff] }
 0x45a   :  { %2172 = vst.msk [vmem:[#allocation2 + $0x48] sm:$0xff] %vm60_vm0, %v7959_v36  ;;  %v7377_v47 = vpack.c.bf16 %v2351_v5, %v2350_v3  ;;  %6784 = vmatmul.mubr.f32.gmra.mrb[176].mxu1 %v9422_v46  ;;  %v12074_v36 = vld [vmem:[#allocation91_spill] sm:$0xff]  ;;  %v12075_v3 = vld [vmem:[#allocation33_spill] sm:$0xff]  ;;  %v12076_v5 = vld [vmem:[#allocation34_spill] sm:$0xff] }
 0x45b   :  { %7964 = vtanh.f32 %v2033_v12  ;;  %6786 = vmatprep.mubr.f32.mxu1 %v9430_v23 }
 0x45c   :  { %v1812_v6 = vpop.f32.mrb[122].mxu1  ;;  %7378 = vmatpush1.bf16.msra.mxu0 %v7377_v47 }
 0x45d   :  { %v7961_v13 = vpop.eup %7960  ;;  %v2038_v55 = vadd.f32 %v9715_v40, %v1812_v6  ;;  %v1814_v18 = vpop.f32.mrb[123].mxu1  ;;  %7379 = vmatprep.subr.bf16.mxu0 %v11923_v59  ;;  %v2352_v35 = vld [vmem:[#allocation2 + $0x40] sm:$0xff] }
 0x45e   :  { %2173 = vst.msk [vmem:[#allocation2 + $0x50] sm:$0xff] %vm60_vm0, %v7961_v13  ;;  %6787 = vmatmul.mubr.f32.gmra.mrb[178].mxu1 %v9433_v20 }
 0x45f   :  { %7966 = vtanh.f32 %v2038_v55  ;;  %6789 = vmatprep.mubr.f32.mxu1 %v9441_v31 }
 0x460   :  { %v1817_v38 = vpop.f32.mrb[124].mxu1 }
 0x461   :  { %v7963_v50 = vpop.eup %7962  ;;  %v2043_v30 = vadd.f32 %v9721_v1, %v1817_v38  ;;  %v1819_v61 = vpop.f32.mrb[125].mxu1  ;;  %v2353_v7 = vld [vmem:[#allocation2 + $0x48] sm:$0xff] }
 0x462   :  { %2174 = vst.msk [vmem:[#allocation2 + $0x58] sm:$0xff] %vm60_vm0, %v7963_v50  ;;  %v7380_v40 = vpack.c.bf16 %v2353_v7, %v2352_v35  ;;  %6790 = vmatmul.mubr.f32.gmra.mrb[180].mxu1 %v9444_v34 }
 0x463   :  { %7968 = vtanh.f32 %v2043_v30  ;;  %6792 = vmatprep.mubr.f32.mxu1 %v9452_v28  ;;  %v12077_v30 = vld [vmem:[#allocation35_spill] sm:$0xff] }
 0x464   :  { %v1822_v42 = vpop.f32.mrb[126].mxu1  ;;  %7381 = vmatpush1.bf16.msra.mxu0 %v7380_v40 }
 0x465   :  { %v7965_v46 = vpop.eup %7964  ;;  %v2048_v23 = vadd.f32 %v9719_v33, %v1822_v42  ;;  %v1824_v39 = vpop.f32.mrb[127].mxu1  ;;  %7382 = vmatprep.subr.bf16.mxu0 %v11923_v59  ;;  %v2354_v9 = vld [vmem:[#allocation2 + $0x50] sm:$0xff] }
 0x466   :  { %2175 = vst.msk [vmem:[#allocation2 + $0x60] sm:$0xff] %vm60_vm0, %v7965_v46  ;;  %6793 = vmatmul.mubr.f32.gmra.mrb[182].mxu1 %v9455_v57  ;;  %v12078_v46 = vld [vmem:[#allocation94_spill] sm:$0xff] }
 0x467   :  { %7970 = vtanh.f32 %v2048_v23  ;;  %6795 = vmatprep.mubr.f32.mxu1 %v9463_v0 }
 0x468   :  { %v1827_v1 = vpop.f32.mrb[128].mxu1 }
 0x469   :  { %v7967_v20 = vpop.eup %7966  ;;  %v2053_v45 = vadd.f32 %v9725_v60, %v1827_v1  ;;  %v1829_v31 = vpop.f32.mrb[129].mxu1  ;;  %v2355_v63 = vld [vmem:[#allocation2 + $0x58] sm:$0xff]  ;;  %v12069_v60 = vld [vmem:[#allocation29_spill] sm:$0xff] }
 0x46a   :  { %2176 = vst.msk [vmem:[#allocation2 + $0x68] sm:$0xff] %vm60_vm0, %v7967_v20  ;;  %v7383_v33 = vpack.c.bf16 %v2355_v63, %v2354_v9  ;;  %6796 = vmatmul.mubr.f32.gmra.mrb[184].mxu1 %v12069_v60  ;;  %v12079_v9 = vld [vmem:[#allocation93_spill] sm:$0xff] }
 0x46b   :  { %7972 = vtanh.f32 %v2053_v45  ;;  %6798 = vmatprep.mubr.f32.mxu1 %v12070_v54 }
 0x46c   :  { %v1832_v11 = vpop.f32.mrb[130].mxu1  ;;  %7384 = vmatpush1.bf16.msra.mxu0 %v7383_v33 }
 0x46d   :  { %v7969_v34 = vpop.eup %7968  ;;  %v2058_v28 = vadd.f32 %v9723_v58, %v1832_v11  ;;  %v1834_v43 = vpop.f32.mrb[131].mxu1  ;;  %7385 = vmatprep.subr.bf16.mxu0 %v11923_v59  ;;  %v2356_v32 = vld [vmem:[#allocation2 + $0x60] sm:$0xff] }
 0x46e   :  { %2177 = vst.msk [vmem:[#allocation2 + $0x70] sm:$0xff] %vm60_vm0, %v7969_v34  ;;  %6799 = vmatmul.mubr.f32.gmra.mrb[186].mxu1 %v12072_v44 }
 0x46f   :  { %7974 = vtanh.f32 %v2058_v28  ;;  %6801 = vmatprep.mubr.f32.mxu1 %v12073_v53 }
 0x470   :  { %v1837_v37 = vpop.f32.mrb[132].mxu1 }
 0x471   :  { %v7971_v57 = vpop.eup %7970  ;;  %v2063_v49 = vadd.f32 %v12071_v15, %v1837_v37  ;;  %v1839_v0 = vpop.f32.mrb[133].mxu1  ;;  %v2357_v8 = vld [vmem:[#allocation2 + $0x68] sm:$0xff] }
 0x472   :  { %2178 = vst.msk [vmem:[#allocation2 + $0x78] sm:$0xff] %vm60_vm0, %v7971_v57  ;;  %v7386_v58 = vpack.c.bf16 %v2357_v8, %v2356_v32  ;;  %6802 = vmatmul.mubr.f32.gmra.mrb[188].mxu1 %v12075_v3 }
 0x473   :  { %7976 = vtanh.f32 %v2063_v49  ;;  %6804 = vmatprep.mubr.f32.mxu1 %v12076_v5 }
 0x474   :  { %v1842_v16 = vpop.f32.mrb[134].mxu1  ;;  %7387 = vmatpush1.bf16.msra.mxu0 %v7386_v58 }
 0x475   :  { %v7973_v4 = vpop.eup %7972  ;;  %v2068_v12 = vadd.f32 %v12074_v36, %v1842_v16  ;;  %v1844_v17 = vpop.f32.mrb[135].mxu1  ;;  %7388 = vmatprep.subr.bf16.mxu0 %v11923_v59  ;;  %v2358_v18 = vld [vmem:[#allocation2 + $0x70] sm:$0xff] }
 0x476   :  { %2179 = vst.msk [vmem:[#allocation2 + $0x80] sm:$0xff] %vm60_vm0, %v7973_v4  ;;  %6805 = vmatmul.mubr.f32.gmra.mrb[190].mxu1 %v12077_v30  ;;  %v12080_v30 = vld [vmem:[#allocation96_spill] sm:$0xff] }
 0x477   :  { %7978 = vtanh.f32 %v2068_v12 }
 0x478   :  { %v1847_v47 = vpop.f32.mrb[136].mxu1 }
 0x479   :  { %v7975_v6 = vpop.eup %7974  ;;  %v2073_v13 = vadd.f32 %v9733_v56, %v1847_v47  ;;  %v1849_v55 = vpop.f32.mrb[137].mxu1  ;;  %v2359_v38 = vld [vmem:[#allocation2 + $0x78] sm:$0xff] }
 0x47a   :  { %2180 = vst.msk [vmem:[#allocation2 + $0x88] sm:$0xff] %vm60_vm0, %v7975_v6  ;;  %v7389_v50 = vpack.c.bf16 %v2359_v38, %v2358_v18 }
 0x47b   :  { %7980 = vtanh.f32 %v2073_v13 }
 0x47c   :  { %v1852_v61 = vpop.f32.mrb[138].mxu1  ;;  %7390 = vmatpush1.bf16.msra.mxu0 %v7389_v50 }
 0x47d   :  { %v7977_v35 = vpop.eup %7976  ;;  %v2078_v7 = vadd.f32 %v9731_v25, %v1852_v61  ;;  %v1854_v40 = vpop.f32.mrb[139].mxu1  ;;  %7391 = vmatprep.subr.bf16.mxu0 %v11923_v59  ;;  %v2360_v1 = vld [vmem:[#allocation2 + $0x80] sm:$0xff] }
 0x47e   :  { %2181 = vst.msk [vmem:[#allocation2 + $0x90] sm:$0xff] %vm60_vm0, %v7977_v35 }
 0x47f   :  { %7982 = vtanh.f32 %v2078_v7 }
 0x480   :  { %v1857_v56 = vpop.f32.mrb[140].mxu1 }
 0x481   :  { %v7979_v42 = vpop.eup %7978  ;;  %v2083_v23 = vadd.f32 %v12078_v46, %v1857_v56  ;;  %v1859_v39 = vpop.f32.mrb[141].mxu1  ;;  %v2361_v20 = vld [vmem:[#allocation2 + $0x88] sm:$0xff]  ;;  %v12081_v46 = vld [vmem:[#allocation95_spill] sm:$0xff] }
 0x482   :  { %2182 = vst.msk [vmem:[#allocation2 + $0x98] sm:$0xff] %vm60_vm0, %v7979_v42  ;;  %v7392_v45 = vpack.c.bf16 %v2361_v20, %v2360_v1 }
 0x483   :  { %7984 = vtanh.f32 %v2083_v23 }
 0x484   :  { %v1862_v31 = vpop.f32.mrb[142].mxu1  ;;  %7393 = vmatpush1.bf16.msra.mxu0 %v7392_v45 }
 0x485   :  { %v7981_v25 = vpop.eup %7980  ;;  %v2088_v63 = vadd.f32 %v12079_v9, %v1862_v31  ;;  %v1864_v33 = vpop.f32.mrb[143].mxu1  ;;  %7394 = vmatprep.subr.bf16.mxu0 %v11923_v59  ;;  %v2362_v60 = vld [vmem:[#allocation2 + $0x90] sm:$0xff] }
 0x486   :  { %2183 = vst.msk [vmem:[#allocation2 + $0xa0] sm:$0xff] %vm60_vm0, %v7981_v25 }
 0x487   :  { %7986 = vtanh.f32 %v2088_v63 }
 0x488   :  { %v1867_v11 = vpop.f32.mrb[144].mxu1 }
 0x489   :  { %v7983_v34 = vpop.eup %7982  ;;  %v2093_v28 = vadd.f32 %v9741_v62, %v1867_v11  ;;  %v1869_v43 = vpop.f32.mrb[145].mxu1  ;;  %v2363_v54 = vld [vmem:[#allocation2 + $0x98] sm:$0xff] }
 0x48a   :  { %2184 = vst.msk [vmem:[#allocation2 + $0xa8] sm:$0xff] %vm60_vm0, %v7983_v34  ;;  %v7395_v37 = vpack.c.bf16 %v2363_v54, %v2362_v60  ;;  %v12082_v60 = vld [vmem:[#allocation36_spill] sm:$0xff]  ;;  %v12083_v54 = vld [vmem:[#allocation37_spill] sm:$0xff] }
 0x48b   :  { %7988 = vtanh.f32 %v2093_v28 }
 0x48c   :  { %v1872_v57 = vpop.f32.mrb[146].mxu1  ;;  %7396 = vmatpush1.bf16.msra.mxu0 %v7395_v37  ;;  %v12084_v37 = vld [vmem:[#allocation38_spill] sm:$0xff] }
 0x48d   :  { %v7985_v15 = vpop.eup %7984  ;;  %v2098_v49 = vadd.f32 %v9739_v21, %v1872_v57  ;;  %v1874_v0 = vpop.f32.mrb[147].mxu1  ;;  %7397 = vmatprep.subr.bf16.mxu0 %v11923_v59  ;;  %v2364_v44 = vld [vmem:[#allocation2 + $0xa0] sm:$0xff] }
 0x48e   :  { %2185 = vst.msk [vmem:[#allocation2 + $0xb0] sm:$0xff] %vm60_vm0, %v7985_v15  ;;  %v12085_v57 = vld [vmem:[#allocation39_spill] sm:$0xff]  ;;  %v12086_v15 = vld [vmem:[#allocation40_spill] sm:$0xff]  ;;  %v12088_v0 = vld [vmem:[#allocation42_spill] sm:$0xff] }
 0x48f   :  { %7990 = vtanh.f32 %v2098_v49  ;;  %v12087_v49 = vld [vmem:[#allocation41_spill] sm:$0xff] }
 0x490   :  { %v1877_v32 = vpop.f32.mrb[148].mxu1 }
 0x491   :  { %v7987_v62 = vpop.eup %7986  ;;  %v2103_v8 = vadd.f32 %v9747_v26, %v1877_v32  ;;  %v1879_v58 = vpop.f32.mrb[149].mxu1  ;;  %v2365_v53 = vld [vmem:[#allocation2 + $0xa8] sm:$0xff]  ;;  %v12089_v32 = vld [vmem:[#allocation43_spill] sm:$0xff] }
 0x492   :  { %2186 = vst.msk [vmem:[#allocation2 + $0xb8] sm:$0xff] %vm60_vm0, %v7987_v62  ;;  %v7398_v16 = vpack.c.bf16 %v2365_v53, %v2364_v44  ;;  %v12090_v62 = vld [vmem:[#allocation44_spill] sm:$0xff]  ;;  %v12092_v58 = vld [vmem:[#allocation46_spill] sm:$0xff]  ;;  %v12093_v44 = vld [vmem:[#allocation47_spill] sm:$0xff] }
 0x493   :  { %7992 = vtanh.f32 %v2103_v8  ;;  %v12091_v8 = vld [vmem:[#allocation45_spill] sm:$0xff]  ;;  %v12094_v53 = vld [vmem:[#allocation48_spill] sm:$0xff] }
 0x494   :  { %v1882_v4 = vpop.f32.mrb[150].mxu1  ;;  %7399 = vmatpush1.bf16.msra.mxu0 %v7398_v16  ;;  %v12095_v16 = vld [vmem:[#allocation49_spill] sm:$0xff] }
 0x495   :  { %v7989_v21 = vpop.eup %7988  ;;  %v2108_v36 = vadd.f32 %v9745_v51, %v1882_v4  ;;  %v1884_v12 = vpop.f32.mrb[151].mxu1  ;;  %7400 = vmatprep.subr.bf16.mxu0 %v11923_v59  ;;  %v2366_v47 = vld [vmem:[#allocation2 + $0xb0] sm:$0xff]  ;;  %v12096_v4 = vld [vmem:[#allocation50_spill] sm:$0xff] }
 0x496   :  { %2187 = vst.msk [vmem:[#allocation2 + $0xc0] sm:$0xff] %vm60_vm0, %v7989_v21  ;;  %v12097_v21 = vld [vmem:[#allocation51_spill] sm:$0xff]  ;;  %v12099_v12 = vld [vmem:[#allocation53_spill] sm:$0xff] }
 0x497   :  { %7994 = vtanh.f32 %v2108_v36  ;;  %v12098_v36 = vld [vmem:[#allocation52_spill] sm:$0xff] }
 0x498   :  { %v1887_v17 = vpop.f32.mrb[152].mxu1 }
 0x499   :  { %v7991_v26 = vpop.eup %7990  ;;  %v2113_v3 = vadd.f32 %v9753_v14, %v1887_v17  ;;  %v1889_v5 = vpop.f32.mrb[153].mxu1  ;;  %v2367_v6 = vld [vmem:[#allocation2 + $0xb8] sm:$0xff] }
 0x49a   :  { %2188 = vst.msk [vmem:[#allocation2 + $0xc8] sm:$0xff] %vm60_vm0, %v7991_v26  ;;  %v7401_v13 = vpack.c.bf16 %v2367_v6, %v2366_v47  ;;  %v12100_v17 = vld [vmem:[#allocation54_spill] sm:$0xff]  ;;  %v12101_v26 = vld [vmem:[#allocation55_spill] sm:$0xff]  ;;  %v12103_v5 = vld [vmem:[#allocation57_spill] sm:$0xff] }
 0x49b   :  { %7996 = vtanh.f32 %v2113_v3  ;;  %v12102_v3 = vld [vmem:[#allocation56_spill] sm:$0xff]  ;;  %v12104_v47 = vld [vmem:[#allocation58_spill] sm:$0xff]  ;;  %v12105_v6 = vld [vmem:[#allocation59_spill] sm:$0xff] }
 0x49c   :  { %v1892_v55 = vpop.f32.mrb[154].mxu1  ;;  %7402 = vmatpush1.bf16.msra.mxu0 %v7401_v13  ;;  %v12106_v13 = vld [vmem:[#allocation60_spill] sm:$0xff] }
 0x49d   :  { %v7993_v51 = vpop.eup %7992  ;;  %v2118_v18 = vadd.f32 %v9751_v41, %v1892_v55  ;;  %v1894_v38 = vpop.f32.mrb[155].mxu1  ;;  %7403 = vmatprep.subr.bf16.mxu0 %v11923_v59  ;;  %v2368_v7 = vld [vmem:[#allocation2 + $0xc0] sm:$0xff]  ;;  %v12107_v55 = vld [vmem:[#allocation61_spill] sm:$0xff] }
 0x49e   :  { %2189 = vst.msk [vmem:[#allocation2 + $0xd0] sm:$0xff] %vm60_vm0, %v7993_v51  ;;  %v12108_v51 = vld [vmem:[#allocation62_spill] sm:$0xff]  ;;  %v12110_v38 = vld [vmem:[#allocation64_spill] sm:$0xff] }
 0x49f   :  { %7998 = vtanh.f32 %v2118_v18  ;;  %v12109_v18 = vld [vmem:[#allocation63_spill] sm:$0xff] }
 0x4a0   :  { %v1897_v50 = vpop.f32.mrb[156].mxu1 }
 0x4a1   :  { %v7995_v14 = vpop.eup %7994  ;;  %v2123_v61 = vadd.f32 %v12080_v30, %v1897_v50  ;;  %v1899_v35 = vpop.f32.mrb[157].mxu1  ;;  %v2369_v40 = vld [vmem:[#allocation2 + $0xc8] sm:$0xff]  ;;  %v12111_v50 = vld [vmem:[#allocation65_spill] sm:$0xff]  ;;  %v12113_v30 = vld [vmem:[#allocation67_spill] sm:$0xff] }
 0x4a2   :  { %2190 = vst.msk [vmem:[#allocation2 + $0xd8] sm:$0xff] %vm60_vm0, %v7995_v14  ;;  %v7404_v56 = vpack.c.bf16 %v2369_v40, %v2368_v7  ;;  %v12112_v14 = vld [vmem:[#allocation66_spill] sm:$0xff]  ;;  %v12115_v35 = vld [vmem:[#allocation69_spill] sm:$0xff]  ;;  %v12117_v40 = vld [vmem:[#allocation71_spill] sm:$0xff] }
 0x4a3   :  { %8000 = vtanh.f32 %v2123_v61  ;;  %v12114_v61 = vld [vmem:[#allocation68_spill] sm:$0xff]  ;;  %v12116_v7 = vld [vmem:[#allocation70_spill] sm:$0xff] }
 0x4a4   :  { %v1902_v42 = vpop.f32.mrb[158].mxu1  ;;  %7405 = vmatpush1.bf16.msra.mxu0 %v7404_v56  ;;  %v12118_v56 = vld [vmem:[#allocation72_spill] sm:$0xff] }
 0x4a5   :  { %v7997_v41 = vpop.eup %7996  ;;  %v2128_v23 = vadd.f32 %v12081_v46, %v1902_v42  ;;  %v1904_v39 = vpop.f32.mrb[159].mxu1  ;;  %7406 = vmatprep.subr.bf16.mxu0 %v11923_v59  ;;  %v2370_v20 = vld [vmem:[#allocation2 + $0xd0] sm:$0xff]  ;;  %v12121_v46 = vld [vmem:[#allocation75_spill] sm:$0xff] }
 0x4a6   :  { %2191 = vst.msk [vmem:[#allocation2 + $0xe0] sm:$0xff] %vm60_vm0, %v7997_v41  ;;  %v12119_v42 = vld [vmem:[#allocation73_spill] sm:$0xff]  ;;  %v12120_v41 = vld [vmem:[#allocation74_spill] sm:$0xff] }
 0x4a7   :  { %8002 = vtanh.f32 %v2128_v23  ;;  %v12122_v23 = vld [vmem:[#allocation76_spill] sm:$0xff]  ;;  %v12123_v39 = vld [vmem:[#allocation77_spill] sm:$0xff] }
 0x4a9   :  { %v7999_v1 = vpop.eup %7998  ;;  %v2371_v45 = vld [vmem:[#allocation2 + $0xd8] sm:$0xff] }
 0x4aa   :  { %2192 = vst.msk [vmem:[#allocation2 + $0xe8] sm:$0xff] %vm60_vm0, %v7999_v1  ;;  %v7407_v31 = vpack.c.bf16 %v2371_v45, %v2370_v20  ;;  %v12124_v45 = vld [vmem:[#allocation78_spill] sm:$0xff] }
 0x4ac   :  { %7408 = vmatpush1.bf16.msra.mxu0 %v7407_v31  ;;  %v12125_v31 = vld [vmem:[#allocation79_spill] sm:$0xff] }
 0x4ad   :  { %v8001_v25 = vpop.eup %8000  ;;  %7409 = vmatprep.subr.bf16.mxu0 %v11923_v59  ;;  %v2372_v63 = vld [vmem:[#allocation2 + $0xe0] sm:$0xff] }
 0x4ae   :  { %2193 = vst.msk [vmem:[#allocation2 + $0xf0] sm:$0xff] %vm60_vm0, %v8001_v25  ;;  %v12126_v25 = vld [vmem:[#allocation80_spill] sm:$0xff] }
 0x4b1   :  { %v8003_v9 = vpop.eup %8002  ;;  %v2373_v33 = vld [vmem:[#allocation2 + $0xe8] sm:$0xff] }
 0x4b2   :  { %2194 = vst.msk [vmem:[#allocation2 + $0xf8] sm:$0xff] %vm60_vm0, %v8003_v9  ;;  %v7410_v11 = vpack.c.bf16 %v2373_v33, %v2372_v63  ;;  %v12127_v9 = vld [vmem:[#allocation81_spill] sm:$0xff] }
 0x4b4   :  { %7411 = vmatpush1.bf16.msra.mxu0 %v7410_v11  ;;  %v12128_v11 = vld [vmem:[#allocation19_spill] sm:$0xff] }
 0x4b5   :  { %7412 = vmatprep.subr.bf16.mxu0 %v11923_v59  ;;  %v2374_v34 = vld [vmem:[#allocation2 + $0xf0] sm:$0xff] }
 0x4b9   :  { %v2375_v28 = vld [vmem:[#allocation2 + $0xf8] sm:$0xff] }
 0x4ba   :  { %v7413_v43 = vpack.c.bf16 %v2375_v28, %v2374_v34  ;;  %v12129_v34 = vld [vmem:[#allocation20_spill] sm:$0xff]  ;;  %v12130_v28 = vld [vmem:[#allocation21_spill] sm:$0xff] }
 0x4bc   :  { %7414 = vmatpush1.bf16.msra.mxu0 %v7413_v43  ;;  %v12131_v43 = vld [vmem:[#allocation22_spill] sm:$0xff] }
 0x4bf   :  { %2441 = vmatmul.mubr.f32.vlgmr.msra.gmra.mrb[128].mxu0 %v12082_v60 }
 0x4c0   :  { %2445 = vmatprep.mubr.f32.mxu0 %v12083_v54 }
 0x4c3   :  { %2446 = vmatmul.mubr.f32.gmra.mrb[130].mxu0 %v12084_v37  ;;  %v12132_v37 = vld [vmem:[#allocation23_spill] sm:$0xff] }
 0x4c4   :  { %2450 = vmatprep.mubr.f32.mxu0 %v12085_v57  ;;  %v12133_v57 = vld [vmem:[#allocation24_spill] sm:$0xff] }
 0x4c7   :  { %2451 = vmatmul.mubr.f32.gmra.mrb[132].mxu0 %v12086_v15  ;;  %v12134_v15 = vld [vmem:[#allocation25_spill] sm:$0xff] }
 0x4c8   :  { %2455 = vmatprep.mubr.f32.mxu0 %v12087_v49  ;;  %v12135_v49 = vld [vmem:[#allocation26_spill] sm:$0xff] }
 0x4cb   :  { %2456 = vmatmul.mubr.f32.gmra.mrb[134].mxu0 %v12088_v0 }
 0x4cc   :  { %2460 = vmatprep.mubr.f32.mxu0 %v12089_v32 }
 0x4cf   :  { %2461 = vmatmul.mubr.f32.gmra.mrb[136].mxu0 %v12090_v62  ;;  %v12136_v62 = vld [vmem:[#allocation82_spill] sm:$0xff] }
 0x4d0   :  { %2465 = vmatprep.mubr.f32.mxu0 %v12091_v8  ;;  %v12137_v8 = vld [vmem:[#allocation83_spill] sm:$0xff] }
 0x4d3   :  { %2466 = vmatmul.mubr.f32.gmra.mrb[138].mxu0 %v12092_v58  ;;  %v12138_v58 = vld [vmem:[#allocation84_spill] sm:$0xff] }
 0x4d4   :  { %2470 = vmatprep.mubr.f32.mxu0 %v12093_v44  ;;  %v12139_v44 = vld [vmem:[#allocation85_spill] sm:$0xff] }
 0x4d7   :  { %2471 = vmatmul.mubr.f32.gmra.mrb[140].mxu0 %v12094_v53 }
 0x4d8   :  { %2475 = vmatprep.mubr.f32.mxu0 %v12095_v16 }
 0x4db   :  { %2476 = vmatmul.mubr.f32.gmra.mrb[142].mxu0 %v12096_v4  ;;  %v12140_v4 = vld [vmem:[#allocation86_spill] sm:$0xff] }
 0x4dc   :  { %2480 = vmatprep.mubr.f32.mxu0 %v12097_v21  ;;  %v12141_v21 = vld [vmem:[#allocation87_spill] sm:$0xff] }
 0x4df   :  { %2481 = vmatmul.mubr.f32.gmra.mrb[144].mxu0 %v12098_v36  ;;  %v12142_v36 = vld [vmem:[#allocation88_spill] sm:$0xff] }
 0x4e0   :  { %2485 = vmatprep.mubr.f32.mxu0 %v12099_v12  ;;  %v12143_v12 = vld [vmem:[#allocation89_spill] sm:$0xff] }
 0x4e3   :  { %2486 = vmatmul.mubr.f32.gmra.mrb[146].mxu0 %v12100_v17 }
 0x4e4   :  { %2490 = vmatprep.mubr.f32.mxu0 %v12101_v26 }
 0x4e7   :  { %2491 = vmatmul.mubr.f32.gmra.mrb[148].mxu0 %v12102_v3  ;;  %v12144_v3 = vld [vmem:[#allocation90_spill] sm:$0xff] }
 0x4e8   :  { %2495 = vmatprep.mubr.f32.mxu0 %v12103_v5 }
 0x4eb   :  { %2496 = vmatmul.mubr.f32.gmra.mrb[150].mxu0 %v12104_v47 }
 0x4ec   :  { %2500 = vmatprep.mubr.f32.mxu0 %v12105_v6 }
 0x4ef   :  { %2501 = vmatmul.mubr.f32.gmra.mrb[152].mxu0 %v12106_v13 }
 0x4f0   :  { %2505 = vmatprep.mubr.f32.mxu0 %v12107_v55 }
 0x4f3   :  { %2506 = vmatmul.mubr.f32.gmra.mrb[154].mxu0 %v12108_v51 }
 0x4f4   :  { %2510 = vmatprep.mubr.f32.mxu0 %v12109_v18 }
 0x4f7   :  { %2511 = vmatmul.mubr.f32.gmra.mrb[156].mxu0 %v12110_v38 }
 0x4f8   :  { %2515 = vmatprep.mubr.f32.mxu0 %v12111_v50 }
 0x4fb   :  { %2516 = vmatmul.mubr.f32.gmra.mrb[158].mxu0 %v12112_v14 }
 0x4fc   :  { %2520 = vmatprep.mubr.f32.mxu0 %v12113_v30 }
 0x4ff   :  { %2521 = vmatmul.mubr.f32.gmra.mrb[160].mxu0 %v12114_v61 }
 0x500   :  { %2525 = vmatprep.mubr.f32.mxu0 %v12115_v35 }
 0x503   :  { %2526 = vmatmul.mubr.f32.gmra.mrb[162].mxu0 %v12116_v7 }
 0x504   :  { %2530 = vmatprep.mubr.f32.mxu0 %v12117_v40  ;;  %v5935_v40 = vld [vmem:[#allocation3 + $0x4] ss:$0 sm:$0xff] }
 0x505   :  { %vm2901_vm1 = vcmp.eq.s32.totalorder %v11983_v24, %v5935_v40  ;;  %vm2902_vm2 = vcmp.eq.s32.totalorder %v11984_v29, %v5935_v40  ;;  %vm2903_vm4 = vcmp.eq.s32.totalorder %v11985_v2, %v5935_v40  ;;  %vm2904_vm5 = vcmp.eq.s32.totalorder %v11986_v22, %v5935_v40 }
 0x506   :  { %vm7507_vm3 = vmpackc.low %vm2902_vm2, %vm2901_vm1 }
 0x507   :  { %2531 = vmatmul.mubr.f32.gmra.mrb[164].mxu0 %v12118_v56  ;;  %v12145_v56 = vld [vmem:[#allocation13_spill] sm:$0xff]  ;;  %vm7511_vm6 = vmpackc.low %vm2904_vm5, %vm2903_vm4 }
 0x508   :  { %2535 = vmatprep.mubr.f32.mxu0 %v12119_v42  ;;  %vm2895_vm7 = vcmp.eq.s32.totalorder %v12145_v56, %v5935_v40  ;;  %v12146_v42 = vld [vmem:[#allocation14_spill] sm:$0xff] }
 0x509   :  { %vm2896_vm8 = vcmp.eq.s32.totalorder %v12146_v42, %v5935_v40 }
 0x50a   :  { %v9935_v1 = vpop.f32.mrb[160].mxu1  ;;  %vm7495_vm9 = vmpackc.low %vm2896_vm8, %vm2895_vm7  ;;  %vm2905_vm7 = vcmp.eq.s32.totalorder %v11987_v27, %v5935_v40  ;;  %vm2906_vm8 = vcmp.eq.s32.totalorder %v11988_v48, %v5935_v40 }
 0x50b   :  { %2536 = vmatmul.mubr.f32.gmra.mrb[166].mxu0 %v12120_v41  ;;  %v9937_v20 = vpop.f32.mrb[161].mxu1  ;;  %7496 = vmatprep.subr.msk.bf16.mxu0 %vm7495_vm9, %v11922_v19 }
 0x50c   :  { %2540 = vmatprep.mubr.f32.mxu0 %v12121_v46  ;;  %7498 = vmatpush3.bf16.msk.msra.mxu0 %vm7495_vm9, %v11922_v19  ;;  %vm7515_vm9 = vmpackc.low %vm2906_vm8, %vm2905_vm7 }
 0x50e   :  { %v9943_v63 = vpop.f32.mrb[162].mxu1 }
 0x50f   :  { %2541 = vmatmul.mubr.f32.gmra.mrb[168].mxu0 %v12122_v23  ;;  %v9945_v33 = vpop.f32.mrb[163].mxu1 }
 0x510   :  { %2545 = vmatprep.mubr.f32.mxu0 %v12123_v39 }
 0x513   :  { %2546 = vmatmul.mubr.f32.gmra.mrb[170].mxu0 %v12124_v45  ;;  %v12147_v45 = vld [vmem:[#allocation15_spill] sm:$0xff] }
 0x514   :  { %2550 = vmatprep.mubr.f32.mxu0 %v12125_v31  ;;  %vm2897_vm10 = vcmp.eq.s32.totalorder %v12147_v45, %v5935_v40  ;;  %v12148_v31 = vld [vmem:[#allocation16_spill] sm:$0xff] }
 0x515   :  { %v9951_v60 = vpop.f32.mrb[164].mxu1  ;;  %vm2898_vm11 = vcmp.eq.s32.totalorder %v12148_v31, %v5935_v40 }
 0x516   :  { %v9953_v54 = vpop.f32.mrb[165].mxu1  ;;  %vm7499_vm12 = vmpackc.low %vm2898_vm11, %vm2897_vm10  ;;  %vm2907_vm10 = vcmp.eq.s32.totalorder %v11989_v10, %v5935_v40  ;;  %vm2908_vm11 = vcmp.eq.s32.totalorder %v11990_v52, %v5935_v40 }
 0x517   :  { %2551 = vmatmul.mubr.f32.gmra.mrb[172].mxu0 %v12126_v25  ;;  %7500 = vmatprep.subr.msk.bf16.mxu0 %vm7499_vm12, %v11922_v19 }
 0x518   :  { %2555 = vmatprep.mubr.f32.mxu0 %v12127_v9  ;;  %7502 = vmatpush3.bf16.msk.msra.mxu0 %vm7499_vm12, %v11922_v19 }
 0x519   :  { %v9959_v0 = vpop.f32.mrb[166].mxu1 }
 0x51a   :  { %v9961_v32 = vpop.f32.mrb[167].mxu1 }
 0x51b   :  { %2556 = vmatmul.mubr.f32.gmra.mrb[174].mxu0 %v12128_v11  ;;  %v12149_v11 = vld [vmem:[#allocation17_spill] sm:$0xff] }
 0x51c   :  { %2560 = vmatprep.mubr.f32.mxu0 %v12129_v34  ;;  %vm2899_vm13 = vcmp.eq.s32.totalorder %v12149_v11, %v5935_v40  ;;  %v12150_v34 = vld [vmem:[#allocation18_spill] sm:$0xff] }
 0x51d   :  { %v9967_v53 = vpop.f32.mrb[168].mxu1  ;;  %vm2900_vm14 = vcmp.eq.s32.totalorder %v12150_v34, %v5935_v40 }
 0x51e   :  { %v9969_v16 = vpop.f32.mrb[169].mxu1  ;;  %vm7503_vm15 = vmpackc.low %vm2900_vm14, %vm2899_vm13 }
 0x51f   :  { %2561 = vmatmul.mubr.f32.gmra.mrb[176].mxu0 %v12130_v28  ;;  %7504 = vmatprep.subr.msk.bf16.mxu0 %vm7503_vm15, %v11922_v19  ;;  %vm7519_vm14 = vmpackc.low %vm2908_vm11, %vm2907_vm10 }
 0x520   :  { %2565 = vmatprep.mubr.f32.mxu0 %v12131_v43  ;;  %7506 = vmatpush3.bf16.msk.msra.mxu0 %vm7503_vm15, %v11922_v19 }
 0x521   :  { %v9975_v17 = vpop.f32.mrb[170].mxu1  ;;  %7508 = vmatprep.subr.msk.bf16.mxu0 %vm7507_vm3, %v11922_v19 }
 0x522   :  { %v9977_v26 = vpop.f32.mrb[171].mxu1 }
 0x523   :  { %2566 = vmatmul.mubr.f32.gmra.mrb[178].mxu0 %v12132_v37 }
 0x524   :  { %2570 = vmatprep.mubr.f32.mxu0 %v12133_v57  ;;  %7510 = vmatpush3.bf16.msk.msra.mxu0 %vm7507_vm3, %v11922_v19 }
 0x525   :  { %v9980_v5 = vpop.f32.mrb[172].mxu1  ;;  %7512 = vmatprep.subr.msk.bf16.mxu0 %vm7511_vm6, %v11922_v19 }
 0x526   :  { %v9982_v47 = vpop.f32.mrb[173].mxu1 }
 0x527   :  { %2571 = vmatmul.mubr.f32.gmra.mrb[180].mxu0 %v12134_v15 }
 0x528   :  { %2575 = vmatprep.mubr.f32.mxu0 %v12135_v49  ;;  %7514 = vmatpush3.bf16.msk.msra.mxu0 %vm7511_vm6, %v11922_v19 }
 0x529   :  { %v9984_v6 = vpop.f32.mrb[174].mxu1  ;;  %7516 = vmatprep.subr.msk.bf16.mxu0 %vm7515_vm9, %v11922_v19 }
 0x52a   :  { %v9986_v13 = vpop.f32.mrb[175].mxu1 }
 0x52b   :  { %2576 = vmatmul.mubr.f32.gmra.mrb[182].mxu0 %v12136_v62 }
 0x52c   :  { %2580 = vmatprep.mubr.f32.mxu0 %v12137_v8  ;;  %7518 = vmatpush3.bf16.msk.msra.mxu0 %vm7515_vm9, %v11922_v19 }
 0x52d   :  { %v9988_v55 = vpop.f32.mrb[176].mxu1  ;;  %7520 = vmatprep.subr.msk.bf16.mxu0 %vm7519_vm14, %v11922_v19 }
 0x52e   :  { %v9990_v51 = vpop.f32.mrb[177].mxu1 }
 0x52f   :  { %2581 = vmatmul.mubr.f32.gmra.mrb[184].mxu0 %v12138_v58  ;;  %v12151_v58 = vld [vmem:[#allocation27_spill] sm:$0xff] }
 0x530   :  { %2585 = vmatprep.mubr.f32.mxu0 %v12139_v44  ;;  %vm2909_vm12 = vcmp.eq.s32.totalorder %v12151_v58, %v5935_v40  ;;  %v12152_v44 = vld [vmem:[#allocation28_spill] sm:$0xff]  ;;  %7522 = vmatpush3.bf16.msk.msra.mxu0 %vm7519_vm14, %v11922_v19 }
 0x531   :  { %v9992_v18 = vpop.f32.mrb[178].mxu1  ;;  %vm2910_vm13 = vcmp.eq.s32.totalorder %v12152_v44, %v5935_v40 }
 0x532   :  { %v9994_v38 = vpop.f32.mrb[179].mxu1  ;;  %vm7523_vm15 = vmpackc.low %vm2910_vm13, %vm2909_vm12 }
 0x533   :  { %2586 = vmatmul.mubr.f32.gmra.mrb[186].mxu0 %v12140_v4  ;;  %7524 = vmatprep.subr.msk.bf16.mxu0 %vm7523_vm15, %v11922_v19 }
 0x534   :  { %2590 = vmatprep.mubr.f32.mxu0 %v12141_v21  ;;  %7526 = vmatpush3.bf16.msk.msra.mxu0 %vm7523_vm15, %v11922_v19 }
 0x535   :  { %v9996_v50 = vpop.f32.mrb[180].mxu1  ;;  %7527 = vmatprep.subr.bf16.mxu0 %v11923_v59 }
 0x536   :  { %v9998_v14 = vpop.f32.mrb[181].mxu1 }
 0x537   :  { %2591 = vmatmul.mubr.f32.gmra.mrb[188].mxu0 %v12142_v36 }
 0x538   :  { %2595 = vmatprep.mubr.f32.mxu0 %v12143_v12 }
 0x539   :  { %v10000_v30 = vpop.f32.mrb[182].mxu1 }
 0x53a   :  { %v10002_v61 = vpop.f32.mrb[183].mxu1 }
 0x53b   :  { %2596 = vmatmul.mubr.f32.gmra.mrb[190].mxu0 %v12144_v3 }
 0x53d   :  { %v10004_v35 = vpop.f32.mrb[184].mxu1 }
 0x53e   :  { %v10006_v7 = vpop.f32.mrb[185].mxu1 }
 0x541   :  { %v10010_v41 = vpop.f32.mrb[186].mxu1 }
 0x542   :  { %v10012_v46 = vpop.f32.mrb[187].mxu1 }
 0x545   :  { %v10016_v23 = vpop.f32.mrb[188].mxu1 }
 0x546   :  { %v10018_v39 = vpop.f32.mrb[189].mxu1 }
 0x549   :  { %v10022_v25 = vpop.f32.mrb[190].mxu1 }
 0x54a   :  { %v10025_v9 = vpop.f32.mrb[191].mxu1 }
 0x592   :  { %v2442_v28 = vpop.f32.mrb[128].mxu0 }
 0x593   :  { %v2668_v43 = vadd.f32 %v9937_v20, %v2442_v28  ;;  %v2444_v37 = vpop.f32.mrb[129].mxu0  ;;  %v10059_v28 = vld [vmem:[#allocation6] sm:$0xff] }
 0x594   :  { %v2944_v37 = vld [vmem:[#allocation6 + $0x8] sm:$0xff]  ;;  %6839 = vmatprep.mubr.f32.mxu0 %v10059_v28 }
 0x595   :  { %8004 = vtanh.f32 %v2668_v43  ;;  %v10061_v43 = vld [vmem:[#allocation8 + $0x8] sm:$0xff]  ;;  %6840 = vmatmul.mubr.f32.vlgmr.msra.gmra.mrb[192].mxu0 %v2944_v37 }
 0x596   :  { %v2447_v57 = vpop.f32.mrb[130].mxu0  ;;  %3135 = vmatprep.mubr.f32.mxu1 %v10061_v43 }
 0x597   :  { %v2673_v15 = vadd.f32 %v9935_v1, %v2447_v57  ;;  %v2449_v49 = vpop.f32.mrb[131].mxu0 }
 0x599   :  { %8006 = vtanh.f32 %v2673_v15 }
 0x59a   :  { %v2452_v20 = vpop.f32.mrb[132].mxu0 }
 0x59b   :  { %v2678_v62 = vadd.f32 %v9945_v33, %v2452_v20  ;;  %v2454_v8 = vpop.f32.mrb[133].mxu0 }
 0x59d   :  { %8008 = vtanh.f32 %v2678_v62 }
 0x59e   :  { %v2457_v1 = vpop.f32.mrb[134].mxu0 }
 0x59f   :  { %v8005_v4 = vpop.eup %8004  ;;  %v2683_v21 = vadd.f32 %v9943_v63, %v2457_v1  ;;  %v2459_v33 = vpop.f32.mrb[135].mxu0 }
 0x5a0   :  { %2858 = vst.msk [vmem:[#allocation2] sm:$0xff] %vm60_vm0, %v8005_v4 }
 0x5a1   :  { %8010 = vtanh.f32 %v2683_v21 }
 0x5a2   :  { %v2462_v36 = vpop.f32.mrb[136].mxu0 }
 0x5a3   :  { %v8007_v12 = vpop.eup %8006  ;;  %v2688_v3 = vadd.f32 %v9953_v54, %v2462_v36  ;;  %v2464_v40 = vpop.f32.mrb[137].mxu0  ;;  %v2946_v36 = vld [vmem:[#allocation6 + $0x18] sm:$0xff] }
 0x5a4   :  { %2859 = vst.msk [vmem:[#allocation2 + $0x8] sm:$0xff] %vm60_vm0, %v8007_v12 }
 0x5a5   :  { %8012 = vtanh.f32 %v2688_v3 }
 0x5a6   :  { %v2467_v63 = vpop.f32.mrb[138].mxu0 }
 0x5a7   :  { %v8009_v57 = vpop.eup %8008  ;;  %v2693_v15 = vadd.f32 %v9951_v60, %v2467_v63  ;;  %v2469_v49 = vpop.f32.mrb[139].mxu0  ;;  %v3039_v1 = vld [vmem:[#allocation2] sm:$0xff]  ;;  %v2945_v60 = vld [vmem:[#allocation6 + $0x10] sm:$0xff] }
 0x5a8   :  { %2860 = vst.msk [vmem:[#allocation2 + $0x10] sm:$0xff] %vm60_vm0, %v8009_v57  ;;  %6842 = vmatprep.mubr.f32.mxu0 %v2945_v60 }
 0x5a9   :  { %8014 = vtanh.f32 %v2693_v15  ;;  %6843 = vmatmul.mubr.f32.gmra.mrb[194].mxu0 %v2946_v36 }
 0x5aa   :  { %v2472_v54 = vpop.f32.mrb[140].mxu0 }
 0x5ab   :  { %v8011_v20 = vpop.eup %8010  ;;  %v2698_v62 = vadd.f32 %v9961_v32, %v2472_v54  ;;  %v2474_v8 = vpop.f32.mrb[141].mxu0  ;;  %v3040_v4 = vld [vmem:[#allocation2 + $0x8] sm:$0xff] }
 0x5ac   :  { %2861 = vst.msk [vmem:[#allocation2 + $0x18] sm:$0xff] %vm60_vm0, %v8011_v20  ;;  %v7448_v21 = vpack.c.bf16 %v3040_v4, %v3039_v1  ;;  %v2947_v20 = vld [vmem:[#allocation6 + $0x20] sm:$0xff] }
 0x5ad   :  { %8016 = vtanh.f32 %v2698_v62  ;;  %6845 = vmatprep.mubr.f32.mxu0 %v2947_v20  ;;  %v2948_v62 = vld [vmem:[#allocation6 + $0x28] sm:$0xff] }
 0x5ae   :  { %v2477_v33 = vpop.f32.mrb[142].mxu0  ;;  %7449 = vmatpush1.bf16.msra.mxu1 %v7448_v21  ;;  %6846 = vmatmul.mubr.f32.gmra.mrb[196].mxu0 %v2948_v62 }
 0x5af   :  { %v8013_v12 = vpop.eup %8012  ;;  %v2703_v3 = vadd.f32 %v9959_v0, %v2477_v33  ;;  %v2479_v40 = vpop.f32.mrb[143].mxu0  ;;  %7450 = vmatprep.subr.bf16.mxu1 %v11923_v59  ;;  %v3041_v15 = vld [vmem:[#allocation2 + $0x10] sm:$0xff] }
 0x5b0   :  { %2862 = vst.msk [vmem:[#allocation2 + $0x20] sm:$0xff] %vm60_vm0, %v8013_v12  ;;  %v10080_v40 = vld [vmem:[#allocation6 + $0x30] sm:$0xff] }
 0x5b1   :  { %8018 = vtanh.f32 %v2703_v3  ;;  %6848 = vmatprep.mubr.f32.mxu0 %v10080_v40 }
 0x5b2   :  { %v2482_v32 = vpop.f32.mrb[144].mxu0 }
 0x5b3   :  { %v8015_v63 = vpop.eup %8014  ;;  %v2708_v37 = vadd.f32 %v9969_v16, %v2482_v32  ;;  %v2484_v57 = vpop.f32.mrb[145].mxu0  ;;  %v3042_v49 = vld [vmem:[#allocation2 + $0x18] sm:$0xff]  ;;  %v10083_v32 = vld [vmem:[#allocation6 + $0x38] sm:$0xff] }
 0x5b4   :  { %2863 = vst.msk [vmem:[#allocation2 + $0x28] sm:$0xff] %vm60_vm0, %v8015_v63  ;;  %v7451_v54 = vpack.c.bf16 %v3042_v49, %v3041_v15  ;;  %6849 = vmatmul.mubr.f32.gmra.mrb[198].mxu0 %v10083_v32 }
 0x5b5   :  { %8020 = vtanh.f32 %v2708_v37 }
 0x5b6   :  { %v2487_v0 = vpop.f32.mrb[146].mxu0  ;;  %7452 = vmatpush1.bf16.msra.mxu1 %v7451_v54 }
 0x5b7   :  { %v8017_v8 = vpop.eup %8016  ;;  %v2713_v1 = vadd.f32 %v9967_v53, %v2487_v0  ;;  %v2489_v4 = vpop.f32.mrb[147].mxu0  ;;  %7453 = vmatprep.subr.bf16.mxu1 %v11923_v59  ;;  %v3043_v36 = vld [vmem:[#allocation2 + $0x20] sm:$0xff] }
 0x5b8   :  { %2864 = vst.msk [vmem:[#allocation2 + $0x30] sm:$0xff] %vm60_vm0, %v8017_v8 }
 0x5b9   :  { %8022 = vtanh.f32 %v2713_v1  ;;  %v10094_v1 = vld [vmem:[#allocation6 + $0x48] sm:$0xff] }
 0x5ba   :  { %v2492_v16 = vpop.f32.mrb[148].mxu0 }
 0x5bb   :  { %v8019_v21 = vpop.eup %8018  ;;  %v2718_v60 = vadd.f32 %v9977_v26, %v2492_v16  ;;  %v2494_v33 = vpop.f32.mrb[149].mxu0  ;;  %v3044_v12 = vld [vmem:[#allocation2 + $0x28] sm:$0xff] }
 0x5bc   :  { %2865 = vst.msk [vmem:[#allocation2 + $0x38] sm:$0xff] %vm60_vm0, %v8019_v21  ;;  %v7454_v3 = vpack.c.bf16 %v3044_v12, %v3043_v36 }
 0x5bd   :  { %8024 = vtanh.f32 %v2718_v60 }
 0x5be   :  { %v2497_v53 = vpop.f32.mrb[150].mxu0  ;;  %7455 = vmatpush1.bf16.msra.mxu1 %v7454_v3 }
 0x5bf   :  { %v8021_v63 = vpop.eup %8020  ;;  %v2723_v37 = vadd.f32 %v9975_v17, %v2497_v53  ;;  %v2499_v57 = vpop.f32.mrb[151].mxu0  ;;  %7456 = vmatprep.subr.bf16.mxu1 %v11923_v59  ;;  %v3045_v20 = vld [vmem:[#allocation2 + $0x30] sm:$0xff]  ;;  %v10091_v17 = vld [vmem:[#allocation6 + $0x40] sm:$0xff] }
 0x5c0   :  { %2866 = vst.msk [vmem:[#allocation2 + $0x40] sm:$0xff] %vm60_vm0, %v8021_v63  ;;  %6851 = vmatprep.mubr.f32.mxu0 %v10091_v17 }
 0x5c1   :  { %8026 = vtanh.f32 %v2723_v37  ;;  %6852 = vmatmul.mubr.f32.gmra.mrb[200].mxu0 %v10094_v1  ;;  %v10105_v37 = vld [vmem:[#allocation6 + $0x58] sm:$0xff] }
 0x5c2   :  { %v2502_v26 = vpop.f32.mrb[152].mxu0 }
 0x5c3   :  { %v8023_v15 = vpop.eup %8022  ;;  %v2728_v49 = vadd.f32 %v9982_v47, %v2502_v26  ;;  %v2504_v54 = vpop.f32.mrb[153].mxu0  ;;  %v3046_v0 = vld [vmem:[#allocation2 + $0x38] sm:$0xff] }
 0x5c4   :  { %2867 = vst.msk [vmem:[#allocation2 + $0x48] sm:$0xff] %vm60_vm0, %v8023_v15  ;;  %v7457_v62 = vpack.c.bf16 %v3046_v0, %v3045_v20 }
 0x5c5   :  { %8028 = vtanh.f32 %v2728_v49 }
 0x5c6   :  { %v2507_v8 = vpop.f32.mrb[154].mxu0  ;;  %7458 = vmatpush1.bf16.msra.mxu1 %v7457_v62 }
 0x5c7   :  { %v8025_v4 = vpop.eup %8024  ;;  %v2733_v16 = vadd.f32 %v9980_v5, %v2507_v8  ;;  %v2509_v21 = vpop.f32.mrb[155].mxu0  ;;  %7459 = vmatprep.subr.bf16.mxu1 %v11923_v59  ;;  %v3047_v12 = vld [vmem:[#allocation2 + $0x40] sm:$0xff]  ;;  %v10102_v5 = vld [vmem:[#allocation6 + $0x50] sm:$0xff] }
 0x5c8   :  { %2868 = vst.msk [vmem:[#allocation2 + $0x50] sm:$0xff] %vm60_vm0, %v8025_v4  ;;  %6854 = vmatprep.mubr.f32.mxu0 %v10102_v5 }
 0x5c9   :  { %8030 = vtanh.f32 %v2733_v16  ;;  %6855 = vmatmul.mubr.f32.gmra.mrb[202].mxu0 %v10105_v37  ;;  %v10116_v16 = vld [vmem:[#allocation6 + $0x68] sm:$0xff] }
 0x5ca   :  { %v2512_v47 = vpop.f32.mrb[156].mxu0 }
 0x5cb   :  { %v8027_v60 = vpop.eup %8026  ;;  %v2738_v33 = vadd.f32 %v9986_v13, %v2512_v47  ;;  %v2514_v36 = vpop.f32.mrb[157].mxu0  ;;  %v3048_v3 = vld [vmem:[#allocation2 + $0x48] sm:$0xff] }
 0x5cc   :  { %2869 = vst.msk [vmem:[#allocation2 + $0x58] sm:$0xff] %vm60_vm0, %v8027_v60  ;;  %v7460_v53 = vpack.c.bf16 %v3048_v3, %v3047_v12 }
 0x5cd   :  { %8032 = vtanh.f32 %v2738_v33 }
 0x5ce   :  { %v2517_v63 = vpop.f32.mrb[158].mxu0  ;;  %7461 = vmatpush1.bf16.msra.mxu1 %v7460_v53 }
 0x5cf   :  { %v8029_v57 = vpop.eup %8028  ;;  %v2743_v26 = vadd.f32 %v9984_v6, %v2517_v63  ;;  %v2519_v15 = vpop.f32.mrb[159].mxu0  ;;  %7462 = vmatprep.subr.bf16.mxu1 %v11923_v59  ;;  %v3049_v0 = vld [vmem:[#allocation2 + $0x50] sm:$0xff]  ;;  %v10113_v6 = vld [vmem:[#allocation6 + $0x60] sm:$0xff] }
 0x5d0   :  { %2870 = vst.msk [vmem:[#allocation2 + $0x60] sm:$0xff] %vm60_vm0, %v8029_v57  ;;  %6857 = vmatprep.mubr.f32.mxu0 %v10113_v6 }
 0x5d1   :  { %8034 = vtanh.f32 %v2743_v26  ;;  %6858 = vmatmul.mubr.f32.gmra.mrb[204].mxu0 %v10116_v16  ;;  %v10127_v26 = vld [vmem:[#allocation6 + $0x78] sm:$0xff] }
 0x5d2   :  { %v2522_v13 = vpop.f32.mrb[160].mxu0 }
 0x5d3   :  { %v8031_v49 = vpop.eup %8030  ;;  %v2748_v54 = vadd.f32 %v9990_v51, %v2522_v13  ;;  %v2524_v20 = vpop.f32.mrb[161].mxu0  ;;  %v3050_v62 = vld [vmem:[#allocation2 + $0x58] sm:$0xff] }
 0x5d4   :  { %2871 = vst.msk [vmem:[#allocation2 + $0x68] sm:$0xff] %vm60_vm0, %v8031_v49  ;;  %v7463_v8 = vpack.c.bf16 %v3050_v62, %v3049_v0 }
 0x5d5   :  { %8036 = vtanh.f32 %v2748_v54 }
 0x5d6   :  { %v2527_v4 = vpop.f32.mrb[162].mxu0  ;;  %7464 = vmatpush1.bf16.msra.mxu1 %v7463_v8 }
 0x5d7   :  { %v8033_v21 = vpop.eup %8032  ;;  %v2753_v47 = vadd.f32 %v9988_v55, %v2527_v4  ;;  %v2529_v60 = vpop.f32.mrb[163].mxu0  ;;  %7465 = vmatprep.subr.bf16.mxu1 %v11923_v59  ;;  %v3051_v3 = vld [vmem:[#allocation2 + $0x60] sm:$0xff]  ;;  %v10124_v55 = vld [vmem:[#allocation6 + $0x70] sm:$0xff] }
 0x5d8   :  { %2872 = vst.msk [vmem:[#allocation2 + $0x70] sm:$0xff] %vm60_vm0, %v8033_v21  ;;  %6860 = vmatprep.mubr.f32.mxu0 %v10124_v55 }
 0x5d9   :  { %8038 = vtanh.f32 %v2753_v47  ;;  %6861 = vmatmul.mubr.f32.gmra.mrb[206].mxu0 %v10127_v26  ;;  %v10138_v47 = vld [vmem:[#allocation6 + $0x88] sm:$0xff] }
 0x5da   :  { %v2532_v51 = vpop.f32.mrb[164].mxu0 }
 0x5db   :  { %v8035_v33 = vpop.eup %8034  ;;  %v2758_v36 = vadd.f32 %v9994_v38, %v2532_v51  ;;  %v2534_v12 = vpop.f32.mrb[165].mxu0  ;;  %v3052_v53 = vld [vmem:[#allocation2 + $0x68] sm:$0xff] }
 0x5dc   :  { %2873 = vst.msk [vmem:[#allocation2 + $0x78] sm:$0xff] %vm60_vm0, %v8035_v33  ;;  %v7466_v63 = vpack.c.bf16 %v3052_v53, %v3051_v3 }
 0x5dd   :  { %8040 = vtanh.f32 %v2758_v36 }
 0x5de   :  { %v2537_v57 = vpop.f32.mrb[166].mxu0  ;;  %7467 = vmatpush1.bf16.msra.mxu1 %v7466_v63 }
 0x5df   :  { %v8037_v15 = vpop.eup %8036  ;;  %v2763_v13 = vadd.f32 %v9992_v18, %v2537_v57  ;;  %v2539_v49 = vpop.f32.mrb[167].mxu0  ;;  %7468 = vmatprep.subr.bf16.mxu1 %v11923_v59  ;;  %v3053_v62 = vld [vmem:[#allocation2 + $0x70] sm:$0xff]  ;;  %v10135_v18 = vld [vmem:[#allocation6 + $0x80] sm:$0xff] }
 0x5e0   :  { %2874 = vst.msk [vmem:[#allocation2 + $0x80] sm:$0xff] %vm60_vm0, %v8037_v15  ;;  %6863 = vmatprep.mubr.f32.mxu0 %v10135_v18 }
 0x5e1   :  { %8042 = vtanh.f32 %v2763_v13  ;;  %6864 = vmatmul.mubr.f32.gmra.mrb[208].mxu0 %v10138_v47  ;;  %v10149_v13 = vld [vmem:[#allocation6 + $0x98] sm:$0xff] }
 0x5e2   :  { %v2542_v38 = vpop.f32.mrb[168].mxu0 }
 0x5e3   :  { %v8039_v54 = vpop.eup %8038  ;;  %v2768_v20 = vadd.f32 %v9998_v14, %v2542_v38  ;;  %v2544_v0 = vpop.f32.mrb[169].mxu0  ;;  %v3054_v8 = vld [vmem:[#allocation2 + $0x78] sm:$0xff] }
 0x5e4   :  { %2875 = vst.msk [vmem:[#allocation2 + $0x88] sm:$0xff] %vm60_vm0, %v8039_v54  ;;  %v7469_v4 = vpack.c.bf16 %v3054_v8, %v3053_v62 }
 0x5e5   :  { %8044 = vtanh.f32 %v2768_v20 }
 0x5e6   :  { %v2547_v21 = vpop.f32.mrb[170].mxu0  ;;  %7470 = vmatpush1.bf16.msra.mxu1 %v7469_v4 }
 0x5e7   :  { %v8041_v60 = vpop.eup %8040  ;;  %v2773_v51 = vadd.f32 %v9996_v50, %v2547_v21  ;;  %v2549_v33 = vpop.f32.mrb[171].mxu0  ;;  %7471 = vmatprep.subr.bf16.mxu1 %v11923_v59  ;;  %v3055_v53 = vld [vmem:[#allocation2 + $0x80] sm:$0xff]  ;;  %v10146_v50 = vld [vmem:[#allocation6 + $0x90] sm:$0xff] }
 0x5e8   :  { %2876 = vst.msk [vmem:[#allocation2 + $0x90] sm:$0xff] %vm60_vm0, %v8041_v60  ;;  %6866 = vmatprep.mubr.f32.mxu0 %v10146_v50 }
 0x5e9   :  { %8046 = vtanh.f32 %v2773_v51  ;;  %6867 = vmatmul.mubr.f32.gmra.mrb[210].mxu0 %v10149_v13  ;;  %v10160_v51 = vld [vmem:[#allocation6 + $0xa8] sm:$0xff] }
 0x5ea   :  { %v2552_v14 = vpop.f32.mrb[172].mxu0 }
 0x5eb   :  { %v8043_v36 = vpop.eup %8042  ;;  %v2778_v12 = vadd.f32 %v10002_v61, %v2552_v14  ;;  %v2554_v3 = vpop.f32.mrb[173].mxu0  ;;  %v3056_v63 = vld [vmem:[#allocation2 + $0x88] sm:$0xff] }
 0x5ec   :  { %2877 = vst.msk [vmem:[#allocation2 + $0x98] sm:$0xff] %vm60_vm0, %v8043_v36  ;;  %v7472_v57 = vpack.c.bf16 %v3056_v63, %v3055_v53 }
 0x5ed   :  { %8048 = vtanh.f32 %v2778_v12 }
 0x5ee   :  { %v2557_v15 = vpop.f32.mrb[174].mxu0  ;;  %7473 = vmatpush1.bf16.msra.mxu1 %v7472_v57 }
 0x5ef   :  { %v8045_v49 = vpop.eup %8044  ;;  %v2783_v38 = vadd.f32 %v10000_v30, %v2557_v15  ;;  %v2559_v54 = vpop.f32.mrb[175].mxu0  ;;  %7474 = vmatprep.subr.bf16.mxu1 %v11923_v59  ;;  %v3057_v8 = vld [vmem:[#allocation2 + $0x90] sm:$0xff]  ;;  %v10157_v30 = vld [vmem:[#allocation6 + $0xa0] sm:$0xff] }
 0x5f0   :  { %2878 = vst.msk [vmem:[#allocation2 + $0xa0] sm:$0xff] %vm60_vm0, %v8045_v49  ;;  %6869 = vmatprep.mubr.f32.mxu0 %v10157_v30 }
 0x5f1   :  { %8050 = vtanh.f32 %v2783_v38  ;;  %6870 = vmatmul.mubr.f32.gmra.mrb[212].mxu0 %v10160_v51  ;;  %v10171_v38 = vld [vmem:[#allocation6 + $0xb8] sm:$0xff] }
 0x5f2   :  { %v2562_v61 = vpop.f32.mrb[176].mxu0 }
 0x5f3   :  { %v8047_v20 = vpop.eup %8046  ;;  %v2788_v0 = vadd.f32 %v10006_v7, %v2562_v61  ;;  %v2564_v62 = vpop.f32.mrb[177].mxu0  ;;  %v3058_v4 = vld [vmem:[#allocation2 + $0x98] sm:$0xff] }
 0x5f4   :  { %2879 = vst.msk [vmem:[#allocation2 + $0xa8] sm:$0xff] %vm60_vm0, %v8047_v20  ;;  %v7475_v21 = vpack.c.bf16 %v3058_v4, %v3057_v8 }
 0x5f5   :  { %8052 = vtanh.f32 %v2788_v0 }
 0x5f6   :  { %v2567_v60 = vpop.f32.mrb[178].mxu0  ;;  %7476 = vmatpush1.bf16.msra.mxu1 %v7475_v21 }
 0x5f7   :  { %v8049_v33 = vpop.eup %8048  ;;  %v2793_v14 = vadd.f32 %v10004_v35, %v2567_v60  ;;  %v2569_v36 = vpop.f32.mrb[179].mxu0  ;;  %7477 = vmatprep.subr.bf16.mxu1 %v11923_v59  ;;  %v3059_v63 = vld [vmem:[#allocation2 + $0xa0] sm:$0xff]  ;;  %v10168_v35 = vld [vmem:[#allocation6 + $0xb0] sm:$0xff] }
 0x5f8   :  { %2880 = vst.msk [vmem:[#allocation2 + $0xb0] sm:$0xff] %vm60_vm0, %v8049_v33  ;;  %6872 = vmatprep.mubr.f32.mxu0 %v10168_v35 }
 0x5f9   :  { %8054 = vtanh.f32 %v2793_v14  ;;  %6873 = vmatmul.mubr.f32.gmra.mrb[214].mxu0 %v10171_v38  ;;  %v10182_v14 = vld [vmem:[#allocation6 + $0xc8] sm:$0xff] }
 0x5fa   :  { %v2572_v7 = vpop.f32.mrb[180].mxu0  ;;  %12153 = vst [vmem:[#allocation29_spill] sm:$0xff] %v10182_v14 }
 0x5fb   :  { %v8051_v12 = vpop.eup %8050  ;;  %v2798_v3 = vadd.f32 %v10012_v46, %v2572_v7  ;;  %v2574_v53 = vpop.f32.mrb[181].mxu0  ;;  %v3060_v57 = vld [vmem:[#allocation2 + $0xa8] sm:$0xff] }
 0x5fc   :  { %2881 = vst.msk [vmem:[#allocation2 + $0xb8] sm:$0xff] %vm60_vm0, %v8051_v12  ;;  %v7478_v15 = vpack.c.bf16 %v3060_v57, %v3059_v63 }
 0x5fd   :  { %8056 = vtanh.f32 %v2798_v3 }
 0x5fe   :  { %v2577_v49 = vpop.f32.mrb[182].mxu0  ;;  %7479 = vmatpush1.bf16.msra.mxu1 %v7478_v15 }
 0x5ff   :  { %v8053_v54 = vpop.eup %8052  ;;  %v2803_v61 = vadd.f32 %v10010_v41, %v2577_v49  ;;  %v2579_v20 = vpop.f32.mrb[183].mxu0  ;;  %7480 = vmatprep.subr.bf16.mxu1 %v11923_v59  ;;  %v3061_v4 = vld [vmem:[#allocation2 + $0xb0] sm:$0xff]  ;;  %v10179_v41 = vld [vmem:[#allocation6 + $0xc0] sm:$0xff] }
 0x600   :  { %2882 = vst.msk [vmem:[#allocation2 + $0xc0] sm:$0xff] %vm60_vm0, %v8053_v54  ;;  %6875 = vmatprep.mubr.f32.mxu0 %v10179_v41 }
 0x601   :  { %8058 = vtanh.f32 %v2803_v61  ;;  %6876 = vmatmul.mubr.f32.gmra.mrb[216].mxu0 %v10182_v14  ;;  %v10193_v61 = vld [vmem:[#allocation6 + $0xd8] sm:$0xff] }
 0x602   :  { %v2582_v46 = vpop.f32.mrb[184].mxu0  ;;  %12155 = vst [vmem:[#allocation92_spill] sm:$0xff] %v10193_v61  ;;  %v5968_v14 = vld [vmem:[#allocation3 + $0x5] ss:$0 sm:$0xff] }
 0x603   :  { %v8055_v0 = vpop.eup %8054  ;;  %v2808_v62 = vadd.f32 %v10018_v39, %v2582_v46  ;;  %v2584_v8 = vpop.f32.mrb[185].mxu0  ;;  %v3062_v21 = vld [vmem:[#allocation2 + $0xb8] sm:$0xff]  ;;  %vm3590_vm1 = vcmp.eq.s32.totalorder %v12145_v56, %v5968_v14  ;;  %vm3591_vm2 = vcmp.eq.s32.totalorder %v12146_v42, %v5968_v14  ;;  %vm3592_vm4 = vcmp.eq.s32.totalorder %v12147_v45, %v5968_v14 }
 0x604   :  { %2883 = vst.msk [vmem:[#allocation2 + $0xc8] sm:$0xff] %vm60_vm0, %v8055_v0  ;;  %v7481_v60 = vpack.c.bf16 %v3062_v21, %v3061_v4  ;;  %v10200_v21 = vld [vmem:[#allocation6 + $0xe0] sm:$0xff]  ;;  %vm7575_vm3 = vmpackc.low %vm3591_vm2, %vm3590_vm1  ;;  %vm3593_vm5 = vcmp.eq.s32.totalorder %v12148_v31, %v5968_v14  ;;  %vm3594_vm7 = vcmp.eq.s32.totalorder %v12149_v11, %v5968_v14  ;;  %vm3595_vm8 = vcmp.eq.s32.totalorder %v12150_v34, %v5968_v14 }
 0x605   :  { %8060 = vtanh.f32 %v2808_v62  ;;  %12156 = vst [vmem:[#allocation31_spill] sm:$0xff] %v10200_v21  ;;  %vm7579_vm6 = vmpackc.low %vm3593_vm5, %vm3592_vm4  ;;  %vm3596_vm10 = vcmp.eq.s32.totalorder %v11983_v24, %v5968_v14  ;;  %vm3597_vm11 = vcmp.eq.s32.totalorder %v11984_v29, %v5968_v14  ;;  %vm3598_vm13 = vcmp.eq.s32.totalorder %v11985_v2, %v5968_v14 }
 0x606   :  { %v2587_v33 = vpop.f32.mrb[186].mxu0  ;;  %7482 = vmatpush1.bf16.msra.mxu1 %v7481_v60  ;;  %vm7583_vm9 = vmpackc.low %vm3595_vm8, %vm3594_vm7  ;;  %vm3599_vm14 = vcmp.eq.s32.totalorder %v11986_v22, %v5968_v14  ;;  %vm3600_vm1 = vcmp.eq.s32.totalorder %v11987_v27, %v5968_v14  ;;  %vm3601_vm2 = vcmp.eq.s32.totalorder %v11988_v48, %v5968_v14  ;;  %vm3602_vm4 = vcmp.eq.s32.totalorder %v11989_v10, %v5968_v14 }
 0x607   :  { %v8057_v36 = vpop.eup %8056  ;;  %v2813_v7 = vadd.f32 %v10016_v23, %v2587_v33  ;;  %v2589_v12 = vpop.f32.mrb[187].mxu0  ;;  %7483 = vmatprep.subr.bf16.mxu1 %v11923_v59  ;;  %v3063_v57 = vld [vmem:[#allocation2 + $0xc0] sm:$0xff]  ;;  %v10190_v23 = vld [vmem:[#allocation6 + $0xd0] sm:$0xff]  ;;  %vm7587_vm12 = vmpackc.low %vm3597_vm11, %vm3596_vm10  ;;  %vm3603_vm5 = vcmp.eq.s32.totalorder %v11990_v52, %v5968_v14  ;;  %vm3605_vm7 = vcmp.eq.s32.totalorder %v12152_v44, %v5968_v14 }
 0x608   :  { %2884 = vst.msk [vmem:[#allocation2 + $0xd0] sm:$0xff] %vm60_vm0, %v8057_v36  ;;  %12154 = vst [vmem:[#allocation30_spill] sm:$0xff] %v10190_v23  ;;  %6878 = vmatprep.mubr.f32.mxu0 %v10190_v23 }
 0x609   :  { %8062 = vtanh.f32 %v2813_v7  ;;  %6879 = vmatmul.mubr.f32.gmra.mrb[218].mxu0 %v10193_v61  ;;  %vm7591_vm15 = vmpackc.low %vm3599_vm14, %vm3598_vm13 }
 0x60a   :  { %v2592_v39 = vpop.f32.mrb[188].mxu0  ;;  %6881 = vmatprep.mubr.f32.mxu0 %v10200_v21  ;;  %vm7599_vm8 = vmpackc.low %vm3603_vm5, %vm3602_vm4 }
 0x60b   :  { %v8059_v3 = vpop.eup %8058  ;;  %v2818_v53 = vadd.f32 %v10025_v9, %v2592_v39  ;;  %v2594_v63 = vpop.f32.mrb[189].mxu0  ;;  %v3064_v15 = vld [vmem:[#allocation2 + $0xc8] sm:$0xff]  ;;  %v10209_v39 = vld [vmem:[#allocation6 + $0xf0] sm:$0xff] }
 0x60c   :  { %2885 = vst.msk [vmem:[#allocation2 + $0xd8] sm:$0xff] %vm60_vm0, %v8059_v3  ;;  %v7484_v49 = vpack.c.bf16 %v3064_v15, %v3063_v57  ;;  %12158 = vst [vmem:[#allocation91_spill] sm:$0xff] %v10209_v39  ;;  %v10212_v3 = vld [vmem:[#allocation6 + $0xf8] sm:$0xff]  ;;  %v10217_v15 = vld [vmem:[#allocation8] sm:$0xff] }
 0x60d   :  { %8064 = vtanh.f32 %v2818_v53  ;;  %12159 = vst [vmem:[#allocation33_spill] sm:$0xff] %v10212_v3  ;;  %12160 = vst [vmem:[#allocation34_spill] sm:$0xff] %v10217_v15 }
 0x60e   :  { %v2597_v54 = vpop.f32.mrb[190].mxu0  ;;  %7485 = vmatpush1.bf16.msra.mxu1 %v7484_v49  ;;  %v10219_v49 = vld [vmem:[#allocation8 + $0x18] sm:$0xff] }
 0x60f   :  { %v8061_v20 = vpop.eup %8060  ;;  %v2823_v46 = vadd.f32 %v10022_v25, %v2597_v54  ;;  %v2599_v0 = vpop.f32.mrb[191].mxu0  ;;  %7486 = vmatprep.subr.bf16.mxu1 %v11923_v59  ;;  %v3065_v62 = vld [vmem:[#allocation2 + $0xd0] sm:$0xff]  ;;  %12161 = vst [vmem:[#allocation35_spill] sm:$0xff] %v10219_v49  ;;  %v10223_v54 = vld [vmem:[#allocation8 + $0x10] sm:$0xff] }
 0x610   :  { %2886 = vst.msk [vmem:[#allocation2 + $0xe0] sm:$0xff] %vm60_vm0, %v8061_v20  ;;  %v10203_v25 = vld [vmem:[#allocation6 + $0xe8] sm:$0xff]  ;;  %12162 = vst [vmem:[#allocation94_spill] sm:$0xff] %v10223_v54  ;;  %v10235_v0 = vld [vmem:[#allocation8 + $0x30] sm:$0xff] }
 0x611   :  { %8066 = vtanh.f32 %v2823_v46  ;;  %12157 = vst [vmem:[#allocation32_spill] sm:$0xff] %v10203_v25  ;;  %6882 = vmatmul.mubr.f32.gmra.mrb[220].mxu0 %v10203_v25  ;;  %v10225_v20 = vld [vmem:[#allocation8 + $0x28] sm:$0xff]  ;;  %v10231_v46 = vld [vmem:[#allocation8 + $0x38] sm:$0xff]  ;;  %12166 = vst [vmem:[#allocation36_spill] sm:$0xff] %v10235_v0 }
 0x612   :  { %6884 = vmatprep.mubr.f32.mxu0 %v10209_v39  ;;  %12163 = vst [vmem:[#allocation93_spill] sm:$0xff] %v10225_v20  ;;  %12165 = vst [vmem:[#allocation95_spill] sm:$0xff] %v10231_v46 }
 0x613   :  { %v8063_v9 = vpop.eup %8062  ;;  %v3066_v8 = vld [vmem:[#allocation2 + $0xd8] sm:$0xff] }
 0x614   :  { %2887 = vst.msk [vmem:[#allocation2 + $0xe8] sm:$0xff] %vm60_vm0, %v8063_v9  ;;  %v7487_v4 = vpack.c.bf16 %v3066_v8, %v3065_v62  ;;  %v10237_v9 = vld [vmem:[#allocation8 + $0x48] sm:$0xff]  ;;  %v10241_v62 = vld [vmem:[#allocation8 + $0x40] sm:$0xff]  ;;  %v10243_v8 = vld [vmem:[#allocation8 + $0x58] sm:$0xff] }
 0x615   :  { %6885 = vmatmul.mubr.f32.gmra.mrb[222].mxu0 %v10212_v3  ;;  %12167 = vst [vmem:[#allocation37_spill] sm:$0xff] %v10237_v9  ;;  %12168 = vst [vmem:[#allocation38_spill] sm:$0xff] %v10241_v62 }
 0x616   :  { %7488 = vmatpush1.bf16.msra.mxu1 %v7487_v4  ;;  %3830 = vmatprep.mubr.f32.mxu0 %v10061_v43  ;;  %v10229_v43 = vld [vmem:[#allocation8 + $0x20] sm:$0xff]  ;;  %12169 = vst [vmem:[#allocation39_spill] sm:$0xff] %v10243_v8  ;;  %v10247_v4 = vld [vmem:[#allocation8 + $0x50] sm:$0xff] }
 0x617   :  { %v8065_v60 = vpop.eup %8064  ;;  %7489 = vmatprep.subr.bf16.mxu1 %v11923_v59  ;;  %v3067_v36 = vld [vmem:[#allocation2 + $0xe0] sm:$0xff]  ;;  %12164 = vst [vmem:[#allocation96_spill] sm:$0xff] %v10229_v43  ;;  %12170 = vst [vmem:[#allocation40_spill] sm:$0xff] %v10247_v4 }
 0x618   :  { %2888 = vst.msk [vmem:[#allocation2 + $0xf0] sm:$0xff] %vm60_vm0, %v8065_v60  ;;  %v10249_v60 = vld [vmem:[#allocation8 + $0x68] sm:$0xff] }
 0x619   :  { %12171 = vst [vmem:[#allocation41_spill] sm:$0xff] %v10249_v60 }
 0x61b   :  { %v8067_v33 = vpop.eup %8066  ;;  %v3068_v7 = vld [vmem:[#allocation2 + $0xe8] sm:$0xff] }
 0x61c   :  { %2889 = vst.msk [vmem:[#allocation2 + $0xf8] sm:$0xff] %vm60_vm0, %v8067_v33  ;;  %v7490_v12 = vpack.c.bf16 %v3068_v7, %v3067_v36  ;;  %v10253_v33 = vld [vmem:[#allocation8 + $0x60] sm:$0xff]  ;;  %v10255_v36 = vld [vmem:[#allocation8 + $0x78] sm:$0xff]  ;;  %v10259_v7 = vld [vmem:[#allocation8 + $0x70] sm:$0xff] }
 0x61d   :  { %12172 = vst [vmem:[#allocation42_spill] sm:$0xff] %v10253_v33  ;;  %12173 = vst [vmem:[#allocation43_spill] sm:$0xff] %v10255_v36 }
 0x61e   :  { %7491 = vmatpush1.bf16.msra.mxu1 %v7490_v12  ;;  %12174 = vst [vmem:[#allocation44_spill] sm:$0xff] %v10259_v7  ;;  %v10261_v12 = vld [vmem:[#allocation8 + $0x88] sm:$0xff] }
 0x61f   :  { %7492 = vmatprep.subr.bf16.mxu1 %v11923_v59  ;;  %v3069_v53 = vld [vmem:[#allocation2 + $0xf0] sm:$0xff]  ;;  %12175 = vst [vmem:[#allocation45_spill] sm:$0xff] %v10261_v12 }
 0x623   :  { %v3070_v63 = vld [vmem:[#allocation2 + $0xf8] sm:$0xff] }
 0x624   :  { %v7493_v57 = vpack.c.bf16 %v3070_v63, %v3069_v53  ;;  %v10265_v53 = vld [vmem:[#allocation8 + $0x80] sm:$0xff]  ;;  %v10267_v63 = vld [vmem:[#allocation8 + $0x98] sm:$0xff] }
 0x625   :  { %12176 = vst [vmem:[#allocation46_spill] sm:$0xff] %v10265_v53  ;;  %12177 = vst [vmem:[#allocation47_spill] sm:$0xff] %v10267_v63 }
 0x626   :  { %7494 = vmatpush1.bf16.msra.mxu1 %v7493_v57  ;;  %v10271_v57 = vld [vmem:[#allocation8 + $0x90] sm:$0xff] }
 0x627   :  { %12178 = vst [vmem:[#allocation48_spill] sm:$0xff] %v10271_v57  ;;  %7576 = vmatprep.subr.msk.bf16.mxu1 %vm7575_vm3, %v11922_v19 }
 0x629   :  { %3136 = vmatmul.mubr.f32.vlgmr.msra.gmra.mrb[192].mxu1 %v10217_v15 }
 0x62a   :  { %3140 = vmatprep.mubr.f32.mxu1 %v10219_v49  ;;  %7578 = vmatpush3.bf16.msk.msra.mxu1 %vm7575_vm3, %v11922_v19  ;;  %vm7595_vm3 = vmpackc.low %vm3601_vm2, %vm3600_vm1 }
 0x62b   :  { %7580 = vmatprep.subr.msk.bf16.mxu1 %vm7579_vm6, %v11922_v19 }
 0x62d   :  { %3141 = vmatmul.mubr.f32.gmra.mrb[194].mxu1 %v10223_v54 }
 0x62e   :  { %3145 = vmatprep.mubr.f32.mxu1 %v10225_v20  ;;  %7582 = vmatpush3.bf16.msk.msra.mxu1 %vm7579_vm6, %v11922_v19  ;;  %vm3604_vm6 = vcmp.eq.s32.totalorder %v12151_v58, %v5968_v14  ;;  %v8345_v58 = vld [vmem:[#allocation6 + $0x18] sm:$0xff] }
 0x62f   :  { %7584 = vmatprep.subr.msk.bf16.mxu1 %vm7583_vm9, %v11922_v19 }
 0x631   :  { %3146 = vmatmul.mubr.f32.gmra.mrb[196].mxu1 %v10229_v43 }
 0x632   :  { %3150 = vmatprep.mubr.f32.mxu1 %v10231_v46  ;;  %7586 = vmatpush3.bf16.msk.msra.mxu1 %vm7583_vm9, %v11922_v19  ;;  %vm7603_vm9 = vmpackc.low %vm3605_vm7, %vm3604_vm6 }
 0x633   :  { %7588 = vmatprep.subr.msk.bf16.mxu1 %vm7587_vm12, %v11922_v19 }
 0x635   :  { %3151 = vmatmul.mubr.f32.gmra.mrb[198].mxu1 %v10235_v0 }
 0x636   :  { %3155 = vmatprep.mubr.f32.mxu1 %v10237_v9  ;;  %7590 = vmatpush3.bf16.msk.msra.mxu1 %vm7587_vm12, %v11922_v19 }
 0x637   :  { %7592 = vmatprep.subr.msk.bf16.mxu1 %vm7591_vm15, %v11922_v19 }
 0x639   :  { %3156 = vmatmul.mubr.f32.gmra.mrb[200].mxu1 %v10241_v62 }
 0x63a   :  { %3160 = vmatprep.mubr.f32.mxu1 %v10243_v8  ;;  %7594 = vmatpush3.bf16.msk.msra.mxu1 %vm7591_vm15, %v11922_v19 }
 0x63b   :  { %7596 = vmatprep.subr.msk.bf16.mxu1 %vm7595_vm3, %v11922_v19 }
 0x63d   :  { %3161 = vmatmul.mubr.f32.gmra.mrb[202].mxu1 %v10247_v4 }
 0x63e   :  { %3165 = vmatprep.mubr.f32.mxu1 %v10249_v60  ;;  %7598 = vmatpush3.bf16.msk.msra.mxu1 %vm7595_vm3, %v11922_v19 }
 0x63f   :  { %7600 = vmatprep.subr.msk.bf16.mxu1 %vm7599_vm8, %v11922_v19 }
 0x641   :  { %3166 = vmatmul.mubr.f32.gmra.mrb[204].mxu1 %v10253_v33  ;;  %v10273_v33 = vld [vmem:[#allocation8 + $0xa8] sm:$0xff] }
 0x642   :  { %3170 = vmatprep.mubr.f32.mxu1 %v10255_v36  ;;  %12179 = vst [vmem:[#allocation49_spill] sm:$0xff] %v10273_v33  ;;  %v10277_v36 = vld [vmem:[#allocation8 + $0xa0] sm:$0xff]  ;;  %7602 = vmatpush3.bf16.msk.msra.mxu1 %vm7599_vm8, %v11922_v19 }
 0x643   :  { %12180 = vst [vmem:[#allocation50_spill] sm:$0xff] %v10277_v36  ;;  %7604 = vmatprep.subr.msk.bf16.mxu1 %vm7603_vm9, %v11922_v19 }
 0x645   :  { %3171 = vmatmul.mubr.f32.gmra.mrb[206].mxu1 %v10259_v7  ;;  %v10279_v7 = vld [vmem:[#allocation8 + $0xb8] sm:$0xff] }
 0x646   :  { %3175 = vmatprep.mubr.f32.mxu1 %v10261_v12  ;;  %12181 = vst [vmem:[#allocation51_spill] sm:$0xff] %v10279_v7  ;;  %v10283_v12 = vld [vmem:[#allocation8 + $0xb0] sm:$0xff]  ;;  %7606 = vmatpush3.bf16.msk.msra.mxu1 %vm7603_vm9, %v11922_v19 }
 0x647   :  { %12182 = vst [vmem:[#allocation52_spill] sm:$0xff] %v10283_v12  ;;  %7607 = vmatprep.subr.bf16.mxu1 %v11923_v59 }
 0x649   :  { %3176 = vmatmul.mubr.f32.gmra.mrb[208].mxu1 %v10265_v53  ;;  %v10285_v53 = vld [vmem:[#allocation8 + $0xc8] sm:$0xff] }
 0x64a   :  { %3180 = vmatprep.mubr.f32.mxu1 %v10267_v63  ;;  %12183 = vst [vmem:[#allocation53_spill] sm:$0xff] %v10285_v53  ;;  %v10289_v63 = vld [vmem:[#allocation8 + $0xc0] sm:$0xff] }
 0x64b   :  { %12184 = vst [vmem:[#allocation54_spill] sm:$0xff] %v10289_v63 }
 0x64d   :  { %3181 = vmatmul.mubr.f32.gmra.mrb[210].mxu1 %v10271_v57  ;;  %v10291_v57 = vld [vmem:[#allocation8 + $0xd8] sm:$0xff] }
 0x64e   :  { %3185 = vmatprep.mubr.f32.mxu1 %v10273_v33  ;;  %12185 = vst [vmem:[#allocation55_spill] sm:$0xff] %v10291_v57  ;;  %v10295_v33 = vld [vmem:[#allocation8 + $0xd0] sm:$0xff] }
 0x64f   :  { %12186 = vst [vmem:[#allocation56_spill] sm:$0xff] %v10295_v33 }
 0x651   :  { %3186 = vmatmul.mubr.f32.gmra.mrb[212].mxu1 %v10277_v36  ;;  %v10297_v36 = vld [vmem:[#allocation8 + $0xe8] sm:$0xff] }
 0x652   :  { %3190 = vmatprep.mubr.f32.mxu1 %v10279_v7  ;;  %12187 = vst [vmem:[#allocation57_spill] sm:$0xff] %v10297_v36  ;;  %v10301_v7 = vld [vmem:[#allocation8 + $0xe0] sm:$0xff] }
 0x653   :  { %12188 = vst [vmem:[#allocation58_spill] sm:$0xff] %v10301_v7 }
 0x655   :  { %3191 = vmatmul.mubr.f32.gmra.mrb[214].mxu1 %v10283_v12  ;;  %v10303_v12 = vld [vmem:[#allocation8 + $0xf8] sm:$0xff] }
 0x656   :  { %3195 = vmatprep.mubr.f32.mxu1 %v10285_v53  ;;  %12189 = vst [vmem:[#allocation59_spill] sm:$0xff] %v10303_v12  ;;  %v10307_v53 = vld [vmem:[#allocation8 + $0xf0] sm:$0xff] }
 0x657   :  { %12190 = vst [vmem:[#allocation60_spill] sm:$0xff] %v10307_v53 }
 0x659   :  { %3196 = vmatmul.mubr.f32.gmra.mrb[216].mxu1 %v10289_v63  ;;  %v10309_v63 = vld [vmem:[#allocation8 + $0x108] sm:$0xff] }
 0x65a   :  { %3200 = vmatprep.mubr.f32.mxu1 %v10291_v57  ;;  %12191 = vst [vmem:[#allocation61_spill] sm:$0xff] %v10309_v63  ;;  %v10313_v57 = vld [vmem:[#allocation8 + $0x100] sm:$0xff] }
 0x65b   :  { %12192 = vst [vmem:[#allocation62_spill] sm:$0xff] %v10313_v57 }
 0x65d   :  { %3201 = vmatmul.mubr.f32.gmra.mrb[218].mxu1 %v10295_v33  ;;  %v10315_v33 = vld [vmem:[#allocation8 + $0x118] sm:$0xff] }
 0x65e   :  { %3205 = vmatprep.mubr.f32.mxu1 %v10297_v36  ;;  %12193 = vst [vmem:[#allocation63_spill] sm:$0xff] %v10315_v33  ;;  %v10319_v36 = vld [vmem:[#allocation8 + $0x110] sm:$0xff] }
 0x65f   :  { %12194 = vst [vmem:[#allocation64_spill] sm:$0xff] %v10319_v36 }
 0x661   :  { %3206 = vmatmul.mubr.f32.gmra.mrb[220].mxu1 %v10301_v7  ;;  %v10321_v7 = vld [vmem:[#allocation8 + $0x128] sm:$0xff] }
 0x662   :  { %3210 = vmatprep.mubr.f32.mxu1 %v10303_v12  ;;  %12195 = vst [vmem:[#allocation65_spill] sm:$0xff] %v10321_v7  ;;  %v10325_v12 = vld [vmem:[#allocation8 + $0x120] sm:$0xff] }
 0x663   :  { %12196 = vst [vmem:[#allocation66_spill] sm:$0xff] %v10325_v12 }
 0x665   :  { %3211 = vmatmul.mubr.f32.gmra.mrb[222].mxu1 %v10307_v53  ;;  %v10327_v53 = vld [vmem:[#allocation8 + $0x138] sm:$0xff] }
 0x666   :  { %3215 = vmatprep.mubr.f32.mxu1 %v10309_v63  ;;  %12197 = vst [vmem:[#allocation67_spill] sm:$0xff] %v10327_v53  ;;  %v10331_v63 = vld [vmem:[#allocation8 + $0x130] sm:$0xff] }
 0x667   :  { %12198 = vst [vmem:[#allocation68_spill] sm:$0xff] %v10331_v63 }
 0x669   :  { %3216 = vmatmul.mubr.f32.gmra.mrb[224].mxu1 %v10313_v57  ;;  %v10333_v57 = vld [vmem:[#allocation8 + $0x148] sm:$0xff] }
 0x66a   :  { %3220 = vmatprep.mubr.f32.mxu1 %v10315_v33  ;;  %12199 = vst [vmem:[#allocation69_spill] sm:$0xff] %v10333_v57  ;;  %v10337_v33 = vld [vmem:[#allocation8 + $0x140] sm:$0xff] }
 0x66b   :  { %12200 = vst [vmem:[#allocation70_spill] sm:$0xff] %v10337_v33 }
 0x66d   :  { %3221 = vmatmul.mubr.f32.gmra.mrb[226].mxu1 %v10319_v36  ;;  %v10339_v36 = vld [vmem:[#allocation8 + $0x158] sm:$0xff] }
 0x66e   :  { %3225 = vmatprep.mubr.f32.mxu1 %v10321_v7  ;;  %12201 = vst [vmem:[#allocation71_spill] sm:$0xff] %v10339_v36  ;;  %v10343_v7 = vld [vmem:[#allocation8 + $0x150] sm:$0xff] }
 0x66f   :  { %12202 = vst [vmem:[#allocation72_spill] sm:$0xff] %v10343_v7 }
 0x671   :  { %3226 = vmatmul.mubr.f32.gmra.mrb[228].mxu1 %v10325_v12  ;;  %v10345_v12 = vld [vmem:[#allocation8 + $0x168] sm:$0xff] }
 0x672   :  { %3230 = vmatprep.mubr.f32.mxu1 %v10327_v53  ;;  %12203 = vst [vmem:[#allocation73_spill] sm:$0xff] %v10345_v12  ;;  %v10347_v53 = vpop.f32.mrb[192].mxu0 }
 0x673   :  { %v10349_v60 = vpop.f32.mrb[193].mxu0 }
 0x675   :  { %3231 = vmatmul.mubr.f32.gmra.mrb[230].mxu1 %v10331_v63  ;;  %v10355_v63 = vld [vmem:[#allocation8 + $0x178] sm:$0xff] }
 0x676   :  { %3235 = vmatprep.mubr.f32.mxu1 %v10333_v57  ;;  %v10353_v57 = vld [vmem:[#allocation8 + $0x160] sm:$0xff]  ;;  %12205 = vst [vmem:[#allocation75_spill] sm:$0xff] %v10355_v63 }
 0x677   :  { %12204 = vst [vmem:[#allocation74_spill] sm:$0xff] %v10353_v57 }
 0x679   :  { %3236 = vmatmul.mubr.f32.gmra.mrb[232].mxu1 %v10337_v33  ;;  %v10361_v33 = vld [vmem:[#allocation8 + $0x188] sm:$0xff] }
 0x67a   :  { %3240 = vmatprep.mubr.f32.mxu1 %v10339_v36  ;;  %v10359_v36 = vld [vmem:[#allocation8 + $0x170] sm:$0xff]  ;;  %12207 = vst [vmem:[#allocation77_spill] sm:$0xff] %v10361_v33 }
 0x67b   :  { %12206 = vst [vmem:[#allocation76_spill] sm:$0xff] %v10359_v36 }
 0x67c   :  { %v10363_v4 = vpop.f32.mrb[194].mxu0 }
 0x67d   :  { %3241 = vmatmul.mubr.f32.gmra.mrb[234].mxu1 %v10343_v7  ;;  %v10365_v8 = vpop.f32.mrb[195].mxu0  ;;  %v10371_v7 = vld [vmem:[#allocation8 + $0x198] sm:$0xff] }
 0x67e   :  { %3245 = vmatprep.mubr.f32.mxu1 %v10345_v12  ;;  %v10369_v12 = vld [vmem:[#allocation8 + $0x180] sm:$0xff]  ;;  %12209 = vst [vmem:[#allocation79_spill] sm:$0xff] %v10371_v7 }
 0x67f   :  { %12208 = vst [vmem:[#allocation78_spill] sm:$0xff] %v10369_v12 }
 0x681   :  { %3246 = vmatmul.mubr.f32.gmra.mrb[236].mxu1 %v10353_v57  ;;  %v10377_v57 = vld [vmem:[#allocation8 + $0x1a8] sm:$0xff]  ;;  %v10379_v62 = vpop.f32.mrb[196].mxu0 }
 0x682   :  { %3250 = vmatprep.mubr.f32.mxu1 %v10355_v63  ;;  %v10375_v63 = vld [vmem:[#allocation8 + $0x190] sm:$0xff]  ;;  %12211 = vst [vmem:[#allocation81_spill] sm:$0xff] %v10377_v57  ;;  %v10381_v9 = vpop.f32.mrb[197].mxu0 }
 0x683   :  { %12210 = vst [vmem:[#allocation80_spill] sm:$0xff] %v10375_v63 }
 0x685   :  { %3251 = vmatmul.mubr.f32.gmra.mrb[238].mxu1 %v10359_v36  ;;  %v10387_v36 = vld [vmem:[#allocation8 + $0x1b8] sm:$0xff] }
 0x686   :  { %3255 = vmatprep.mubr.f32.mxu1 %v10361_v33  ;;  %v10385_v33 = vld [vmem:[#allocation8 + $0x1a0] sm:$0xff]  ;;  %12213 = vst [vmem:[#allocation20_spill] sm:$0xff] %v10387_v36 }
 0x687   :  { %12212 = vst [vmem:[#allocation19_spill] sm:$0xff] %v10385_v33  ;;  %v10395_v0 = vpop.f32.mrb[198].mxu0 }
 0x688   :  { %v10397_v46 = vpop.f32.mrb[199].mxu0 }
 0x689   :  { %3256 = vmatmul.mubr.f32.gmra.mrb[240].mxu1 %v10369_v12  ;;  %v10393_v12 = vld [vmem:[#allocation8 + $0x1c8] sm:$0xff] }
 0x68a   :  { %3260 = vmatprep.mubr.f32.mxu1 %v10371_v7  ;;  %v10391_v7 = vld [vmem:[#allocation8 + $0x1b0] sm:$0xff]  ;;  %12215 = vst [vmem:[#allocation22_spill] sm:$0xff] %v10393_v12 }
 0x68b   :  { %12214 = vst [vmem:[#allocation21_spill] sm:$0xff] %v10391_v7 }
 0x68d   :  { %3261 = vmatmul.mubr.f32.gmra.mrb[242].mxu1 %v10375_v63  ;;  %v10403_v63 = vld [vmem:[#allocation8 + $0x1d8] sm:$0xff] }
 0x68e   :  { %3265 = vmatprep.mubr.f32.mxu1 %v10377_v57  ;;  %v10401_v57 = vld [vmem:[#allocation8 + $0x1c0] sm:$0xff]  ;;  %12217 = vst [vmem:[#allocation24_spill] sm:$0xff] %v10403_v63 }
 0x68f   :  { %12216 = vst [vmem:[#allocation23_spill] sm:$0xff] %v10401_v57 }
 0x691   :  { %3266 = vmatmul.mubr.f32.gmra.mrb[244].mxu1 %v10385_v33  ;;  %v10409_v33 = vld [vmem:[#allocation8 + $0x1e8] sm:$0xff] }
 0x692   :  { %3270 = vmatprep.mubr.f32.mxu1 %v10387_v36  ;;  %v10407_v36 = vld [vmem:[#allocation8 + $0x1d0] sm:$0xff]  ;;  %12219 = vst [vmem:[#allocation26_spill] sm:$0xff] %v10409_v33 }
 0x693   :  { %12218 = vst [vmem:[#allocation25_spill] sm:$0xff] %v10407_v36 }
 0x694   :  { %v10411_v43 = vpop.f32.mrb[200].mxu0 }
 0x695   :  { %3271 = vmatmul.mubr.f32.gmra.mrb[246].mxu1 %v10391_v7  ;;  %v10413_v20 = vpop.f32.mrb[201].mxu0  ;;  %v10419_v7 = vld [vmem:[#allocation8 + $0x1f8] sm:$0xff] }
 0x696   :  { %3275 = vmatprep.mubr.f32.mxu1 %v10393_v12  ;;  %v10417_v12 = vld [vmem:[#allocation8 + $0x1e0] sm:$0xff]  ;;  %12221 = vst [vmem:[#allocation83_spill] sm:$0xff] %v10419_v7 }
 0x697   :  { %12220 = vst [vmem:[#allocation82_spill] sm:$0xff] %v10417_v12 }
 0x699   :  { %3276 = vmatmul.mubr.f32.gmra.mrb[248].mxu1 %v10401_v57 }
 0x69a   :  { %3280 = vmatprep.mubr.f32.mxu1 %v10403_v63  ;;  %v10423_v63 = vld [vmem:[#allocation8 + $0x1f0] sm:$0xff] }
 0x69b   :  { %12222 = vst [vmem:[#allocation84_spill] sm:$0xff] %v10423_v63 }
 0x69c   :  { %v10425_v57 = vpop.f32.mrb[202].mxu0 }
 0x69d   :  { %3281 = vmatmul.mubr.f32.gmra.mrb[250].mxu1 %v10407_v36  ;;  %v10427_v54 = vpop.f32.mrb[203].mxu0 }
 0x69e   :  { %3285 = vmatprep.mubr.f32.mxu1 %v10409_v33 }
 0x6a1   :  { %3286 = vmatmul.mubr.f32.gmra.mrb[252].mxu1 %v10417_v12 }
 0x6a2   :  { %3290 = vmatprep.mubr.f32.mxu1 %v10419_v7 }
 0x6a4   :  { %v10431_v36 = vpop.f32.mrb[204].mxu0 }
 0x6a5   :  { %3291 = vmatmul.mubr.f32.gmra.mrb[254].mxu1 %v10423_v63  ;;  %v10433_v33 = vpop.f32.mrb[205].mxu0 }
 0x6a6   :  { %6919 = vmatprep.mubr.f32.mxu1 %v10059_v28 }
 0x6ac   :  { %v10435_v49 = vpop.f32.mrb[206].mxu0 }
 0x6ad   :  { %v10437_v15 = vpop.f32.mrb[207].mxu0 }
 0x6b4   :  { %v10439_v12 = vpop.f32.mrb[208].mxu0 }
 0x6b5   :  { %v10441_v7 = vpop.f32.mrb[209].mxu0 }
 0x6bc   :  { %v10443_v3 = vpop.f32.mrb[210].mxu0 }
 0x6bd   :  { %12223 = vst [vmem:[#allocation85_spill] sm:$0xff] %v10443_v3  ;;  %v10445_v39 = vpop.f32.mrb[211].mxu0 }
 0x6be   :  { %12224 = vst [vmem:[#allocation86_spill] sm:$0xff] %v10445_v39 }
 0x6c4   :  { %v10447_v25 = vpop.f32.mrb[212].mxu0 }
 0x6c5   :  { %v10449_v63 = vpop.f32.mrb[213].mxu0 }
 0x6cc   :  { %v10451_v28 = vpop.f32.mrb[214].mxu0 }
 0x6cd   :  { %12225 = vst [vmem:[#allocation87_spill] sm:$0xff] %v10451_v28  ;;  %v10453_v21 = vpop.f32.mrb[215].mxu0 }
 0x6ce   :  { %12226 = vst [vmem:[#allocation88_spill] sm:$0xff] %v10453_v21 }
 0x6d4   :  { %v10455_v61 = vpop.f32.mrb[216].mxu0 }
 0x6d5   :  { %v10457_v23 = vpop.f32.mrb[217].mxu0 }
 0x6dc   :  { %v10461_v3 = vpop.f32.mrb[218].mxu0 }
 0x6dd   :  { %v10463_v39 = vpop.f32.mrb[219].mxu0 }
 0x6e4   :  { %v10467_v28 = vpop.f32.mrb[220].mxu0 }
 0x6e5   :  { %v10469_v21 = vpop.f32.mrb[221].mxu0 }
 0x6e8   :  { %v10473_v56 = vpop.f32.mrb[222].mxu0 }
 0x6e9   :  { %12227 = vst [vmem:[#allocation89_spill] sm:$0xff] %v10473_v56  ;;  %v10476_v42 = vpop.f32.mrb[223].mxu0 }
 0x6ea   :  { %12228 = vst [vmem:[#allocation90_spill] sm:$0xff] %v10476_v42 }
 0x6fc   :  { %v3137_v45 = vpop.f32.mrb[192].mxu1 }
 0x6fd   :  { %v3363_v31 = vadd.f32 %v10349_v60, %v3137_v45  ;;  %v3139_v56 = vpop.f32.mrb[193].mxu1 }
 0x6ff   :  { %8068 = vtanh.f32 %v3363_v31 }
 0x700   :  { %v3142_v34 = vpop.f32.mrb[194].mxu1 }
 0x701   :  { %v3368_v11 = vadd.f32 %v10347_v53, %v3142_v34  ;;  %v3144_v42 = vpop.f32.mrb[195].mxu1 }
 0x703   :  { %8070 = vtanh.f32 %v3368_v11 }
 0x704   :  { %v3147_v56 = vpop.f32.mrb[196].mxu1 }
 0x705   :  { %v3373_v45 = vadd.f32 %v10365_v8, %v3147_v56  ;;  %v3149_v31 = vpop.f32.mrb[197].mxu1 }
 0x707   :  { %8072 = vtanh.f32 %v3373_v45 }
 0x708   :  { %v3152_v42 = vpop.f32.mrb[198].mxu1 }
 0x709   :  { %v8069_v11 = vpop.eup %8068  ;;  %v3378_v34 = vadd.f32 %v10363_v4, %v3152_v42  ;;  %v3154_v8 = vpop.f32.mrb[199].mxu1 }
 0x70a   :  { %3553 = vst.msk [vmem:[#allocation2] sm:$0xff] %vm60_vm0, %v8069_v11  ;;  %v8343_v11 = vld [vmem:[#allocation6 + $0x8] sm:$0xff] }
 0x70b   :  { %8074 = vtanh.f32 %v3378_v34  ;;  %6920 = vmatmul.mubr.f32.vlgmr.msra.gmra.mrb[0].mxu1 %v8343_v11  ;;  %v8344_v34 = vld [vmem:[#allocation6 + $0x10] sm:$0xff] }
 0x70c   :  { %v3157_v60 = vpop.f32.mrb[200].mxu1  ;;  %6922 = vmatprep.mubr.f32.mxu1 %v8344_v34 }
 0x70d   :  { %v8071_v53 = vpop.eup %8070  ;;  %v3383_v56 = vadd.f32 %v10381_v9, %v3157_v60  ;;  %v3159_v14 = vpop.f32.mrb[201].mxu1 }
 0x70e   :  { %3554 = vst.msk [vmem:[#allocation2 + $0x8] sm:$0xff] %vm60_vm0, %v8071_v53 }
 0x70f   :  { %8076 = vtanh.f32 %v3383_v56  ;;  %6923 = vmatmul.mubr.f32.gmra.mrb[2].mxu1 %v8345_v58 }
 0x710   :  { %v3162_v4 = vpop.f32.mrb[202].mxu1 }
 0x711   :  { %v8073_v45 = vpop.eup %8072  ;;  %v3388_v31 = vadd.f32 %v10379_v62, %v3162_v4  ;;  %v3164_v42 = vpop.f32.mrb[203].mxu1  ;;  %v3734_v56 = vld [vmem:[#allocation2] sm:$0xff]  ;;  %v8346_v62 = vld [vmem:[#allocation6 + $0x20] sm:$0xff] }
 0x712   :  { %3555 = vst.msk [vmem:[#allocation2 + $0x10] sm:$0xff] %vm60_vm0, %v8073_v45  ;;  %6925 = vmatprep.mubr.f32.mxu1 %v8346_v62 }
 0x713   :  { %8078 = vtanh.f32 %v3388_v31 }
 0x714   :  { %v3167_v9 = vpop.f32.mrb[204].mxu1 }
 0x715   :  { %v8075_v8 = vpop.eup %8074  ;;  %v3393_v60 = vadd.f32 %v10397_v46, %v3167_v9  ;;  %v3169_v53 = vpop.f32.mrb[205].mxu1  ;;  %v3735_v14 = vld [vmem:[#allocation2 + $0x8] sm:$0xff]  ;;  %v8347_v46 = vld [vmem:[#allocation6 + $0x28] sm:$0xff] }
 0x716   :  { %3556 = vst.msk [vmem:[#allocation2 + $0x18] sm:$0xff] %vm60_vm0, %v8075_v8  ;;  %v7528_v44 = vpack.c.bf16 %v3735_v14, %v3734_v56  ;;  %6926 = vmatmul.mubr.f32.gmra.mrb[4].mxu1 %v8347_v46 }
 0x717   :  { %8080 = vtanh.f32 %v3393_v60  ;;  %6928 = vmatprep.mubr.f32.mxu1 %v10080_v40 }
 0x718   :  { %v3172_v4 = vpop.f32.mrb[206].mxu1  ;;  %7529 = vmatpush1.bf16.msra.mxu0 %v7528_v44 }
 0x719   :  { %v8077_v45 = vpop.eup %8076  ;;  %v3398_v31 = vadd.f32 %v10395_v0, %v3172_v4  ;;  %v3174_v42 = vpop.f32.mrb[207].mxu1  ;;  %7530 = vmatprep.subr.bf16.mxu0 %v11923_v59  ;;  %v3736_v8 = vld [vmem:[#allocation2 + $0x10] sm:$0xff] }
 0x71a   :  { %3557 = vst.msk [vmem:[#allocation2 + $0x20] sm:$0xff] %vm60_vm0, %v8077_v45  ;;  %6929 = vmatmul.mubr.f32.gmra.mrb[6].mxu1 %v10083_v32 }
 0x71b   :  { %8082 = vtanh.f32 %v3398_v31  ;;  %6931 = vmatprep.mubr.f32.mxu1 %v10091_v17 }
 0x71c   :  { %v3177_v11 = vpop.f32.mrb[208].mxu1 }
 0x71d   :  { %v8079_v58 = vpop.eup %8078  ;;  %v3403_v34 = vadd.f32 %v10413_v20, %v3177_v11  ;;  %v3179_v9 = vpop.f32.mrb[209].mxu1  ;;  %v3737_v44 = vld [vmem:[#allocation2 + $0x18] sm:$0xff] }
 0x71e   :  { %3558 = vst.msk [vmem:[#allocation2 + $0x28] sm:$0xff] %vm60_vm0, %v8079_v58  ;;  %v7531_v0 = vpack.c.bf16 %v3737_v44, %v3736_v8  ;;  %6932 = vmatmul.mubr.f32.gmra.mrb[8].mxu1 %v10094_v1 }
 0x71f   :  { %8084 = vtanh.f32 %v3403_v34  ;;  %6934 = vmatprep.mubr.f32.mxu1 %v10102_v5 }
 0x720   :  { %v3182_v60 = vpop.f32.mrb[210].mxu1  ;;  %7532 = vmatpush1.bf16.msra.mxu0 %v7531_v0 }
 0x721   :  { %v8081_v53 = vpop.eup %8080  ;;  %v3408_v40 = vadd.f32 %v10411_v43, %v3182_v60  ;;  %v3184_v56 = vpop.f32.mrb[211].mxu1  ;;  %7533 = vmatprep.subr.bf16.mxu0 %v11923_v59  ;;  %v3738_v62 = vld [vmem:[#allocation2 + $0x20] sm:$0xff] }
 0x722   :  { %3559 = vst.msk [vmem:[#allocation2 + $0x30] sm:$0xff] %vm60_vm0, %v8081_v53  ;;  %6935 = vmatmul.mubr.f32.gmra.mrb[10].mxu1 %v10105_v37 }
 0x723   :  { %8086 = vtanh.f32 %v3408_v40  ;;  %6937 = vmatprep.mubr.f32.mxu1 %v10113_v6 }
 0x724   :  { %v3187_v20 = vpop.f32.mrb[212].mxu1 }
 0x725   :  { %v8083_v32 = vpop.eup %8082  ;;  %v3413_v14 = vadd.f32 %v10427_v54, %v3187_v20  ;;  %v3189_v17 = vpop.f32.mrb[213].mxu1  ;;  %v3739_v4 = vld [vmem:[#allocation2 + $0x28] sm:$0xff] }
 0x726   :  { %3560 = vst.msk [vmem:[#allocation2 + $0x38] sm:$0xff] %vm60_vm0, %v8083_v32  ;;  %v7534_v43 = vpack.c.bf16 %v3739_v4, %v3738_v62  ;;  %6938 = vmatmul.mubr.f32.gmra.mrb[12].mxu1 %v10116_v16  ;;  %v12231_v62 = vld [vmem:[#allocation86_spill] sm:$0xff] }
 0x727   :  { %8088 = vtanh.f32 %v3413_v14  ;;  %6940 = vmatprep.mubr.f32.mxu1 %v10124_v55  ;;  %v12230_v14 = vld [vmem:[#allocation30_spill] sm:$0xff] }
 0x728   :  { %v3192_v45 = vpop.f32.mrb[214].mxu1  ;;  %7535 = vmatpush1.bf16.msra.mxu0 %v7534_v43 }
 0x729   :  { %v8085_v1 = vpop.eup %8084  ;;  %v3418_v5 = vadd.f32 %v10425_v57, %v3192_v45  ;;  %v3194_v31 = vpop.f32.mrb[215].mxu1  ;;  %7536 = vmatprep.subr.bf16.mxu0 %v11923_v59  ;;  %v3740_v46 = vld [vmem:[#allocation2 + $0x30] sm:$0xff] }
 0x72a   :  { %3561 = vst.msk [vmem:[#allocation2 + $0x40] sm:$0xff] %vm60_vm0, %v8085_v1  ;;  %6941 = vmatmul.mubr.f32.gmra.mrb[14].mxu1 %v10127_v26  ;;  %v12232_v1 = vld [vmem:[#allocation92_spill] sm:$0xff] }
 0x72b   :  { %8090 = vtanh.f32 %v3418_v5  ;;  %6943 = vmatprep.mubr.f32.mxu1 %v10135_v18  ;;  %v12233_v5 = vld [vmem:[#allocation31_spill] sm:$0xff] }
 0x72c   :  { %v3197_v54 = vpop.f32.mrb[216].mxu1 }
 0x72d   :  { %v8087_v37 = vpop.eup %8086  ;;  %v3423_v42 = vadd.f32 %v10433_v33, %v3197_v54  ;;  %v3199_v6 = vpop.f32.mrb[217].mxu1  ;;  %v3741_v11 = vld [vmem:[#allocation2 + $0x38] sm:$0xff] }
 0x72e   :  { %3562 = vst.msk [vmem:[#allocation2 + $0x48] sm:$0xff] %vm60_vm0, %v8087_v37  ;;  %v7537_v57 = vpack.c.bf16 %v3741_v11, %v3740_v46  ;;  %6944 = vmatmul.mubr.f32.gmra.mrb[16].mxu1 %v10138_v47  ;;  %v12234_v37 = vld [vmem:[#allocation85_spill] sm:$0xff]  ;;  %v12235_v46 = vld [vmem:[#allocation32_spill] sm:$0xff]  ;;  %v12236_v11 = vld [vmem:[#allocation91_spill] sm:$0xff] }
 0x72f   :  { %8092 = vtanh.f32 %v3423_v42  ;;  %6946 = vmatprep.mubr.f32.mxu1 %v10146_v50 }
 0x730   :  { %v3202_v58 = vpop.f32.mrb[218].mxu1  ;;  %7538 = vmatpush1.bf16.msra.mxu0 %v7537_v57 }
 0x731   :  { %v8089_v16 = vpop.eup %8088  ;;  %v3428_v55 = vadd.f32 %v10431_v36, %v3202_v58  ;;  %v3204_v34 = vpop.f32.mrb[219].mxu1  ;;  %7539 = vmatprep.subr.bf16.mxu0 %v11923_v59  ;;  %v3742_v8 = vld [vmem:[#allocation2 + $0x40] sm:$0xff] }
 0x732   :  { %3563 = vst.msk [vmem:[#allocation2 + $0x50] sm:$0xff] %vm60_vm0, %v8089_v16  ;;  %6947 = vmatmul.mubr.f32.gmra.mrb[18].mxu1 %v10149_v13 }
 0x733   :  { %8094 = vtanh.f32 %v3428_v55  ;;  %6949 = vmatprep.mubr.f32.mxu1 %v10157_v30 }
 0x734   :  { %v3207_v33 = vpop.f32.mrb[220].mxu1 }
 0x735   :  { %v8091_v26 = vpop.eup %8090  ;;  %v3433_v9 = vadd.f32 %v10437_v15, %v3207_v33  ;;  %v3209_v18 = vpop.f32.mrb[221].mxu1  ;;  %v3743_v44 = vld [vmem:[#allocation2 + $0x48] sm:$0xff] }
 0x736   :  { %3564 = vst.msk [vmem:[#allocation2 + $0x58] sm:$0xff] %vm60_vm0, %v8091_v26  ;;  %v7540_v36 = vpack.c.bf16 %v3743_v44, %v3742_v8  ;;  %6950 = vmatmul.mubr.f32.gmra.mrb[20].mxu1 %v10160_v51 }
 0x737   :  { %8096 = vtanh.f32 %v3433_v9  ;;  %6952 = vmatprep.mubr.f32.mxu1 %v10168_v35  ;;  %v12237_v9 = vld [vmem:[#allocation33_spill] sm:$0xff] }
 0x738   :  { %v3212_v0 = vpop.f32.mrb[222].mxu1  ;;  %7541 = vmatpush1.bf16.msra.mxu0 %v7540_v36 }
 0x739   :  { %v8093_v47 = vpop.eup %8092  ;;  %v3438_v50 = vadd.f32 %v10435_v49, %v3212_v0  ;;  %v3214_v60 = vpop.f32.mrb[223].mxu1  ;;  %7542 = vmatprep.subr.bf16.mxu0 %v11923_v59  ;;  %v3744_v40 = vld [vmem:[#allocation2 + $0x50] sm:$0xff] }
 0x73a   :  { %3565 = vst.msk [vmem:[#allocation2 + $0x60] sm:$0xff] %vm60_vm0, %v8093_v47  ;;  %6953 = vmatmul.mubr.f32.gmra.mrb[22].mxu1 %v10171_v38  ;;  %v12238_v47 = vld [vmem:[#allocation88_spill] sm:$0xff] }
 0x73b   :  { %8098 = vtanh.f32 %v3438_v50  ;;  %6955 = vmatprep.mubr.f32.mxu1 %v10179_v41 }
 0x73c   :  { %v3217_v15 = vpop.f32.mrb[224].mxu1 }
 0x73d   :  { %v8095_v13 = vpop.eup %8094  ;;  %v3443_v53 = vadd.f32 %v10441_v7, %v3217_v15  ;;  %v3219_v30 = vpop.f32.mrb[225].mxu1  ;;  %v3745_v56 = vld [vmem:[#allocation2 + $0x58] sm:$0xff]  ;;  %v12229_v7 = vld [vmem:[#allocation29_spill] sm:$0xff] }
 0x73e   :  { %3566 = vst.msk [vmem:[#allocation2 + $0x68] sm:$0xff] %vm60_vm0, %v8095_v13  ;;  %v7543_v49 = vpack.c.bf16 %v3745_v56, %v3744_v40  ;;  %6956 = vmatmul.mubr.f32.gmra.mrb[24].mxu1 %v12229_v7  ;;  %v12239_v40 = vld [vmem:[#allocation87_spill] sm:$0xff] }
 0x73f   :  { %8100 = vtanh.f32 %v3443_v53  ;;  %6958 = vmatprep.mubr.f32.mxu1 %v12230_v14 }
 0x740   :  { %v3222_v20 = vpop.f32.mrb[226].mxu1  ;;  %7544 = vmatpush1.bf16.msra.mxu0 %v7543_v49 }
 0x741   :  { %v8097_v51 = vpop.eup %8096  ;;  %v3448_v35 = vadd.f32 %v10439_v12, %v3222_v20  ;;  %v3224_v32 = vpop.f32.mrb[227].mxu1  ;;  %7545 = vmatprep.subr.bf16.mxu0 %v11923_v59  ;;  %v3746_v43 = vld [vmem:[#allocation2 + $0x60] sm:$0xff] }
 0x742   :  { %3567 = vst.msk [vmem:[#allocation2 + $0x70] sm:$0xff] %vm60_vm0, %v8097_v51  ;;  %6959 = vmatmul.mubr.f32.gmra.mrb[26].mxu1 %v12232_v1 }
 0x743   :  { %8102 = vtanh.f32 %v3448_v35  ;;  %6961 = vmatprep.mubr.f32.mxu1 %v12233_v5 }
 0x744   :  { %v3227_v17 = vpop.f32.mrb[228].mxu1 }
 0x745   :  { %v8099_v38 = vpop.eup %8098  ;;  %v3453_v4 = vadd.f32 %v12231_v62, %v3227_v17  ;;  %v3229_v41 = vpop.f32.mrb[229].mxu1  ;;  %v3747_v45 = vld [vmem:[#allocation2 + $0x68] sm:$0xff] }
 0x746   :  { %3568 = vst.msk [vmem:[#allocation2 + $0x78] sm:$0xff] %vm60_vm0, %v8099_v38  ;;  %v7546_v12 = vpack.c.bf16 %v3747_v45, %v3746_v43  ;;  %6962 = vmatmul.mubr.f32.gmra.mrb[28].mxu1 %v12235_v46 }
 0x747   :  { %8104 = vtanh.f32 %v3453_v4  ;;  %6964 = vmatprep.mubr.f32.mxu1 %v12236_v11 }
 0x748   :  { %v3232_v31 = vpop.f32.mrb[230].mxu1  ;;  %7547 = vmatpush1.bf16.msra.mxu0 %v7546_v12 }
 0x749   :  { %v8101_v54 = vpop.eup %8100  ;;  %v3458_v42 = vadd.f32 %v12234_v37, %v3232_v31  ;;  %v3234_v6 = vpop.f32.mrb[231].mxu1  ;;  %7548 = vmatprep.subr.bf16.mxu0 %v11923_v59  ;;  %v3748_v34 = vld [vmem:[#allocation2 + $0x70] sm:$0xff] }
 0x74a   :  { %3569 = vst.msk [vmem:[#allocation2 + $0x80] sm:$0xff] %vm60_vm0, %v8101_v54  ;;  %6965 = vmatmul.mubr.f32.gmra.mrb[30].mxu1 %v12237_v9  ;;  %v12240_v9 = vld [vmem:[#allocation90_spill] sm:$0xff] }
 0x74b   :  { %8106 = vtanh.f32 %v3458_v42 }
 0x74c   :  { %v3237_v57 = vpop.f32.mrb[232].mxu1 }
 0x74d   :  { %v8103_v58 = vpop.eup %8102  ;;  %v3463_v16 = vadd.f32 %v10449_v63, %v3237_v57  ;;  %v3239_v55 = vpop.f32.mrb[233].mxu1  ;;  %v3749_v33 = vld [vmem:[#allocation2 + $0x78] sm:$0xff] }
 0x74e   :  { %3570 = vst.msk [vmem:[#allocation2 + $0x88] sm:$0xff] %vm60_vm0, %v8103_v58  ;;  %v7549_v26 = vpack.c.bf16 %v3749_v33, %v3748_v34 }
 0x74f   :  { %8108 = vtanh.f32 %v3463_v16 }
 0x750   :  { %v3242_v18 = vpop.f32.mrb[234].mxu1  ;;  %7550 = vmatpush1.bf16.msra.mxu0 %v7549_v26 }
 0x751   :  { %v8105_v8 = vpop.eup %8104  ;;  %v3468_v44 = vadd.f32 %v10447_v25, %v3242_v18  ;;  %v3244_v36 = vpop.f32.mrb[235].mxu1  ;;  %7551 = vmatprep.subr.bf16.mxu0 %v11923_v59  ;;  %v3750_v15 = vld [vmem:[#allocation2 + $0x80] sm:$0xff] }
 0x752   :  { %3571 = vst.msk [vmem:[#allocation2 + $0x90] sm:$0xff] %vm60_vm0, %v8105_v8 }
 0x753   :  { %8110 = vtanh.f32 %v3468_v44 }
 0x754   :  { %v3247_v63 = vpop.f32.mrb[236].mxu1 }
 0x755   :  { %v8107_v0 = vpop.eup %8106  ;;  %v3473_v50 = vadd.f32 %v12238_v47, %v3247_v63  ;;  %v3249_v60 = vpop.f32.mrb[237].mxu1  ;;  %v3751_v13 = vld [vmem:[#allocation2 + $0x88] sm:$0xff]  ;;  %v12241_v47 = vld [vmem:[#allocation89_spill] sm:$0xff] }
 0x756   :  { %3572 = vst.msk [vmem:[#allocation2 + $0x98] sm:$0xff] %vm60_vm0, %v8107_v0  ;;  %v7552_v53 = vpack.c.bf16 %v3751_v13, %v3750_v15 }
 0x757   :  { %8112 = vtanh.f32 %v3473_v50 }
 0x758   :  { %v3252_v30 = vpop.f32.mrb[238].mxu1  ;;  %7553 = vmatpush1.bf16.msra.mxu0 %v7552_v53 }
 0x759   :  { %v8109_v25 = vpop.eup %8108  ;;  %v3478_v56 = vadd.f32 %v12239_v40, %v3252_v30  ;;  %v3254_v49 = vpop.f32.mrb[239].mxu1  ;;  %7554 = vmatprep.subr.bf16.mxu0 %v11923_v59  ;;  %v3752_v7 = vld [vmem:[#allocation2 + $0x90] sm:$0xff] }
 0x75a   :  { %3573 = vst.msk [vmem:[#allocation2 + $0xa0] sm:$0xff] %vm60_vm0, %v8109_v25 }
 0x75b   :  { %8114 = vtanh.f32 %v3478_v56 }
 0x75c   :  { %v3257_v20 = vpop.f32.mrb[240].mxu1 }
 0x75d   :  { %v8111_v51 = vpop.eup %8110  ;;  %v3483_v35 = vadd.f32 %v10457_v23, %v3257_v20  ;;  %v3259_v32 = vpop.f32.mrb[241].mxu1  ;;  %v3753_v14 = vld [vmem:[#allocation2 + $0x98] sm:$0xff] }
 0x75e   :  { %3574 = vst.msk [vmem:[#allocation2 + $0xa8] sm:$0xff] %vm60_vm0, %v8111_v51  ;;  %v7555_v17 = vpack.c.bf16 %v3753_v14, %v3752_v7  ;;  %v12242_v7 = vld [vmem:[#allocation34_spill] sm:$0xff]  ;;  %v12243_v14 = vld [vmem:[#allocation35_spill] sm:$0xff] }
 0x75f   :  { %8116 = vtanh.f32 %v3483_v35 }
 0x760   :  { %v3262_v38 = vpop.f32.mrb[242].mxu1  ;;  %7556 = vmatpush1.bf16.msra.mxu0 %v7555_v17  ;;  %v12244_v17 = vld [vmem:[#allocation94_spill] sm:$0xff] }
 0x761   :  { %v8113_v62 = vpop.eup %8112  ;;  %v3488_v4 = vadd.f32 %v10455_v61, %v3262_v38  ;;  %v3264_v41 = vpop.f32.mrb[243].mxu1  ;;  %7557 = vmatprep.subr.bf16.mxu0 %v11923_v59  ;;  %v3754_v1 = vld [vmem:[#allocation2 + $0xa0] sm:$0xff]  ;;  %v12245_v38 = vld [vmem:[#allocation93_spill] sm:$0xff] }
 0x762   :  { %3575 = vst.msk [vmem:[#allocation2 + $0xb0] sm:$0xff] %vm60_vm0, %v8113_v62  ;;  %v12246_v62 = vld [vmem:[#allocation96_spill] sm:$0xff] }
 0x763   :  { %8118 = vtanh.f32 %v3488_v4  ;;  %v12247_v4 = vld [vmem:[#allocation95_spill] sm:$0xff]  ;;  %v12248_v41 = vld [vmem:[#allocation36_spill] sm:$0xff] }
 0x764   :  { %v3267_v43 = vpop.f32.mrb[244].mxu1 }
 0x765   :  { %v8115_v23 = vpop.eup %8114  ;;  %v3493_v45 = vadd.f32 %v10463_v39, %v3267_v43  ;;  %v3269_v12 = vpop.f32.mrb[245].mxu1  ;;  %v3755_v5 = vld [vmem:[#allocation2 + $0xa8] sm:$0xff]  ;;  %v12249_v43 = vld [vmem:[#allocation37_spill] sm:$0xff] }
 0x766   :  { %3576 = vst.msk [vmem:[#allocation2 + $0xb8] sm:$0xff] %vm60_vm0, %v8115_v23  ;;  %v7558_v31 = vpack.c.bf16 %v3755_v5, %v3754_v1  ;;  %v12250_v23 = vld [vmem:[#allocation38_spill] sm:$0xff]  ;;  %v12252_v12 = vld [vmem:[#allocation40_spill] sm:$0xff]  ;;  %v12253_v1 = vld [vmem:[#allocation41_spill] sm:$0xff] }
 0x767   :  { %8120 = vtanh.f32 %v3493_v45  ;;  %v12251_v45 = vld [vmem:[#allocation39_spill] sm:$0xff]  ;;  %v12254_v5 = vld [vmem:[#allocation42_spill] sm:$0xff] }
 0x768   :  { %v3272_v54 = vpop.f32.mrb[246].mxu1  ;;  %7559 = vmatpush1.bf16.msra.mxu0 %v7558_v31  ;;  %v12255_v31 = vld [vmem:[#allocation43_spill] sm:$0xff] }
 0x769   :  { %v8117_v61 = vpop.eup %8116  ;;  %v3498_v37 = vadd.f32 %v10461_v3, %v3272_v54  ;;  %v3274_v42 = vpop.f32.mrb[247].mxu1  ;;  %7560 = vmatprep.subr.bf16.mxu0 %v11923_v59  ;;  %v3756_v57 = vld [vmem:[#allocation2 + $0xb0] sm:$0xff]  ;;  %v12256_v54 = vld [vmem:[#allocation44_spill] sm:$0xff] }
 0x76a   :  { %3577 = vst.msk [vmem:[#allocation2 + $0xc0] sm:$0xff] %vm60_vm0, %v8117_v61  ;;  %v12257_v61 = vld [vmem:[#allocation45_spill] sm:$0xff]  ;;  %v12259_v42 = vld [vmem:[#allocation47_spill] sm:$0xff] }
 0x76b   :  { %8122 = vtanh.f32 %v3498_v37  ;;  %v12258_v37 = vld [vmem:[#allocation46_spill] sm:$0xff] }
 0x76c   :  { %v3277_v6 = vpop.f32.mrb[248].mxu1 }
 0x76d   :  { %v8119_v39 = vpop.eup %8118  ;;  %v3503_v46 = vadd.f32 %v10469_v21, %v3277_v6  ;;  %v3279_v11 = vpop.f32.mrb[249].mxu1  ;;  %v3757_v58 = vld [vmem:[#allocation2 + $0xb8] sm:$0xff]  ;;  %v12260_v6 = vld [vmem:[#allocation48_spill] sm:$0xff] }
 0x76e   :  { %3578 = vst.msk [vmem:[#allocation2 + $0xc8] sm:$0xff] %vm60_vm0, %v8119_v39  ;;  %v7561_v16 = vpack.c.bf16 %v3757_v58, %v3756_v57  ;;  %v12261_v39 = vld [vmem:[#allocation49_spill] sm:$0xff]  ;;  %v12263_v11 = vld [vmem:[#allocation51_spill] sm:$0xff]  ;;  %v12264_v57 = vld [vmem:[#allocation52_spill] sm:$0xff] }
 0x76f   :  { %8124 = vtanh.f32 %v3503_v46  ;;  %v12262_v46 = vld [vmem:[#allocation50_spill] sm:$0xff]  ;;  %v12265_v58 = vld [vmem:[#allocation53_spill] sm:$0xff] }
 0x770   :  { %v3282_v55 = vpop.f32.mrb[250].mxu1  ;;  %7562 = vmatpush1.bf16.msra.mxu0 %v7561_v16  ;;  %v12266_v16 = vld [vmem:[#allocation54_spill] sm:$0xff] }
 0x771   :  { %v8121_v3 = vpop.eup %8120  ;;  %v3508_v34 = vadd.f32 %v10467_v28, %v3282_v55  ;;  %v3284_v33 = vpop.f32.mrb[251].mxu1  ;;  %7563 = vmatprep.subr.bf16.mxu0 %v11923_v59  ;;  %v3758_v44 = vld [vmem:[#allocation2 + $0xc0] sm:$0xff] }
 0x772   :  { %3579 = vst.msk [vmem:[#allocation2 + $0xd0] sm:$0xff] %vm60_vm0, %v8121_v3  ;;  %v12267_v55 = vld [vmem:[#allocation55_spill] sm:$0xff]  ;;  %v12268_v3 = vld [vmem:[#allocation56_spill] sm:$0xff]  ;;  %v12270_v33 = vld [vmem:[#allocation58_spill] sm:$0xff] }
 0x773   :  { %8126 = vtanh.f32 %v3508_v34  ;;  %v12269_v34 = vld [vmem:[#allocation57_spill] sm:$0xff] }
 0x774   :  { %v3287_v26 = vpop.f32.mrb[252].mxu1 }
 0x775   :  { %v8123_v21 = vpop.eup %8122  ;;  %v3513_v18 = vadd.f32 %v12240_v9, %v3287_v26  ;;  %v3289_v8 = vpop.f32.mrb[253].mxu1  ;;  %v3759_v36 = vld [vmem:[#allocation2 + $0xc8] sm:$0xff]  ;;  %v12271_v26 = vld [vmem:[#allocation59_spill] sm:$0xff]  ;;  %v12273_v9 = vld [vmem:[#allocation61_spill] sm:$0xff] }
 0x776   :  { %3580 = vst.msk [vmem:[#allocation2 + $0xd8] sm:$0xff] %vm60_vm0, %v8123_v21  ;;  %v7564_v63 = vpack.c.bf16 %v3759_v36, %v3758_v44  ;;  %v12272_v21 = vld [vmem:[#allocation60_spill] sm:$0xff]  ;;  %v12275_v8 = vld [vmem:[#allocation63_spill] sm:$0xff]  ;;  %v12277_v36 = vld [vmem:[#allocation65_spill] sm:$0xff] }
 0x777   :  { %8128 = vtanh.f32 %v3513_v18  ;;  %v12274_v18 = vld [vmem:[#allocation62_spill] sm:$0xff]  ;;  %v12276_v44 = vld [vmem:[#allocation64_spill] sm:$0xff] }
 0x778   :  { %v3292_v0 = vpop.f32.mrb[254].mxu1  ;;  %7565 = vmatpush1.bf16.msra.mxu0 %v7564_v63  ;;  %v12278_v63 = vld [vmem:[#allocation66_spill] sm:$0xff] }
 0x779   :  { %v8125_v28 = vpop.eup %8124  ;;  %v3518_v50 = vadd.f32 %v12241_v47, %v3292_v0  ;;  %v3294_v60 = vpop.f32.mrb[255].mxu1  ;;  %7566 = vmatprep.subr.bf16.mxu0 %v11923_v59  ;;  %v3760_v13 = vld [vmem:[#allocation2 + $0xd0] sm:$0xff]  ;;  %v12279_v0 = vld [vmem:[#allocation67_spill] sm:$0xff] }
 0x77a   :  { %3581 = vst.msk [vmem:[#allocation2 + $0xe0] sm:$0xff] %vm60_vm0, %v8125_v28  ;;  %v12280_v28 = vld [vmem:[#allocation68_spill] sm:$0xff]  ;;  %v12281_v47 = vld [vmem:[#allocation69_spill] sm:$0xff]  ;;  %v12283_v60 = vld [vmem:[#allocation71_spill] sm:$0xff] }
 0x77b   :  { %8130 = vtanh.f32 %v3518_v50  ;;  %v12282_v50 = vld [vmem:[#allocation70_spill] sm:$0xff] }
 0x77d   :  { %v8127_v15 = vpop.eup %8126  ;;  %v3761_v53 = vld [vmem:[#allocation2 + $0xd8] sm:$0xff] }
 0x77e   :  { %3582 = vst.msk [vmem:[#allocation2 + $0xe8] sm:$0xff] %vm60_vm0, %v8127_v15  ;;  %v7567_v30 = vpack.c.bf16 %v3761_v53, %v3760_v13  ;;  %v12284_v53 = vld [vmem:[#allocation72_spill] sm:$0xff] }
 0x780   :  { %7568 = vmatpush1.bf16.msra.mxu0 %v7567_v30  ;;  %v12285_v30 = vld [vmem:[#allocation73_spill] sm:$0xff] }
 0x781   :  { %v8129_v25 = vpop.eup %8128  ;;  %7569 = vmatprep.subr.bf16.mxu0 %v11923_v59  ;;  %v3762_v56 = vld [vmem:[#allocation2 + $0xe0] sm:$0xff] }
 0x782   :  { %3583 = vst.msk [vmem:[#allocation2 + $0xf0] sm:$0xff] %vm60_vm0, %v8129_v25  ;;  %v12286_v25 = vld [vmem:[#allocation74_spill] sm:$0xff] }
 0x785   :  { %v8131_v40 = vpop.eup %8130  ;;  %v3763_v49 = vld [vmem:[#allocation2 + $0xe8] sm:$0xff] }
 0x786   :  { %3584 = vst.msk [vmem:[#allocation2 + $0xf8] sm:$0xff] %vm60_vm0, %v8131_v40  ;;  %v7570_v20 = vpack.c.bf16 %v3763_v49, %v3762_v56  ;;  %v12287_v40 = vld [vmem:[#allocation75_spill] sm:$0xff] }
 0x788   :  { %7571 = vmatpush1.bf16.msra.mxu0 %v7570_v20  ;;  %v12288_v20 = vld [vmem:[#allocation76_spill] sm:$0xff] }
 0x789   :  { %7572 = vmatprep.subr.bf16.mxu0 %v11923_v59  ;;  %v3764_v51 = vld [vmem:[#allocation2 + $0xf0] sm:$0xff] }
 0x78d   :  { %v3765_v35 = vld [vmem:[#allocation2 + $0xf8] sm:$0xff] }
 0x78e   :  { %v7573_v32 = vpack.c.bf16 %v3765_v35, %v3764_v51  ;;  %v12289_v51 = vld [vmem:[#allocation77_spill] sm:$0xff]  ;;  %v12290_v35 = vld [vmem:[#allocation78_spill] sm:$0xff] }
 0x790   :  { %7574 = vmatpush1.bf16.msra.mxu0 %v7573_v32  ;;  %v12291_v32 = vld [vmem:[#allocation79_spill] sm:$0xff] }
 0x793   :  { %3831 = vmatmul.mubr.f32.vlgmr.msra.gmra.mrb[224].mxu0 %v12242_v7 }
 0x794   :  { %3835 = vmatprep.mubr.f32.mxu0 %v12243_v14 }
 0x797   :  { %3836 = vmatmul.mubr.f32.gmra.mrb[226].mxu0 %v12244_v17  ;;  %v12292_v17 = vld [vmem:[#allocation80_spill] sm:$0xff] }
 0x798   :  { %3840 = vmatprep.mubr.f32.mxu0 %v12245_v38  ;;  %v12293_v38 = vld [vmem:[#allocation81_spill] sm:$0xff] }
 0x79b   :  { %3841 = vmatmul.mubr.f32.gmra.mrb[228].mxu0 %v12246_v62  ;;  %v12294_v62 = vld [vmem:[#allocation19_spill] sm:$0xff] }
 0x79c   :  { %3845 = vmatprep.mubr.f32.mxu0 %v12247_v4  ;;  %v12295_v4 = vld [vmem:[#allocation20_spill] sm:$0xff] }
 0x79f   :  { %3846 = vmatmul.mubr.f32.gmra.mrb[230].mxu0 %v12248_v41 }
 0x7a0   :  { %3850 = vmatprep.mubr.f32.mxu0 %v12249_v43 }
 0x7a3   :  { %3851 = vmatmul.mubr.f32.gmra.mrb[232].mxu0 %v12250_v23  ;;  %v12296_v23 = vld [vmem:[#allocation21_spill] sm:$0xff] }
 0x7a4   :  { %3855 = vmatprep.mubr.f32.mxu0 %v12251_v45  ;;  %v12297_v45 = vld [vmem:[#allocation22_spill] sm:$0xff] }
 0x7a7   :  { %3856 = vmatmul.mubr.f32.gmra.mrb[234].mxu0 %v12252_v12  ;;  %v12298_v12 = vld [vmem:[#allocation23_spill] sm:$0xff] }
 0x7a8   :  { %3860 = vmatprep.mubr.f32.mxu0 %v12253_v1  ;;  %v12299_v1 = vld [vmem:[#allocation24_spill] sm:$0xff] }
 0x7ab   :  { %3861 = vmatmul.mubr.f32.gmra.mrb[236].mxu0 %v12254_v5 }
 0x7ac   :  { %3865 = vmatprep.mubr.f32.mxu0 %v12255_v31 }
 0x7af   :  { %3866 = vmatmul.mubr.f32.gmra.mrb[238].mxu0 %v12256_v54  ;;  %v12300_v54 = vld [vmem:[#allocation25_spill] sm:$0xff] }
 0x7b0   :  { %3870 = vmatprep.mubr.f32.mxu0 %v12257_v61  ;;  %v12301_v61 = vld [vmem:[#allocation26_spill] sm:$0xff] }
 0x7b3   :  { %3871 = vmatmul.mubr.f32.gmra.mrb[240].mxu0 %v12258_v37  ;;  %v12302_v37 = vld [vmem:[#allocation82_spill] sm:$0xff] }
 0x7b4   :  { %3875 = vmatprep.mubr.f32.mxu0 %v12259_v42  ;;  %v12303_v42 = vld [vmem:[#allocation83_spill] sm:$0xff] }
 0x7b7   :  { %3876 = vmatmul.mubr.f32.gmra.mrb[242].mxu0 %v12260_v6 }
 0x7b8   :  { %3880 = vmatprep.mubr.f32.mxu0 %v12261_v39 }
 0x7bb   :  { %3881 = vmatmul.mubr.f32.gmra.mrb[244].mxu0 %v12262_v46  ;;  %v12304_v46 = vld [vmem:[#allocation84_spill] sm:$0xff] }
 0x7bc   :  { %3885 = vmatprep.mubr.f32.mxu0 %v12263_v11 }
 0x7bf   :  { %3886 = vmatmul.mubr.f32.gmra.mrb[246].mxu0 %v12264_v57 }
 0x7c0   :  { %3890 = vmatprep.mubr.f32.mxu0 %v12265_v58 }
 0x7c3   :  { %3891 = vmatmul.mubr.f32.gmra.mrb[248].mxu0 %v12266_v16 }
 0x7c4   :  { %3895 = vmatprep.mubr.f32.mxu0 %v12267_v55 }
 0x7c7   :  { %3896 = vmatmul.mubr.f32.gmra.mrb[250].mxu0 %v12268_v3 }
 0x7c8   :  { %3900 = vmatprep.mubr.f32.mxu0 %v12269_v34 }
 0x7cb   :  { %3901 = vmatmul.mubr.f32.gmra.mrb[252].mxu0 %v12270_v33 }
 0x7cc   :  { %3905 = vmatprep.mubr.f32.mxu0 %v12271_v26 }
 0x7cf   :  { %3906 = vmatmul.mubr.f32.gmra.mrb[254].mxu0 %v12272_v21 }
 0x7d0   :  { %3910 = vmatprep.mubr.f32.mxu0 %v12273_v9 }
 0x7d3   :  { %3911 = vmatmul.mubr.f32.gmra.mrb[0].mxu0 %v12274_v18 }
 0x7d4   :  { %3915 = vmatprep.mubr.f32.mxu0 %v12275_v8 }
 0x7d7   :  { %3916 = vmatmul.mubr.f32.gmra.mrb[2].mxu0 %v12276_v44 }
 0x7d8   :  { %3920 = vmatprep.mubr.f32.mxu0 %v12277_v36  ;;  %v6001_v36 = vld [vmem:[#allocation3 + $0x6] ss:$0 sm:$0xff] }
 0x7d9   :  { %vm4291_vm4 = vcmp.eq.s32.totalorder %v11983_v24, %v6001_v36  ;;  %vm4292_vm5 = vcmp.eq.s32.totalorder %v11984_v29, %v6001_v36  ;;  %vm4293_vm7 = vcmp.eq.s32.totalorder %v11985_v2, %v6001_v36  ;;  %vm4294_vm8 = vcmp.eq.s32.totalorder %v11986_v22, %v6001_v36 }
 0x7da   :  { %vm7667_vm6 = vmpackc.low %vm4292_vm5, %vm4291_vm4 }
 0x7db   :  { %3921 = vmatmul.mubr.f32.gmra.mrb[4].mxu0 %v12278_v63  ;;  %v12305_v63 = vld [vmem:[#allocation13_spill] sm:$0xff]  ;;  %vm7671_vm9 = vmpackc.low %vm4294_vm8, %vm4293_vm7 }
 0x7dc   :  { %3925 = vmatprep.mubr.f32.mxu0 %v12279_v0  ;;  %vm4285_vm10 = vcmp.eq.s32.totalorder %v12305_v63, %v6001_v36  ;;  %v12306_v0 = vld [vmem:[#allocation14_spill] sm:$0xff] }
 0x7dd   :  { %vm4286_vm11 = vcmp.eq.s32.totalorder %v12306_v0, %v6001_v36 }
 0x7de   :  { %v10651_v15 = vpop.f32.mrb[0].mxu1  ;;  %vm7655_vm12 = vmpackc.low %vm4286_vm11, %vm4285_vm10  ;;  %vm4295_vm10 = vcmp.eq.s32.totalorder %v11987_v27, %v6001_v36  ;;  %vm4296_vm11 = vcmp.eq.s32.totalorder %v11988_v48, %v6001_v36 }
 0x7df   :  { %3926 = vmatmul.mubr.f32.gmra.mrb[6].mxu0 %v12280_v28  ;;  %v10653_v13 = vpop.f32.mrb[1].mxu1  ;;  %7656 = vmatprep.subr.msk.bf16.mxu0 %vm7655_vm12, %v11922_v19 }
 0x7e0   :  { %3930 = vmatprep.mubr.f32.mxu0 %v12281_v47  ;;  %7658 = vmatpush3.bf16.msk.msra.mxu0 %vm7655_vm12, %v11922_v19  ;;  %vm7675_vm12 = vmpackc.low %vm4296_vm11, %vm4295_vm10 }
 0x7e2   :  { %v10659_v56 = vpop.f32.mrb[2].mxu1 }
 0x7e3   :  { %3931 = vmatmul.mubr.f32.gmra.mrb[8].mxu0 %v12282_v50  ;;  %v10661_v49 = vpop.f32.mrb[3].mxu1 }
 0x7e4   :  { %3935 = vmatprep.mubr.f32.mxu0 %v12283_v60 }
 0x7e7   :  { %3936 = vmatmul.mubr.f32.gmra.mrb[10].mxu0 %v12284_v53  ;;  %v12307_v53 = vld [vmem:[#allocation15_spill] sm:$0xff] }
 0x7e8   :  { %3940 = vmatprep.mubr.f32.mxu0 %v12285_v30  ;;  %vm4287_vm13 = vcmp.eq.s32.totalorder %v12307_v53, %v6001_v36  ;;  %v12308_v30 = vld [vmem:[#allocation16_spill] sm:$0xff] }
 0x7e9   :  { %v10667_v7 = vpop.f32.mrb[4].mxu1  ;;  %vm4288_vm14 = vcmp.eq.s32.totalorder %v12308_v30, %v6001_v36 }
 0x7ea   :  { %v10669_v14 = vpop.f32.mrb[5].mxu1  ;;  %vm7659_vm15 = vmpackc.low %vm4288_vm14, %vm4287_vm13  ;;  %vm4297_vm13 = vcmp.eq.s32.totalorder %v11989_v10, %v6001_v36  ;;  %vm4298_vm14 = vcmp.eq.s32.totalorder %v11990_v52, %v6001_v36 }
 0x7eb   :  { %3941 = vmatmul.mubr.f32.gmra.mrb[12].mxu0 %v12286_v25  ;;  %7660 = vmatprep.subr.msk.bf16.mxu0 %vm7659_vm15, %v11922_v19 }
 0x7ec   :  { %3945 = vmatprep.mubr.f32.mxu0 %v12287_v40  ;;  %7662 = vmatpush3.bf16.msk.msra.mxu0 %vm7659_vm15, %v11922_v19 }
 0x7ed   :  { %v10675_v41 = vpop.f32.mrb[6].mxu1 }
 0x7ee   :  { %v10677_v43 = vpop.f32.mrb[7].mxu1 }
 0x7ef   :  { %3946 = vmatmul.mubr.f32.gmra.mrb[14].mxu0 %v12288_v20  ;;  %v12309_v20 = vld [vmem:[#allocation17_spill] sm:$0xff] }
 0x7f0   :  { %3950 = vmatprep.mubr.f32.mxu0 %v12289_v51  ;;  %vm4289_vm1 = vcmp.eq.s32.totalorder %v12309_v20, %v6001_v36  ;;  %v12310_v51 = vld [vmem:[#allocation18_spill] sm:$0xff] }
 0x7f1   :  { %v10683_v5 = vpop.f32.mrb[8].mxu1  ;;  %vm4290_vm2 = vcmp.eq.s32.totalorder %v12310_v51, %v6001_v36 }
 0x7f2   :  { %v10685_v31 = vpop.f32.mrb[9].mxu1  ;;  %vm7663_vm3 = vmpackc.low %vm4290_vm2, %vm4289_vm1 }
 0x7f3   :  { %3951 = vmatmul.mubr.f32.gmra.mrb[16].mxu0 %v12290_v35  ;;  %7664 = vmatprep.subr.msk.bf16.mxu0 %vm7663_vm3, %v11922_v19  ;;  %vm7679_vm2 = vmpackc.low %vm4298_vm14, %vm4297_vm13 }
 0x7f4   :  { %3955 = vmatprep.mubr.f32.mxu0 %v12291_v32  ;;  %7666 = vmatpush3.bf16.msk.msra.mxu0 %vm7663_vm3, %v11922_v19 }
 0x7f5   :  { %v10691_v6 = vpop.f32.mrb[10].mxu1  ;;  %7668 = vmatprep.subr.msk.bf16.mxu0 %vm7667_vm6, %v11922_v19 }
 0x7f6   :  { %v10693_v39 = vpop.f32.mrb[11].mxu1 }
 0x7f7   :  { %3956 = vmatmul.mubr.f32.gmra.mrb[18].mxu0 %v12292_v17 }
 0x7f8   :  { %3960 = vmatprep.mubr.f32.mxu0 %v12293_v38  ;;  %7670 = vmatpush3.bf16.msk.msra.mxu0 %vm7667_vm6, %v11922_v19 }
 0x7f9   :  { %v10696_v11 = vpop.f32.mrb[12].mxu1  ;;  %7672 = vmatprep.subr.msk.bf16.mxu0 %vm7671_vm9, %v11922_v19 }
 0x7fa   :  { %v10698_v57 = vpop.f32.mrb[13].mxu1 }
 0x7fb   :  { %3961 = vmatmul.mubr.f32.gmra.mrb[20].mxu0 %v12294_v62 }
 0x7fc   :  { %3965 = vmatprep.mubr.f32.mxu0 %v12295_v4  ;;  %7674 = vmatpush3.bf16.msk.msra.mxu0 %vm7671_vm9, %v11922_v19 }
 0x7fd   :  { %v10700_v58 = vpop.f32.mrb[14].mxu1  ;;  %7676 = vmatprep.subr.msk.bf16.mxu0 %vm7675_vm12, %v11922_v19 }
 0x7fe   :  { %v10702_v16 = vpop.f32.mrb[15].mxu1 }
 0x7ff   :  { %3966 = vmatmul.mubr.f32.gmra.mrb[22].mxu0 %v12296_v23 }
 0x800   :  { %3970 = vmatprep.mubr.f32.mxu0 %v12297_v45  ;;  %7678 = vmatpush3.bf16.msk.msra.mxu0 %vm7675_vm12, %v11922_v19 }
 0x801   :  { %v10704_v55 = vpop.f32.mrb[16].mxu1  ;;  %7680 = vmatprep.subr.msk.bf16.mxu0 %vm7679_vm2, %v11922_v19 }
 0x802   :  { %v10706_v3 = vpop.f32.mrb[17].mxu1 }
 0x803   :  { %3971 = vmatmul.mubr.f32.gmra.mrb[24].mxu0 %v12298_v12  ;;  %v12311_v12 = vld [vmem:[#allocation27_spill] sm:$0xff] }
 0x804   :  { %3975 = vmatprep.mubr.f32.mxu0 %v12299_v1  ;;  %vm4299_vm15 = vcmp.eq.s32.totalorder %v12311_v12, %v6001_v36  ;;  %v12312_v1 = vld [vmem:[#allocation28_spill] sm:$0xff]  ;;  %7682 = vmatpush3.bf16.msk.msra.mxu0 %vm7679_vm2, %v11922_v19 }
 0x805   :  { %v10708_v34 = vpop.f32.mrb[18].mxu1  ;;  %vm4300_vm1 = vcmp.eq.s32.totalorder %v12312_v1, %v6001_v36 }
 0x806   :  { %v10710_v33 = vpop.f32.mrb[19].mxu1  ;;  %vm7683_vm3 = vmpackc.low %vm4300_vm1, %vm4299_vm15 }
 0x807   :  { %3976 = vmatmul.mubr.f32.gmra.mrb[26].mxu0 %v12300_v54  ;;  %7684 = vmatprep.subr.msk.bf16.mxu0 %vm7683_vm3, %v11922_v19 }
 0x808   :  { %3980 = vmatprep.mubr.f32.mxu0 %v12301_v61  ;;  %7686 = vmatpush3.bf16.msk.msra.mxu0 %vm7683_vm3, %v11922_v19 }
 0x809   :  { %v10712_v26 = vpop.f32.mrb[20].mxu1  ;;  %7687 = vmatprep.subr.bf16.mxu0 %v11923_v59 }
 0x80a   :  { %v10714_v21 = vpop.f32.mrb[21].mxu1 }
 0x80b   :  { %3981 = vmatmul.mubr.f32.gmra.mrb[28].mxu0 %v12302_v37 }
 0x80c   :  { %3985 = vmatprep.mubr.f32.mxu0 %v12303_v42 }
 0x80d   :  { %v10716_v9 = vpop.f32.mrb[22].mxu1 }
 0x80e   :  { %v10718_v18 = vpop.f32.mrb[23].mxu1 }
 0x80f   :  { %3986 = vmatmul.mubr.f32.gmra.mrb[30].mxu0 %v12304_v46 }
 0x811   :  { %v10720_v8 = vpop.f32.mrb[24].mxu1 }
 0x812   :  { %v10722_v44 = vpop.f32.mrb[25].mxu1 }
 0x815   :  { %v10726_v28 = vpop.f32.mrb[26].mxu1 }
 0x816   :  { %v10728_v47 = vpop.f32.mrb[27].mxu1 }
 0x819   :  { %v10732_v50 = vpop.f32.mrb[28].mxu1 }
 0x81a   :  { %v10734_v60 = vpop.f32.mrb[29].mxu1 }
 0x81d   :  { %v10738_v25 = vpop.f32.mrb[30].mxu1 }
 0x81e   :  { %v10741_v40 = vpop.f32.mrb[31].mxu1 }
 0x866   :  { %v3832_v35 = vpop.f32.mrb[224].mxu0 }
 0x867   :  { %v4058_v32 = vadd.f32 %v10653_v13, %v3832_v35  ;;  %v3834_v17 = vpop.f32.mrb[225].mxu0  ;;  %v10775_v35 = vld [vmem:[#allocation6] sm:$0xff] }
 0x868   :  { %v4334_v17 = vld [vmem:[#allocation6 + $0x8] sm:$0xff]  ;;  %6999 = vmatprep.mubr.f32.mxu0 %v10775_v35 }
 0x869   :  { %8132 = vtanh.f32 %v4058_v32  ;;  %v10777_v32 = vld [vmem:[#allocation8 + $0x8] sm:$0xff]  ;;  %7000 = vmatmul.mubr.f32.vlgmr.msra.gmra.mrb[32].mxu0 %v4334_v17 }
 0x86a   :  { %v3837_v38 = vpop.f32.mrb[226].mxu0  ;;  %4525 = vmatprep.mubr.f32.mxu1 %v10777_v32 }
 0x86b   :  { %v4063_v62 = vadd.f32 %v10651_v15, %v3837_v38  ;;  %v3839_v4 = vpop.f32.mrb[227].mxu0 }
 0x86d   :  { %8134 = vtanh.f32 %v4063_v62 }
 0x86e   :  { %v3842_v13 = vpop.f32.mrb[228].mxu0 }
 0x86f   :  { %v4068_v23 = vadd.f32 %v10661_v49, %v3842_v13  ;;  %v3844_v45 = vpop.f32.mrb[229].mxu0 }
 0x871   :  { %8136 = vtanh.f32 %v4068_v23 }
 0x872   :  { %v3847_v15 = vpop.f32.mrb[230].mxu0 }
 0x873   :  { %v8133_v54 = vpop.eup %8132  ;;  %v4073_v61 = vadd.f32 %v10659_v56, %v3847_v15  ;;  %v3849_v49 = vpop.f32.mrb[231].mxu0 }
 0x874   :  { %4248 = vst.msk [vmem:[#allocation2] sm:$0xff] %vm60_vm0, %v8133_v54 }
 0x875   :  { %8138 = vtanh.f32 %v4073_v61 }
 0x876   :  { %v3852_v37 = vpop.f32.mrb[232].mxu0 }
 0x877   :  { %v8135_v42 = vpop.eup %8134  ;;  %v4078_v46 = vadd.f32 %v10669_v14, %v3852_v37  ;;  %v3854_v36 = vpop.f32.mrb[233].mxu0  ;;  %v4336_v37 = vld [vmem:[#allocation6 + $0x18] sm:$0xff] }
 0x878   :  { %4249 = vst.msk [vmem:[#allocation2 + $0x8] sm:$0xff] %vm60_vm0, %v8135_v42 }
 0x879   :  { %8140 = vtanh.f32 %v4078_v46 }
 0x87a   :  { %v3857_v56 = vpop.f32.mrb[234].mxu0 }
 0x87b   :  { %v8137_v38 = vpop.eup %8136  ;;  %v4083_v62 = vadd.f32 %v10667_v7, %v3857_v56  ;;  %v3859_v4 = vpop.f32.mrb[235].mxu0  ;;  %v4429_v15 = vld [vmem:[#allocation2] sm:$0xff]  ;;  %v4335_v7 = vld [vmem:[#allocation6 + $0x10] sm:$0xff] }
 0x87c   :  { %4250 = vst.msk [vmem:[#allocation2 + $0x10] sm:$0xff] %vm60_vm0, %v8137_v38  ;;  %7002 = vmatprep.mubr.f32.mxu0 %v4335_v7 }
 0x87d   :  { %8142 = vtanh.f32 %v4083_v62  ;;  %7003 = vmatmul.mubr.f32.gmra.mrb[34].mxu0 %v4336_v37 }
 0x87e   :  { %v3862_v14 = vpop.f32.mrb[236].mxu0 }
 0x87f   :  { %v8139_v13 = vpop.eup %8138  ;;  %v4088_v23 = vadd.f32 %v10677_v43, %v3862_v14  ;;  %v3864_v45 = vpop.f32.mrb[237].mxu0  ;;  %v4430_v54 = vld [vmem:[#allocation2 + $0x8] sm:$0xff] }
 0x880   :  { %4251 = vst.msk [vmem:[#allocation2 + $0x18] sm:$0xff] %vm60_vm0, %v8139_v13  ;;  %v7608_v61 = vpack.c.bf16 %v4430_v54, %v4429_v15  ;;  %v4337_v13 = vld [vmem:[#allocation6 + $0x20] sm:$0xff] }
 0x881   :  { %8144 = vtanh.f32 %v4088_v23  ;;  %7005 = vmatprep.mubr.f32.mxu0 %v4337_v13  ;;  %v4338_v23 = vld [vmem:[#allocation6 + $0x28] sm:$0xff] }
 0x882   :  { %v3867_v49 = vpop.f32.mrb[238].mxu0  ;;  %7609 = vmatpush1.bf16.msra.mxu1 %v7608_v61  ;;  %7006 = vmatmul.mubr.f32.gmra.mrb[36].mxu0 %v4338_v23 }
 0x883   :  { %v8141_v42 = vpop.eup %8140  ;;  %v4093_v46 = vadd.f32 %v10675_v41, %v3867_v49  ;;  %v3869_v36 = vpop.f32.mrb[239].mxu0  ;;  %7610 = vmatprep.subr.bf16.mxu1 %v11923_v59  ;;  %v4431_v62 = vld [vmem:[#allocation2 + $0x10] sm:$0xff] }
 0x884   :  { %4252 = vst.msk [vmem:[#allocation2 + $0x20] sm:$0xff] %vm60_vm0, %v8141_v42  ;;  %v10796_v36 = vld [vmem:[#allocation6 + $0x30] sm:$0xff] }
 0x885   :  { %8146 = vtanh.f32 %v4093_v46  ;;  %7008 = vmatprep.mubr.f32.mxu0 %v10796_v36 }
 0x886   :  { %v3872_v43 = vpop.f32.mrb[240].mxu0 }
 0x887   :  { %v8143_v56 = vpop.eup %8142  ;;  %v4098_v17 = vadd.f32 %v10685_v31, %v3872_v43  ;;  %v3874_v38 = vpop.f32.mrb[241].mxu0  ;;  %v4432_v4 = vld [vmem:[#allocation2 + $0x18] sm:$0xff]  ;;  %v10799_v43 = vld [vmem:[#allocation6 + $0x38] sm:$0xff] }
 0x888   :  { %4253 = vst.msk [vmem:[#allocation2 + $0x28] sm:$0xff] %vm60_vm0, %v8143_v56  ;;  %v7611_v14 = vpack.c.bf16 %v4432_v4, %v4431_v62  ;;  %7009 = vmatmul.mubr.f32.gmra.mrb[38].mxu0 %v10799_v43 }
 0x889   :  { %8148 = vtanh.f32 %v4098_v17 }
 0x88a   :  { %v3877_v41 = vpop.f32.mrb[242].mxu0  ;;  %7612 = vmatpush1.bf16.msra.mxu1 %v7611_v14 }
 0x88b   :  { %v8145_v45 = vpop.eup %8144  ;;  %v4103_v15 = vadd.f32 %v10683_v5, %v3877_v41  ;;  %v3879_v54 = vpop.f32.mrb[243].mxu0  ;;  %7613 = vmatprep.subr.bf16.mxu1 %v11923_v59  ;;  %v4433_v37 = vld [vmem:[#allocation2 + $0x20] sm:$0xff] }
 0x88c   :  { %4254 = vst.msk [vmem:[#allocation2 + $0x30] sm:$0xff] %vm60_vm0, %v8145_v45 }
 0x88d   :  { %8150 = vtanh.f32 %v4103_v15  ;;  %v10810_v15 = vld [vmem:[#allocation6 + $0x48] sm:$0xff] }
 0x88e   :  { %v3882_v31 = vpop.f32.mrb[244].mxu0 }
 0x88f   :  { %v8147_v61 = vpop.eup %8146  ;;  %v4108_v7 = vadd.f32 %v10693_v39, %v3882_v31  ;;  %v3884_v49 = vpop.f32.mrb[245].mxu0  ;;  %v4434_v42 = vld [vmem:[#allocation2 + $0x28] sm:$0xff] }
 0x890   :  { %4255 = vst.msk [vmem:[#allocation2 + $0x38] sm:$0xff] %vm60_vm0, %v8147_v61  ;;  %v7614_v46 = vpack.c.bf16 %v4434_v42, %v4433_v37 }
 0x891   :  { %8152 = vtanh.f32 %v4108_v7 }
 0x892   :  { %v3887_v5 = vpop.f32.mrb[246].mxu0  ;;  %7615 = vmatpush1.bf16.msra.mxu1 %v7614_v46 }
 0x893   :  { %v8149_v56 = vpop.eup %8148  ;;  %v4113_v17 = vadd.f32 %v10691_v6, %v3887_v5  ;;  %v3889_v38 = vpop.f32.mrb[247].mxu0  ;;  %7616 = vmatprep.subr.bf16.mxu1 %v11923_v59  ;;  %v4435_v13 = vld [vmem:[#allocation2 + $0x30] sm:$0xff]  ;;  %v10807_v6 = vld [vmem:[#allocation6 + $0x40] sm:$0xff] }
 0x894   :  { %4256 = vst.msk [vmem:[#allocation2 + $0x40] sm:$0xff] %vm60_vm0, %v8149_v56  ;;  %7011 = vmatprep.mubr.f32.mxu0 %v10807_v6 }
 0x895   :  { %8154 = vtanh.f32 %v4113_v17  ;;  %7012 = vmatmul.mubr.f32.gmra.mrb[40].mxu0 %v10810_v15  ;;  %v10821_v17 = vld [vmem:[#allocation6 + $0x58] sm:$0xff] }
 0x896   :  { %v3892_v39 = vpop.f32.mrb[248].mxu0 }
 0x897   :  { %v8151_v62 = vpop.eup %8150  ;;  %v4118_v4 = vadd.f32 %v10698_v57, %v3892_v39  ;;  %v3894_v14 = vpop.f32.mrb[249].mxu0  ;;  %v4436_v41 = vld [vmem:[#allocation2 + $0x38] sm:$0xff] }
 0x898   :  { %4257 = vst.msk [vmem:[#allocation2 + $0x48] sm:$0xff] %vm60_vm0, %v8151_v62  ;;  %v7617_v23 = vpack.c.bf16 %v4436_v41, %v4435_v13 }
 0x899   :  { %8156 = vtanh.f32 %v4118_v4 }
 0x89a   :  { %v3897_v45 = vpop.f32.mrb[250].mxu0  ;;  %7618 = vmatpush1.bf16.msra.mxu1 %v7617_v23 }
 0x89b   :  { %v8153_v54 = vpop.eup %8152  ;;  %v4123_v31 = vadd.f32 %v10696_v11, %v3897_v45  ;;  %v3899_v61 = vpop.f32.mrb[251].mxu0  ;;  %7619 = vmatprep.subr.bf16.mxu1 %v11923_v59  ;;  %v4437_v42 = vld [vmem:[#allocation2 + $0x40] sm:$0xff]  ;;  %v10818_v11 = vld [vmem:[#allocation6 + $0x50] sm:$0xff] }
 0x89c   :  { %4258 = vst.msk [vmem:[#allocation2 + $0x50] sm:$0xff] %vm60_vm0, %v8153_v54  ;;  %7014 = vmatprep.mubr.f32.mxu0 %v10818_v11 }
 0x89d   :  { %8158 = vtanh.f32 %v4123_v31  ;;  %7015 = vmatmul.mubr.f32.gmra.mrb[42].mxu0 %v10821_v17  ;;  %v10832_v31 = vld [vmem:[#allocation6 + $0x68] sm:$0xff] }
 0x89e   :  { %v3902_v57 = vpop.f32.mrb[252].mxu0 }
 0x89f   :  { %v8155_v7 = vpop.eup %8154  ;;  %v4128_v49 = vadd.f32 %v10702_v16, %v3902_v57  ;;  %v3904_v37 = vpop.f32.mrb[253].mxu0  ;;  %v4438_v46 = vld [vmem:[#allocation2 + $0x48] sm:$0xff] }
 0x8a0   :  { %4259 = vst.msk [vmem:[#allocation2 + $0x58] sm:$0xff] %vm60_vm0, %v8155_v7  ;;  %v7620_v5 = vpack.c.bf16 %v4438_v46, %v4437_v42 }
 0x8a1   :  { %8160 = vtanh.f32 %v4128_v49 }
 0x8a2   :  { %v3907_v56 = vpop.f32.mrb[254].mxu0  ;;  %7621 = vmatpush1.bf16.msra.mxu1 %v7620_v5 }
 0x8a3   :  { %v8157_v38 = vpop.eup %8156  ;;  %v4133_v39 = vadd.f32 %v10700_v58, %v3907_v56  ;;  %v3909_v62 = vpop.f32.mrb[255].mxu0  ;;  %7622 = vmatprep.subr.bf16.mxu1 %v11923_v59  ;;  %v4439_v41 = vld [vmem:[#allocation2 + $0x50] sm:$0xff]  ;;  %v10829_v58 = vld [vmem:[#allocation6 + $0x60] sm:$0xff] }
 0x8a4   :  { %4260 = vst.msk [vmem:[#allocation2 + $0x60] sm:$0xff] %vm60_vm0, %v8157_v38  ;;  %7017 = vmatprep.mubr.f32.mxu0 %v10829_v58 }
 0x8a5   :  { %8162 = vtanh.f32 %v4133_v39  ;;  %7018 = vmatmul.mubr.f32.gmra.mrb[44].mxu0 %v10832_v31  ;;  %v10843_v39 = vld [vmem:[#allocation6 + $0x78] sm:$0xff] }
 0x8a6   :  { %v3912_v16 = vpop.f32.mrb[0].mxu0 }
 0x8a7   :  { %v8159_v4 = vpop.eup %8158  ;;  %v4138_v14 = vadd.f32 %v10706_v3, %v3912_v16  ;;  %v3914_v13 = vpop.f32.mrb[1].mxu0  ;;  %v4440_v23 = vld [vmem:[#allocation2 + $0x58] sm:$0xff] }
 0x8a8   :  { %4261 = vst.msk [vmem:[#allocation2 + $0x68] sm:$0xff] %vm60_vm0, %v8159_v4  ;;  %v7623_v45 = vpack.c.bf16 %v4440_v23, %v4439_v41 }
 0x8a9   :  { %8164 = vtanh.f32 %v4138_v14 }
 0x8aa   :  { %v3917_v54 = vpop.f32.mrb[2].mxu0  ;;  %7624 = vmatpush1.bf16.msra.mxu1 %v7623_v45 }
 0x8ab   :  { %v8161_v61 = vpop.eup %8160  ;;  %v4143_v57 = vadd.f32 %v10704_v55, %v3917_v54  ;;  %v3919_v7 = vpop.f32.mrb[3].mxu0  ;;  %7625 = vmatprep.subr.bf16.mxu1 %v11923_v59  ;;  %v4441_v46 = vld [vmem:[#allocation2 + $0x60] sm:$0xff]  ;;  %v10840_v55 = vld [vmem:[#allocation6 + $0x70] sm:$0xff] }
 0x8ac   :  { %4262 = vst.msk [vmem:[#allocation2 + $0x70] sm:$0xff] %vm60_vm0, %v8161_v61  ;;  %7020 = vmatprep.mubr.f32.mxu0 %v10840_v55 }
 0x8ad   :  { %8166 = vtanh.f32 %v4143_v57  ;;  %7021 = vmatmul.mubr.f32.gmra.mrb[46].mxu0 %v10843_v39  ;;  %v10854_v57 = vld [vmem:[#allocation6 + $0x88] sm:$0xff] }
 0x8ae   :  { %v3922_v3 = vpop.f32.mrb[4].mxu0 }
 0x8af   :  { %v8163_v49 = vpop.eup %8162  ;;  %v4148_v37 = vadd.f32 %v10710_v33, %v3922_v3  ;;  %v3924_v42 = vpop.f32.mrb[5].mxu0  ;;  %v4442_v5 = vld [vmem:[#allocation2 + $0x68] sm:$0xff] }
 0x8b0   :  { %4263 = vst.msk [vmem:[#allocation2 + $0x78] sm:$0xff] %vm60_vm0, %v8163_v49  ;;  %v7626_v56 = vpack.c.bf16 %v4442_v5, %v4441_v46 }
 0x8b1   :  { %8168 = vtanh.f32 %v4148_v37 }
 0x8b2   :  { %v3927_v38 = vpop.f32.mrb[6].mxu0  ;;  %7627 = vmatpush1.bf16.msra.mxu1 %v7626_v56 }
 0x8b3   :  { %v8165_v62 = vpop.eup %8164  ;;  %v4153_v16 = vadd.f32 %v10708_v34, %v3927_v38  ;;  %v3929_v4 = vpop.f32.mrb[7].mxu0  ;;  %7628 = vmatprep.subr.bf16.mxu1 %v11923_v59  ;;  %v4443_v23 = vld [vmem:[#allocation2 + $0x70] sm:$0xff]  ;;  %v10851_v34 = vld [vmem:[#allocation6 + $0x80] sm:$0xff] }
 0x8b4   :  { %4264 = vst.msk [vmem:[#allocation2 + $0x80] sm:$0xff] %vm60_vm0, %v8165_v62  ;;  %7023 = vmatprep.mubr.f32.mxu0 %v10851_v34 }
 0x8b5   :  { %8170 = vtanh.f32 %v4153_v16  ;;  %7024 = vmatmul.mubr.f32.gmra.mrb[48].mxu0 %v10854_v57  ;;  %v10865_v16 = vld [vmem:[#allocation6 + $0x98] sm:$0xff] }
 0x8b6   :  { %v3932_v33 = vpop.f32.mrb[8].mxu0 }
 0x8b7   :  { %v8167_v14 = vpop.eup %8166  ;;  %v4158_v13 = vadd.f32 %v10714_v21, %v3932_v33  ;;  %v3934_v41 = vpop.f32.mrb[9].mxu0  ;;  %v4444_v45 = vld [vmem:[#allocation2 + $0x78] sm:$0xff] }
 0x8b8   :  { %4265 = vst.msk [vmem:[#allocation2 + $0x88] sm:$0xff] %vm60_vm0, %v8167_v14  ;;  %v7629_v54 = vpack.c.bf16 %v4444_v45, %v4443_v23 }
 0x8b9   :  { %8172 = vtanh.f32 %v4158_v13 }
 0x8ba   :  { %v3937_v61 = vpop.f32.mrb[10].mxu0  ;;  %7630 = vmatpush1.bf16.msra.mxu1 %v7629_v54 }
 0x8bb   :  { %v8169_v7 = vpop.eup %8168  ;;  %v4163_v3 = vadd.f32 %v10712_v26, %v3937_v61  ;;  %v3939_v49 = vpop.f32.mrb[11].mxu0  ;;  %7631 = vmatprep.subr.bf16.mxu1 %v11923_v59  ;;  %v4445_v5 = vld [vmem:[#allocation2 + $0x80] sm:$0xff]  ;;  %v10862_v26 = vld [vmem:[#allocation6 + $0x90] sm:$0xff] }
 0x8bc   :  { %4266 = vst.msk [vmem:[#allocation2 + $0x90] sm:$0xff] %vm60_vm0, %v8169_v7  ;;  %7026 = vmatprep.mubr.f32.mxu0 %v10862_v26 }
 0x8bd   :  { %8174 = vtanh.f32 %v4163_v3  ;;  %7027 = vmatmul.mubr.f32.gmra.mrb[50].mxu0 %v10865_v16  ;;  %v10876_v3 = vld [vmem:[#allocation6 + $0xa8] sm:$0xff] }
 0x8be   :  { %v3942_v21 = vpop.f32.mrb[12].mxu0 }
 0x8bf   :  { %v8171_v37 = vpop.eup %8170  ;;  %v4168_v42 = vadd.f32 %v10718_v18, %v3942_v21  ;;  %v3944_v46 = vpop.f32.mrb[13].mxu0  ;;  %v4446_v56 = vld [vmem:[#allocation2 + $0x88] sm:$0xff] }
 0x8c0   :  { %4267 = vst.msk [vmem:[#allocation2 + $0x98] sm:$0xff] %vm60_vm0, %v8171_v37  ;;  %v7632_v38 = vpack.c.bf16 %v4446_v56, %v4445_v5 }
 0x8c1   :  { %8176 = vtanh.f32 %v4168_v42 }
 0x8c2   :  { %v3947_v62 = vpop.f32.mrb[14].mxu0  ;;  %7633 = vmatpush1.bf16.msra.mxu1 %v7632_v38 }
 0x8c3   :  { %v8173_v4 = vpop.eup %8172  ;;  %v4173_v33 = vadd.f32 %v10716_v9, %v3947_v62  ;;  %v3949_v14 = vpop.f32.mrb[15].mxu0  ;;  %7634 = vmatprep.subr.bf16.mxu1 %v11923_v59  ;;  %v4447_v45 = vld [vmem:[#allocation2 + $0x90] sm:$0xff]  ;;  %v10873_v9 = vld [vmem:[#allocation6 + $0xa0] sm:$0xff] }
 0x8c4   :  { %4268 = vst.msk [vmem:[#allocation2 + $0xa0] sm:$0xff] %vm60_vm0, %v8173_v4  ;;  %7029 = vmatprep.mubr.f32.mxu0 %v10873_v9 }
 0x8c5   :  { %8178 = vtanh.f32 %v4173_v33  ;;  %7030 = vmatmul.mubr.f32.gmra.mrb[52].mxu0 %v10876_v3  ;;  %v10887_v33 = vld [vmem:[#allocation6 + $0xb8] sm:$0xff] }
 0x8c6   :  { %v3952_v18 = vpop.f32.mrb[16].mxu0 }
 0x8c7   :  { %v8175_v13 = vpop.eup %8174  ;;  %v4178_v41 = vadd.f32 %v10722_v44, %v3952_v18  ;;  %v3954_v23 = vpop.f32.mrb[17].mxu0  ;;  %v4448_v54 = vld [vmem:[#allocation2 + $0x98] sm:$0xff] }
 0x8c8   :  { %4269 = vst.msk [vmem:[#allocation2 + $0xa8] sm:$0xff] %vm60_vm0, %v8175_v13  ;;  %v7635_v61 = vpack.c.bf16 %v4448_v54, %v4447_v45 }
 0x8c9   :  { %8180 = vtanh.f32 %v4178_v41 }
 0x8ca   :  { %v3957_v7 = vpop.f32.mrb[18].mxu0  ;;  %7636 = vmatpush1.bf16.msra.mxu1 %v7635_v61 }
 0x8cb   :  { %v8177_v49 = vpop.eup %8176  ;;  %v4183_v21 = vadd.f32 %v10720_v8, %v3957_v7  ;;  %v3959_v37 = vpop.f32.mrb[19].mxu0  ;;  %7637 = vmatprep.subr.bf16.mxu1 %v11923_v59  ;;  %v4449_v56 = vld [vmem:[#allocation2 + $0xa0] sm:$0xff]  ;;  %v10884_v8 = vld [vmem:[#allocation6 + $0xb0] sm:$0xff] }
 0x8cc   :  { %4270 = vst.msk [vmem:[#allocation2 + $0xb0] sm:$0xff] %vm60_vm0, %v8177_v49  ;;  %7032 = vmatprep.mubr.f32.mxu0 %v10884_v8 }
 0x8cd   :  { %8182 = vtanh.f32 %v4183_v21  ;;  %7033 = vmatmul.mubr.f32.gmra.mrb[54].mxu0 %v10887_v33  ;;  %v10898_v21 = vld [vmem:[#allocation6 + $0xc8] sm:$0xff] }
 0x8ce   :  { %v3962_v44 = vpop.f32.mrb[20].mxu0  ;;  %12313 = vst [vmem:[#allocation29_spill] sm:$0xff] %v10898_v21 }
 0x8cf   :  { %v8179_v42 = vpop.eup %8178  ;;  %v4188_v46 = vadd.f32 %v10728_v47, %v3962_v44  ;;  %v3964_v5 = vpop.f32.mrb[21].mxu0  ;;  %v4450_v38 = vld [vmem:[#allocation2 + $0xa8] sm:$0xff] }
 0x8d0   :  { %4271 = vst.msk [vmem:[#allocation2 + $0xb8] sm:$0xff] %vm60_vm0, %v8179_v42  ;;  %v7638_v62 = vpack.c.bf16 %v4450_v38, %v4449_v56 }
 0x8d1   :  { %8184 = vtanh.f32 %v4188_v46 }
 0x8d2   :  { %v3967_v4 = vpop.f32.mrb[22].mxu0  ;;  %7639 = vmatpush1.bf16.msra.mxu1 %v7638_v62 }
 0x8d3   :  { %v8181_v14 = vpop.eup %8180  ;;  %v4193_v18 = vadd.f32 %v10726_v28, %v3967_v4  ;;  %v3969_v13 = vpop.f32.mrb[23].mxu0  ;;  %7640 = vmatprep.subr.bf16.mxu1 %v11923_v59  ;;  %v4451_v54 = vld [vmem:[#allocation2 + $0xb0] sm:$0xff]  ;;  %v10895_v28 = vld [vmem:[#allocation6 + $0xc0] sm:$0xff] }
 0x8d4   :  { %4272 = vst.msk [vmem:[#allocation2 + $0xc0] sm:$0xff] %vm60_vm0, %v8181_v14  ;;  %7035 = vmatprep.mubr.f32.mxu0 %v10895_v28 }
 0x8d5   :  { %8186 = vtanh.f32 %v4193_v18  ;;  %7036 = vmatmul.mubr.f32.gmra.mrb[56].mxu0 %v10898_v21  ;;  %v10909_v18 = vld [vmem:[#allocation6 + $0xd8] sm:$0xff] }
 0x8d6   :  { %v3972_v47 = vpop.f32.mrb[24].mxu0  ;;  %12315 = vst [vmem:[#allocation86_spill] sm:$0xff] %v10909_v18  ;;  %v6034_v21 = vld [vmem:[#allocation3 + $0x7] ss:$0 sm:$0xff] }
 0x8d7   :  { %v8183_v41 = vpop.eup %8182  ;;  %v4198_v23 = vadd.f32 %v10734_v60, %v3972_v47  ;;  %v3974_v45 = vpop.f32.mrb[25].mxu0  ;;  %v4452_v61 = vld [vmem:[#allocation2 + $0xb8] sm:$0xff]  ;;  %vm4980_vm4 = vcmp.eq.s32.totalorder %v12305_v63, %v6034_v21  ;;  %vm4981_vm5 = vcmp.eq.s32.totalorder %v12306_v0, %v6034_v21  ;;  %vm4982_vm7 = vcmp.eq.s32.totalorder %v12307_v53, %v6034_v21 }
 0x8d8   :  { %4273 = vst.msk [vmem:[#allocation2 + $0xc8] sm:$0xff] %vm60_vm0, %v8183_v41  ;;  %v7641_v7 = vpack.c.bf16 %v4452_v61, %v4451_v54  ;;  %v10916_v61 = vld [vmem:[#allocation6 + $0xe0] sm:$0xff]  ;;  %vm7735_vm6 = vmpackc.low %vm4981_vm5, %vm4980_vm4  ;;  %vm4983_vm8 = vcmp.eq.s32.totalorder %v12308_v30, %v6034_v21  ;;  %vm4984_vm10 = vcmp.eq.s32.totalorder %v12309_v20, %v6034_v21  ;;  %vm4985_vm11 = vcmp.eq.s32.totalorder %v12310_v51, %v6034_v21 }
 0x8d9   :  { %8188 = vtanh.f32 %v4198_v23  ;;  %12316 = vst [vmem:[#allocation92_spill] sm:$0xff] %v10916_v61  ;;  %vm7739_vm9 = vmpackc.low %vm4983_vm8, %vm4982_vm7  ;;  %vm4986_vm13 = vcmp.eq.s32.totalorder %v11983_v24, %v6034_v21  ;;  %vm4987_vm14 = vcmp.eq.s32.totalorder %v11984_v29, %v6034_v21  ;;  %vm4988_vm1 = vcmp.eq.s32.totalorder %v11985_v2, %v6034_v21 }
 0x8da   :  { %v3977_v49 = vpop.f32.mrb[26].mxu0  ;;  %7642 = vmatpush1.bf16.msra.mxu1 %v7641_v7  ;;  %vm7743_vm12 = vmpackc.low %vm4985_vm11, %vm4984_vm10  ;;  %vm4989_vm2 = vcmp.eq.s32.totalorder %v11986_v22, %v6034_v21  ;;  %vm4990_vm4 = vcmp.eq.s32.totalorder %v11987_v27, %v6034_v21  ;;  %vm4991_vm5 = vcmp.eq.s32.totalorder %v11988_v48, %v6034_v21  ;;  %vm4992_vm7 = vcmp.eq.s32.totalorder %v11989_v10, %v6034_v21 }
 0x8db   :  { %v8185_v37 = vpop.eup %8184  ;;  %v4203_v44 = vadd.f32 %v10732_v50, %v3977_v49  ;;  %v3979_v42 = vpop.f32.mrb[27].mxu0  ;;  %7643 = vmatprep.subr.bf16.mxu1 %v11923_v59  ;;  %v4453_v38 = vld [vmem:[#allocation2 + $0xc0] sm:$0xff]  ;;  %v10906_v50 = vld [vmem:[#allocation6 + $0xd0] sm:$0xff]  ;;  %vm7747_vm15 = vmpackc.low %vm4987_vm14, %vm4986_vm13  ;;  %vm4993_vm8 = vcmp.eq.s32.totalorder %v11990_v52, %v6034_v21  ;;  %vm4995_vm10 = vcmp.eq.s32.totalorder %v12312_v1, %v6034_v21 }
 0x8dc   :  { %4274 = vst.msk [vmem:[#allocation2 + $0xd0] sm:$0xff] %vm60_vm0, %v8185_v37  ;;  %12314 = vst [vmem:[#allocation30_spill] sm:$0xff] %v10906_v50  ;;  %7038 = vmatprep.mubr.f32.mxu0 %v10906_v50 }
 0x8dd   :  { %8190 = vtanh.f32 %v4203_v44  ;;  %7039 = vmatmul.mubr.f32.gmra.mrb[58].mxu0 %v10909_v18  ;;  %vm7751_vm3 = vmpackc.low %vm4989_vm2, %vm4988_vm1 }
 0x8de   :  { %v3982_v60 = vpop.f32.mrb[28].mxu0  ;;  %7041 = vmatprep.mubr.f32.mxu0 %v10916_v61  ;;  %vm7759_vm11 = vmpackc.low %vm4993_vm8, %vm4992_vm7 }
 0x8df   :  { %v8187_v46 = vpop.eup %8186  ;;  %v4208_v5 = vadd.f32 %v10741_v40, %v3982_v60  ;;  %v3984_v56 = vpop.f32.mrb[29].mxu0  ;;  %v4454_v62 = vld [vmem:[#allocation2 + $0xc8] sm:$0xff]  ;;  %v10925_v60 = vld [vmem:[#allocation6 + $0xf0] sm:$0xff] }
 0x8e0   :  { %4275 = vst.msk [vmem:[#allocation2 + $0xd8] sm:$0xff] %vm60_vm0, %v8187_v46  ;;  %v7644_v4 = vpack.c.bf16 %v4454_v62, %v4453_v38  ;;  %12318 = vst [vmem:[#allocation85_spill] sm:$0xff] %v10925_v60  ;;  %v10928_v46 = vld [vmem:[#allocation6 + $0xf8] sm:$0xff]  ;;  %v10933_v62 = vld [vmem:[#allocation8] sm:$0xff] }
 0x8e1   :  { %8192 = vtanh.f32 %v4208_v5  ;;  %12319 = vst [vmem:[#allocation32_spill] sm:$0xff] %v10928_v46  ;;  %12320 = vst [vmem:[#allocation91_spill] sm:$0xff] %v10933_v62 }
 0x8e2   :  { %v3987_v14 = vpop.f32.mrb[30].mxu0  ;;  %7645 = vmatpush1.bf16.msra.mxu1 %v7644_v4  ;;  %v10935_v4 = vld [vmem:[#allocation8 + $0x18] sm:$0xff] }
 0x8e3   :  { %v8189_v13 = vpop.eup %8188  ;;  %v4213_v47 = vadd.f32 %v10738_v25, %v3987_v14  ;;  %v3989_v41 = vpop.f32.mrb[31].mxu0  ;;  %7646 = vmatprep.subr.bf16.mxu1 %v11923_v59  ;;  %v4455_v23 = vld [vmem:[#allocation2 + $0xd0] sm:$0xff]  ;;  %12321 = vst [vmem:[#allocation33_spill] sm:$0xff] %v10935_v4  ;;  %v10939_v14 = vld [vmem:[#allocation8 + $0x10] sm:$0xff] }
 0x8e4   :  { %4276 = vst.msk [vmem:[#allocation2 + $0xe0] sm:$0xff] %vm60_vm0, %v8189_v13  ;;  %v10919_v25 = vld [vmem:[#allocation6 + $0xe8] sm:$0xff]  ;;  %12322 = vst [vmem:[#allocation88_spill] sm:$0xff] %v10939_v14  ;;  %v10951_v41 = vld [vmem:[#allocation8 + $0x30] sm:$0xff] }
 0x8e5   :  { %8194 = vtanh.f32 %v4213_v47  ;;  %12317 = vst [vmem:[#allocation31_spill] sm:$0xff] %v10919_v25  ;;  %7042 = vmatmul.mubr.f32.gmra.mrb[60].mxu0 %v10919_v25  ;;  %v10941_v13 = vld [vmem:[#allocation8 + $0x28] sm:$0xff]  ;;  %v10947_v47 = vld [vmem:[#allocation8 + $0x38] sm:$0xff]  ;;  %12326 = vst [vmem:[#allocation34_spill] sm:$0xff] %v10951_v41 }
 0x8e6   :  { %7044 = vmatprep.mubr.f32.mxu0 %v10925_v60  ;;  %12323 = vst [vmem:[#allocation87_spill] sm:$0xff] %v10941_v13  ;;  %12325 = vst [vmem:[#allocation89_spill] sm:$0xff] %v10947_v47 }
 0x8e7   :  { %v8191_v40 = vpop.eup %8190  ;;  %v4456_v45 = vld [vmem:[#allocation2 + $0xd8] sm:$0xff] }
 0x8e8   :  { %4277 = vst.msk [vmem:[#allocation2 + $0xe8] sm:$0xff] %vm60_vm0, %v8191_v40  ;;  %v7647_v54 = vpack.c.bf16 %v4456_v45, %v4455_v23  ;;  %v10953_v40 = vld [vmem:[#allocation8 + $0x48] sm:$0xff]  ;;  %v10957_v23 = vld [vmem:[#allocation8 + $0x40] sm:$0xff]  ;;  %v10959_v45 = vld [vmem:[#allocation8 + $0x58] sm:$0xff] }
 0x8e9   :  { %7045 = vmatmul.mubr.f32.gmra.mrb[62].mxu0 %v10928_v46  ;;  %12327 = vst [vmem:[#allocation35_spill] sm:$0xff] %v10953_v40  ;;  %12328 = vst [vmem:[#allocation94_spill] sm:$0xff] %v10957_v23 }
 0x8ea   :  { %7648 = vmatpush1.bf16.msra.mxu1 %v7647_v54  ;;  %5220 = vmatprep.mubr.f32.mxu0 %v10777_v32  ;;  %v10945_v32 = vld [vmem:[#allocation8 + $0x20] sm:$0xff]  ;;  %12329 = vst [vmem:[#allocation93_spill] sm:$0xff] %v10959_v45  ;;  %v10963_v54 = vld [vmem:[#allocation8 + $0x50] sm:$0xff] }
 0x8eb   :  { %v8193_v7 = vpop.eup %8192  ;;  %7649 = vmatprep.subr.bf16.mxu1 %v11923_v59  ;;  %v4457_v37 = vld [vmem:[#allocation2 + $0xe0] sm:$0xff]  ;;  %12324 = vst [vmem:[#allocation90_spill] sm:$0xff] %v10945_v32  ;;  %12330 = vst [vmem:[#allocation96_spill] sm:$0xff] %v10963_v54 }
 0x8ec   :  { %4278 = vst.msk [vmem:[#allocation2 + $0xf0] sm:$0xff] %vm60_vm0, %v8193_v7  ;;  %v10965_v7 = vld [vmem:[#allocation8 + $0x68] sm:$0xff] }
 0x8ed   :  { %12331 = vst [vmem:[#allocation95_spill] sm:$0xff] %v10965_v7 }
 0x8ef   :  { %v8195_v49 = vpop.eup %8194  ;;  %v4458_v44 = vld [vmem:[#allocation2 + $0xe8] sm:$0xff] }
 0x8f0   :  { %4279 = vst.msk [vmem:[#allocation2 + $0xf8] sm:$0xff] %vm60_vm0, %v8195_v49  ;;  %v7650_v42 = vpack.c.bf16 %v4458_v44, %v4457_v37  ;;  %v10969_v49 = vld [vmem:[#allocation8 + $0x60] sm:$0xff]  ;;  %v10971_v37 = vld [vmem:[#allocation8 + $0x78] sm:$0xff]  ;;  %v10975_v44 = vld [vmem:[#allocation8 + $0x70] sm:$0xff] }
 0x8f1   :  { %12332 = vst [vmem:[#allocation36_spill] sm:$0xff] %v10969_v49  ;;  %12333 = vst [vmem:[#allocation37_spill] sm:$0xff] %v10971_v37 }
 0x8f2   :  { %7651 = vmatpush1.bf16.msra.mxu1 %v7650_v42  ;;  %12334 = vst [vmem:[#allocation38_spill] sm:$0xff] %v10975_v44  ;;  %v10977_v42 = vld [vmem:[#allocation8 + $0x88] sm:$0xff] }
 0x8f3   :  { %7652 = vmatprep.subr.bf16.mxu1 %v11923_v59  ;;  %v4459_v5 = vld [vmem:[#allocation2 + $0xf0] sm:$0xff]  ;;  %12335 = vst [vmem:[#allocation39_spill] sm:$0xff] %v10977_v42 }
 0x8f7   :  { %v4460_v56 = vld [vmem:[#allocation2 + $0xf8] sm:$0xff] }
 0x8f8   :  { %v7653_v38 = vpack.c.bf16 %v4460_v56, %v4459_v5  ;;  %v10981_v5 = vld [vmem:[#allocation8 + $0x80] sm:$0xff]  ;;  %v10983_v56 = vld [vmem:[#allocation8 + $0x98] sm:$0xff] }
 0x8f9   :  { %12336 = vst [vmem:[#allocation40_spill] sm:$0xff] %v10981_v5  ;;  %12337 = vst [vmem:[#allocation41_spill] sm:$0xff] %v10983_v56 }
 0x8fa   :  { %7654 = vmatpush1.bf16.msra.mxu1 %v7653_v38  ;;  %v10987_v38 = vld [vmem:[#allocation8 + $0x90] sm:$0xff] }
 0x8fb   :  { %12338 = vst [vmem:[#allocation42_spill] sm:$0xff] %v10987_v38  ;;  %7736 = vmatprep.subr.msk.bf16.mxu1 %vm7735_vm6, %v11922_v19 }
 0x8fd   :  { %4526 = vmatmul.mubr.f32.vlgmr.msra.gmra.mrb[32].mxu1 %v10933_v62 }
 0x8fe   :  { %4530 = vmatprep.mubr.f32.mxu1 %v10935_v4  ;;  %7738 = vmatpush3.bf16.msk.msra.mxu1 %vm7735_vm6, %v11922_v19  ;;  %vm7755_vm6 = vmpackc.low %vm4991_vm5, %vm4990_vm4 }
 0x8ff   :  { %7740 = vmatprep.subr.msk.bf16.mxu1 %vm7739_vm9, %v11922_v19 }
 0x901   :  { %4531 = vmatmul.mubr.f32.gmra.mrb[34].mxu1 %v10939_v14 }
 0x902   :  { %4535 = vmatprep.mubr.f32.mxu1 %v10941_v13  ;;  %7742 = vmatpush3.bf16.msk.msra.mxu1 %vm7739_vm9, %v11922_v19  ;;  %vm4994_vm9 = vcmp.eq.s32.totalorder %v12311_v12, %v6034_v21 }
 0x903   :  { %7744 = vmatprep.subr.msk.bf16.mxu1 %vm7743_vm12, %v11922_v19 }
 0x905   :  { %4536 = vmatmul.mubr.f32.gmra.mrb[36].mxu1 %v10945_v32 }
 0x906   :  { %4540 = vmatprep.mubr.f32.mxu1 %v10947_v47  ;;  %7746 = vmatpush3.bf16.msk.msra.mxu1 %vm7743_vm12, %v11922_v19  ;;  %vm7763_vm12 = vmpackc.low %vm4995_vm10, %vm4994_vm9 }
 0x907   :  { %7748 = vmatprep.subr.msk.bf16.mxu1 %vm7747_vm15, %v11922_v19 }
 0x909   :  { %4541 = vmatmul.mubr.f32.gmra.mrb[38].mxu1 %v10951_v41 }
 0x90a   :  { %4545 = vmatprep.mubr.f32.mxu1 %v10953_v40  ;;  %7750 = vmatpush3.bf16.msk.msra.mxu1 %vm7747_vm15, %v11922_v19 }
 0x90b   :  { %7752 = vmatprep.subr.msk.bf16.mxu1 %vm7751_vm3, %v11922_v19 }
 0x90d   :  { %4546 = vmatmul.mubr.f32.gmra.mrb[40].mxu1 %v10957_v23 }
 0x90e   :  { %4550 = vmatprep.mubr.f32.mxu1 %v10959_v45  ;;  %7754 = vmatpush3.bf16.msk.msra.mxu1 %vm7751_vm3, %v11922_v19 }
 0x90f   :  { %7756 = vmatprep.subr.msk.bf16.mxu1 %vm7755_vm6, %v11922_v19 }
 0x911   :  { %4551 = vmatmul.mubr.f32.gmra.mrb[42].mxu1 %v10963_v54 }
 0x912   :  { %4555 = vmatprep.mubr.f32.mxu1 %v10965_v7  ;;  %7758 = vmatpush3.bf16.msk.msra.mxu1 %vm7755_vm6, %v11922_v19 }
 0x913   :  { %7760 = vmatprep.subr.msk.bf16.mxu1 %vm7759_vm11, %v11922_v19 }
 0x915   :  { %4556 = vmatmul.mubr.f32.gmra.mrb[44].mxu1 %v10969_v49  ;;  %v10989_v49 = vld [vmem:[#allocation8 + $0xa8] sm:$0xff] }
 0x916   :  { %4560 = vmatprep.mubr.f32.mxu1 %v10971_v37  ;;  %12339 = vst [vmem:[#allocation43_spill] sm:$0xff] %v10989_v49  ;;  %v10993_v37 = vld [vmem:[#allocation8 + $0xa0] sm:$0xff]  ;;  %7762 = vmatpush3.bf16.msk.msra.mxu1 %vm7759_vm11, %v11922_v19 }
 0x917   :  { %12340 = vst [vmem:[#allocation44_spill] sm:$0xff] %v10993_v37  ;;  %7764 = vmatprep.subr.msk.bf16.mxu1 %vm7763_vm12, %v11922_v19 }
 0x919   :  { %4561 = vmatmul.mubr.f32.gmra.mrb[46].mxu1 %v10975_v44  ;;  %v10995_v44 = vld [vmem:[#allocation8 + $0xb8] sm:$0xff] }
 0x91a   :  { %4565 = vmatprep.mubr.f32.mxu1 %v10977_v42  ;;  %12341 = vst [vmem:[#allocation45_spill] sm:$0xff] %v10995_v44  ;;  %v10999_v42 = vld [vmem:[#allocation8 + $0xb0] sm:$0xff]  ;;  %7766 = vmatpush3.bf16.msk.msra.mxu1 %vm7763_vm12, %v11922_v19 }
 0x91b   :  { %12342 = vst [vmem:[#allocation46_spill] sm:$0xff] %v10999_v42 }
 0x91d   :  { %4566 = vmatmul.mubr.f32.gmra.mrb[48].mxu1 %v10981_v5  ;;  %v11001_v5 = vld [vmem:[#allocation8 + $0xc8] sm:$0xff] }
 0x91e   :  { %4570 = vmatprep.mubr.f32.mxu1 %v10983_v56  ;;  %12343 = vst [vmem:[#allocation47_spill] sm:$0xff] %v11001_v5  ;;  %v11005_v56 = vld [vmem:[#allocation8 + $0xc0] sm:$0xff] }
 0x91f   :  { %12344 = vst [vmem:[#allocation48_spill] sm:$0xff] %v11005_v56 }
 0x921   :  { %4571 = vmatmul.mubr.f32.gmra.mrb[50].mxu1 %v10987_v38  ;;  %v11007_v38 = vld [vmem:[#allocation8 + $0xd8] sm:$0xff] }
 0x922   :  { %4575 = vmatprep.mubr.f32.mxu1 %v10989_v49  ;;  %12345 = vst [vmem:[#allocation49_spill] sm:$0xff] %v11007_v38  ;;  %v11011_v49 = vld [vmem:[#allocation8 + $0xd0] sm:$0xff] }
 0x923   :  { %12346 = vst [vmem:[#allocation50_spill] sm:$0xff] %v11011_v49 }
 0x925   :  { %4576 = vmatmul.mubr.f32.gmra.mrb[52].mxu1 %v10993_v37  ;;  %v11013_v37 = vld [vmem:[#allocation8 + $0xe8] sm:$0xff] }
 0x926   :  { %4580 = vmatprep.mubr.f32.mxu1 %v10995_v44  ;;  %12347 = vst [vmem:[#allocation51_spill] sm:$0xff] %v11013_v37  ;;  %v11017_v44 = vld [vmem:[#allocation8 + $0xe0] sm:$0xff] }
 0x927   :  { %12348 = vst [vmem:[#allocation52_spill] sm:$0xff] %v11017_v44 }
 0x929   :  { %4581 = vmatmul.mubr.f32.gmra.mrb[54].mxu1 %v10999_v42  ;;  %v11019_v42 = vld [vmem:[#allocation8 + $0xf8] sm:$0xff] }
 0x92a   :  { %4585 = vmatprep.mubr.f32.mxu1 %v11001_v5  ;;  %12349 = vst [vmem:[#allocation53_spill] sm:$0xff] %v11019_v42  ;;  %v11023_v5 = vld [vmem:[#allocation8 + $0xf0] sm:$0xff] }
 0x92b   :  { %12350 = vst [vmem:[#allocation54_spill] sm:$0xff] %v11023_v5 }
 0x92d   :  { %4586 = vmatmul.mubr.f32.gmra.mrb[56].mxu1 %v11005_v56  ;;  %v11025_v56 = vld [vmem:[#allocation8 + $0x108] sm:$0xff] }
 0x92e   :  { %4590 = vmatprep.mubr.f32.mxu1 %v11007_v38  ;;  %12351 = vst [vmem:[#allocation55_spill] sm:$0xff] %v11025_v56  ;;  %v11029_v38 = vld [vmem:[#allocation8 + $0x100] sm:$0xff] }
 0x92f   :  { %12352 = vst [vmem:[#allocation56_spill] sm:$0xff] %v11029_v38 }
 0x931   :  { %4591 = vmatmul.mubr.f32.gmra.mrb[58].mxu1 %v11011_v49  ;;  %v11031_v49 = vld [vmem:[#allocation8 + $0x118] sm:$0xff] }
 0x932   :  { %4595 = vmatprep.mubr.f32.mxu1 %v11013_v37  ;;  %12353 = vst [vmem:[#allocation57_spill] sm:$0xff] %v11031_v49  ;;  %v11035_v37 = vld [vmem:[#allocation8 + $0x110] sm:$0xff] }
 0x933   :  { %12354 = vst [vmem:[#allocation58_spill] sm:$0xff] %v11035_v37 }
 0x935   :  { %4596 = vmatmul.mubr.f32.gmra.mrb[60].mxu1 %v11017_v44  ;;  %v11037_v44 = vld [vmem:[#allocation8 + $0x128] sm:$0xff] }
 0x936   :  { %4600 = vmatprep.mubr.f32.mxu1 %v11019_v42  ;;  %12355 = vst [vmem:[#allocation59_spill] sm:$0xff] %v11037_v44  ;;  %v11041_v42 = vld [vmem:[#allocation8 + $0x120] sm:$0xff] }
 0x937   :  { %12356 = vst [vmem:[#allocation60_spill] sm:$0xff] %v11041_v42 }
 0x939   :  { %4601 = vmatmul.mubr.f32.gmra.mrb[62].mxu1 %v11023_v5  ;;  %v11043_v5 = vld [vmem:[#allocation8 + $0x138] sm:$0xff] }
 0x93a   :  { %4605 = vmatprep.mubr.f32.mxu1 %v11025_v56  ;;  %12357 = vst [vmem:[#allocation61_spill] sm:$0xff] %v11043_v5  ;;  %v11047_v56 = vld [vmem:[#allocation8 + $0x130] sm:$0xff] }
 0x93b   :  { %12358 = vst [vmem:[#allocation62_spill] sm:$0xff] %v11047_v56 }
 0x93d   :  { %4606 = vmatmul.mubr.f32.gmra.mrb[64].mxu1 %v11029_v38  ;;  %v11049_v38 = vld [vmem:[#allocation8 + $0x148] sm:$0xff] }
 0x93e   :  { %4610 = vmatprep.mubr.f32.mxu1 %v11031_v49  ;;  %12359 = vst [vmem:[#allocation63_spill] sm:$0xff] %v11049_v38  ;;  %v11053_v49 = vld [vmem:[#allocation8 + $0x140] sm:$0xff] }
 0x93f   :  { %12360 = vst [vmem:[#allocation64_spill] sm:$0xff] %v11053_v49 }
 0x941   :  { %4611 = vmatmul.mubr.f32.gmra.mrb[66].mxu1 %v11035_v37  ;;  %v11055_v37 = vld [vmem:[#allocation8 + $0x158] sm:$0xff] }
 0x942   :  { %4615 = vmatprep.mubr.f32.mxu1 %v11037_v44  ;;  %12361 = vst [vmem:[#allocation65_spill] sm:$0xff] %v11055_v37  ;;  %v11059_v44 = vld [vmem:[#allocation8 + $0x150] sm:$0xff] }
 0x943   :  { %12362 = vst [vmem:[#allocation66_spill] sm:$0xff] %v11059_v44 }
 0x945   :  { %4616 = vmatmul.mubr.f32.gmra.mrb[68].mxu1 %v11041_v42  ;;  %v11061_v42 = vld [vmem:[#allocation8 + $0x168] sm:$0xff] }
 0x946   :  { %4620 = vmatprep.mubr.f32.mxu1 %v11043_v5  ;;  %12363 = vst [vmem:[#allocation67_spill] sm:$0xff] %v11061_v42  ;;  %v11063_v5 = vpop.f32.mrb[32].mxu0 }
 0x947   :  { %v11065_v7 = vpop.f32.mrb[33].mxu0 }
 0x949   :  { %4621 = vmatmul.mubr.f32.gmra.mrb[70].mxu1 %v11047_v56  ;;  %v11071_v56 = vld [vmem:[#allocation8 + $0x178] sm:$0xff] }
 0x94a   :  { %4625 = vmatprep.mubr.f32.mxu1 %v11049_v38  ;;  %v11069_v38 = vld [vmem:[#allocation8 + $0x160] sm:$0xff]  ;;  %12365 = vst [vmem:[#allocation69_spill] sm:$0xff] %v11071_v56 }
 0x94b   :  { %12364 = vst [vmem:[#allocation68_spill] sm:$0xff] %v11069_v38 }
 0x94d   :  { %4626 = vmatmul.mubr.f32.gmra.mrb[72].mxu1 %v11053_v49  ;;  %v11077_v49 = vld [vmem:[#allocation8 + $0x188] sm:$0xff] }
 0x94e   :  { %4630 = vmatprep.mubr.f32.mxu1 %v11055_v37  ;;  %v11075_v37 = vld [vmem:[#allocation8 + $0x170] sm:$0xff]  ;;  %12367 = vst [vmem:[#allocation71_spill] sm:$0xff] %v11077_v49 }
 0x94f   :  { %12366 = vst [vmem:[#allocation70_spill] sm:$0xff] %v11075_v37 }
 0x950   :  { %v11079_v54 = vpop.f32.mrb[34].mxu0 }
 0x951   :  { %4631 = vmatmul.mubr.f32.gmra.mrb[74].mxu1 %v11059_v44  ;;  %v11081_v45 = vpop.f32.mrb[35].mxu0  ;;  %v11087_v44 = vld [vmem:[#allocation8 + $0x198] sm:$0xff] }
 0x952   :  { %4635 = vmatprep.mubr.f32.mxu1 %v11061_v42  ;;  %v11085_v42 = vld [vmem:[#allocation8 + $0x180] sm:$0xff]  ;;  %12369 = vst [vmem:[#allocation73_spill] sm:$0xff] %v11087_v44 }
 0x953   :  { %12368 = vst [vmem:[#allocation72_spill] sm:$0xff] %v11085_v42 }
 0x955   :  { %4636 = vmatmul.mubr.f32.gmra.mrb[76].mxu1 %v11069_v38  ;;  %v11093_v38 = vld [vmem:[#allocation8 + $0x1a8] sm:$0xff]  ;;  %v11095_v23 = vpop.f32.mrb[36].mxu0 }
 0x956   :  { %4640 = vmatprep.mubr.f32.mxu1 %v11071_v56  ;;  %v11091_v56 = vld [vmem:[#allocation8 + $0x190] sm:$0xff]  ;;  %12371 = vst [vmem:[#allocation75_spill] sm:$0xff] %v11093_v38  ;;  %v11097_v40 = vpop.f32.mrb[37].mxu0 }
 0x957   :  { %12370 = vst [vmem:[#allocation74_spill] sm:$0xff] %v11091_v56 }
 0x959   :  { %4641 = vmatmul.mubr.f32.gmra.mrb[78].mxu1 %v11075_v37  ;;  %v11103_v37 = vld [vmem:[#allocation8 + $0x1b8] sm:$0xff] }
 0x95a   :  { %4645 = vmatprep.mubr.f32.mxu1 %v11077_v49  ;;  %v11101_v49 = vld [vmem:[#allocation8 + $0x1a0] sm:$0xff]  ;;  %12373 = vst [vmem:[#allocation77_spill] sm:$0xff] %v11103_v37 }
 0x95b   :  { %12372 = vst [vmem:[#allocation76_spill] sm:$0xff] %v11101_v49  ;;  %v11111_v41 = vpop.f32.mrb[38].mxu0 }
 0x95c   :  { %v11113_v47 = vpop.f32.mrb[39].mxu0 }
 0x95d   :  { %4646 = vmatmul.mubr.f32.gmra.mrb[80].mxu1 %v11085_v42  ;;  %v11109_v42 = vld [vmem:[#allocation8 + $0x1c8] sm:$0xff] }
 0x95e   :  { %4650 = vmatprep.mubr.f32.mxu1 %v11087_v44  ;;  %v11107_v44 = vld [vmem:[#allocation8 + $0x1b0] sm:$0xff]  ;;  %12375 = vst [vmem:[#allocation79_spill] sm:$0xff] %v11109_v42 }
 0x95f   :  { %12374 = vst [vmem:[#allocation78_spill] sm:$0xff] %v11107_v44 }
 0x961   :  { %4651 = vmatmul.mubr.f32.gmra.mrb[82].mxu1 %v11091_v56  ;;  %v11119_v56 = vld [vmem:[#allocation8 + $0x1d8] sm:$0xff] }
 0x962   :  { %4655 = vmatprep.mubr.f32.mxu1 %v11093_v38  ;;  %v11117_v38 = vld [vmem:[#allocation8 + $0x1c0] sm:$0xff]  ;;  %12377 = vst [vmem:[#allocation81_spill] sm:$0xff] %v11119_v56 }
 0x963   :  { %12376 = vst [vmem:[#allocation80_spill] sm:$0xff] %v11117_v38 }
 0x965   :  { %4656 = vmatmul.mubr.f32.gmra.mrb[84].mxu1 %v11101_v49  ;;  %v11125_v49 = vld [vmem:[#allocation8 + $0x1e8] sm:$0xff] }
 0x966   :  { %4660 = vmatprep.mubr.f32.mxu1 %v11103_v37  ;;  %v11123_v37 = vld [vmem:[#allocation8 + $0x1d0] sm:$0xff]  ;;  %12379 = vst [vmem:[#allocation20_spill] sm:$0xff] %v11125_v49 }
 0x967   :  { %12378 = vst [vmem:[#allocation19_spill] sm:$0xff] %v11123_v37 }
 0x968   :  { %v11127_v32 = vpop.f32.mrb[40].mxu0 }
 0x969   :  { %4661 = vmatmul.mubr.f32.gmra.mrb[86].mxu1 %v11107_v44  ;;  %v11129_v13 = vpop.f32.mrb[41].mxu0  ;;  %v11135_v44 = vld [vmem:[#allocation8 + $0x1f8] sm:$0xff] }
 0x96a   :  { %4665 = vmatprep.mubr.f32.mxu1 %v11109_v42  ;;  %v11133_v42 = vld [vmem:[#allocation8 + $0x1e0] sm:$0xff]  ;;  %12381 = vst [vmem:[#allocation22_spill] sm:$0xff] %v11135_v44 }
 0x96b   :  { %12380 = vst [vmem:[#allocation21_spill] sm:$0xff] %v11133_v42 }
 0x96d   :  { %4666 = vmatmul.mubr.f32.gmra.mrb[88].mxu1 %v11117_v38 }
 0x96e   :  { %4670 = vmatprep.mubr.f32.mxu1 %v11119_v56  ;;  %v11139_v56 = vld [vmem:[#allocation8 + $0x1f0] sm:$0xff] }
 0x96f   :  { %12382 = vst [vmem:[#allocation23_spill] sm:$0xff] %v11139_v56 }
 0x970   :  { %v11141_v38 = vpop.f32.mrb[42].mxu0 }
 0x971   :  { %4671 = vmatmul.mubr.f32.gmra.mrb[90].mxu1 %v11123_v37  ;;  %v11143_v14 = vpop.f32.mrb[43].mxu0 }
 0x972   :  { %4675 = vmatprep.mubr.f32.mxu1 %v11125_v49 }
 0x975   :  { %4676 = vmatmul.mubr.f32.gmra.mrb[92].mxu1 %v11133_v42 }
 0x976   :  { %4680 = vmatprep.mubr.f32.mxu1 %v11135_v44 }
 0x978   :  { %v11147_v37 = vpop.f32.mrb[44].mxu0 }
 0x979   :  { %4681 = vmatmul.mubr.f32.gmra.mrb[94].mxu1 %v11139_v56  ;;  %v11149_v49 = vpop.f32.mrb[45].mxu0 }
 0x97a   :  { %7079 = vmatprep.mubr.f32.mxu1 %v10775_v35 }
 0x980   :  { %v11151_v4 = vpop.f32.mrb[46].mxu0 }
 0x981   :  { %v11153_v62 = vpop.f32.mrb[47].mxu0 }
 0x988   :  { %v11155_v42 = vpop.f32.mrb[48].mxu0 }
 0x989   :  { %v11157_v44 = vpop.f32.mrb[49].mxu0 }
 0x990   :  { %v11159_v46 = vpop.f32.mrb[50].mxu0 }
 0x991   :  { %12383 = vst [vmem:[#allocation24_spill] sm:$0xff] %v11159_v46  ;;  %v11161_v60 = vpop.f32.mrb[51].mxu0 }
 0x992   :  { %12384 = vst [vmem:[#allocation25_spill] sm:$0xff] %v11161_v60 }
 0x998   :  { %v11163_v25 = vpop.f32.mrb[52].mxu0 }
 0x999   :  { %v11165_v56 = vpop.f32.mrb[53].mxu0 }
 0x9a0   :  { %v11167_v35 = vpop.f32.mrb[54].mxu0 }
 0x9a1   :  { %12385 = vst [vmem:[#allocation26_spill] sm:$0xff] %v11167_v35  ;;  %v11169_v61 = vpop.f32.mrb[55].mxu0 }
 0x9a2   :  { %12386 = vst [vmem:[#allocation82_spill] sm:$0xff] %v11169_v61 }
 0x9a8   :  { %v11171_v18 = vpop.f32.mrb[56].mxu0 }
 0x9a9   :  { %v11173_v50 = vpop.f32.mrb[57].mxu0 }
 0x9b0   :  { %v11177_v46 = vpop.f32.mrb[58].mxu0 }
 0x9b1   :  { %v11179_v60 = vpop.f32.mrb[59].mxu0 }
 0x9b8   :  { %v11183_v35 = vpop.f32.mrb[60].mxu0 }
 0x9b9   :  { %v11185_v61 = vpop.f32.mrb[61].mxu0 }
 0x9bc   :  { %v11189_v63 = vpop.f32.mrb[62].mxu0 }
 0x9bd   :  { %12387 = vst [vmem:[#allocation83_spill] sm:$0xff] %v11189_v63  ;;  %v11192_v0 = vpop.f32.mrb[63].mxu0 }
 0x9be   :  { %12388 = vst [vmem:[#allocation84_spill] sm:$0xff] %v11192_v0 }
 0x9d0   :  { %v4527_v53 = vpop.f32.mrb[32].mxu1 }
 0x9d1   :  { %v4753_v30 = vadd.f32 %v11065_v7, %v4527_v53  ;;  %v4529_v63 = vpop.f32.mrb[33].mxu1 }
 0x9d2   :  { %v8348_v63 = vld [vmem:[#allocation6 + $0x8] sm:$0xff] }
 0x9d3   :  { %8196 = vtanh.f32 %v4753_v30  ;;  %7080 = vmatmul.mubr.f32.vlgmr.msra.gmra.mrb[96].mxu1 %v8348_v63 }
 0x9d4   :  { %v4532_v20 = vpop.f32.mrb[34].mxu1 }
 0x9d5   :  { %v4758_v51 = vadd.f32 %v11063_v5, %v4532_v20  ;;  %v4534_v0 = vpop.f32.mrb[35].mxu1 }
 0x9d6   :  { %v8349_v0 = vld [vmem:[#allocation6 + $0x10] sm:$0xff] }
 0x9d7   :  { %8198 = vtanh.f32 %v4758_v51  ;;  %7082 = vmatprep.mubr.f32.mxu1 %v8349_v0 }
 0x9d8   :  { %v4537_v24 = vpop.f32.mrb[36].mxu1 }
 0x9d9   :  { %v4763_v29 = vadd.f32 %v11081_v45, %v4537_v24  ;;  %v4539_v7 = vpop.f32.mrb[37].mxu1 }
 0x9db   :  { %8200 = vtanh.f32 %v4763_v29  ;;  %v8350_v29 = vld [vmem:[#allocation6 + $0x18] sm:$0xff] }
 0x9dc   :  { %v4542_v2 = vpop.f32.mrb[38].mxu1  ;;  %7083 = vmatmul.mubr.f32.gmra.mrb[98].mxu1 %v8350_v29 }
 0x9dd   :  { %v8197_v22 = vpop.eup %8196  ;;  %v4768_v27 = vadd.f32 %v11079_v54, %v4542_v2  ;;  %v4544_v48 = vpop.f32.mrb[39].mxu1 }
 0x9de   :  { %4943 = vst.msk [vmem:[#allocation2] sm:$0xff] %vm60_vm0, %v8197_v22 }
 0x9df   :  { %8202 = vtanh.f32 %v4768_v27 }
 0x9e0   :  { %v4547_v10 = vpop.f32.mrb[40].mxu1 }
 0x9e1   :  { %v8199_v52 = vpop.eup %8198  ;;  %v4773_v12 = vadd.f32 %v11097_v40, %v4547_v10  ;;  %v4549_v1 = vpop.f32.mrb[41].mxu1 }
 0x9e2   :  { %4944 = vst.msk [vmem:[#allocation2 + $0x8] sm:$0xff] %vm60_vm0, %v8199_v52 }
 0x9e3   :  { %8204 = vtanh.f32 %v4773_v12 }
 0x9e4   :  { %v4552_v21 = vpop.f32.mrb[42].mxu1 }
 0x9e5   :  { %v8201_v45 = vpop.eup %8200  ;;  %v4778_v54 = vadd.f32 %v11095_v23, %v4552_v21  ;;  %v4554_v5 = vpop.f32.mrb[43].mxu1  ;;  %v5124_v51 = vld [vmem:[#allocation2] sm:$0xff]  ;;  %v8351_v23 = vld [vmem:[#allocation6 + $0x20] sm:$0xff] }
 0x9e6   :  { %4945 = vst.msk [vmem:[#allocation2 + $0x10] sm:$0xff] %vm60_vm0, %v8201_v45  ;;  %7085 = vmatprep.mubr.f32.mxu1 %v8351_v23 }
 0x9e7   :  { %8206 = vtanh.f32 %v4778_v54 }
 0x9e8   :  { %v4557_v53 = vpop.f32.mrb[44].mxu1 }
 0x9e9   :  { %v8203_v40 = vpop.eup %8202  ;;  %v4783_v30 = vadd.f32 %v11113_v47, %v4557_v53  ;;  %v4559_v20 = vpop.f32.mrb[45].mxu1  ;;  %v5125_v24 = vld [vmem:[#allocation2 + $0x8] sm:$0xff]  ;;  %v8352_v47 = vld [vmem:[#allocation6 + $0x28] sm:$0xff] }
 0x9ea   :  { %4946 = vst.msk [vmem:[#allocation2 + $0x18] sm:$0xff] %vm60_vm0, %v8203_v40  ;;  %v7688_v19 = vpack.c.bf16 %v5125_v24, %v5124_v51  ;;  %7086 = vmatmul.mubr.f32.gmra.mrb[100].mxu1 %v8352_v47 }
 0x9eb   :  { %8208 = vtanh.f32 %v4783_v30  ;;  %7088 = vmatprep.mubr.f32.mxu1 %v10796_v36 }
 0x9ec   :  { %v4562_v7 = vpop.f32.mrb[46].mxu1  ;;  %7689 = vmatpush1.bf16.msra.mxu0 %v7688_v19 }
 0x9ed   :  { %v8205_v2 = vpop.eup %8204  ;;  %v4788_v22 = vadd.f32 %v11111_v41, %v4562_v7  ;;  %v4564_v27 = vpop.f32.mrb[47].mxu1  ;;  %7690 = vmatprep.subr.bf16.mxu0 %v11923_v59  ;;  %v5126_v1 = vld [vmem:[#allocation2 + $0x10] sm:$0xff] }
 0x9ee   :  { %4947 = vst.msk [vmem:[#allocation2 + $0x20] sm:$0xff] %vm60_vm0, %v8205_v2  ;;  %7089 = vmatmul.mubr.f32.gmra.mrb[102].mxu1 %v10799_v43 }
 0x9ef   :  { %8210 = vtanh.f32 %v4788_v22  ;;  %7091 = vmatprep.mubr.f32.mxu1 %v10807_v6 }
 0x9f0   :  { %v4567_v48 = vpop.f32.mrb[48].mxu1 }
 0x9f1   :  { %v8207_v10 = vpop.eup %8206  ;;  %v4793_v52 = vadd.f32 %v11129_v13, %v4567_v48  ;;  %v4569_v12 = vpop.f32.mrb[49].mxu1  ;;  %v5127_v21 = vld [vmem:[#allocation2 + $0x18] sm:$0xff] }
 0x9f2   :  { %4948 = vst.msk [vmem:[#allocation2 + $0x28] sm:$0xff] %vm60_vm0, %v8207_v10  ;;  %v7691_v41 = vpack.c.bf16 %v5127_v21, %v5126_v1  ;;  %7092 = vmatmul.mubr.f32.gmra.mrb[104].mxu1 %v10810_v15  ;;  %v12390_v1 = vld [vmem:[#allocation30_spill] sm:$0xff] }
 0x9f3   :  { %8212 = vtanh.f32 %v4793_v52  ;;  %7094 = vmatprep.mubr.f32.mxu1 %v10818_v11 }
 0x9f4   :  { %v4572_v45 = vpop.f32.mrb[50].mxu1  ;;  %7692 = vmatpush1.bf16.msra.mxu0 %v7691_v41  ;;  %v12391_v41 = vld [vmem:[#allocation25_spill] sm:$0xff] }
 0x9f5   :  { %v8209_v54 = vpop.eup %8208  ;;  %v4798_v36 = vadd.f32 %v11127_v32, %v4572_v45  ;;  %v4574_v5 = vpop.f32.mrb[51].mxu1  ;;  %7693 = vmatprep.subr.bf16.mxu0 %v11923_v59  ;;  %v5128_v0 = vld [vmem:[#allocation2 + $0x20] sm:$0xff] }
 0x9f6   :  { %4949 = vst.msk [vmem:[#allocation2 + $0x30] sm:$0xff] %vm60_vm0, %v8209_v54  ;;  %7095 = vmatmul.mubr.f32.gmra.mrb[106].mxu1 %v10821_v17  ;;  %v12392_v5 = vld [vmem:[#allocation86_spill] sm:$0xff] }
 0x9f7   :  { %8214 = vtanh.f32 %v4798_v36  ;;  %7097 = vmatprep.mubr.f32.mxu1 %v10829_v58 }
 0x9f8   :  { %v4577_v13 = vpop.f32.mrb[52].mxu1 }
 0x9f9   :  { %v8211_v43 = vpop.eup %8210  ;;  %v4803_v63 = vadd.f32 %v11143_v14, %v4577_v13  ;;  %v4579_v6 = vpop.f32.mrb[53].mxu1  ;;  %v5129_v53 = vld [vmem:[#allocation2 + $0x28] sm:$0xff] }
 0x9fa   :  { %4950 = vst.msk [vmem:[#allocation2 + $0x38] sm:$0xff] %vm60_vm0, %v8211_v43  ;;  %v7694_v32 = vpack.c.bf16 %v5129_v53, %v5128_v0  ;;  %7098 = vmatmul.mubr.f32.gmra.mrb[108].mxu1 %v10832_v31  ;;  %v12393_v13 = vld [vmem:[#allocation92_spill] sm:$0xff] }
 0x9fb   :  { %8216 = vtanh.f32 %v4803_v63  ;;  %7100 = vmatprep.mubr.f32.mxu1 %v10840_v55  ;;  %v12394_v6 = vld [vmem:[#allocation24_spill] sm:$0xff] }
 0x9fc   :  { %v4582_v40 = vpop.f32.mrb[54].mxu1  ;;  %7695 = vmatpush1.bf16.msra.mxu0 %v7694_v32  ;;  %v12395_v32 = vld [vmem:[#allocation31_spill] sm:$0xff] }
 0x9fd   :  { %v8213_v15 = vpop.eup %8212  ;;  %v4808_v11 = vadd.f32 %v11141_v38, %v4582_v40  ;;  %v4584_v30 = vpop.f32.mrb[55].mxu1  ;;  %7696 = vmatprep.subr.bf16.mxu0 %v11923_v59  ;;  %v5130_v51 = vld [vmem:[#allocation2 + $0x30] sm:$0xff] }
 0x9fe   :  { %4951 = vst.msk [vmem:[#allocation2 + $0x40] sm:$0xff] %vm60_vm0, %v8213_v15  ;;  %7101 = vmatmul.mubr.f32.gmra.mrb[110].mxu1 %v10843_v39  ;;  %v12396_v40 = vld [vmem:[#allocation85_spill] sm:$0xff] }
 0x9ff   :  { %8218 = vtanh.f32 %v4808_v11  ;;  %7103 = vmatprep.mubr.f32.mxu1 %v10851_v34 }
 0xa00   :  { %v4587_v14 = vpop.f32.mrb[56].mxu1 }
 0xa01   :  { %v8215_v17 = vpop.eup %8214  ;;  %v4813_v20 = vadd.f32 %v11149_v49, %v4587_v14  ;;  %v4589_v58 = vpop.f32.mrb[57].mxu1  ;;  %v5131_v24 = vld [vmem:[#allocation2 + $0x38] sm:$0xff] }
 0xa02   :  { %4952 = vst.msk [vmem:[#allocation2 + $0x48] sm:$0xff] %vm60_vm0, %v8215_v17  ;;  %v7697_v38 = vpack.c.bf16 %v5131_v24, %v5130_v51  ;;  %7104 = vmatmul.mubr.f32.gmra.mrb[112].mxu1 %v10854_v57  ;;  %v12397_v51 = vld [vmem:[#allocation32_spill] sm:$0xff] }
 0xa03   :  { %8220 = vtanh.f32 %v4813_v20  ;;  %7106 = vmatprep.mubr.f32.mxu1 %v10862_v26 }
 0xa04   :  { %v4592_v19 = vpop.f32.mrb[58].mxu1  ;;  %7698 = vmatpush1.bf16.msra.mxu0 %v7697_v38 }
 0xa05   :  { %v8217_v31 = vpop.eup %8216  ;;  %v4818_v55 = vadd.f32 %v11147_v37, %v4592_v19  ;;  %v4594_v29 = vpop.f32.mrb[59].mxu1  ;;  %7699 = vmatprep.subr.bf16.mxu0 %v11923_v59  ;;  %v5132_v7 = vld [vmem:[#allocation2 + $0x40] sm:$0xff] }
 0xa06   :  { %4953 = vst.msk [vmem:[#allocation2 + $0x50] sm:$0xff] %vm60_vm0, %v8217_v31  ;;  %7107 = vmatmul.mubr.f32.gmra.mrb[114].mxu1 %v10865_v16  ;;  %v12398_v29 = vld [vmem:[#allocation82_spill] sm:$0xff] }
 0xa07   :  { %8222 = vtanh.f32 %v4818_v55  ;;  %7109 = vmatprep.mubr.f32.mxu1 %v10873_v9 }
 0xa08   :  { %v4597_v49 = vpop.f32.mrb[60].mxu1 }
 0xa09   :  { %v8219_v39 = vpop.eup %8218  ;;  %v4823_v23 = vadd.f32 %v11153_v62, %v4597_v49  ;;  %v4599_v34 = vpop.f32.mrb[61].mxu1  ;;  %v5133_v2 = vld [vmem:[#allocation2 + $0x48] sm:$0xff] }
 0xa0a   :  { %4954 = vst.msk [vmem:[#allocation2 + $0x58] sm:$0xff] %vm60_vm0, %v8219_v39  ;;  %v7700_v37 = vpack.c.bf16 %v5133_v2, %v5132_v7  ;;  %7110 = vmatmul.mubr.f32.gmra.mrb[116].mxu1 %v10876_v3 }
 0xa0b   :  { %8224 = vtanh.f32 %v4823_v23  ;;  %7112 = vmatprep.mubr.f32.mxu1 %v10884_v8 }
 0xa0c   :  { %v4602_v22 = vpop.f32.mrb[62].mxu1  ;;  %7701 = vmatpush1.bf16.msra.mxu0 %v7700_v37  ;;  %v12399_v37 = vld [vmem:[#allocation26_spill] sm:$0xff] }
 0xa0d   :  { %v8221_v57 = vpop.eup %8220  ;;  %v4828_v26 = vadd.f32 %v11151_v4, %v4602_v22  ;;  %v4604_v27 = vpop.f32.mrb[63].mxu1  ;;  %7702 = vmatprep.subr.bf16.mxu0 %v11923_v59  ;;  %v5134_v48 = vld [vmem:[#allocation2 + $0x50] sm:$0xff] }
 0xa0e   :  { %4955 = vst.msk [vmem:[#allocation2 + $0x60] sm:$0xff] %vm60_vm0, %v8221_v57  ;;  %7113 = vmatmul.mubr.f32.gmra.mrb[118].mxu1 %v10887_v33 }
 0xa0f   :  { %8226 = vtanh.f32 %v4828_v26  ;;  %7115 = vmatprep.mubr.f32.mxu1 %v10895_v28 }
 0xa10   :  { %v4607_v62 = vpop.f32.mrb[64].mxu1 }
 0xa11   :  { %v8223_v16 = vpop.eup %8222  ;;  %v4833_v47 = vadd.f32 %v11157_v44, %v4607_v62  ;;  %v4609_v9 = vpop.f32.mrb[65].mxu1  ;;  %v5135_v10 = vld [vmem:[#allocation2 + $0x58] sm:$0xff]  ;;  %v12389_v44 = vld [vmem:[#allocation29_spill] sm:$0xff] }
 0xa12   :  { %4956 = vst.msk [vmem:[#allocation2 + $0x68] sm:$0xff] %vm60_vm0, %v8223_v16  ;;  %v7703_v4 = vpack.c.bf16 %v5135_v10, %v5134_v48  ;;  %7116 = vmatmul.mubr.f32.gmra.mrb[120].mxu1 %v12389_v44 }
 0xa13   :  { %8228 = vtanh.f32 %v4833_v47  ;;  %7118 = vmatprep.mubr.f32.mxu1 %v12390_v1 }
 0xa14   :  { %v4612_v52 = vpop.f32.mrb[66].mxu1  ;;  %7704 = vmatpush1.bf16.msra.mxu0 %v7703_v4 }
 0xa15   :  { %v8225_v3 = vpop.eup %8224  ;;  %v4838_v8 = vadd.f32 %v11155_v42, %v4612_v52  ;;  %v4614_v12 = vpop.f32.mrb[67].mxu1  ;;  %7705 = vmatprep.subr.bf16.mxu0 %v11923_v59  ;;  %v5136_v54 = vld [vmem:[#allocation2 + $0x60] sm:$0xff] }
 0xa16   :  { %4957 = vst.msk [vmem:[#allocation2 + $0x70] sm:$0xff] %vm60_vm0, %v8225_v3  ;;  %7119 = vmatmul.mubr.f32.gmra.mrb[122].mxu1 %v12392_v5 }
 0xa17   :  { %8230 = vtanh.f32 %v4838_v8  ;;  %7121 = vmatprep.mubr.f32.mxu1 %v12393_v13 }
 0xa18   :  { %v4617_v21 = vpop.f32.mrb[68].mxu1 }
 0xa19   :  { %v8227_v33 = vpop.eup %8226  ;;  %v4843_v45 = vadd.f32 %v12391_v41, %v4617_v21  ;;  %v4619_v28 = vpop.f32.mrb[69].mxu1  ;;  %v5137_v36 = vld [vmem:[#allocation2 + $0x68] sm:$0xff] }
 0xa1a   :  { %4958 = vst.msk [vmem:[#allocation2 + $0x78] sm:$0xff] %vm60_vm0, %v8227_v33  ;;  %v7706_v42 = vpack.c.bf16 %v5137_v36, %v5136_v54  ;;  %7122 = vmatmul.mubr.f32.gmra.mrb[124].mxu1 %v12395_v32  ;;  %v12400_v32 = vld [vmem:[#allocation84_spill] sm:$0xff] }
 0xa1b   :  { %8232 = vtanh.f32 %v4843_v45  ;;  %7124 = vmatprep.mubr.f32.mxu1 %v12396_v40 }
 0xa1c   :  { %v4622_v43 = vpop.f32.mrb[70].mxu1  ;;  %7707 = vmatpush1.bf16.msra.mxu0 %v7706_v42 }
 0xa1d   :  { %v8229_v63 = vpop.eup %8228  ;;  %v4848_v0 = vadd.f32 %v12394_v6, %v4622_v43  ;;  %v4624_v53 = vpop.f32.mrb[71].mxu1  ;;  %7708 = vmatprep.subr.bf16.mxu0 %v11923_v59  ;;  %v5138_v17 = vld [vmem:[#allocation2 + $0x70] sm:$0xff] }
 0xa1e   :  { %4959 = vst.msk [vmem:[#allocation2 + $0x80] sm:$0xff] %vm60_vm0, %v8229_v63  ;;  %7125 = vmatmul.mubr.f32.gmra.mrb[126].mxu1 %v12397_v51 }
 0xa1f   :  { %8234 = vtanh.f32 %v4848_v0 }
 0xa20   :  { %v4627_v15 = vpop.f32.mrb[72].mxu1 }
 0xa21   :  { %v8231_v11 = vpop.eup %8230  ;;  %v4853_v30 = vadd.f32 %v11165_v56, %v4627_v15  ;;  %v4629_v14 = vpop.f32.mrb[73].mxu1  ;;  %v5139_v20 = vld [vmem:[#allocation2 + $0x78] sm:$0xff] }
 0xa22   :  { %4960 = vst.msk [vmem:[#allocation2 + $0x88] sm:$0xff] %vm60_vm0, %v8231_v11  ;;  %v7709_v58 = vpack.c.bf16 %v5139_v20, %v5138_v17  ;;  %v12401_v20 = vld [vmem:[#allocation83_spill] sm:$0xff] }
 0xa23   :  { %8236 = vtanh.f32 %v4853_v30 }
 0xa24   :  { %v4632_v24 = vpop.f32.mrb[74].mxu1  ;;  %7710 = vmatpush1.bf16.msra.mxu0 %v7709_v58 }
 0xa25   :  { %v8233_v38 = vpop.eup %8232  ;;  %v4858_v19 = vadd.f32 %v11163_v25, %v4632_v24  ;;  %v4634_v31 = vpop.f32.mrb[75].mxu1  ;;  %7711 = vmatprep.subr.bf16.mxu0 %v11923_v59  ;;  %v5140_v23 = vld [vmem:[#allocation2 + $0x80] sm:$0xff] }
 0xa26   :  { %4961 = vst.msk [vmem:[#allocation2 + $0x90] sm:$0xff] %vm60_vm0, %v8233_v38 }
 0xa27   :  { %8238 = vtanh.f32 %v4858_v19 }
 0xa28   :  { %v4637_v56 = vpop.f32.mrb[76].mxu1 }
 0xa29   :  { %v8235_v55 = vpop.eup %8234  ;;  %v4863_v49 = vadd.f32 %v12398_v29, %v4637_v56  ;;  %v4639_v39 = vpop.f32.mrb[77].mxu1  ;;  %v5141_v34 = vld [vmem:[#allocation2 + $0x88] sm:$0xff] }
 0xa2a   :  { %4962 = vst.msk [vmem:[#allocation2 + $0x98] sm:$0xff] %vm60_vm0, %v8235_v55  ;;  %v7712_v7 = vpack.c.bf16 %v5141_v34, %v5140_v23 }
 0xa2b   :  { %8240 = vtanh.f32 %v4863_v49 }
 0xa2c   :  { %v4642_v2 = vpop.f32.mrb[78].mxu1  ;;  %7713 = vmatpush1.bf16.msra.mxu0 %v7712_v7 }
 0xa2d   :  { %v8237_v25 = vpop.eup %8236  ;;  %v4868_v22 = vadd.f32 %v12399_v37, %v4642_v2  ;;  %v4644_v57 = vpop.f32.mrb[79].mxu1  ;;  %7714 = vmatprep.subr.bf16.mxu0 %v11923_v59  ;;  %v5142_v47 = vld [vmem:[#allocation2 + $0x90] sm:$0xff]  ;;  %v12402_v2 = vld [vmem:[#allocation91_spill] sm:$0xff]  ;;  %v12404_v37 = vld [vmem:[#allocation88_spill] sm:$0xff] }
 0xa2e   :  { %4963 = vst.msk [vmem:[#allocation2 + $0xa0] sm:$0xff] %vm60_vm0, %v8237_v25  ;;  %v12403_v25 = vld [vmem:[#allocation33_spill] sm:$0xff]  ;;  %v12406_v57 = vld [vmem:[#allocation90_spill] sm:$0xff] }
 0xa2f   :  { %8242 = vtanh.f32 %v4868_v22  ;;  %v12405_v22 = vld [vmem:[#allocation87_spill] sm:$0xff] }
 0xa30   :  { %v4647_v26 = vpop.f32.mrb[80].mxu1 }
 0xa31   :  { %v8239_v27 = vpop.eup %8238  ;;  %v4873_v62 = vadd.f32 %v11173_v50, %v4647_v26  ;;  %v4649_v16 = vpop.f32.mrb[81].mxu1  ;;  %v5143_v9 = vld [vmem:[#allocation2 + $0x98] sm:$0xff]  ;;  %v12407_v26 = vld [vmem:[#allocation89_spill] sm:$0xff] }
 0xa32   :  { %4964 = vst.msk [vmem:[#allocation2 + $0xa8] sm:$0xff] %vm60_vm0, %v8239_v27  ;;  %v7715_v48 = vpack.c.bf16 %v5143_v9, %v5142_v47  ;;  %v12408_v27 = vld [vmem:[#allocation34_spill] sm:$0xff]  ;;  %v12411_v16 = vld [vmem:[#allocation93_spill] sm:$0xff]  ;;  %v12412_v47 = vld [vmem:[#allocation96_spill] sm:$0xff] }
 0xa33   :  { %8244 = vtanh.f32 %v4873_v62  ;;  %v12409_v62 = vld [vmem:[#allocation35_spill] sm:$0xff] }
 0xa34   :  { %v4652_v10 = vpop.f32.mrb[82].mxu1  ;;  %7716 = vmatpush1.bf16.msra.mxu0 %v7715_v48  ;;  %v12413_v9 = vld [vmem:[#allocation95_spill] sm:$0xff]  ;;  %v12414_v48 = vld [vmem:[#allocation36_spill] sm:$0xff] }
 0xa35   :  { %v8241_v4 = vpop.eup %8240  ;;  %v4878_v52 = vadd.f32 %v11171_v18, %v4652_v10  ;;  %v4654_v3 = vpop.f32.mrb[83].mxu1  ;;  %7717 = vmatprep.subr.bf16.mxu0 %v11923_v59  ;;  %v5144_v1 = vld [vmem:[#allocation2 + $0xa0] sm:$0xff]  ;;  %v12415_v10 = vld [vmem:[#allocation37_spill] sm:$0xff] }
 0xa36   :  { %4965 = vst.msk [vmem:[#allocation2 + $0xb0] sm:$0xff] %vm60_vm0, %v8241_v4  ;;  %v12416_v4 = vld [vmem:[#allocation38_spill] sm:$0xff]  ;;  %v12418_v3 = vld [vmem:[#allocation40_spill] sm:$0xff] }
 0xa37   :  { %8246 = vtanh.f32 %v4878_v52  ;;  %v12417_v52 = vld [vmem:[#allocation39_spill] sm:$0xff] }
 0xa38   :  { %v4657_v8 = vpop.f32.mrb[84].mxu1 }
 0xa39   :  { %v8243_v50 = vpop.eup %8242  ;;  %v4883_v12 = vadd.f32 %v11179_v60, %v4657_v8  ;;  %v4659_v44 = vpop.f32.mrb[85].mxu1  ;;  %v5145_v21 = vld [vmem:[#allocation2 + $0xa8] sm:$0xff]  ;;  %v12419_v8 = vld [vmem:[#allocation41_spill] sm:$0xff] }
 0xa3a   :  { %4966 = vst.msk [vmem:[#allocation2 + $0xb8] sm:$0xff] %vm60_vm0, %v8243_v50  ;;  %v7718_v33 = vpack.c.bf16 %v5145_v21, %v5144_v1  ;;  %v12420_v50 = vld [vmem:[#allocation42_spill] sm:$0xff]  ;;  %v12422_v44 = vld [vmem:[#allocation44_spill] sm:$0xff]  ;;  %v12423_v1 = vld [vmem:[#allocation45_spill] sm:$0xff] }
 0xa3b   :  { %8248 = vtanh.f32 %v4883_v12  ;;  %v12421_v12 = vld [vmem:[#allocation43_spill] sm:$0xff]  ;;  %v12424_v21 = vld [vmem:[#allocation46_spill] sm:$0xff] }
 0xa3c   :  { %v4662_v41 = vpop.f32.mrb[86].mxu1  ;;  %7719 = vmatpush1.bf16.msra.mxu0 %v7718_v33  ;;  %v12425_v33 = vld [vmem:[#allocation47_spill] sm:$0xff] }
 0xa3d   :  { %v8245_v18 = vpop.eup %8244  ;;  %v4888_v45 = vadd.f32 %v11177_v46, %v4662_v41  ;;  %v4664_v28 = vpop.f32.mrb[87].mxu1  ;;  %7720 = vmatprep.subr.bf16.mxu0 %v11923_v59  ;;  %v5146_v5 = vld [vmem:[#allocation2 + $0xb0] sm:$0xff]  ;;  %v12426_v41 = vld [vmem:[#allocation48_spill] sm:$0xff] }
 0xa3e   :  { %4967 = vst.msk [vmem:[#allocation2 + $0xc0] sm:$0xff] %vm60_vm0, %v8245_v18  ;;  %v12427_v18 = vld [vmem:[#allocation49_spill] sm:$0xff]  ;;  %v12429_v28 = vld [vmem:[#allocation51_spill] sm:$0xff] }
 0xa3f   :  { %8250 = vtanh.f32 %v4888_v45  ;;  %v12428_v45 = vld [vmem:[#allocation50_spill] sm:$0xff] }
 0xa40   :  { %v4667_v54 = vpop.f32.mrb[88].mxu1 }
 0xa41   :  { %v8247_v60 = vpop.eup %8246  ;;  %v4893_v36 = vadd.f32 %v11185_v61, %v4667_v54  ;;  %v4669_v42 = vpop.f32.mrb[89].mxu1  ;;  %v5147_v13 = vld [vmem:[#allocation2 + $0xb8] sm:$0xff]  ;;  %v12430_v54 = vld [vmem:[#allocation52_spill] sm:$0xff] }
 0xa42   :  { %4968 = vst.msk [vmem:[#allocation2 + $0xc8] sm:$0xff] %vm60_vm0, %v8247_v60  ;;  %v7721_v43 = vpack.c.bf16 %v5147_v13, %v5146_v5  ;;  %v12431_v60 = vld [vmem:[#allocation53_spill] sm:$0xff]  ;;  %v12433_v42 = vld [vmem:[#allocation55_spill] sm:$0xff]  ;;  %v12434_v5 = vld [vmem:[#allocation56_spill] sm:$0xff] }
 0xa43   :  { %8252 = vtanh.f32 %v4893_v36  ;;  %v12432_v36 = vld [vmem:[#allocation54_spill] sm:$0xff]  ;;  %v12435_v13 = vld [vmem:[#allocation57_spill] sm:$0xff] }
 0xa44   :  { %v4672_v63 = vpop.f32.mrb[90].mxu1  ;;  %7722 = vmatpush1.bf16.msra.mxu0 %v7721_v43  ;;  %v12436_v43 = vld [vmem:[#allocation58_spill] sm:$0xff] }
 0xa45   :  { %v8249_v46 = vpop.eup %8248  ;;  %v4898_v6 = vadd.f32 %v11183_v35, %v4672_v63  ;;  %v4674_v0 = vpop.f32.mrb[91].mxu1  ;;  %7723 = vmatprep.subr.bf16.mxu0 %v11923_v59  ;;  %v5148_v11 = vld [vmem:[#allocation2 + $0xc0] sm:$0xff] }
 0xa46   :  { %4969 = vst.msk [vmem:[#allocation2 + $0xd0] sm:$0xff] %vm60_vm0, %v8249_v46  ;;  %v12437_v63 = vld [vmem:[#allocation59_spill] sm:$0xff]  ;;  %v12438_v46 = vld [vmem:[#allocation60_spill] sm:$0xff]  ;;  %v12440_v0 = vld [vmem:[#allocation62_spill] sm:$0xff] }
 0xa47   :  { %8254 = vtanh.f32 %v4898_v6  ;;  %v12439_v6 = vld [vmem:[#allocation61_spill] sm:$0xff] }
 0xa48   :  { %v4677_v53 = vpop.f32.mrb[92].mxu1 }
 0xa49   :  { %v8251_v61 = vpop.eup %8250  ;;  %v4903_v40 = vadd.f32 %v12400_v32, %v4677_v53  ;;  %v4679_v15 = vpop.f32.mrb[93].mxu1  ;;  %v5149_v30 = vld [vmem:[#allocation2 + $0xc8] sm:$0xff]  ;;  %v12441_v53 = vld [vmem:[#allocation63_spill] sm:$0xff]  ;;  %v12443_v32 = vld [vmem:[#allocation65_spill] sm:$0xff] }
 0xa4a   :  { %4970 = vst.msk [vmem:[#allocation2 + $0xd8] sm:$0xff] %vm60_vm0, %v8251_v61  ;;  %v7724_v14 = vpack.c.bf16 %v5149_v30, %v5148_v11  ;;  %v12442_v61 = vld [vmem:[#allocation64_spill] sm:$0xff]  ;;  %v12444_v11 = vld [vmem:[#allocation66_spill] sm:$0xff]  ;;  %v12445_v30 = vld [vmem:[#allocation67_spill] sm:$0xff] }
 0xa4b   :  { %8256 = vtanh.f32 %v4903_v40 }
 0xa4c   :  { %v4682_v17 = vpop.f32.mrb[94].mxu1  ;;  %7725 = vmatpush1.bf16.msra.mxu0 %v7724_v14  ;;  %v12446_v14 = vld [vmem:[#allocation68_spill] sm:$0xff] }
 0xa4d   :  { %v8253_v35 = vpop.eup %8252  ;;  %v4908_v58 = vadd.f32 %v12401_v20, %v4682_v17  ;;  %v4684_v51 = vpop.f32.mrb[95].mxu1  ;;  %7726 = vmatprep.subr.bf16.mxu0 %v11923_v59  ;;  %v5150_v38 = vld [vmem:[#allocation2 + $0xd0] sm:$0xff] }
 0xa4e   :  { %4971 = vst.msk [vmem:[#allocation2 + $0xe0] sm:$0xff] %vm60_vm0, %v8253_v35  ;;  %v12447_v17 = vld [vmem:[#allocation69_spill] sm:$0xff]  ;;  %v12449_v51 = vld [vmem:[#allocation71_spill] sm:$0xff] }
 0xa4f   :  { %8258 = vtanh.f32 %v4908_v58  ;;  %v12448_v58 = vld [vmem:[#allocation70_spill] sm:$0xff] }
 0xa51   :  { %v8255_v24 = vpop.eup %8254  ;;  %v5151_v19 = vld [vmem:[#allocation2 + $0xd8] sm:$0xff] }
 0xa52   :  { %4972 = vst.msk [vmem:[#allocation2 + $0xe8] sm:$0xff] %vm60_vm0, %v8255_v24  ;;  %v7727_v31 = vpack.c.bf16 %v5151_v19, %v5150_v38  ;;  %v12450_v24 = vld [vmem:[#allocation72_spill] sm:$0xff]  ;;  %v12451_v38 = vld [vmem:[#allocation73_spill] sm:$0xff] }
 0xa54   :  { %7728 = vmatpush1.bf16.msra.mxu0 %v7727_v31 }
 0xa55   :  { %v8257_v56 = vpop.eup %8256  ;;  %7729 = vmatprep.subr.bf16.mxu0 %v11923_v59  ;;  %v5152_v29 = vld [vmem:[#allocation2 + $0xe0] sm:$0xff] }
 0xa56   :  { %4973 = vst.msk [vmem:[#allocation2 + $0xf0] sm:$0xff] %vm60_vm0, %v8257_v56  ;;  %v12452_v56 = vld [vmem:[#allocation74_spill] sm:$0xff] }
 0xa59   :  { %v8259_v55 = vpop.eup %8258  ;;  %v5153_v49 = vld [vmem:[#allocation2 + $0xe8] sm:$0xff] }
 0xa5a   :  { %4974 = vst.msk [vmem:[#allocation2 + $0xf8] sm:$0xff] %vm60_vm0, %v8259_v55  ;;  %v7730_v39 = vpack.c.bf16 %v5153_v49, %v5152_v29  ;;  %v12453_v55 = vld [vmem:[#allocation75_spill] sm:$0xff]  ;;  %v12454_v29 = vld [vmem:[#allocation76_spill] sm:$0xff]  ;;  %v12455_v49 = vld [vmem:[#allocation77_spill] sm:$0xff] }
 0xa5c   :  { %7731 = vmatpush1.bf16.msra.mxu0 %v7730_v39 }
 0xa5d   :  { %7732 = vmatprep.subr.bf16.mxu0 %v11923_v59  ;;  %v5154_v23 = vld [vmem:[#allocation2 + $0xf0] sm:$0xff]  ;;  %v12410_v59 = vld [vmem:[#allocation94_spill] sm:$0xff] }
 0xa61   :  { %v5155_v34 = vld [vmem:[#allocation2 + $0xf8] sm:$0xff] }
 0xa62   :  { %v7733_v7 = vpack.c.bf16 %v5155_v34, %v5154_v23  ;;  %v12456_v34 = vld [vmem:[#allocation78_spill] sm:$0xff] }
 0xa64   :  { %7734 = vmatpush1.bf16.msra.mxu0 %v7733_v7  ;;  %v12457_v7 = vld [vmem:[#allocation79_spill] sm:$0xff] }
 0xa67   :  { %5221 = vmatmul.mubr.f32.vlgmr.msra.gmra.mrb[64].mxu0 %v12402_v2  ;;  %v12458_v2 = vld [vmem:[#allocation80_spill] sm:$0xff] }
 0xa68   :  { %5225 = vmatprep.mubr.f32.mxu0 %v12403_v25  ;;  %v12459_v25 = vld [vmem:[#allocation81_spill] sm:$0xff] }
 0xa6b   :  { %5226 = vmatmul.mubr.f32.gmra.mrb[66].mxu0 %v12404_v37 }
 0xa6c   :  { %5230 = vmatprep.mubr.f32.mxu0 %v12405_v22 }
 0xa6f   :  { %5231 = vmatmul.mubr.f32.gmra.mrb[68].mxu0 %v12406_v57  ;;  %v12460_v57 = vld [vmem:[#allocation19_spill] sm:$0xff] }
 0xa70   :  { %5235 = vmatprep.mubr.f32.mxu0 %v12407_v26  ;;  %v12461_v26 = vld [vmem:[#allocation20_spill] sm:$0xff] }
 0xa73   :  { %5236 = vmatmul.mubr.f32.gmra.mrb[70].mxu0 %v12408_v27  ;;  %v12462_v27 = vld [vmem:[#allocation21_spill] sm:$0xff] }
 0xa74   :  { %5240 = vmatprep.mubr.f32.mxu0 %v12409_v62  ;;  %v12463_v62 = vld [vmem:[#allocation22_spill] sm:$0xff] }
 0xa77   :  { %5241 = vmatmul.mubr.f32.gmra.mrb[72].mxu0 %v12410_v59 }
 0xa78   :  { %5245 = vmatprep.mubr.f32.mxu0 %v12411_v16 }
 0xa7b   :  { %5246 = vmatmul.mubr.f32.gmra.mrb[74].mxu0 %v12412_v47  ;;  %v12464_v47 = vld [vmem:[#allocation23_spill] sm:$0xff] }
 0xa7c   :  { %5250 = vmatprep.mubr.f32.mxu0 %v12413_v9 }
 0xa7f   :  { %5251 = vmatmul.mubr.f32.gmra.mrb[76].mxu0 %v12414_v48 }
 0xa80   :  { %5255 = vmatprep.mubr.f32.mxu0 %v12415_v10 }
 0xa83   :  { %5256 = vmatmul.mubr.f32.gmra.mrb[78].mxu0 %v12416_v4 }
 0xa84   :  { %5260 = vmatprep.mubr.f32.mxu0 %v12417_v52 }
 0xa87   :  { %5261 = vmatmul.mubr.f32.gmra.mrb[80].mxu0 %v12418_v3 }
 0xa88   :  { %5265 = vmatprep.mubr.f32.mxu0 %v12419_v8 }
 0xa8b   :  { %5266 = vmatmul.mubr.f32.gmra.mrb[82].mxu0 %v12420_v50 }
 0xa8c   :  { %5270 = vmatprep.mubr.f32.mxu0 %v12421_v12 }
 0xa8f   :  { %5271 = vmatmul.mubr.f32.gmra.mrb[84].mxu0 %v12422_v44 }
 0xa90   :  { %5275 = vmatprep.mubr.f32.mxu0 %v12423_v1 }
 0xa93   :  { %5276 = vmatmul.mubr.f32.gmra.mrb[86].mxu0 %v12424_v21 }
 0xa94   :  { %5280 = vmatprep.mubr.f32.mxu0 %v12425_v33 }
 0xa97   :  { %5281 = vmatmul.mubr.f32.gmra.mrb[88].mxu0 %v12426_v41 }
 0xa98   :  { %5285 = vmatprep.mubr.f32.mxu0 %v12427_v18 }
 0xa9b   :  { %5286 = vmatmul.mubr.f32.gmra.mrb[90].mxu0 %v12428_v45 }
 0xa9c   :  { %5290 = vmatprep.mubr.f32.mxu0 %v12429_v28 }
 0xa9f   :  { %5291 = vmatmul.mubr.f32.gmra.mrb[92].mxu0 %v12430_v54 }
 0xaa0   :  { %5295 = vmatprep.mubr.f32.mxu0 %v12431_v60 }
 0xaa3   :  { %5296 = vmatmul.mubr.f32.gmra.mrb[94].mxu0 %v12432_v36 }
 0xaa4   :  { %5300 = vmatprep.mubr.f32.mxu0 %v12433_v42 }
 0xaa6   :  { %v7081_v40 = vpop.f32.mrb[96].mxu1 }
 0xaa7   :  { %5301 = vmatmul.mubr.f32.gmra.mrb[96].mxu0 %v12434_v5  ;;  %v5447_v15 = vpop.f32.mrb[97].mxu1 }
 0xaa8   :  { %5305 = vmatprep.mubr.f32.mxu0 %v12435_v13 }
 0xaab   :  { %5306 = vmatmul.mubr.f32.gmra.mrb[98].mxu0 %v12436_v43 }
 0xaac   :  { %5310 = vmatprep.mubr.f32.mxu0 %v12437_v63 }
 0xaaf   :  { %5311 = vmatmul.mubr.f32.gmra.mrb[100].mxu0 %v12438_v46  ;;  %v7084_v35 = vpop.f32.mrb[98].mxu1 }
 0xab0   :  { %5315 = vmatprep.mubr.f32.mxu0 %v12439_v6  ;;  %v5457_v20 = vpop.f32.mrb[99].mxu1 }
 0xab3   :  { %5316 = vmatmul.mubr.f32.gmra.mrb[102].mxu0 %v12440_v0 }
 0xab4   :  { %5320 = vmatprep.mubr.f32.mxu0 %v12441_v53 }
 0xab7   :  { %5321 = vmatmul.mubr.f32.gmra.mrb[104].mxu0 %v12442_v61 }
 0xab8   :  { %5325 = vmatprep.mubr.f32.mxu0 %v12443_v32 }
 0xabb   :  { %5326 = vmatmul.mubr.f32.gmra.mrb[106].mxu0 %v12444_v11 }
 0xabc   :  { %5330 = vmatprep.mubr.f32.mxu0 %v12445_v30 }
 0xabd   :  { %v11374_v19 = vpop.f32.mrb[100].mxu1 }
 0xabe   :  { %v5467_v31 = vpop.f32.mrb[101].mxu1 }
 0xabf   :  { %5331 = vmatmul.mubr.f32.gmra.mrb[108].mxu0 %v12446_v14 }
 0xac0   :  { %5335 = vmatprep.mubr.f32.mxu0 %v12447_v17 }
 0xac1   :  { %v11380_v39 = vpop.f32.mrb[102].mxu1 }
 0xac2   :  { %v11382_v23 = vpop.f32.mrb[103].mxu1 }
 0xac3   :  { %5336 = vmatmul.mubr.f32.gmra.mrb[110].mxu0 %v12448_v58 }
 0xac4   :  { %5340 = vmatprep.mubr.f32.mxu0 %v12449_v51 }
 0xac5   :  { %v11388_v37 = vpop.f32.mrb[104].mxu1 }
 0xac6   :  { %v11390_v22 = vpop.f32.mrb[105].mxu1 }
 0xac7   :  { %5341 = vmatmul.mubr.f32.gmra.mrb[112].mxu0 %v12450_v24 }
 0xac8   :  { %5345 = vmatprep.mubr.f32.mxu0 %v12451_v38 }
 0xac9   :  { %v11396_v59 = vpop.f32.mrb[106].mxu1 }
 0xaca   :  { %v11398_v16 = vpop.f32.mrb[107].mxu1 }
 0xacb   :  { %5346 = vmatmul.mubr.f32.gmra.mrb[114].mxu0 %v12452_v56 }
 0xacc   :  { %5350 = vmatprep.mubr.f32.mxu0 %v12453_v55 }
 0xacd   :  { %v11401_v9 = vpop.f32.mrb[108].mxu1 }
 0xace   :  { %v11403_v48 = vpop.f32.mrb[109].mxu1 }
 0xacf   :  { %5351 = vmatmul.mubr.f32.gmra.mrb[116].mxu0 %v12454_v29 }
 0xad0   :  { %5355 = vmatprep.mubr.f32.mxu0 %v12455_v49  ;;  %v8457_v49 = vmov 0  }
 0xad1   :  { %v11405_v10 = vpop.f32.mrb[110].mxu1  ;;  %7811 = vset.pattern.permute.xlu0 %v8457_v49 }
 0xad2   :  { %v11407_v4 = vpop.f32.mrb[111].mxu1 }
 0xad3   :  { %5356 = vmatmul.mubr.f32.gmra.mrb[118].mxu0 %v12456_v34 }
 0xad4   :  { %5360 = vmatprep.mubr.f32.mxu0 %v12457_v7 }
 0xad5   :  { %v11409_v52 = vpop.f32.mrb[112].mxu1 }
 0xad6   :  { %v11411_v3 = vpop.f32.mrb[113].mxu1 }
 0xad7   :  { %5361 = vmatmul.mubr.f32.gmra.mrb[120].mxu0 %v12458_v2 }
 0xad8   :  { %5365 = vmatprep.mubr.f32.mxu0 %v12459_v25 }
 0xad9   :  { %v11413_v8 = vpop.f32.mrb[114].mxu1 }
 0xada   :  { %v11415_v50 = vpop.f32.mrb[115].mxu1 }
 0xadb   :  { %5366 = vmatmul.mubr.f32.gmra.mrb[122].mxu0 %v12460_v57 }
 0xadc   :  { %5370 = vmatprep.mubr.f32.mxu0 %v12461_v26 }
 0xadd   :  { %v11417_v12 = vpop.f32.mrb[116].mxu1 }
 0xade   :  { %v11419_v44 = vpop.f32.mrb[117].mxu1 }
 0xadf   :  { %5371 = vmatmul.mubr.f32.gmra.mrb[124].mxu0 %v12462_v27 }
 0xae0   :  { %5375 = vmatprep.mubr.f32.mxu0 %v12463_v62 }
 0xae1   :  { %v11421_v1 = vpop.f32.mrb[118].mxu1 }
 0xae2   :  { %v11423_v21 = vpop.f32.mrb[119].mxu1 }
 0xae3   :  { %5376 = vmatmul.mubr.f32.gmra.mrb[126].mxu0 %v12464_v47 }
 0xae5   :  { %v11425_v33 = vpop.f32.mrb[120].mxu1 }
 0xae6   :  { %v11427_v41 = vpop.f32.mrb[121].mxu1 }
 0xae9   :  { %v11429_v18 = vpop.f32.mrb[122].mxu1 }
 0xaea   :  { %v11431_v45 = vpop.f32.mrb[123].mxu1 }
 0xaed   :  { %v11433_v28 = vpop.f32.mrb[124].mxu1 }
 0xaee   :  { %v11435_v54 = vpop.f32.mrb[125].mxu1 }
 0xaf1   :  { %v11437_v60 = vpop.f32.mrb[126].mxu1 }
 0xaf2   :  { %v11439_v36 = vpop.f32.mrb[127].mxu1 }
 0xb3a   :  { %v5222_v42 = vpop.f32.mrb[64].mxu0 }
 0xb3b   :  { %v5448_v5 = vadd.f32 %v5447_v15, %v5222_v42  ;;  %v5224_v13 = vpop.f32.mrb[65].mxu0 }
 0xb3d   :  { %8260 = vtanh.f32 %v5448_v5 }
 0xb3e   :  { %v5227_v43 = vpop.f32.mrb[66].mxu0 }
 0xb3f   :  { %v5453_v63 = vadd.f32 %v7081_v40, %v5227_v43  ;;  %v5229_v46 = vpop.f32.mrb[67].mxu0 }
 0xb41   :  { %8262 = vtanh.f32 %v5453_v63 }
 0xb42   :  { %v5232_v6 = vpop.f32.mrb[68].mxu0 }
 0xb43   :  { %v5458_v0 = vadd.f32 %v5457_v20, %v5232_v6  ;;  %v5234_v53 = vpop.f32.mrb[69].mxu0 }
 0xb45   :  { %8264 = vtanh.f32 %v5458_v0 }
 0xb46   :  { %v5237_v61 = vpop.f32.mrb[70].mxu0 }
 0xb47   :  { %v8261_v32 = vpop.eup %8260  ;;  %v5463_v11 = vadd.f32 %v7084_v35, %v5237_v61  ;;  %v5239_v30 = vpop.f32.mrb[71].mxu0  ;;  %v5671_v35 = vld [vmem:[%s11525_s3 + $0x8] sm:$0xff] }
 0xb48   :  { %5638 = vst.msk [vmem:[#allocation2] sm:$0xff] %vm60_vm0, %v8261_v32  ;;  %5774 = vmatprep.mubr.f32.mxu1 %v5671_v35 }
 0xb49   :  { %8266 = vtanh.f32 %v5463_v11 }
 0xb4a   :  { %v5242_v14 = vpop.f32.mrb[72].mxu0 }
 0xb4b   :  { %v8263_v17 = vpop.eup %8262  ;;  %v5468_v15 = vadd.f32 %v5467_v31, %v5242_v14  ;;  %v5244_v58 = vpop.f32.mrb[73].mxu0  ;;  %v5704_v31 = vld [vmem:[%s11526_s4] sm:$0xff] }
 0xb4c   :  { %5639 = vst.msk [vmem:[#allocation2 + $0x8] sm:$0xff] %vm60_vm0, %v8263_v17  ;;  %5707 = vperm.xlu0 %7811, %v5704_v31  }
 0xb4d   :  { %8268 = vtanh.f32 %v5468_v15 }
 0xb4e   :  { %v5247_v40 = vpop.f32.mrb[74].mxu0 }
 0xb4f   :  { %v8265_v51 = vpop.eup %8264  ;;  %v5473_v20 = vadd.f32 %v11374_v19, %v5247_v40  ;;  %v5249_v24 = vpop.f32.mrb[75].mxu0 }
 0xb50   :  { %5640 = vst.msk [vmem:[#allocation2 + $0x10] sm:$0xff] %vm60_vm0, %v8265_v51 }
 0xb51   :  { %8270 = vtanh.f32 %v5473_v20 }
 0xb52   :  { %v5252_v38 = vpop.f32.mrb[76].mxu0 }
 0xb53   :  { %v8267_v56 = vpop.eup %8266  ;;  %v5478_v55 = vadd.f32 %v11382_v23, %v5252_v38  ;;  %v5254_v29 = vpop.f32.mrb[77].mxu0 }
 0xb54   :  { %5641 = vst.msk [vmem:[#allocation2 + $0x18] sm:$0xff] %vm60_vm0, %v8267_v56 }
 0xb55   :  { %8272 = vtanh.f32 %v5478_v55 }
 0xb56   :  { %v5257_v19 = vpop.f32.mrb[78].mxu0 }
 0xb57   :  { %v8269_v34 = vpop.eup %8268  ;;  %v5483_v7 = vadd.f32 %v11380_v39, %v5257_v19  ;;  %v5259_v2 = vpop.f32.mrb[79].mxu0 }
 0xb58   :  { %5642 = vst.msk [vmem:[#allocation2 + $0x20] sm:$0xff] %vm60_vm0, %v8269_v34 }
 0xb59   :  { %8274 = vtanh.f32 %v5483_v7 }
 0xb5a   :  { %v5262_v25 = vpop.f32.mrb[80].mxu0 }
 0xb5b   :  { %v8271_v57 = vpop.eup %8270  ;;  %v5488_v26 = vadd.f32 %v11390_v22, %v5262_v25  ;;  %v5264_v23 = vpop.f32.mrb[81].mxu0 }
 0xb5c   :  { %5643 = vst.msk [vmem:[#allocation2 + $0x28] sm:$0xff] %vm60_vm0, %v8271_v57 }
 0xb5d   :  { %8276 = vtanh.f32 %v5488_v26 }
 0xb5e   :  { %v5267_v27 = vpop.f32.mrb[82].mxu0 }
 0xb5f   :  { %v8273_v62 = vpop.eup %8272  ;;  %v5493_v47 = vadd.f32 %v11388_v37, %v5267_v27  ;;  %v5269_v42 = vpop.f32.mrb[83].mxu0 }
 0xb60   :  { %5644 = vst.msk [vmem:[#allocation2 + $0x30] sm:$0xff] %vm60_vm0, %v8273_v62  ;;  %v5673_v62 = vld [vmem:[#allocation2 + $0x8] sm:$0xff] }
 0xb61   :  { %8278 = vtanh.f32 %v5493_v47 }
 0xb62   :  { %v5272_v39 = vpop.f32.mrb[84].mxu0 }
 0xb63   :  { %v8275_v5 = vpop.eup %8274  ;;  %v5498_v13 = vadd.f32 %v11398_v16, %v5272_v39  ;;  %v5274_v43 = vpop.f32.mrb[85].mxu0 }
 0xb64   :  { %5645 = vst.msk [vmem:[#allocation2 + $0x38] sm:$0xff] %vm60_vm0, %v8275_v5  ;;  %v5672_v43 = vld [vmem:[#allocation2] sm:$0xff] }
 0xb65   :  { %8280 = vtanh.f32 %v5498_v13 }
 0xb66   :  { %v5277_v22 = vpop.f32.mrb[86].mxu0 }
 0xb67   :  { %v8277_v63 = vpop.eup %8276  ;;  %v5503_v46 = vadd.f32 %v11396_v59, %v5277_v22  ;;  %v5279_v6 = vpop.f32.mrb[87].mxu0  ;;  %v7769_v22 = vpack.c.bf16 %v5673_v62, %v5672_v43 }
 0xb68   :  { %5646 = vst.msk [vmem:[#allocation2 + $0x40] sm:$0xff] %vm60_vm0, %v8277_v63 }
 0xb69   :  { %8282 = vtanh.f32 %v5503_v46 }
 0xb6a   :  { %v5282_v37 = vpop.f32.mrb[88].mxu0 }
 0xb6b   :  { %v8279_v0 = vpop.eup %8278  ;;  %v5508_v53 = vadd.f32 %v11403_v48, %v5282_v37  ;;  %v5284_v61 = vpop.f32.mrb[89].mxu0  ;;  %v5675_v37 = vld [vmem:[#allocation2 + $0x18] sm:$0xff] }
 0xb6c   :  { %5647 = vst.msk [vmem:[#allocation2 + $0x48] sm:$0xff] %vm60_vm0, %v8279_v0 }
 0xb6d   :  { %8284 = vtanh.f32 %v5508_v53 }
 0xb6e   :  { %v5287_v16 = vpop.f32.mrb[90].mxu0 }
 0xb6f   :  { %v8281_v32 = vpop.eup %8280  ;;  %v5513_v11 = vadd.f32 %v11401_v9, %v5287_v16  ;;  %v5289_v30 = vpop.f32.mrb[91].mxu0 }
 0xb70   :  { %5648 = vst.msk [vmem:[#allocation2 + $0x50] sm:$0xff] %vm60_vm0, %v8281_v32  ;;  %v5674_v30 = vld [vmem:[#allocation2 + $0x10] sm:$0xff] }
 0xb71   :  { %8286 = vtanh.f32 %v5513_v11 }
 0xb72   :  { %v5292_v59 = vpop.f32.mrb[92].mxu0 }
 0xb73   :  { %v8283_v14 = vpop.eup %8282  ;;  %v5518_v17 = vadd.f32 %v11407_v4, %v5292_v59  ;;  %v5294_v15 = vpop.f32.mrb[93].mxu0  ;;  %v7773_v59 = vpack.c.bf16 %v5675_v37, %v5674_v30 }
 0xb74   :  { %5649 = vst.msk [vmem:[#allocation2 + $0x58] sm:$0xff] %vm60_vm0, %v8283_v14 }
 0xb75   :  { %8288 = vtanh.f32 %v5518_v17 }
 0xb76   :  { %v5297_v48 = vpop.f32.mrb[94].mxu0 }
 0xb77   :  { %v8285_v58 = vpop.eup %8284  ;;  %v5523_v40 = vadd.f32 %v11405_v10, %v5297_v48  ;;  %v5299_v51 = vpop.f32.mrb[95].mxu0  ;;  %v5677_v48 = vld [vmem:[#allocation2 + $0x28] sm:$0xff] }
 0xb78   :  { %5650 = vst.msk [vmem:[#allocation2 + $0x60] sm:$0xff] %vm60_vm0, %v8285_v58 }
 0xb79   :  { %8290 = vtanh.f32 %v5523_v40 }
 0xb7a   :  { %v5302_v9 = vpop.f32.mrb[96].mxu0 }
 0xb7b   :  { %v8287_v20 = vpop.eup %8286  ;;  %v5528_v24 = vadd.f32 %v11411_v3, %v5302_v9  ;;  %v5304_v35 = vpop.f32.mrb[97].mxu0 }
 0xb7c   :  { %5651 = vst.msk [vmem:[#allocation2 + $0x68] sm:$0xff] %vm60_vm0, %v8287_v20  ;;  %v5676_v35 = vld [vmem:[#allocation2 + $0x20] sm:$0xff] }
 0xb7d   :  { %8292 = vtanh.f32 %v5528_v24 }
 0xb7e   :  { %v5307_v4 = vpop.f32.mrb[98].mxu0 }
 0xb7f   :  { %v8289_v38 = vpop.eup %8288  ;;  %v5533_v31 = vadd.f32 %v11409_v52, %v5307_v4  ;;  %v5309_v56 = vpop.f32.mrb[99].mxu0  ;;  %v7777_v4 = vpack.c.bf16 %v5677_v48, %v5676_v35 }
 0xb80   :  { %5652 = vst.msk [vmem:[#allocation2 + $0x70] sm:$0xff] %vm60_vm0, %v8289_v38 }
 0xb81   :  { %8294 = vtanh.f32 %v5533_v31 }
 0xb82   :  { %v5312_v10 = vpop.f32.mrb[100].mxu0 }
 0xb83   :  { %v8291_v55 = vpop.eup %8290  ;;  %v5538_v29 = vadd.f32 %v11415_v50, %v5312_v10  ;;  %v5314_v49 = vpop.f32.mrb[101].mxu0  ;;  %v5679_v10 = vld [vmem:[#allocation2 + $0x38] sm:$0xff] }
 0xb84   :  { %5653 = vst.msk [vmem:[#allocation2 + $0x78] sm:$0xff] %vm60_vm0, %v8291_v55 }
 0xb85   :  { %8296 = vtanh.f32 %v5538_v29 }
 0xb86   :  { %v5317_v3 = vpop.f32.mrb[102].mxu0 }
 0xb87   :  { %v8293_v19 = vpop.eup %8292  ;;  %v5543_v34 = vadd.f32 %v11413_v8, %v5317_v3  ;;  %v5319_v7 = vpop.f32.mrb[103].mxu0 }
 0xb88   :  { %5654 = vst.msk [vmem:[#allocation2 + $0x80] sm:$0xff] %vm60_vm0, %v8293_v19  ;;  %v5678_v7 = vld [vmem:[#allocation2 + $0x30] sm:$0xff] }
 0xb89   :  { %8298 = vtanh.f32 %v5543_v34 }
 0xb8a   :  { %v5322_v52 = vpop.f32.mrb[104].mxu0 }
 0xb8b   :  { %v8295_v2 = vpop.eup %8294  ;;  %v5548_v25 = vadd.f32 %v11419_v44, %v5322_v52  ;;  %v5324_v57 = vpop.f32.mrb[105].mxu0  ;;  %v7781_v52 = vpack.c.bf16 %v5679_v10, %v5678_v7 }
 0xb8c   :  { %5655 = vst.msk [vmem:[#allocation2 + $0x88] sm:$0xff] %vm60_vm0, %v8295_v2 }
 0xb8d   :  { %8300 = vtanh.f32 %v5548_v25 }
 0xb8e   :  { %v5327_v50 = vpop.f32.mrb[106].mxu0 }
 0xb8f   :  { %v8297_v26 = vpop.eup %8296  ;;  %v5553_v23 = vadd.f32 %v11417_v12, %v5327_v50  ;;  %v5329_v27 = vpop.f32.mrb[107].mxu0  ;;  %v5688_v5 = vld [vmem:[#allocation2 + $0x80] sm:$0xff]  ;;  %v5681_v50 = vld [vmem:[#allocation2 + $0x48] sm:$0xff] }
 0xb90   :  { %5656 = vst.msk [vmem:[#allocation2 + $0x90] sm:$0xff] %vm60_vm0, %v8297_v26 }
 0xb91   :  { %8302 = vtanh.f32 %v5553_v23 }
 0xb92   :  { %v5332_v8 = vpop.f32.mrb[108].mxu0 }
 0xb93   :  { %v8299_v47 = vpop.eup %8298  ;;  %v5558_v42 = vadd.f32 %v11423_v21, %v5332_v8  ;;  %v5334_v39 = vpop.f32.mrb[109].mxu0  ;;  %v5689_v44 = vld [vmem:[#allocation2 + $0x88] sm:$0xff] }
 0xb94   :  { %5657 = vst.msk [vmem:[#allocation2 + $0x98] sm:$0xff] %vm60_vm0, %v8299_v47  ;;  %v7767_v13 = vpack.c.bf16 %v5689_v44, %v5688_v5 }
 0xb95   :  { %8304 = vtanh.f32 %v5558_v42  ;;  %v5680_v42 = vld [vmem:[#allocation2 + $0x40] sm:$0xff] }
 0xb96   :  { %v5337_v63 = vpop.f32.mrb[110].mxu0  ;;  %7768 = vmatprep.subr.bf16.mxu1 %v7767_v13  ;;  %v7785_v39 = vpack.c.bf16 %v5681_v50, %v5680_v42 }
 0xb97   :  { %v8301_v12 = vpop.eup %8300  ;;  %v5563_v46 = vadd.f32 %v11421_v1, %v5337_v63  ;;  %v5339_v6 = vpop.f32.mrb[111].mxu0  ;;  %7770 = vmatpush3.bf16.msra.mxu1 %v7769_v22  ;;  %v5690_v16 = vld [vmem:[#allocation2 + $0x90] sm:$0xff] }
 0xb98   :  { %5658 = vst.msk [vmem:[#allocation2 + $0xa0] sm:$0xff] %vm60_vm0, %v8301_v12 }
 0xb99   :  { %8306 = vtanh.f32 %v5563_v46  ;;  %v5682_v46 = vld [vmem:[#allocation2 + $0x50] sm:$0xff] }
 0xb9a   :  { %v5342_v21 = vpop.f32.mrb[112].mxu0 }
 0xb9b   :  { %v8303_v0 = vpop.eup %8302  ;;  %v5568_v53 = vadd.f32 %v11427_v41, %v5342_v21  ;;  %v5344_v61 = vpop.f32.mrb[113].mxu0  ;;  %v5691_v32 = vld [vmem:[#allocation2 + $0x98] sm:$0xff] }
 0xb9c   :  { %5659 = vst.msk [vmem:[#allocation2 + $0xa8] sm:$0xff] %vm60_vm0, %v8303_v0  ;;  %v7771_v11 = vpack.c.bf16 %v5691_v32, %v5690_v16  ;;  %v5684_v16 = vld [vmem:[#allocation2 + $0x60] sm:$0xff] }
 0xb9d   :  { %8308 = vtanh.f32 %v5568_v53 }
 0xb9e   :  { %v5347_v1 = vpop.f32.mrb[114].mxu0  ;;  %7772 = vmatprep.subr.bf16.mxu1 %v7771_v11  ;;  %v5687_v11 = vld [vmem:[#allocation2 + $0x78] sm:$0xff] }
 0xb9f   :  { %v8305_v14 = vpop.eup %8304  ;;  %v5573_v17 = vadd.f32 %v11425_v33, %v5347_v1  ;;  %v5349_v15 = vpop.f32.mrb[115].mxu0  ;;  %7774 = vmatpush3.bf16.msra.mxu1 %v7773_v59  ;;  %v5692_v9 = vld [vmem:[#allocation2 + $0xa0] sm:$0xff] }
 0xba0   :  { %5660 = vst.msk [vmem:[#allocation2 + $0xb0] sm:$0xff] %vm60_vm0, %v8305_v14  ;;  %v5686_v14 = vld [vmem:[#allocation2 + $0x70] sm:$0xff]  ;;  %v5670_v15 = vld [vmem:[%s11525_s3] sm:$0xff] }
 0xba1   :  { %8310 = vtanh.f32 %v5573_v17  ;;  %v7797_v17 = vpack.c.bf16 %v5687_v11, %v5686_v14 }
 0xba2   :  { %v5352_v41 = vpop.f32.mrb[116].mxu0 }
 0xba3   :  { %v8307_v58 = vpop.eup %8306  ;;  %v5578_v40 = vadd.f32 %v11431_v45, %v5352_v41  ;;  %v5354_v51 = vpop.f32.mrb[117].mxu0  ;;  %v5693_v20 = vld [vmem:[#allocation2 + $0xa8] sm:$0xff] }
 0xba4   :  { %5661 = vst.msk [vmem:[#allocation2 + $0xb8] sm:$0xff] %vm60_vm0, %v8307_v58  ;;  %v7775_v24 = vpack.c.bf16 %v5693_v20, %v5692_v9 }
 0xba5   :  { %8312 = vtanh.f32 %v5578_v40 }
 0xba6   :  { %v5357_v33 = vpop.f32.mrb[118].mxu0  ;;  %7776 = vmatprep.subr.bf16.mxu1 %v7775_v24 }
 0xba7   :  { %v8309_v38 = vpop.eup %8308  ;;  %v5583_v31 = vadd.f32 %v11429_v18, %v5357_v33  ;;  %v5359_v56 = vpop.f32.mrb[119].mxu0  ;;  %7778 = vmatpush3.bf16.msra.mxu1 %v7777_v4  ;;  %v5694_v3 = vld [vmem:[#allocation2 + $0xb0] sm:$0xff] }
 0xba8   :  { %5662 = vst.msk [vmem:[#allocation2 + $0xc0] sm:$0xff] %vm60_vm0, %v8309_v38 }
 0xba9   :  { %8314 = vtanh.f32 %v5583_v31 }
 0xbaa   :  { %v5362_v45 = vpop.f32.mrb[120].mxu0 }
 0xbab   :  { %v8311_v55 = vpop.eup %8310  ;;  %v5588_v29 = vadd.f32 %v11435_v54, %v5362_v45  ;;  %v5364_v49 = vpop.f32.mrb[121].mxu0  ;;  %v5695_v19 = vld [vmem:[#allocation2 + $0xb8] sm:$0xff] }
 0xbac   :  { %5663 = vst.msk [vmem:[#allocation2 + $0xc8] sm:$0xff] %vm60_vm0, %v8311_v55  ;;  %v7779_v34 = vpack.c.bf16 %v5695_v19, %v5694_v3 }
 0xbad   :  { %8316 = vtanh.f32 %v5588_v29 }
 0xbae   :  { %v5367_v18 = vpop.f32.mrb[122].mxu0  ;;  %7780 = vmatprep.subr.bf16.mxu1 %v7779_v34 }
 0xbaf   :  { %v8313_v2 = vpop.eup %8312  ;;  %v5593_v25 = vadd.f32 %v11433_v28, %v5367_v18  ;;  %v5369_v57 = vpop.f32.mrb[123].mxu0  ;;  %7782 = vmatpush3.bf16.msra.mxu1 %v7781_v52  ;;  %v5696_v8 = vld [vmem:[#allocation2 + $0xc0] sm:$0xff] }
 0xbb0   :  { %5664 = vst.msk [vmem:[#allocation2 + $0xd0] sm:$0xff] %vm60_vm0, %v8313_v2 }
 0xbb1   :  { %8318 = vtanh.f32 %v5593_v25 }
 0xbb2   :  { %v5372_v54 = vpop.f32.mrb[124].mxu0 }
 0xbb3   :  { %v8315_v26 = vpop.eup %8314  ;;  %v5598_v23 = vadd.f32 %v11439_v36, %v5372_v54  ;;  %v5374_v27 = vpop.f32.mrb[125].mxu0  ;;  %v5697_v62 = vld [vmem:[#allocation2 + $0xc8] sm:$0xff]  ;;  %v5683_v36 = vld [vmem:[#allocation2 + $0x58] sm:$0xff] }
 0xbb4   :  { %5665 = vst.msk [vmem:[#allocation2 + $0xd8] sm:$0xff] %vm60_vm0, %v8315_v26  ;;  %v7783_v47 = vpack.c.bf16 %v5697_v62, %v5696_v8  ;;  %v7789_v6 = vpack.c.bf16 %v5683_v36, %v5682_v46 }
 0xbb5   :  { %8320 = vtanh.f32 %v5598_v23 }
 0xbb6   :  { %v5377_v28 = vpop.f32.mrb[126].mxu0  ;;  %7784 = vmatprep.subr.bf16.mxu1 %v7783_v47 }
 0xbb7   :  { %v8317_v5 = vpop.eup %8316  ;;  %v5603_v44 = vadd.f32 %v11437_v60, %v5377_v28  ;;  %v5379_v13 = vpop.f32.mrb[127].mxu0  ;;  %7786 = vmatpush3.bf16.msra.mxu1 %v7785_v39  ;;  %v5698_v22 = vld [vmem:[#allocation2 + $0xd0] sm:$0xff]  ;;  %v5685_v60 = vld [vmem:[#allocation2 + $0x68] sm:$0xff] }
 0xbb8   :  { %5666 = vst.msk [vmem:[#allocation2 + $0xe0] sm:$0xff] %vm60_vm0, %v8317_v5  ;;  %v7793_v32 = vpack.c.bf16 %v5685_v60, %v5684_v16 }
 0xbb9   :  { %8322 = vtanh.f32 %v5603_v44 }
 0xbbb   :  { %v8319_v43 = vpop.eup %8318  ;;  %v5699_v63 = vld [vmem:[#allocation2 + $0xd8] sm:$0xff] }
 0xbbc   :  { %5667 = vst.msk [vmem:[#allocation2 + $0xe8] sm:$0xff] %vm60_vm0, %v8319_v43  ;;  %v7787_v12 = vpack.c.bf16 %v5699_v63, %v5698_v22 }
 0xbbe   :  { %7788 = vmatprep.subr.bf16.mxu1 %v7787_v12 }
 0xbbf   :  { %v8321_v21 = vpop.eup %8320  ;;  %7790 = vmatpush3.bf16.msra.mxu1 %v7789_v6  ;;  %v5700_v0 = vld [vmem:[#allocation2 + $0xe0] sm:$0xff] }
 0xbc0   :  { %5668 = vst.msk [vmem:[#allocation2 + $0xf0] sm:$0xff] %vm60_vm0, %v8321_v21 }
 0xbc3   :  { %v8323_v37 = vpop.eup %8322  ;;  %v5701_v53 = vld [vmem:[#allocation2 + $0xe8] sm:$0xff] }
 0xbc4   :  { %5669 = vst.msk [vmem:[#allocation2 + $0xf8] sm:$0xff] %vm60_vm0, %v8323_v37  ;;  %v7791_v61 = vpack.c.bf16 %v5701_v53, %v5700_v0 }
 0xbc6   :  { %7792 = vmatprep.subr.bf16.mxu1 %v7791_v61 }
 0xbc7   :  { %7794 = vmatpush3.bf16.msra.mxu1 %v7793_v32  ;;  %v5702_v30 = vld [vmem:[#allocation2 + $0xf0] sm:$0xff] }
 0xbcb   :  { %v5703_v59 = vld [vmem:[#allocation2 + $0xf8] sm:$0xff]  ;;  %v5708_v58 = vpop.permute.xlu0 %5707 }
 0xbcc   :  { %v7795_v1 = vpack.c.bf16 %v5703_v59, %v5702_v30 }
 0xbce   :  { %7796 = vmatprep.subr.bf16.mxu1 %v7795_v1 }
 0xbcf   :  { %7798 = vmatpush3.bf16.msra.mxu1 %v7797_v17 }
 0xbd2   :  { %5775 = vmatmul.mubr.f32.vlgmr.msra.gmra.mrb[128].mxu1 %v5670_v15 }
 0xca5   :  { %v6484_v41 = vpop.f32.mrb[128].mxu1 }
 0xca6   :  { %v6485_v48 = vpop.f32.mrb[129].mxu1 }
 0xca7   :  { %v6486_v40 = vadd.f32 %v6485_v48, %v6484_v41 }
 0xca9   :  { %v5777_v51 = vadd.f32 %v6486_v40, %v5708_v58 }
 0xcab   :  { %v6067_v9 = vmul.f32 -1.442695, %v5777_v51 }
 0xcad   :  { %8324 = vpow2.f32 %v6067_v9 }
 0xcb7   :  { %v8325_v20 = vpop.eup %8324 }
 0xcb8   :  { %v5783_v24 = vadd.f32 1.0, %v8325_v20 }
 0xcba   :  { %8326 = vrcp.f32 %v5783_v24 }
 0xcc4   :  { %v8327_v35 = vpop.eup %8326 }
 0xcc5   :  { %5786 = vst.msk [vmem:[#allocation9] sm:$0xff] %vm60_vm0, %v8327_v35 }
 0xcc6   :  { %8430 = shalt.err (!%p8427_p0)
}
 0xcc7   :  { %s8431_s14 = scalar_lea.hbm %s11527_s5, 128 }
 0xcc8   :  { %p8432_p1 = scmp.ne.s32.totalorder %s11527_s5, %s8431_s14  ;;  %p8435_p2 = scmp.lt.u32.totalorder %s8431_s14, %s11527_s5 }
 0xcca   :  { %p8437_p3 = pnand %p8435_p2, %p8432_p1 }
 0xccc   :  { %8440 = shalt.err (!%p8437_p3)
}
 0xccd   :  { %5796 = dma.vmem_to_hbm [thread:$0]  %s5794_s11, 128, %s11527_s5, [#allocation5]  }
 0xcce   :  { %8445 = dma.done.wait [#allocation5], 128  }
 0xccf   :  { %8446 = vsyncadd [#allocation5], 4294967168 }
 0xcd0   :  { %5800 = vsyncpa [#allocation4], 1 }
 0xcd1   :  { %5801 = vsyncpa [#allocation7], 1 }
 0xcd2   :  { %5802 = vsyncpa [#allocation5], 1 }

</bundles_post_ra>
